<compile_context>
chip_gen: v7x
topology: tpu7x:2x2x1
jax: 0.10.0
libtpu: 0.0.40
codegen_flags: <defaults>
</compile_context>

<pallas_src>
import jax
import jax.numpy as jnp
from jax.experimental import pallas as pl
from jax.experimental.pallas import tpu as pltpu

SITE = 1
D_MODEL = 768
N_HEAD = 8
HEAD_DIM = D_MODEL // N_HEAD          # 96
DFF = 768
N_LAYERS = 6
LN_EPS = 1e-5
IN_FEAT = 8 * SITE
OUT_PAD = 128                         # lane-dense padded output width (>= SITE)
VEC_ROWS = 16                         # coalesced per-layer vector block (10 used rows)

assert N_HEAD * HEAD_DIM == D_MODEL
assert DFF == D_MODEL                 # vec block assumes all vectors are 768 wide

# Row layout of the coalesced per-layer vector block (VEC_ROWS, D_MODEL):
_R_BQ, _R_BK, _R_BV = 0, 1, 2         # qkv projection biases
_R_BO, _R_B1, _R_B2 = 3, 4, 5         # out-proj / ffn biases
_R_G1, _R_BE1, _R_G2, _R_BE2 = 6, 7, 8, 9   # LayerNorm1/2 weight+bias


# ----------------------------- fused kernel ---------------------------------
def _fused_kernel(x_ref, inw_ref, inb_ref,
                  wqkv_ref, wo_ref, w1_ref, w2_ref, vec_ref,
                  outw_ref, outb_ref,
                  o_ref, act_ref):
    l = pl.program_id(0)

    # ---- input_proj fused into the first grid step ----
    @pl.when(l == 0)
    def _():
        act_ref[...] = (
            jnp.dot(x_ref[...], inw_ref[...], preferred_element_type=jnp.float32)
            + inb_ref[...])

    x = act_ref[...]                                       # (S, D) f32
    vec = vec_ref[...]                                     # (16, D) f32

    # ---- multi-head self-attention (de-padded: per-head 96-wide slices) ----
    qkv = jnp.dot(x.astype(jnp.bfloat16), wqkv_ref[...],
                  preferred_element_type=jnp.float32)      # (S, 3D)
    q = qkv[:, 0:D_MODEL] + vec[_R_BQ:_R_BQ + 1, :]
    k = qkv[:, D_MODEL:2 * D_MODEL] + vec[_R_BK:_R_BK + 1, :]
    v = qkv[:, 2 * D_MODEL:3 * D_MODEL] + vec[_R_BV:_R_BV + 1, :]

    scale = 1.0 / (HEAD_DIM ** 0.5)
    attn = jnp.zeros((x.shape[0], D_MODEL), jnp.float32)
    for h in range(N_HEAD):
        lo = h * HEAD_DIM
        hi = lo + HEAD_DIM
        qh = q[:, lo:hi]                                   # (S, 96) f32
        kh = k[:, lo:hi]
        vh = v[:, lo:hi]
        s = jax.lax.dot_general(qh, kh, (((1,), (1,)), ((), ())),
                                preferred_element_type=jnp.float32) * scale
        s = s - jnp.max(s, axis=-1, keepdims=True)
        p = jnp.exp(s)
        p = p / jnp.sum(p, axis=-1, keepdims=True)         # exact softmax
        ctx = jnp.dot(p, vh, preferred_element_type=jnp.float32)   # (S, 96)
        # fold head h's out-projection rows directly (avoids lane concat)
        attn = attn + jnp.dot(ctx.astype(jnp.bfloat16),
                              wo_ref[pl.ds(lo, HEAD_DIM), :],
                              preferred_element_type=jnp.float32)
    attn = attn + vec[_R_BO:_R_BO + 1, :]

    # ---- residual + LayerNorm1 (post-LN, as in nn.TransformerEncoderLayer) ----
    h1 = x + attn
    mu = jnp.mean(h1, axis=-1, keepdims=True)
    var = jnp.mean((h1 - mu) ** 2, axis=-1, keepdims=True)
    h1 = ((h1 - mu) * jax.lax.rsqrt(var + LN_EPS)
          * vec[_R_G1:_R_G1 + 1, :] + vec[_R_BE1:_R_BE1 + 1, :])

    # ---- feed-forward (ReLU) ----
    ff = (jnp.dot(h1.astype(jnp.bfloat16), w1_ref[...],
                  preferred_element_type=jnp.float32) + vec[_R_B1:_R_B1 + 1, :])
    ff = jnp.maximum(ff, 0.0)
    ff = (jnp.dot(ff.astype(jnp.bfloat16), w2_ref[...],
                  preferred_element_type=jnp.float32) + vec[_R_B2:_R_B2 + 1, :])

    # ---- residual + LayerNorm2 ----
    h2 = h1 + ff
    mu2 = jnp.mean(h2, axis=-1, keepdims=True)
    var2 = jnp.mean((h2 - mu2) ** 2, axis=-1, keepdims=True)
    h2 = ((h2 - mu2) * jax.lax.rsqrt(var2 + LN_EPS)
          * vec[_R_G2:_R_G2 + 1, :] + vec[_R_BE2:_R_BE2 + 1, :])
    act_ref[...] = h2                                      # carried to next layer

    # ---- output_proj fused into the last grid step (lane-padded to 128) ----
    @pl.when(l == pl.num_programs(0) - 1)
    def _():
        o_ref[...] = (jnp.dot(h2, outw_ref[...],
                              preferred_element_type=jnp.float32)
                      + outb_ref[...])


def _fused_forward(packed, x2d):
    S = x2d.shape[0]

    def rep(shape):          # resident block (same index every grid step)
        return pl.BlockSpec(shape, lambda l: (0,) * len(shape))

    def per_layer(shape2d):  # stacked (L, *shape2d): one layer slice per step
        return pl.BlockSpec((None,) + tuple(shape2d), lambda l: (l, 0, 0))

    in_specs = [
        rep((S, IN_FEAT)),                      # x (squeezed input)
        rep((IN_FEAT, D_MODEL)),                # in_w
        rep((1, D_MODEL)),                      # in_b
        per_layer((D_MODEL, 3 * D_MODEL)),      # wqkv  (bf16, de-padded)
        per_layer((D_MODEL, D_MODEL)),          # wo    (bf16)
        per_layer((D_MODEL, DFF)),              # w1    (bf16)
        per_layer((DFF, D_MODEL)),              # w2    (bf16)
        per_layer((VEC_ROWS, D_MODEL)),         # coalesced biases + LN params (f32)
        rep((D_MODEL, OUT_PAD)),                # out_w (padded to 128 lanes)
        rep((1, OUT_PAD)),                      # out_b (padded)
    ]
    out_spec = pl.BlockSpec((S, OUT_PAD), lambda l: (0, 0))

    return pl.pallas_call(
        _fused_kernel,
        out_shape=jax.ShapeDtypeStruct((S, OUT_PAD), jnp.float32),
        grid_spec=pltpu.PrefetchScalarGridSpec(
            num_scalar_prefetch=0,
            grid=(N_LAYERS,),
            in_specs=in_specs,
            out_specs=out_spec,
            scratch_shapes=[pltpu.VMEM((S, D_MODEL), jnp.float32)],
        ),
        compiler_params=pltpu.CompilerParams(
            dimension_semantics=("arbitrary",),     # layers are sequential
            vmem_limit_bytes=48 * 1024 * 1024,      # ~15 MiB used; fits every gen
        ),
    )(
        x2d, packed["in_w"], packed["in_b"],
        packed["wqkv"], packed["wo"], packed["w1"], packed["w2"], packed["vec"],
        packed["out_w"], packed["out_b"],
    )


# ---------------- parameters (deterministic synthetic init) ----------------
def init_params(key):
    def nxt():
        nonlocal key
        key, sub = jax.random.split(key)
        return sub

    scale = 0.02
    params = {
        "in_w": jax.random.normal(nxt(), (IN_FEAT, D_MODEL), jnp.float32) * scale,
        "in_b": jnp.zeros((1, D_MODEL), jnp.float32),
        "out_w": jax.random.normal(nxt(), (D_MODEL, SITE), jnp.float32) * scale,
        "out_b": jnp.zeros((1, SITE), jnp.float32),
        "layers": [],
    }
    for _ in range(N_LAYERS):
        params["layers"].append({
            "wqkv": jax.random.normal(nxt(), (D_MODEL, 3 * D_MODEL), jnp.float32) * scale,
            "bqkv": jnp.zeros((1, 3 * D_MODEL), jnp.float32),
            "wo":   jax.random.normal(nxt(), (D_MODEL, D_MODEL), jnp.float32) * scale,
            "bo":   jnp.zeros((1, D_MODEL), jnp.float32),
            "w1":   jax.random.normal(nxt(), (D_MODEL, DFF), jnp.float32) * scale,
            "b1":   jnp.zeros((1, DFF), jnp.float32),
            "w2":   jax.random.normal(nxt(), (DFF, D_MODEL), jnp.float32) * scale,
            "b2":   jnp.zeros((1, D_MODEL), jnp.float32),
            "g1":   jnp.ones((1, D_MODEL), jnp.float32),
            "be1":  jnp.zeros((1, D_MODEL), jnp.float32),
            "g2":   jnp.ones((1, D_MODEL), jnp.float32),
            "be2":  jnp.zeros((1, D_MODEL), jnp.float32),
        })
    return params


def pack_params(params):
    """One-time layout prep (plain JAX, outside the kernel):
    stack the 6 layers along a leading axis, cast the big streamed weight
    matrices to bf16 (NO head padding), and coalesce the 10 small per-layer
    vectors into one (L, 16, 768) f32 block (rows 10..15 are zero pad)."""
    layers = params["layers"]

    def stack(name):
        return jnp.stack([lp[name] for lp in layers], axis=0)

    vec_blocks = []
    for lp in layers:
        rows = jnp.concatenate([
            lp["bqkv"].reshape(3, D_MODEL),   # rows 0,1,2 : bq, bk, bv
            lp["bo"].reshape(1, D_MODEL),     # row 3
            lp["b1"].reshape(1, DFF),         # row 4
            lp["b2"].reshape(1, D_MODEL),     # row 5
            lp["g1"].reshape(1, D_MODEL),     # row 6
            lp["be1"].reshape(1, D_MODEL),    # row 7
            lp["g2"].reshape(1, D_MODEL),     # row 8
            lp["be2"].reshape(1, D_MODEL),    # row 9
        ], axis=0)
        rows = jnp.pad(rows, ((0, VEC_ROWS - rows.shape[0]), (0, 0)))
        vec_blocks.append(rows)
    vec = jnp.stack(vec_blocks, axis=0).astype(jnp.float32)     # (L, 16, 768)

    packed = {
        "in_w": params["in_w"].astype(jnp.float32),
        "in_b": params["in_b"].astype(jnp.float32),
        "out_w": jnp.pad(params["out_w"],
                         ((0, 0), (0, OUT_PAD - SITE))).astype(jnp.float32),
        "out_b": jnp.pad(params["out_b"],
                         ((0, 0), (0, OUT_PAD - SITE))).astype(jnp.float32),
        "wqkv": stack("wqkv").astype(jnp.bfloat16),   # (L, 768, 2304)
        "wo":   stack("wo").astype(jnp.bfloat16),     # (L, 768, 768)
        "w1":   stack("w1").astype(jnp.bfloat16),     # (L, 768, 768)
        "w2":   stack("w2").astype(jnp.bfloat16),     # (L, 768, 768)
        "vec":  vec,
    }
    return packed


# ---------------- full forward (matches WindPowerModel_.forward) ----------------
@jax.jit
def wind_power_model_forward(packed, station, month, day, hour, minute, x):
    # station / month / day / hour / minute are accepted but unused, exactly as
    # in the PyTorch WindPowerModel_ forward.
    del station, month, day, hour, minute
    b = x.shape[0]
    x2d = x.reshape(b, IN_FEAT).astype(jnp.float32)      # x.squeeze(1)
    out_pad = _fused_forward(packed, x2d)                # fused proj + 6 layers + proj
    return out_pad[:, :SITE]                             # drop lane padding -> (b, site)


# ---------------- pure-JAX f32 reference (for validation) ----------------
def _layer_norm(h, g, b):
    mu = jnp.mean(h, axis=-1, keepdims=True)
    var = jnp.mean((h - mu) ** 2, axis=-1, keepdims=True)
    return (h - mu) * jax.lax.rsqrt(var + LN_EPS) * g + b


def reference_forward(params, x2d):
    x = x2d @ params["in_w"] + params["in_b"]
    S = x.shape[0]
    for lp in params["layers"]:
        qkv = x @ lp["wqkv"] + lp["bqkv"]
        q = qkv[:, 0:D_MODEL].reshape(S, N_HEAD, HEAD_DIM)
        k = qkv[:, D_MODEL:2 * D_MODEL].reshape(S, N_HEAD, HEAD_DIM)
        v = qkv[:, 2 * D_MODEL:3 * D_MODEL].reshape(S, N_HEAD, HEAD_DIM)
        s = jnp.einsum("qhd,khd->hqk", q, k) / (HEAD_DIM ** 0.5)
        p = jax.nn.softmax(s, axis=-1)
        ctx = jnp.einsum("hqk,khd->qhd", p, v).reshape(S, D_MODEL)
        attn = ctx @ lp["wo"] + lp["bo"]
        x = _layer_norm(x + attn, lp["g1"], lp["be1"])
        ff = jnp.maximum(x @ lp["w1"] + lp["b1"], 0.0) @ lp["w2"] + lp["b2"]
        x = _layer_norm(x + ff, lp["g2"], lp["be2"])
    return x @ params["out_w"] + params["out_b"]


if __name__ == "__main__":
    key = jax.random.PRNGKey(0)
    pkey, xkey, skey, tkey = jax.random.split(key, 4)
    params = init_params(pkey)
    packed = pack_params(params)

    b = 8
    x = jax.random.normal(xkey, (b, 1, IN_FEAT), jnp.float32)
    station = jax.random.randint(skey, (b, 1), 0, 10, jnp.int32)
    tk = jax.random.split(tkey, 4)
    month  = jax.random.randint(tk[0], (b, 1), 1, 13, jnp.int32).astype(jnp.float32)
    day    = jax.random.randint(tk[1], (b, 1), 1, 29, jnp.int32).astype(jnp.float32)
    hour   = jax.random.randint(tk[2], (b, 1), 0, 24, jnp.int32).astype(jnp.float32)
    minute = jax.random.randint(tk[3], (b, 1), 0, 60, jnp.int32).astype(jnp.float32)

    out = wind_power_model_forward(packed, station, month, day, hour, minute, x)
    out = jax.block_until_ready(out)
    assert out.shape == (b, SITE), out.shape
    assert bool(jnp.all(jnp.isfinite(out)))

    # validate against the pure-f32 JAX reference (bf16 weight stream tolerance)
    ref = reference_forward(params, x.reshape(b, IN_FEAT))
    max_err = float(jnp.max(jnp.abs(out - ref)))
    assert max_err < 1e-1, f"max abs error vs f32 reference: {max_err}"

    print("KERNEL_OK")
</pallas_src>

<mosaic_0001>
module attributes {stable_mosaic.version = 11 : i64} {
  func.func @_fused_kernel(%arg0: i32, %arg1: memref<8x8xf32, #tpu.memory_space<vmem>>, %arg2: memref<8x768xf32, #tpu.memory_space<vmem>>, %arg3: memref<1x768xf32, #tpu.memory_space<vmem>>, %arg4: memref<1x768x2304xbf16, #tpu.memory_space<vmem>>, %arg5: memref<1x768x768xbf16, #tpu.memory_space<vmem>>, %arg6: memref<1x768x768xbf16, #tpu.memory_space<vmem>>, %arg7: memref<1x768x768xbf16, #tpu.memory_space<vmem>>, %arg8: memref<1x16x768xf32, #tpu.memory_space<vmem>>, %arg9: memref<768x128xf32, #tpu.memory_space<vmem>>, %arg10: memref<1x128xf32, #tpu.memory_space<vmem>>, %arg11: memref<8x128xf32, #tpu.memory_space<vmem>>, %arg12: memref<8x768xf32, #tpu.memory_space<vmem>>) attributes {dimension_semantics = [#tpu.dimension_semantics<arbitrary>], iteration_bounds = array<i64: 6>, scalar_prefetch = 0 : i64, scratch_operands = 1 : i64, tpu.core_type = #tpu.core_type<tc>, window_params = [{pipeline_mode = #tpu.pipeline_mode<synchronous>, transform_indices = @transform_0, window_bounds = array<i64: 8, 8>}, {pipeline_mode = #tpu.pipeline_mode<synchronous>, transform_indices = @transform_1, window_bounds = array<i64: 8, 768>}, {pipeline_mode = #tpu.pipeline_mode<synchronous>, transform_indices = @transform_2, window_bounds = array<i64: 1, 768>}, {transform_indices = @transform_3, window_bounds = array<i64: 1, 768, 2304>}, {transform_indices = @transform_4, window_bounds = array<i64: 1, 768, 768>}, {transform_indices = @transform_5, window_bounds = array<i64: 1, 768, 768>}, {transform_indices = @transform_6, window_bounds = array<i64: 1, 768, 768>}, {transform_indices = @transform_7, window_bounds = array<i64: 1, 16, 768>}, {pipeline_mode = #tpu.pipeline_mode<synchronous>, transform_indices = @transform_8, window_bounds = array<i64: 768, 128>}, {pipeline_mode = #tpu.pipeline_mode<synchronous>, transform_indices = @transform_9, window_bounds = array<i64: 1, 128>}, {pipeline_mode = #tpu.pipeline_mode<synchronous>, transform_indices = @transform_10, window_bounds = array<i64: 8, 128>}]} {
    %c0_i32 = arith.constant 0 : i32
    %0 = arith.cmpi eq, %arg0, %c0_i32 : i32
    %1 = arith.extui %0 : i1 to i32
    %c0_i32_0 = arith.constant 0 : i32
    %2 = arith.cmpi ne, %1, %c0_i32_0 : i32
    scf.if %2 {
      %c0_96 = arith.constant 0 : index
      %c0_97 = arith.constant 0 : index
      %264 = vector.load %arg1[%c0_96, %c0_97] : memref<8x8xf32, #tpu.memory_space<vmem>>, vector<8x8xf32>
      %c0_98 = arith.constant 0 : index
      %c0_99 = arith.constant 0 : index
      %265 = vector.load %arg2[%c0_98, %c0_99] : memref<8x768xf32, #tpu.memory_space<vmem>>, vector<8x768xf32>
      %cst_100 = arith.constant dense<0.000000e+00> : vector<8x768xf32>
      %266 = tpu.matmul %264, %265, %cst_100 {dimension_numbers = #tpu.dot_dimension_numbers<[1], [0], [0], [1], [0, 0, 1, 1], [], []>} : vector<8x8xf32>, vector<8x768xf32>, vector<8x768xf32> -> vector<8x768xf32>
      %c0_101 = arith.constant 0 : index
      %c0_102 = arith.constant 0 : index
      %267 = vector.load %arg3[%c0_101, %c0_102] : memref<1x768xf32, #tpu.memory_space<vmem>>, vector<1x768xf32>
      %268 = vector.broadcast %267 : vector<1x768xf32> to vector<8x768xf32>
      %269 = arith.addf %266, %268 : vector<8x768xf32>
      %c0_103 = arith.constant 0 : index
      %c0_104 = arith.constant 0 : index
      %270 = vector.load %arg12[%c0_103, %c0_104] : memref<8x768xf32, #tpu.memory_space<vmem>>, vector<8x768xf32>
      tpu.vector_store %arg12[%c0_103, %c0_104], %269 {strides = array<i32>} : memref<8x768xf32, #tpu.memory_space<vmem>>, vector<8x768xf32>,
    } else {
    }
    %c0 = arith.constant 0 : index
    %c0_1 = arith.constant 0 : index
    %3 = vector.load %arg12[%c0, %c0_1] : memref<8x768xf32, #tpu.memory_space<vmem>>, vector<8x768xf32>
    %c0_2 = arith.constant 0 : index
    %c0_3 = arith.constant 0 : index
    %c0_4 = arith.constant 0 : index
    %4 = vector.load %arg8[%c0_2, %c0_3, %c0_4] : memref<1x16x768xf32, #tpu.memory_space<vmem>>, vector<1x16x768xf32>
    %5 = vector.shape_cast %4 : vector<1x16x768xf32> to vector<16x768xf32>
    %6 = arith.truncf %3 : vector<8x768xf32> to vector<8x768xbf16>
    %c0_5 = arith.constant 0 : index
    %c0_6 = arith.constant 0 : index
    %c0_7 = arith.constant 0 : index
    %7 = vector.load %arg4[%c0_5, %c0_6, %c0_7] : memref<1x768x2304xbf16, #tpu.memory_space<vmem>>, vector<1x768x2304xbf16>
    %8 = vector.shape_cast %7 : vector<1x768x2304xbf16> to vector<768x2304xbf16>
    %cst = arith.constant dense<0.000000e+00> : vector<8x2304xf32>
    %9 = tpu.matmul %6, %8, %cst {dimension_numbers = #tpu.dot_dimension_numbers<[1], [0], [0], [1], [0, 0, 1, 1], [], []>} : vector<8x768xbf16>, vector<768x2304xbf16>, vector<8x2304xf32> -> vector<8x2304xf32>
    %10 = vector.extract_strided_slice %9 {offsets = [0, 0], sizes = [8, 768], strides = [1, 1]} : vector<8x2304xf32> to vector<8x768xf32>
    %11 = vector.extract_strided_slice %5 {offsets = [0, 0], sizes = [1, 768], strides = [1, 1]} : vector<16x768xf32> to vector<1x768xf32>
    %12 = vector.broadcast %11 : vector<1x768xf32> to vector<8x768xf32>
    %13 = arith.addf %10, %12 : vector<8x768xf32>
    %14 = vector.extract_strided_slice %9 {offsets = [0, 768], sizes = [8, 768], strides = [1, 1]} : vector<8x2304xf32> to vector<8x768xf32>
    %15 = vector.extract_strided_slice %5 {offsets = [1, 0], sizes = [1, 768], strides = [1, 1]} : vector<16x768xf32> to vector<1x768xf32>
    %16 = vector.broadcast %15 : vector<1x768xf32> to vector<8x768xf32>
    %17 = arith.addf %14, %16 : vector<8x768xf32>
    %18 = vector.extract_strided_slice %9 {offsets = [0, 1536], sizes = [8, 768], strides = [1, 1]} : vector<8x2304xf32> to vector<8x768xf32>
    %19 = vector.extract_strided_slice %5 {offsets = [2, 0], sizes = [1, 768], strides = [1, 1]} : vector<16x768xf32> to vector<1x768xf32>
    %20 = vector.broadcast %19 : vector<1x768xf32> to vector<8x768xf32>
    %21 = arith.addf %18, %20 : vector<8x768xf32>
    %cst_8 = arith.constant 0.000000e+00 : f32
    %22 = vector.broadcast %cst_8 : f32 to vector<8x768xf32>
    %23 = vector.extract_strided_slice %13 {offsets = [0, 0], sizes = [8, 96], strides = [1, 1]} : vector<8x768xf32> to vector<8x96xf32>
    %24 = vector.extract_strided_slice %17 {offsets = [0, 0], sizes = [8, 96], strides = [1, 1]} : vector<8x768xf32> to vector<8x96xf32>
    %25 = vector.extract_strided_slice %21 {offsets = [0, 0], sizes = [8, 96], strides = [1, 1]} : vector<8x768xf32> to vector<8x96xf32>
    %cst_9 = arith.constant dense<0.000000e+00> : vector<8x8xf32>
    %26 = tpu.matmul %23, %24, %cst_9 {dimension_numbers = #tpu.dot_dimension_numbers<[1], [1], [0], [0], [0, 0, 1, 0], [], []>} : vector<8x96xf32>, vector<8x96xf32>, vector<8x8xf32> -> vector<8x8xf32>
    %cst_10 = arith.constant 0.102062076 : f32
    %27 = vector.broadcast %cst_10 : f32 to vector<8x8xf32>
    %28 = arith.mulf %26, %27 : vector<8x8xf32>
    %cst_11 = arith.constant dense<0xFF800000> : vector<8xf32>
    %29 = vector.multi_reduction <maximumf>, %28, %cst_11 [1] : vector<8x8xf32> to vector<8xf32>
    %30 = vector.shape_cast %29 : vector<8xf32> to vector<8x1xf32>
    %31 = vector.broadcast %30 : vector<8x1xf32> to vector<8x8xf32>
    %32 = arith.subf %28, %31 : vector<8x8xf32>
    %33 = math.exp %32 : vector<8x8xf32>
    %cst_12 = arith.constant dense<0.000000e+00> : vector<8xf32>
    %34 = vector.multi_reduction <add>, %33, %cst_12 [1] : vector<8x8xf32> to vector<8xf32>
    %35 = vector.shape_cast %34 : vector<8xf32> to vector<8x1xf32>
    %36 = vector.broadcast %35 : vector<8x1xf32> to vector<8x8xf32>
    %37 = arith.divf %33, %36 : vector<8x8xf32>
    %cst_13 = arith.constant dense<0.000000e+00> : vector<8x96xf32>
    %38 = tpu.matmul %37, %25, %cst_13 {dimension_numbers = #tpu.dot_dimension_numbers<[1], [0], [0], [1], [0, 0, 1, 1], [], []>} : vector<8x8xf32>, vector<8x96xf32>, vector<8x96xf32> -> vector<8x96xf32>
    %39 = arith.truncf %38 : vector<8x96xf32> to vector<8x96xbf16>
    %c0_14 = arith.constant 0 : index
    %c0_15 = arith.constant 0 : index
    %c0_16 = arith.constant 0 : index
    %40 = vector.load %arg5[%c0_14, %c0_15, %c0_16] : memref<1x768x768xbf16, #tpu.memory_space<vmem>>, vector<1x96x768xbf16>
    %41 = vector.shape_cast %40 : vector<1x96x768xbf16> to vector<96x768xbf16>
    %cst_17 = arith.constant dense<0.000000e+00> : vector<8x768xf32>
    %42 = tpu.matmul %39, %41, %cst_17 {dimension_numbers = #tpu.dot_dimension_numbers<[1], [0], [0], [1], [0, 0, 1, 1], [], []>} : vector<8x96xbf16>, vector<96x768xbf16>, vector<8x768xf32> -> vector<8x768xf32>
    %43 = arith.addf %22, %42 : vector<8x768xf32>
    %44 = vector.extract_strided_slice %13 {offsets = [0, 96], sizes = [8, 96], strides = [1, 1]} : vector<8x768xf32> to vector<8x96xf32>
    %45 = vector.extract_strided_slice %17 {offsets = [0, 96], sizes = [8, 96], strides = [1, 1]} : vector<8x768xf32> to vector<8x96xf32>
    %46 = vector.extract_strided_slice %21 {offsets = [0, 96], sizes = [8, 96], strides = [1, 1]} : vector<8x768xf32> to vector<8x96xf32>
    %cst_18 = arith.constant dense<0.000000e+00> : vector<8x8xf32>
    %47 = tpu.matmul %44, %45, %cst_18 {dimension_numbers = #tpu.dot_dimension_numbers<[1], [1], [0], [0], [0, 0, 1, 0], [], []>} : vector<8x96xf32>, vector<8x96xf32>, vector<8x8xf32> -> vector<8x8xf32>
    %cst_19 = arith.constant 0.102062076 : f32
    %48 = vector.broadcast %cst_19 : f32 to vector<8x8xf32>
    %49 = arith.mulf %47, %48 : vector<8x8xf32>
    %cst_20 = arith.constant dense<0xFF800000> : vector<8xf32>
    %50 = vector.multi_reduction <maximumf>, %49, %cst_20 [1] : vector<8x8xf32> to vector<8xf32>
    %51 = vector.shape_cast %50 : vector<8xf32> to vector<8x1xf32>
    %52 = vector.broadcast %51 : vector<8x1xf32> to vector<8x8xf32>
    %53 = arith.subf %49, %52 : vector<8x8xf32>
    %54 = math.exp %53 : vector<8x8xf32>
    %cst_21 = arith.constant dense<0.000000e+00> : vector<8xf32>
    %55 = vector.multi_reduction <add>, %54, %cst_21 [1] : vector<8x8xf32> to vector<8xf32>
    %56 = vector.shape_cast %55 : vector<8xf32> to vector<8x1xf32>
    %57 = vector.broadcast %56 : vector<8x1xf32> to vector<8x8xf32>
    %58 = arith.divf %54, %57 : vector<8x8xf32>
    %cst_22 = arith.constant dense<0.000000e+00> : vector<8x96xf32>
    %59 = tpu.matmul %58, %46, %cst_22 {dimension_numbers = #tpu.dot_dimension_numbers<[1], [0], [0], [1], [0, 0, 1, 1], [], []>} : vector<8x8xf32>, vector<8x96xf32>, vector<8x96xf32> -> vector<8x96xf32>
    %60 = arith.truncf %59 : vector<8x96xf32> to vector<8x96xbf16>
    %c0_23 = arith.constant 0 : index
    %c96 = arith.constant 96 : index
    %c0_24 = arith.constant 0 : index
    %61 = vector.load %arg5[%c0_23, %c96, %c0_24] : memref<1x768x768xbf16, #tpu.memory_space<vmem>>, vector<1x96x768xbf16>
    %62 = vector.shape_cast %61 : vector<1x96x768xbf16> to vector<96x768xbf16>
    %cst_25 = arith.constant dense<0.000000e+00> : vector<8x768xf32>
    %63 = tpu.matmul %60, %62, %cst_25 {dimension_numbers = #tpu.dot_dimension_numbers<[1], [0], [0], [1], [0, 0, 1, 1], [], []>} : vector<8x96xbf16>, vector<96x768xbf16>, vector<8x768xf32> -> vector<8x768xf32>
    %64 = arith.addf %43, %63 : vector<8x768xf32>
    %65 = vector.extract_strided_slice %13 {offsets = [0, 192], sizes = [8, 96], strides = [1, 1]} : vector<8x768xf32> to vector<8x96xf32>
    %66 = vector.extract_strided_slice %17 {offsets = [0, 192], sizes = [8, 96], strides = [1, 1]} : vector<8x768xf32> to vector<8x96xf32>
    %67 = vector.extract_strided_slice %21 {offsets = [0, 192], sizes = [8, 96], strides = [1, 1]} : vector<8x768xf32> to vector<8x96xf32>
    %cst_26 = arith.constant dense<0.000000e+00> : vector<8x8xf32>
    %68 = tpu.matmul %65, %66, %cst_26 {dimension_numbers = #tpu.dot_dimension_numbers<[1], [1], [0], [0], [0, 0, 1, 0], [], []>} : vector<8x96xf32>, vector<8x96xf32>, vector<8x8xf32> -> vector<8x8xf32>
    %cst_27 = arith.constant 0.102062076 : f32
    %69 = vector.broadcast %cst_27 : f32 to vector<8x8xf32>
    %70 = arith.mulf %68, %69 : vector<8x8xf32>
    %cst_28 = arith.constant dense<0xFF800000> : vector<8xf32>
    %71 = vector.multi_reduction <maximumf>, %70, %cst_28 [1] : vector<8x8xf32> to vector<8xf32>
    %72 = vector.shape_cast %71 : vector<8xf32> to vector<8x1xf32>
    %73 = vector.broadcast %72 : vector<8x1xf32> to vector<8x8xf32>
    %74 = arith.subf %70, %73 : vector<8x8xf32>
    %75 = math.exp %74 : vector<8x8xf32>
    %cst_29 = arith.constant dense<0.000000e+00> : vector<8xf32>
    %76 = vector.multi_reduction <add>, %75, %cst_29 [1] : vector<8x8xf32> to vector<8xf32>
    %77 = vector.shape_cast %76 : vector<8xf32> to vector<8x1xf32>
    %78 = vector.broadcast %77 : vector<8x1xf32> to vector<8x8xf32>
    %79 = arith.divf %75, %78 : vector<8x8xf32>
    %cst_30 = arith.constant dense<0.000000e+00> : vector<8x96xf32>
    %80 = tpu.matmul %79, %67, %cst_30 {dimension_numbers = #tpu.dot_dimension_numbers<[1], [0], [0], [1], [0, 0, 1, 1], [], []>} : vector<8x8xf32>, vector<8x96xf32>, vector<8x96xf32> -> vector<8x96xf32>
    %81 = arith.truncf %80 : vector<8x96xf32> to vector<8x96xbf16>
    %c0_31 = arith.constant 0 : index
    %c192 = arith.constant 192 : index
    %c0_32 = arith.constant 0 : index
    %82 = vector.load %arg5[%c0_31, %c192, %c0_32] : memref<1x768x768xbf16, #tpu.memory_space<vmem>>, vector<1x96x768xbf16>
    %83 = vector.shape_cast %82 : vector<1x96x768xbf16> to vector<96x768xbf16>
    %cst_33 = arith.constant dense<0.000000e+00> : vector<8x768xf32>
    %84 = tpu.matmul %81, %83, %cst_33 {dimension_numbers = #tpu.dot_dimension_numbers<[1], [0], [0], [1], [0, 0, 1, 1], [], []>} : vector<8x96xbf16>, vector<96x768xbf16>, vector<8x768xf32> -> vector<8x768xf32>
    %85 = arith.addf %64, %84 : vector<8x768xf32>
    %86 = vector.extract_strided_slice %13 {offsets = [0, 288], sizes = [8, 96], strides = [1, 1]} : vector<8x768xf32> to vector<8x96xf32>
    %87 = vector.extract_strided_slice %17 {offsets = [0, 288], sizes = [8, 96], strides = [1, 1]} : vector<8x768xf32> to vector<8x96xf32>
    %88 = vector.extract_strided_slice %21 {offsets = [0, 288], sizes = [8, 96], strides = [1, 1]} : vector<8x768xf32> to vector<8x96xf32>
    %cst_34 = arith.constant dense<0.000000e+00> : vector<8x8xf32>
    %89 = tpu.matmul %86, %87, %cst_34 {dimension_numbers = #tpu.dot_dimension_numbers<[1], [1], [0], [0], [0, 0, 1, 0], [], []>} : vector<8x96xf32>, vector<8x96xf32>, vector<8x8xf32> -> vector<8x8xf32>
    %cst_35 = arith.constant 0.102062076 : f32
    %90 = vector.broadcast %cst_35 : f32 to vector<8x8xf32>
    %91 = arith.mulf %89, %90 : vector<8x8xf32>
    %cst_36 = arith.constant dense<0xFF800000> : vector<8xf32>
    %92 = vector.multi_reduction <maximumf>, %91, %cst_36 [1] : vector<8x8xf32> to vector<8xf32>
    %93 = vector.shape_cast %92 : vector<8xf32> to vector<8x1xf32>
    %94 = vector.broadcast %93 : vector<8x1xf32> to vector<8x8xf32>
    %95 = arith.subf %91, %94 : vector<8x8xf32>
    %96 = math.exp %95 : vector<8x8xf32>
    %cst_37 = arith.constant dense<0.000000e+00> : vector<8xf32>
    %97 = vector.multi_reduction <add>, %96, %cst_37 [1] : vector<8x8xf32> to vector<8xf32>
    %98 = vector.shape_cast %97 : vector<8xf32> to vector<8x1xf32>
    %99 = vector.broadcast %98 : vector<8x1xf32> to vector<8x8xf32>
    %100 = arith.divf %96, %99 : vector<8x8xf32>
    %cst_38 = arith.constant dense<0.000000e+00> : vector<8x96xf32>
    %101 = tpu.matmul %100, %88, %cst_38 {dimension_numbers = #tpu.dot_dimension_numbers<[1], [0], [0], [1], [0, 0, 1, 1], [], []>} : vector<8x8xf32>, vector<8x96xf32>, vector<8x96xf32> -> vector<8x96xf32>
    %102 = arith.truncf %101 : vector<8x96xf32> to vector<8x96xbf16>
    %c0_39 = arith.constant 0 : index
    %c288 = arith.constant 288 : index
    %c0_40 = arith.constant 0 : index
    %103 = vector.load %arg5[%c0_39, %c288, %c0_40] : memref<1x768x768xbf16, #tpu.memory_space<vmem>>, vector<1x96x768xbf16>
    %104 = vector.shape_cast %103 : vector<1x96x768xbf16> to vector<96x768xbf16>
    %cst_41 = arith.constant dense<0.000000e+00> : vector<8x768xf32>
    %105 = tpu.matmul %102, %104, %cst_41 {dimension_numbers = #tpu.dot_dimension_numbers<[1], [0], [0], [1], [0, 0, 1, 1], [], []>} : vector<8x96xbf16>, vector<96x768xbf16>, vector<8x768xf32> -> vector<8x768xf32>
    %106 = arith.addf %85, %105 : vector<8x768xf32>
    %107 = vector.extract_strided_slice %13 {offsets = [0, 384], sizes = [8, 96], strides = [1, 1]} : vector<8x768xf32> to vector<8x96xf32>
    %108 = vector.extract_strided_slice %17 {offsets = [0, 384], sizes = [8, 96], strides = [1, 1]} : vector<8x768xf32> to vector<8x96xf32>
    %109 = vector.extract_strided_slice %21 {offsets = [0, 384], sizes = [8, 96], strides = [1, 1]} : vector<8x768xf32> to vector<8x96xf32>
    %cst_42 = arith.constant dense<0.000000e+00> : vector<8x8xf32>
    %110 = tpu.matmul %107, %108, %cst_42 {dimension_numbers = #tpu.dot_dimension_numbers<[1], [1], [0], [0], [0, 0, 1, 0], [], []>} : vector<8x96xf32>, vector<8x96xf32>, vector<8x8xf32> -> vector<8x8xf32>
    %cst_43 = arith.constant 0.102062076 : f32
    %111 = vector.broadcast %cst_43 : f32 to vector<8x8xf32>
    %112 = arith.mulf %110, %111 : vector<8x8xf32>
    %cst_44 = arith.constant dense<0xFF800000> : vector<8xf32>
    %113 = vector.multi_reduction <maximumf>, %112, %cst_44 [1] : vector<8x8xf32> to vector<8xf32>
    %114 = vector.shape_cast %113 : vector<8xf32> to vector<8x1xf32>
    %115 = vector.broadcast %114 : vector<8x1xf32> to vector<8x8xf32>
    %116 = arith.subf %112, %115 : vector<8x8xf32>
    %117 = math.exp %116 : vector<8x8xf32>
    %cst_45 = arith.constant dense<0.000000e+00> : vector<8xf32>
    %118 = vector.multi_reduction <add>, %117, %cst_45 [1] : vector<8x8xf32> to vector<8xf32>
    %119 = vector.shape_cast %118 : vector<8xf32> to vector<8x1xf32>
    %120 = vector.broadcast %119 : vector<8x1xf32> to vector<8x8xf32>
    %121 = arith.divf %117, %120 : vector<8x8xf32>
    %cst_46 = arith.constant dense<0.000000e+00> : vector<8x96xf32>
    %122 = tpu.matmul %121, %109, %cst_46 {dimension_numbers = #tpu.dot_dimension_numbers<[1], [0], [0], [1], [0, 0, 1, 1], [], []>} : vector<8x8xf32>, vector<8x96xf32>, vector<8x96xf32> -> vector<8x96xf32>
    %123 = arith.truncf %122 : vector<8x96xf32> to vector<8x96xbf16>
    %c0_47 = arith.constant 0 : index
    %c384 = arith.constant 384 : index
    %c0_48 = arith.constant 0 : index
    %124 = vector.load %arg5[%c0_47, %c384, %c0_48] : memref<1x768x768xbf16, #tpu.memory_space<vmem>>, vector<1x96x768xbf16>
    %125 = vector.shape_cast %124 : vector<1x96x768xbf16> to vector<96x768xbf16>
    %cst_49 = arith.constant dense<0.000000e+00> : vector<8x768xf32>
    %126 = tpu.matmul %123, %125, %cst_49 {dimension_numbers = #tpu.dot_dimension_numbers<[1], [0], [0], [1], [0, 0, 1, 1], [], []>} : vector<8x96xbf16>, vector<96x768xbf16>, vector<8x768xf32> -> vector<8x768xf32>
    %127 = arith.addf %106, %126 : vector<8x768xf32>
    %128 = vector.extract_strided_slice %13 {offsets = [0, 480], sizes = [8, 96], strides = [1, 1]} : vector<8x768xf32> to vector<8x96xf32>
    %129 = vector.extract_strided_slice %17 {offsets = [0, 480], sizes = [8, 96], strides = [1, 1]} : vector<8x768xf32> to vector<8x96xf32>
    %130 = vector.extract_strided_slice %21 {offsets = [0, 480], sizes = [8, 96], strides = [1, 1]} : vector<8x768xf32> to vector<8x96xf32>
    %cst_50 = arith.constant dense<0.000000e+00> : vector<8x8xf32>
    %131 = tpu.matmul %128, %129, %cst_50 {dimension_numbers = #tpu.dot_dimension_numbers<[1], [1], [0], [0], [0, 0, 1, 0], [], []>} : vector<8x96xf32>, vector<8x96xf32>, vector<8x8xf32> -> vector<8x8xf32>
    %cst_51 = arith.constant 0.102062076 : f32
    %132 = vector.broadcast %cst_51 : f32 to vector<8x8xf32>
    %133 = arith.mulf %131, %132 : vector<8x8xf32>
    %cst_52 = arith.constant dense<0xFF800000> : vector<8xf32>
    %134 = vector.multi_reduction <maximumf>, %133, %cst_52 [1] : vector<8x8xf32> to vector<8xf32>
    %135 = vector.shape_cast %134 : vector<8xf32> to vector<8x1xf32>
    %136 = vector.broadcast %135 : vector<8x1xf32> to vector<8x8xf32>
    %137 = arith.subf %133, %136 : vector<8x8xf32>
    %138 = math.exp %137 : vector<8x8xf32>
    %cst_53 = arith.constant dense<0.000000e+00> : vector<8xf32>
    %139 = vector.multi_reduction <add>, %138, %cst_53 [1] : vector<8x8xf32> to vector<8xf32>
    %140 = vector.shape_cast %139 : vector<8xf32> to vector<8x1xf32>
    %141 = vector.broadcast %140 : vector<8x1xf32> to vector<8x8xf32>
    %142 = arith.divf %138, %141 : vector<8x8xf32>
    %cst_54 = arith.constant dense<0.000000e+00> : vector<8x96xf32>
    %143 = tpu.matmul %142, %130, %cst_54 {dimension_numbers = #tpu.dot_dimension_numbers<[1], [0], [0], [1], [0, 0, 1, 1], [], []>} : vector<8x8xf32>, vector<8x96xf32>, vector<8x96xf32> -> vector<8x96xf32>
    %144 = arith.truncf %143 : vector<8x96xf32> to vector<8x96xbf16>
    %c0_55 = arith.constant 0 : index
    %c480 = arith.constant 480 : index
    %c0_56 = arith.constant 0 : index
    %145 = vector.load %arg5[%c0_55, %c480, %c0_56] : memref<1x768x768xbf16, #tpu.memory_space<vmem>>, vector<1x96x768xbf16>
    %146 = vector.shape_cast %145 : vector<1x96x768xbf16> to vector<96x768xbf16>
    %cst_57 = arith.constant dense<0.000000e+00> : vector<8x768xf32>
    %147 = tpu.matmul %144, %146, %cst_57 {dimension_numbers = #tpu.dot_dimension_numbers<[1], [0], [0], [1], [0, 0, 1, 1], [], []>} : vector<8x96xbf16>, vector<96x768xbf16>, vector<8x768xf32> -> vector<8x768xf32>
    %148 = arith.addf %127, %147 : vector<8x768xf32>
    %149 = vector.extract_strided_slice %13 {offsets = [0, 576], sizes = [8, 96], strides = [1, 1]} : vector<8x768xf32> to vector<8x96xf32>
    %150 = vector.extract_strided_slice %17 {offsets = [0, 576], sizes = [8, 96], strides = [1, 1]} : vector<8x768xf32> to vector<8x96xf32>
    %151 = vector.extract_strided_slice %21 {offsets = [0, 576], sizes = [8, 96], strides = [1, 1]} : vector<8x768xf32> to vector<8x96xf32>
    %cst_58 = arith.constant dense<0.000000e+00> : vector<8x8xf32>
    %152 = tpu.matmul %149, %150, %cst_58 {dimension_numbers = #tpu.dot_dimension_numbers<[1], [1], [0], [0], [0, 0, 1, 0], [], []>} : vector<8x96xf32>, vector<8x96xf32>, vector<8x8xf32> -> vector<8x8xf32>
    %cst_59 = arith.constant 0.102062076 : f32
    %153 = vector.broadcast %cst_59 : f32 to vector<8x8xf32>
    %154 = arith.mulf %152, %153 : vector<8x8xf32>
    %cst_60 = arith.constant dense<0xFF800000> : vector<8xf32>
    %155 = vector.multi_reduction <maximumf>, %154, %cst_60 [1] : vector<8x8xf32> to vector<8xf32>
    %156 = vector.shape_cast %155 : vector<8xf32> to vector<8x1xf32>
    %157 = vector.broadcast %156 : vector<8x1xf32> to vector<8x8xf32>
    %158 = arith.subf %154, %157 : vector<8x8xf32>
    %159 = math.exp %158 : vector<8x8xf32>
    %cst_61 = arith.constant dense<0.000000e+00> : vector<8xf32>
    %160 = vector.multi_reduction <add>, %159, %cst_61 [1] : vector<8x8xf32> to vector<8xf32>
    %161 = vector.shape_cast %160 : vector<8xf32> to vector<8x1xf32>
    %162 = vector.broadcast %161 : vector<8x1xf32> to vector<8x8xf32>
    %163 = arith.divf %159, %162 : vector<8x8xf32>
    %cst_62 = arith.constant dense<0.000000e+00> : vector<8x96xf32>
    %164 = tpu.matmul %163, %151, %cst_62 {dimension_numbers = #tpu.dot_dimension_numbers<[1], [0], [0], [1], [0, 0, 1, 1], [], []>} : vector<8x8xf32>, vector<8x96xf32>, vector<8x96xf32> -> vector<8x96xf32>
    %165 = arith.truncf %164 : vector<8x96xf32> to vector<8x96xbf16>
    %c0_63 = arith.constant 0 : index
    %c576 = arith.constant 576 : index
    %c0_64 = arith.constant 0 : index
    %166 = vector.load %arg5[%c0_63, %c576, %c0_64] : memref<1x768x768xbf16, #tpu.memory_space<vmem>>, vector<1x96x768xbf16>
    %167 = vector.shape_cast %166 : vector<1x96x768xbf16> to vector<96x768xbf16>
    %cst_65 = arith.constant dense<0.000000e+00> : vector<8x768xf32>
    %168 = tpu.matmul %165, %167, %cst_65 {dimension_numbers = #tpu.dot_dimension_numbers<[1], [0], [0], [1], [0, 0, 1, 1], [], []>} : vector<8x96xbf16>, vector<96x768xbf16>, vector<8x768xf32> -> vector<8x768xf32>
    %169 = arith.addf %148, %168 : vector<8x768xf32>
    %170 = vector.extract_strided_slice %13 {offsets = [0, 672], sizes = [8, 96], strides = [1, 1]} : vector<8x768xf32> to vector<8x96xf32>
    %171 = vector.extract_strided_slice %17 {offsets = [0, 672], sizes = [8, 96], strides = [1, 1]} : vector<8x768xf32> to vector<8x96xf32>
    %172 = vector.extract_strided_slice %21 {offsets = [0, 672], sizes = [8, 96], strides = [1, 1]} : vector<8x768xf32> to vector<8x96xf32>
    %cst_66 = arith.constant dense<0.000000e+00> : vector<8x8xf32>
    %173 = tpu.matmul %170, %171, %cst_66 {dimension_numbers = #tpu.dot_dimension_numbers<[1], [1], [0], [0], [0, 0, 1, 0], [], []>} : vector<8x96xf32>, vector<8x96xf32>, vector<8x8xf32> -> vector<8x8xf32>
    %cst_67 = arith.constant 0.102062076 : f32
    %174 = vector.broadcast %cst_67 : f32 to vector<8x8xf32>
    %175 = arith.mulf %173, %174 : vector<8x8xf32>
    %cst_68 = arith.constant dense<0xFF800000> : vector<8xf32>
    %176 = vector.multi_reduction <maximumf>, %175, %cst_68 [1] : vector<8x8xf32> to vector<8xf32>
    %177 = vector.shape_cast %176 : vector<8xf32> to vector<8x1xf32>
    %178 = vector.broadcast %177 : vector<8x1xf32> to vector<8x8xf32>
    %179 = arith.subf %175, %178 : vector<8x8xf32>
    %180 = math.exp %179 : vector<8x8xf32>
    %cst_69 = arith.constant dense<0.000000e+00> : vector<8xf32>
    %181 = vector.multi_reduction <add>, %180, %cst_69 [1] : vector<8x8xf32> to vector<8xf32>
    %182 = vector.shape_cast %181 : vector<8xf32> to vector<8x1xf32>
    %183 = vector.broadcast %182 : vector<8x1xf32> to vector<8x8xf32>
    %184 = arith.divf %180, %183 : vector<8x8xf32>
    %cst_70 = arith.constant dense<0.000000e+00> : vector<8x96xf32>
    %185 = tpu.matmul %184, %172, %cst_70 {dimension_numbers = #tpu.dot_dimension_numbers<[1], [0], [0], [1], [0, 0, 1, 1], [], []>} : vector<8x8xf32>, vector<8x96xf32>, vector<8x96xf32> -> vector<8x96xf32>
    %186 = arith.truncf %185 : vector<8x96xf32> to vector<8x96xbf16>
    %c0_71 = arith.constant 0 : index
    %c672 = arith.constant 672 : index
    %c0_72 = arith.constant 0 : index
    %187 = vector.load %arg5[%c0_71, %c672, %c0_72] : memref<1x768x768xbf16, #tpu.memory_space<vmem>>, vector<1x96x768xbf16>
    %188 = vector.shape_cast %187 : vector<1x96x768xbf16> to vector<96x768xbf16>
    %cst_73 = arith.constant dense<0.000000e+00> : vector<8x768xf32>
    %189 = tpu.matmul %186, %188, %cst_73 {dimension_numbers = #tpu.dot_dimension_numbers<[1], [0], [0], [1], [0, 0, 1, 1], [], []>} : vector<8x96xbf16>, vector<96x768xbf16>, vector<8x768xf32> -> vector<8x768xf32>
    %190 = arith.addf %169, %189 : vector<8x768xf32>
    %191 = vector.extract_strided_slice %5 {offsets = [3, 0], sizes = [1, 768], strides = [1, 1]} : vector<16x768xf32> to vector<1x768xf32>
    %192 = vector.broadcast %191 : vector<1x768xf32> to vector<8x768xf32>
    %193 = arith.addf %190, %192 : vector<8x768xf32>
    %194 = arith.addf %3, %193 : vector<8x768xf32>
    %cst_74 = arith.constant dense<0.000000e+00> : vector<8xf32>
    %195 = vector.multi_reduction <add>, %194, %cst_74 [1] : vector<8x768xf32> to vector<8xf32>
    %196 = vector.shape_cast %195 : vector<8xf32> to vector<8x1xf32>
    %cst_75 = arith.constant 7.680000e+02 : f32
    %197 = vector.broadcast %cst_75 : f32 to vector<8x1xf32>
    %198 = arith.divf %196, %197 : vector<8x1xf32>
    %199 = vector.broadcast %198 : vector<8x1xf32> to vector<8x768xf32>
    %200 = arith.subf %194, %199 : vector<8x768xf32>
    %201 = arith.mulf %200, %200 : vector<8x768xf32>
    %cst_76 = arith.constant dense<0.000000e+00> : vector<8xf32>
    %202 = vector.multi_reduction <add>, %201, %cst_76 [1] : vector<8x768xf32> to vector<8xf32>
    %203 = vector.shape_cast %202 : vector<8xf32> to vector<8x1xf32>
    %cst_77 = arith.constant 7.680000e+02 : f32
    %204 = vector.broadcast %cst_77 : f32 to vector<8x1xf32>
    %205 = arith.divf %203, %204 : vector<8x1xf32>
    %206 = vector.broadcast %198 : vector<8x1xf32> to vector<8x768xf32>
    %207 = arith.subf %194, %206 : vector<8x768xf32>
    %cst_78 = arith.constant 9.99999974E-6 : f32
    %208 = vector.broadcast %cst_78 : f32 to vector<8x1xf32>
    %209 = arith.addf %205, %208 : vector<8x1xf32>
    %210 = math.rsqrt %209 : vector<8x1xf32>
    %211 = vector.broadcast %210 : vector<8x1xf32> to vector<8x768xf32>
    %212 = arith.mulf %207, %211 : vector<8x768xf32>
    %213 = vector.extract_strided_slice %5 {offsets = [6, 0], sizes = [1, 768], strides = [1, 1]} : vector<16x768xf32> to vector<1x768xf32>
    %214 = vector.broadcast %213 : vector<1x768xf32> to vector<8x768xf32>
    %215 = arith.mulf %212, %214 : vector<8x768xf32>
    %216 = vector.extract_strided_slice %5 {offsets = [7, 0], sizes = [1, 768], strides = [1, 1]} : vector<16x768xf32> to vector<1x768xf32>
    %217 = vector.broadcast %216 : vector<1x768xf32> to vector<8x768xf32>
    %218 = arith.addf %215, %217 : vector<8x768xf32>
    %219 = arith.truncf %218 : vector<8x768xf32> to vector<8x768xbf16>
    %c0_79 = arith.constant 0 : index
    %c0_80 = arith.constant 0 : index
    %c0_81 = arith.constant 0 : index
    %220 = vector.load %arg6[%c0_79, %c0_80, %c0_81] : memref<1x768x768xbf16, #tpu.memory_space<vmem>>, vector<1x768x768xbf16>
    %221 = vector.shape_cast %220 : vector<1x768x768xbf16> to vector<768x768xbf16>
    %cst_82 = arith.constant dense<0.000000e+00> : vector<8x768xf32>
    %222 = tpu.matmul %219, %221, %cst_82 {dimension_numbers = #tpu.dot_dimension_numbers<[1], [0], [0], [1], [0, 0, 1, 1], [], []>} : vector<8x768xbf16>, vector<768x768xbf16>, vector<8x768xf32> -> vector<8x768xf32>
    %223 = vector.extract_strided_slice %5 {offsets = [4, 0], sizes = [1, 768], strides = [1, 1]} : vector<16x768xf32> to vector<1x768xf32>
    %224 = vector.broadcast %223 : vector<1x768xf32> to vector<8x768xf32>
    %225 = arith.addf %222, %224 : vector<8x768xf32>
    %cst_83 = arith.constant 0.000000e+00 : f32
    %226 = vector.broadcast %cst_83 : f32 to vector<8x768xf32>
    %227 = arith.maximumf %225, %226 : vector<8x768xf32>
    %228 = arith.truncf %227 : vector<8x768xf32> to vector<8x768xbf16>
    %c0_84 = arith.constant 0 : index
    %c0_85 = arith.constant 0 : index
    %c0_86 = arith.constant 0 : index
    %229 = vector.load %arg7[%c0_84, %c0_85, %c0_86] : memref<1x768x768xbf16, #tpu.memory_space<vmem>>, vector<1x768x768xbf16>
    %230 = vector.shape_cast %229 : vector<1x768x768xbf16> to vector<768x768xbf16>
    %cst_87 = arith.constant dense<0.000000e+00> : vector<8x768xf32>
    %231 = tpu.matmul %228, %230, %cst_87 {dimension_numbers = #tpu.dot_dimension_numbers<[1], [0], [0], [1], [0, 0, 1, 1], [], []>} : vector<8x768xbf16>, vector<768x768xbf16>, vector<8x768xf32> -> vector<8x768xf32>
    %232 = vector.extract_strided_slice %5 {offsets = [5, 0], sizes = [1, 768], strides = [1, 1]} : vector<16x768xf32> to vector<1x768xf32>
    %233 = vector.broadcast %232 : vector<1x768xf32> to vector<8x768xf32>
    %234 = arith.addf %231, %233 : vector<8x768xf32>
    %235 = arith.addf %218, %234 : vector<8x768xf32>
    %cst_88 = arith.constant dense<0.000000e+00> : vector<8xf32>
    %236 = vector.multi_reduction <add>, %235, %cst_88 [1] : vector<8x768xf32> to vector<8xf32>
    %237 = vector.shape_cast %236 : vector<8xf32> to vector<8x1xf32>
    %cst_89 = arith.constant 7.680000e+02 : f32
    %238 = vector.broadcast %cst_89 : f32 to vector<8x1xf32>
    %239 = arith.divf %237, %238 : vector<8x1xf32>
    %240 = vector.broadcast %239 : vector<8x1xf32> to vector<8x768xf32>
    %241 = arith.subf %235, %240 : vector<8x768xf32>
    %242 = arith.mulf %241, %241 : vector<8x768xf32>
    %cst_90 = arith.constant dense<0.000000e+00> : vector<8xf32>
    %243 = vector.multi_reduction <add>, %242, %cst_90 [1] : vector<8x768xf32> to vector<8xf32>
    %244 = vector.shape_cast %243 : vector<8xf32> to vector<8x1xf32>
    %cst_91 = arith.constant 7.680000e+02 : f32
    %245 = vector.broadcast %cst_91 : f32 to vector<8x1xf32>
    %246 = arith.divf %244, %245 : vector<8x1xf32>
    %247 = vector.broadcast %239 : vector<8x1xf32> to vector<8x768xf32>
    %248 = arith.subf %235, %247 : vector<8x768xf32>
    %cst_92 = arith.constant 9.99999974E-6 : f32
    %249 = vector.broadcast %cst_92 : f32 to vector<8x1xf32>
    %250 = arith.addf %246, %249 : vector<8x1xf32>
    %251 = math.rsqrt %250 : vector<8x1xf32>
    %252 = vector.broadcast %251 : vector<8x1xf32> to vector<8x768xf32>
    %253 = arith.mulf %248, %252 : vector<8x768xf32>
    %254 = vector.extract_strided_slice %5 {offsets = [8, 0], sizes = [1, 768], strides = [1, 1]} : vector<16x768xf32> to vector<1x768xf32>
    %255 = vector.broadcast %254 : vector<1x768xf32> to vector<8x768xf32>
    %256 = arith.mulf %253, %255 : vector<8x768xf32>
    %257 = vector.extract_strided_slice %5 {offsets = [9, 0], sizes = [1, 768], strides = [1, 1]} : vector<16x768xf32> to vector<1x768xf32>
    %258 = vector.broadcast %257 : vector<1x768xf32> to vector<8x768xf32>
    %259 = arith.addf %256, %258 : vector<8x768xf32>
    %c0_93 = arith.constant 0 : index
    %c0_94 = arith.constant 0 : index
    %260 = vector.load %arg12[%c0_93, %c0_94] : memref<8x768xf32, #tpu.memory_space<vmem>>, vector<8x768xf32>
    tpu.vector_store %arg12[%c0_93, %c0_94], %259 {strides = array<i32>} : memref<8x768xf32, #tpu.memory_space<vmem>>, vector<8x768xf32>,
    %c5_i32 = arith.constant 5 : i32
    %261 = arith.cmpi eq, %arg0, %c5_i32 : i32
    %262 = arith.extui %261 : i1 to i32
    %c0_i32_95 = arith.constant 0 : i32
    %263 = arith.cmpi ne, %262, %c0_i32_95 : i32
    scf.if %263 {
      %c0_96 = arith.constant 0 : index
      %c0_97 = arith.constant 0 : index
      %264 = vector.load %arg9[%c0_96, %c0_97] : memref<768x128xf32, #tpu.memory_space<vmem>>, vector<768x128xf32>
      %cst_98 = arith.constant dense<0.000000e+00> : vector<8x128xf32>
      %265 = tpu.matmul %259, %264, %cst_98 {dimension_numbers = #tpu.dot_dimension_numbers<[1], [0], [0], [1], [0, 0, 1, 1], [], []>} : vector<8x768xf32>, vector<768x128xf32>, vector<8x128xf32> -> vector<8x128xf32>
      %c0_99 = arith.constant 0 : index
      %c0_100 = arith.constant 0 : index
      %266 = vector.load %arg10[%c0_99, %c0_100] : memref<1x128xf32, #tpu.memory_space<vmem>>, vector<1x128xf32>
      %267 = vector.broadcast %266 : vector<1x128xf32> to vector<8x128xf32>
      %268 = arith.addf %265, %267 : vector<8x128xf32>
      %c0_101 = arith.constant 0 : index
      %c0_102 = arith.constant 0 : index
      %269 = vector.load %arg11[%c0_101, %c0_102] : memref<8x128xf32, #tpu.memory_space<vmem>>, vector<8x128xf32>
      tpu.vector_store %arg11[%c0_101, %c0_102], %268 {strides = array<i32>} : memref<8x128xf32, #tpu.memory_space<vmem>>, vector<8x128xf32>,
    } else {
    }
    return
  }
  func.func @transform_0(%arg0: i32) -> (i32, i32) {
    %c0_i32 = arith.constant 0 : i32
    %c0_i32_0 = arith.constant 0 : i32
    %c0_i32_1 = arith.constant 0 : i32
    return %c0_i32, %c0_i32_0 : i32, i32
  }
  func.func @transform_1(%arg0: i32) -> (i32, i32) {
    %c0_i32 = arith.constant 0 : i32
    %c0_i32_0 = arith.constant 0 : i32
    %c0_i32_1 = arith.constant 0 : i32
    return %c0_i32, %c0_i32_0 : i32, i32
  }
  func.func @transform_2(%arg0: i32) -> (i32, i32) {
    %c0_i32 = arith.constant 0 : i32
    %c0_i32_0 = arith.constant 0 : i32
    %c0_i32_1 = arith.constant 0 : i32
    return %c0_i32, %c0_i32_0 : i32, i32
  }
  func.func @transform_3(%arg0: i32) -> (i32, i32, i32) {
    %c0_i32 = arith.constant 0 : i32
    %c0_i32_0 = arith.constant 0 : i32
    %c0_i32_1 = arith.constant 0 : i32
    return %arg0, %c0_i32, %c0_i32_0 : i32, i32, i32
  }
  func.func @transform_4(%arg0: i32) -> (i32, i32, i32) {
    %c0_i32 = arith.constant 0 : i32
    %c0_i32_0 = arith.constant 0 : i32
    %c0_i32_1 = arith.constant 0 : i32
    return %arg0, %c0_i32, %c0_i32_0 : i32, i32, i32
  }
  func.func @transform_5(%arg0: i32) -> (i32, i32, i32) {
    %c0_i32 = arith.constant 0 : i32
    %c0_i32_0 = arith.constant 0 : i32
    %c0_i32_1 = arith.constant 0 : i32
    return %arg0, %c0_i32, %c0_i32_0 : i32, i32, i32
  }
  func.func @transform_6(%arg0: i32) -> (i32, i32, i32) {
    %c0_i32 = arith.constant 0 : i32
    %c0_i32_0 = arith.constant 0 : i32
    %c0_i32_1 = arith.constant 0 : i32
    return %arg0, %c0_i32, %c0_i32_0 : i32, i32, i32
  }
  func.func @transform_7(%arg0: i32) -> (i32, i32, i32) {
    %c0_i32 = arith.constant 0 : i32
    %c0_i32_0 = arith.constant 0 : i32
    %c0_i32_1 = arith.constant 0 : i32
    return %arg0, %c0_i32, %c0_i32_0 : i32, i32, i32
  }
  func.func @transform_8(%arg0: i32) -> (i32, i32) {
    %c0_i32 = arith.constant 0 : i32
    %c0_i32_0 = arith.constant 0 : i32
    %c0_i32_1 = arith.constant 0 : i32
    return %c0_i32, %c0_i32_0 : i32, i32
  }
  func.func @transform_9(%arg0: i32) -> (i32, i32) {
    %c0_i32 = arith.constant 0 : i32
    %c0_i32_0 = arith.constant 0 : i32
    %c0_i32_1 = arith.constant 0 : i32
    return %c0_i32, %c0_i32_0 : i32, i32
  }
  func.func @transform_10(%arg0: i32) -> (i32, i32) {
    %c0_i32 = arith.constant 0 : i32
    %c0_i32_0 = arith.constant 0 : i32
    %c0_i32_1 = arith.constant 0 : i32
    return %c0_i32, %c0_i32_0 : i32, i32
  }
}

</mosaic_0001>

<bundles_post_ra>
// kernel: wind_power_model_forward.1
= control target key start
LH: loop header
LB: loop body
LE: loop exit
PB: predicated region body
PF: predicated region fallthrough
CT: control target
= control target key end

     0   :  { %s24766_s0 = inlined_call_operand.hbm [shape: f32[8,8], index: 0, kind: input, shape index: {}]   ;;  %s24767_s1 = inlined_call_operand.hbm [shape: f32[8,768], index: 1, kind: input, shape index: {}]   ;;  %s24768_s2 = inlined_call_operand.hbm [shape: f32[1,768], index: 2, kind: input, shape index: {}]   ;;  %s24769_s3 = inlined_call_operand.hbm [shape: bf16[6,768,2304], index: 3, kind: input, shape index: {}]   ;;  %s24770_s4 = inlined_call_operand.hbm [shape: bf16[6,768,768], index: 4, kind: input, shape index: {}]   ;;  %s24771_s5 = inlined_call_operand.hbm [shape: bf16[6,768,768], index: 5, kind: input, shape index: {}]   ;;  %s24772_s6 = inlined_call_operand.hbm [shape: bf16[6,768,768], index: 6, kind: input, shape index: {}]   ;;  %s24773_s7 = inlined_call_operand.hbm [shape: f32[6,16,768], index: 7, kind: input, shape index: {}]   ;;  %s24774_s8 = inlined_call_operand.hbm [shape: f32[768,128], index: 8, kind: input, shape index: {}]   ;;  %s24775_s9 = inlined_call_operand.hbm [shape: f32[1,128], index: 9, kind: input, shape index: {}]   ;;  %s24776_s10 = inlined_call_operand.vmem [shape: f32[8,128], index: 10, kind: output, shape index: {}]  }
   0x1   :  { %24797 = sst [smem:[#allocation31_spill]] %s24767_s1 }
   0x2   :  { %24798 = sst [smem:[#allocation32_spill]] %s24769_s3 }
   0x3   :  { %24799 = sst [smem:[#allocation33_spill]] %s24771_s5 }
   0x4   :  { %24800 = sst [smem:[#allocation34_spill]] %s24774_s8 }
   0x5   :  { %24801 = sst [smem:[#allocation35_spill]] %s24776_s10 }
   0x6   :  { %15 = vsyncpa [#allocation4], 0 }
   0x7   :  { %16 = vsyncpa [#allocation6], 0 }
   0x8   :  { %17 = vsyncpa [#allocation9], 0 }
   0x9   :  { %19 = vsyncpa [#allocation9 + $0x1], 0 }
   0xa   :  { %20 = vsyncpa [#allocation12], 0 }
   0xb   :  { %22 = vsyncpa [#allocation12 + $0x1], 0 }
   0xc   :  { %23 = vsyncpa [#allocation15], 0 }
   0xd   :  { %25 = vsyncpa [#allocation15 + $0x1], 0 }
   0xe   :  { %26 = vsyncpa [#allocation18], 0  ;;  %s21765_s13 = smov 0   ;;  %s21767_s14 = smov 0  }
   0xf   :  { %s21769_s15 = smov 0   ;;  %s21771_s16 = smov 0  }
  0x10 LB: > { %24802 = sst [smem:[#allocation26_spill]] %s21675_s14  ;;  %s21685_s17 = smov [#allocation5]   ;;  %s21683_s16 = sphi %s21771_s16, %s24840_s16   ;;  %s21679_s15 = sphi %s21769_s15, %s24843_s15   ;;  %s21675_s14 = sphi %s21767_s14, %s24842_s14   ;;  %s21671_s13 = sphi %s21765_s13, %s24841_s13  }
  0x11   : > { %24803 = sst [smem:[#allocation27_spill]] %s21679_s15  ;;  %s317_s18 = sshll.u32 %s21685_s17, 4  ;;  %s318_s18 = int_to_ptr.vmem [resolvable:$true] %s317_s18 }
  0x12   : > { %s21786_s19 = sadd.s32 4294967295, %s21683_s16   ;;  %p16403_p0 = scmp.ge.s32.totalorder %s21683_s16, 1 }
  0x13   : > { %p24777_p1 = scmp.eq.s32.totalorder %s21786_s19, 0  ;;  %p293_p2 = scmp.lt.s32.totalorder %s21683_s16, 7 }
  0x14   : > { %s21686_s21 = smov [#allocation16]   ;;  %s24806_s1 = sld [smem:[#allocation31_spill]] }
  0x15   : > { %p21792_p4 = pnand %p16403_p0, %p293_p2  ;;  %s338_s22 = sshll.u32 %s21686_s21, 4  ;;  %s21798_s22 = int_to_ptr.vmem [resolvable:$true] %s338_s22 }
  0x17   : > { %s24804_s20 = scalar_select %p21792_p4, 1, 0 }
  0x18   : > { %p18591_p5 = pneg %p21792_p4 }
  0x1a   : > { %p21802_p6 = pnand %p18591_p5, %p24777_p1  ;;  %s21335_s26 = scalar_lea.hbm %s24806_s1, 768 }
  0x1b   : > { %p21336_p7 = scmp.ne.s32.totalorder %s24806_s1, %s21335_s26  ;;  %p21342_p11 = scmp.lt.u32.totalorder %s21335_s26, %s24806_s1 }
  0x1c   : > { %s24805_s23 = scalar_select %p21802_p6, 1, 0 }
  0x1d   : > { %p21814_p8 = pneg %p21802_p6 }
  0x1f   : > { %s24807_s29 = scalar_select %p21814_p8, 1, 0 }
  0x20   : > { %p21338_p9 = pnand %p21814_p8, %p21336_p7 }
  0x22   : > { %p21339_p10 = pneg %p21338_p9 }
  0x24   : > { %p21344_p12 = pnand %p21342_p11, %p21339_p10 }
  0x26   : > { %21347 = shalt.err (!%p21344_p12)
}
  0x27   : > { %s21348_s12 = scalar_lea.vmem %s318_s18, 768  ;;  %p21356_p5 = scmp.lt.s32.totalorder %s318_s18, %s318_s18 }
  0x28   : > { %p21349_p13 = scmp.ne.s32.totalorder %s318_s18, %s21348_s12  ;;  %p21357_p3 = scmp.lt.s32.totalorder %s21348_s12, %s21348_s12 }
  0x2a   : > { %p21351_p0 = pnand %p21349_p13, %p21814_p8  ;;  %p21358_p1 = por %p21357_p3, %p21356_p5 }
  0x2c   : > { %p21352_p2 = pneg %p21351_p0 }
  0x2e   : > { %p21359_p4 = pnand %p21358_p1, %p21352_p2 }
  0x30   : > { %21362 = shalt.err (!%p21359_p4)
}
  0x31   : > { %18597 = dma.hbm_to_vmem [thread:$0]  (!%p21802_p6), %s24806_s1, 768, %s318_s18, [#allocation6]  }
  0x32   : > { %s24808_s8 = sld [smem:[#allocation34_spill]] }
  0x38   : > { %s21363_s26 = scalar_lea.hbm %s24808_s8, 12288 }
  0x39   : > { %p21364_p7 = scmp.ne.s32.totalorder %s24808_s8, %s21363_s26  ;;  %p21370_p1 = scmp.lt.u32.totalorder %s21363_s26, %s24808_s8 }
  0x3b   : > { %p21366_p9 = pnand %p21364_p7, %p21814_p8 }
  0x3d   : > { %p21367_p3 = pneg %p21366_p9 }
  0x3f   : > { %p21372_p4 = pnand %p21370_p1, %p21367_p3 }
  0x41   : > { %21375 = shalt.err (!%p21372_p4)
}
  0x42   : > { %s21376_s18 = scalar_lea.vmem %s21798_s22, 12288  ;;  %p21384_p13 = scmp.lt.s32.totalorder %s21798_s22, %s21798_s22 }
  0x43   : > { %p21377_p10 = scmp.ne.s32.totalorder %s21798_s22, %s21376_s18  ;;  %p21385_p0 = scmp.lt.s32.totalorder %s21376_s18, %s21376_s18 }
  0x45   : > { %p21379_p11 = pnand %p21377_p10, %p21814_p8  ;;  %p21386_p2 = por %p21385_p0, %p21384_p13 }
  0x47   : > { %p21380_p12 = pneg %p21379_p11 }
  0x49   : > { %p21387_p5 = pnand %p21386_p2, %p21380_p12 }
  0x4b   : > { %21390 = shalt.err (!%p21387_p5)
}
  0x4c   : > { %s21687_s12 = smov 128   ;;  %s21688_s17 = smov 8  }
  0x4d   : > { %18603 = dma.hbm_to_vmem [thread:$0]  (!%p21802_p6), %s24808_s8, 12288, %s21798_s22, [#allocation15], %s21687_s12, %s21687_s12, %s21688_s17  }
  0x4e   : > { %s21854_s25 = sadd.s32 1, %s21683_s16   ;;  %s102_s26 = sadd.s32 1, %s21679_s15 }
  0x4f   : > { %24809 = sst [smem:[#allocation28_spill]] %s21854_s25  ;;  %s99_s27 = ssub.s32 %s21683_s16, %s21854_s25 }
  0x50   : > { %p109_p7 = scmp.ne.s32.totalorder %s21679_s15, %s21675_s14  ;;  %p100_p9 = scmp.eq.s32.totalorder %s99_s27, 0 }
  0x51   : > { %p110_p3 = scmp.eq.s32.totalorder %s21683_s16, 0  ;;  %p115_p1 = scmp.ne.s32.totalorder %s21675_s14, %s21671_s13 }
  0x52   : > { %p18628_p4 = scmp.lt.s32.totalorder %s21683_s16, 6  ;;  %p24811_p11 = scmp.eq.s32.totalorder %s21786_s19, 0 }
  0x53   : > { %s21866_s28 = scalar_select %p100_p9, %s21679_s15, %s102_s26  }
  0x54   : > { %p111_p10 = por %p110_p3, %p109_p7  ;;  %p21870_p12 = por %p24811_p11, %p115_p1 }
  0x55   : > { %24810 = sst [smem:[#allocation29_spill]] %s21866_s28  ;;  %s21875_s11 = sand.u32 1, %s21683_s16  }
  0x56   : > { %s24812_s30 = scalar_select %p21870_p12, 1, 0 }
  0x57   : > { %s21878_s22 = sand.u32 1, %s21679_s15   ;;  %s18549_s12 = smul.u32 110592, %s21683_s16 }
  0x58   : > { %24813 = sst [smem:[#allocation30_spill]] %s24812_s30  ;;  %s18548_s18 = smul.u32 6912, %s21878_s22 }
  0x59   : > { %p21882_p13 = pnand %p18628_p4, %p111_p10  ;;  %s24815_s3 = sld [smem:[#allocation32_spill]] }
  0x5a   : > { %s367_s26 = scalar_lea.vmem [#allocation8], %s18548_s18  ;;  %s21894_s1 = smul.u32 2304, %s21878_s22 }
  0x5b   : > { %s24814_s13 = scalar_select %p21882_p13, 1, 0 }
  0x5c   : > { %s374_s27 = sshll.u32 %s367_s26, 4  ;;  %p21901_p2 = pneg %p21882_p13  ;;  %s21891_s27 = int_to_ptr.vmem [resolvable:$true] %s374_s27 }
  0x5e   : > { %s24816_s15 = scalar_select %p21901_p2, 1, 0 }
  0x5f   : > { %s21889_s24 = scalar_lea.hbm %s24815_s3, %s18549_s12  ;;  %s21396_s18 = scalar_lea.hbm %s24815_s3, 663552 }
  0x60   : > { %s21391_s28 = scalar_lea.hbm %s21889_s24, 110592  ;;  %p21397_p9 = scmp.lt.u32.totalorder %s21889_s24, %s24815_s3 }
  0x61   : > { %p21392_p0 = scmp.ne.s32.totalorder %s21889_s24, %s21391_s28  ;;  %p21398_p3 = scmp.lt.u32.totalorder %s21396_s18, %s21391_s28 }
  0x62   : > { %p21400_p4 = scmp.lt.u32.totalorder %s21391_s28, %s21889_s24 }
  0x63   : > { %p21394_p5 = pnand %p21901_p2, %p21392_p0  ;;  %p21399_p1 = por %p21398_p3, %p21397_p9 }
  0x65   : > { %p21395_p7 = pneg %p21394_p5  ;;  %p21401_p10 = por %p21400_p4, %p21399_p1 }
  0x67   : > { %p21402_p11 = pnand %p21401_p10, %p21395_p7 }
  0x69   : > { %21405 = shalt.err (!%p21402_p11)
}
  0x6a   : > { %s21406_s8 = scalar_lea.vmem %s21891_s27, 110592  ;;  %s21689_s12 = smov [#allocation8]  }
  0x6b   : > { %p21407_p0 = scmp.ne.s32.totalorder %s21891_s27, %s21406_s8  ;;  %s21411_s17 = sshll.u32 %s21689_s12, 4  ;;  %s21412_s17 = int_to_ptr.vmem [resolvable:$false] %s21411_s17 }
  0x6c   : > { %s21413_s21 = scalar_lea.vmem %s21412_s17, 221184  ;;  %p21414_p6 = scmp.lt.s32.totalorder %s21891_s27, %s21412_s17 }
  0x6d   : > { %p21409_p5 = pnand %p21407_p0, %p21901_p2  ;;  %p21415_p8 = scmp.lt.s32.totalorder %s21413_s21, %s21406_s8 }
  0x6f   : > { %p21410_p12 = pneg %p21409_p5  ;;  %p21416_p9 = por %p21415_p8, %p21414_p6 }
  0x71   : > { %p21417_p3 = pnand %p21416_p9, %p21410_p12 }
  0x73   : > { %21420 = shalt.err (!%p21417_p3)
}
  0x74   : > { %s21690_s28 = smov 1152   ;;  %s21691_s18 = smov 72  }
  0x75   : > { %s24817_s26 = scalar_lea.sflag [#allocation9], %s21875_s11  ;;  %s21927_s12 = smul.u32 36864, %s21683_s16 }
  0x76   : > { %18610 = dma.hbm_to_vmem [thread:$0]  (!%p21882_p13), %s21889_s24, 110592, %s21891_s27, %s24817_s26, %s21690_s28, %s21690_s28, %s21691_s18  }
  0x77   : > { %s24818_s5 = sld [smem:[#allocation33_spill]]  ;;  %s409_s3 = scalar_lea.vmem [#allocation11], %s21894_s1 }
  0x78   : > { %s416_s25 = sshll.u32 %s409_s3, 4  ;;  %s21692_s10 = smov [#allocation3]   ;;  %s21936_s25 = int_to_ptr.vmem [resolvable:$true] %s416_s25 }
  0x79   : > { %s21938_s30 = sshll.u32 %s21692_s10, 4  ;;  %s24792_s24 = scalar_lea.sflag [#allocation12], %s21875_s11  ;;  %s307_s30 = int_to_ptr.vmem [resolvable:$true] %s21938_s30 }
  0x7d   : > { %s21933_s21 = scalar_lea.hbm %s24818_s5, %s21927_s12  ;;  %s21426_s26 = scalar_lea.hbm %s24818_s5, 221184 }
  0x7e   : > { %s21421_s27 = scalar_lea.hbm %s21933_s21, 36864  ;;  %p21427_p7 = scmp.lt.u32.totalorder %s21933_s21, %s24818_s5 }
  0x7f   : > { %p21422_p6 = scmp.ne.s32.totalorder %s21933_s21, %s21421_s27  ;;  %p21428_p1 = scmp.lt.u32.totalorder %s21426_s26, %s21421_s27 }
  0x80   : > { %p21430_p10 = scmp.lt.u32.totalorder %s21421_s27, %s21933_s21 }
  0x81   : > { %p21424_p8 = pnand %p21422_p6, %p21901_p2  ;;  %p21429_p4 = por %p21428_p1, %p21427_p7 }
  0x83   : > { %p21425_p12 = pneg %p21424_p8  ;;  %p21431_p11 = por %p21430_p10, %p21429_p4 }
  0x85   : > { %p21432_p0 = pnand %p21431_p11, %p21425_p12 }
  0x87   : > { %21435 = shalt.err (!%p21432_p0)
}
  0x88   : > { %s21436_s3 = scalar_lea.vmem %s21936_s25, 36864  ;;  %s21693_s10 = smov [#allocation11]  }
  0x89   : > { %p21437_p5 = scmp.ne.s32.totalorder %s21936_s25, %s21436_s3  ;;  %s21441_s28 = sshll.u32 %s21693_s10, 4  ;;  %s21442_s28 = int_to_ptr.vmem [resolvable:$false] %s21441_s28 }
  0x8a   : > { %s21443_s18 = scalar_lea.vmem %s21442_s28, 73728  ;;  %p21444_p6 = scmp.lt.s32.totalorder %s21936_s25, %s21442_s28 }
  0x8b   : > { %p21439_p9 = pnand %p21437_p5, %p21901_p2  ;;  %p21445_p8 = scmp.lt.s32.totalorder %s21443_s18, %s21436_s3 }
  0x8d   : > { %p21440_p3 = pneg %p21439_p9  ;;  %p21446_p7 = por %p21445_p8, %p21444_p6 }
  0x8f   : > { %p21447_p1 = pnand %p21446_p7, %p21440_p3 }
  0x91   : > { %21450 = shalt.err (!%p21447_p1)
}
  0x92   : > { %s24793_s27 = smov 384   ;;  %s21695_s26 = smov 24  }
  0x93   : > { %18616 = dma.hbm_to_vmem [thread:$0]  (!%p21882_p13), %s21933_s21, 36864, %s21936_s25, %s24792_s24, %s24793_s27, %s24793_s27, %s21695_s26  }
  0x94   : > { %s21451_s3 = scalar_lea.hbm %s24766_s0, 128  ;;  %p24819_p4 = scmp.ne.s32.totalorder %s24807_s29, 0 }
  0x95   : > { %p21452_p12 = scmp.ne.s32.totalorder %s24766_s0, %s21451_s3  ;;  %p21458_p0 = scmp.lt.u32.totalorder %s21451_s3, %s24766_s0 }
  0x97   : > { %p21454_p10 = pnand %p21452_p12, %p24819_p4 }
  0x99   : > { %p21455_p11 = pneg %p21454_p10 }
  0x9b   : > { %p21460_p5 = pnand %p21458_p0, %p21455_p11 }
  0x9d   : > { %21463 = shalt.err (!%p21460_p5)
}
  0x9e   : > { %s21464_s14 = scalar_lea.vmem %s307_s30, 128  ;;  %p21472_p8 = scmp.lt.s32.totalorder %s307_s30, %s307_s30 }
  0x9f   : > { %p21465_p9 = scmp.ne.s32.totalorder %s307_s30, %s21464_s14  ;;  %p21473_p7 = scmp.lt.s32.totalorder %s21464_s14, %s21464_s14 }
  0xa1   : > { %p21467_p3 = pnand %p21465_p9, %p24819_p4  ;;  %p21474_p1 = por %p21473_p7, %p21472_p8 }
  0xa3   : > { %p21468_p6 = pneg %p21467_p3 }
  0xa5   : > { %p21475_p13 = pnand %p21474_p1, %p21468_p6 }
  0xa7   : > { %21478 = shalt.err (!%p21475_p13)
}
  0xa8   : > { %p24820_p12 = scmp.ne.s32.totalorder %s24805_s23, 0  ;;  %s21696_s5 = smov [#allocation7]  }
  0xa9   : > { %s328_s8 = sshll.u32 %s21696_s5, 4  ;;  %s21697_s17 = smov [#allocation17]   ;;  %s329_s8 = int_to_ptr.vmem [resolvable:$true] %s328_s8 }
  0xaa   : > { %18594 = dma.hbm_to_vmem [thread:$0]  (!%p24820_p12), %s24766_s0, 128, %s307_s30, [#allocation4]  }
  0xab   : > { %s352_s3 = sshll.u32 %s21697_s17, 4  ;;  %s21479_s18 = scalar_lea.hbm %s24768_s2, 96  ;;  %s353_s3 = int_to_ptr.vmem [resolvable:$true] %s352_s3 }
  0xac   : > { %p21480_p13 = scmp.ne.s32.totalorder %s24768_s2, %s21479_s18  ;;  %p21486_p0 = scmp.lt.u32.totalorder %s21479_s18, %s24768_s2 }
  0xae   : > { %p21482_p10 = pnand %p21480_p13, %p24819_p4 }
  0xb0   : > { %p21483_p11 = pneg %p21482_p10 }
  0xb2   : > { %p21488_p5 = pnand %p21486_p0, %p21483_p11 }
  0xb4   : > { %21491 = shalt.err (!%p21488_p5)
}
  0xb5   : > { %s21492_s30 = scalar_lea.vmem %s329_s8, 96  ;;  %p21500_p8 = scmp.lt.s32.totalorder %s329_s8, %s329_s8 }
  0xb6   : > { %p21493_p9 = scmp.ne.s32.totalorder %s329_s8, %s21492_s30  ;;  %p21501_p7 = scmp.lt.s32.totalorder %s21492_s30, %s21492_s30 }
  0xb8   : > { %p21495_p3 = pnand %p21493_p9, %p24819_p4  ;;  %p21502_p1 = por %p21501_p7, %p21500_p8 }
  0xba   : > { %p21496_p6 = pneg %p21495_p3 }
  0xbc   : > { %p21503_p2 = pnand %p21502_p1, %p21496_p6 }
  0xbe   : > { %21506 = shalt.err (!%p21503_p2)
}
  0xbf   : > { %18600 = dma.hbm_to_vmem [thread:$0]  (!%p24820_p12), %s24768_s2, 96, %s329_s8, [#allocation6]  }
  0xc0   : > { %s21507_s17 = scalar_lea.hbm %s24775_s9, 16 }
  0xc1   : > { %p21508_p13 = scmp.ne.s32.totalorder %s24775_s9, %s21507_s17  ;;  %p21514_p2 = scmp.lt.u32.totalorder %s21507_s17, %s24775_s9 }
  0xc3   : > { %p21510_p10 = pnand %p21508_p13, %p24819_p4 }
  0xc5   : > { %p21511_p11 = pneg %p21510_p10 }
  0xc7   : > { %p21516_p0 = pnand %p21514_p2, %p21511_p11 }
  0xc9   : > { %21519 = shalt.err (!%p21516_p0)
}
  0xca   : > { %s21520_s25 = scalar_lea.vmem %s353_s3, 16  ;;  %s21527_s8 = scalar_lea.vmem %s353_s3, 32 }
  0xcb   : > { %p21521_p5 = scmp.ne.s32.totalorder %s353_s3, %s21520_s25  ;;  %p21528_p6 = scmp.lt.s32.totalorder %s353_s3, %s353_s3 }
  0xcc   : > { %p21529_p8 = scmp.lt.s32.totalorder %s21527_s8, %s21520_s25 }
  0xcd   : > { %p21523_p9 = pnand %p21521_p5, %p24819_p4 }
  0xce   : > { %p21530_p7 = por %p21529_p8, %p21528_p6 }
  0xcf   : > { %p21524_p3 = pneg %p21523_p9 }
  0xd1   : > { %p21531_p1 = pnand %p21530_p7, %p21524_p3 }
  0xd3   : > { %21534 = shalt.err (!%p21531_p1)
}
  0xd4   : > { %18606 = dma.hbm_to_vmem [thread:$0]  (!%p24820_p12), %s24775_s9, 16, %s353_s3, [#allocation18]  }
  0xd5   : > { %s22026_s29 = scalar_lea.hbm %s24770_s4, %s21927_s12  ;;  %s388_s5 = scalar_lea.vmem [#allocation10], %s21894_s1 }
  0xd6   : > { %s395_s17 = sshll.u32 %s388_s5, 4  ;;  %s21535_s23 = scalar_lea.hbm %s22026_s29, 36864  ;;  %s22029_s17 = int_to_ptr.vmem [resolvable:$true] %s395_s17 }
  0xd7   : > { %p21536_p4 = scmp.ne.s32.totalorder %s22026_s29, %s21535_s23  ;;  %p24821_p13 = scmp.ne.s32.totalorder %s24816_s15, 0 }
  0xd8   : > { %s21540_s28 = scalar_lea.hbm %s24770_s4, 221184  ;;  %p21541_p12 = scmp.lt.u32.totalorder %s22026_s29, %s24770_s4 }
  0xd9   : > { %p21538_p10 = pnand %p21536_p4, %p24821_p13  ;;  %p21542_p2 = scmp.lt.u32.totalorder %s21540_s28, %s21535_s23 }
  0xda   : > { %p21544_p5 = scmp.lt.u32.totalorder %s21535_s23, %s22026_s29 }
  0xdb   : > { %p21539_p11 = pneg %p21538_p10  ;;  %p21543_p0 = por %p21542_p2, %p21541_p12 }
  0xdd   : > { %p21545_p9 = por %p21544_p5, %p21543_p0 }
  0xdf   : > { %p21546_p3 = pnand %p21545_p9, %p21539_p11 }
  0xe1   : > { %21549 = shalt.err (!%p21546_p3)
}
  0xe2   : > { %s21550_s25 = scalar_lea.vmem %s22029_s17, 36864  ;;  %s21698_s8 = smov [#allocation10]  }
  0xe3   : > { %p21551_p6 = scmp.ne.s32.totalorder %s22029_s17, %s21550_s25  ;;  %s21555_s30 = sshll.u32 %s21698_s8, 4  ;;  %s21556_s30 = int_to_ptr.vmem [resolvable:$false] %s21555_s30 }
  0xe4   : > { %s21557_s24 = scalar_lea.vmem %s21556_s30, 73728  ;;  %p21558_p1 = scmp.lt.s32.totalorder %s22029_s17, %s21556_s30 }
  0xe5   : > { %p21553_p8 = pnand %p21551_p6, %p24821_p13  ;;  %p21559_p4 = scmp.lt.s32.totalorder %s21557_s24, %s21550_s25 }
  0xe7   : > { %p21554_p7 = pneg %p21553_p8  ;;  %p21560_p10 = por %p21559_p4, %p21558_p1 }
  0xe9   : > { %p21561_p12 = pnand %p21560_p10, %p21554_p7 }
  0xeb   : > { %21564 = shalt.err (!%p21561_p12)
}
  0xec   : > { %p24822_p11 = scmp.ne.s32.totalorder %s24814_s13, 0  ;;  %s24823_s21 = smov 384  }
  0xed   : > { %s24824_s27 = scalar_lea.sflag [#allocation9], %s21875_s11  ;;  %s22061_s10 = scalar_lea.hbm %s24772_s6, %s21927_s12 }
  0xee   : > { %18613 = dma.hbm_to_vmem [thread:$0]  (!%p24822_p11), %s22026_s29, 36864, %s22029_s17, %s24824_s27, %s24823_s21, %s24823_s21, %s21695_s26  }
  0xef   : > { %s430_s3 = scalar_lea.vmem [#allocation13], %s21894_s1  ;;  %s21565_s18 = scalar_lea.hbm %s22061_s10, 36864 }
  0xf0   : > { %s437_s28 = sshll.u32 %s430_s3, 4  ;;  %p21566_p2 = scmp.ne.s32.totalorder %s22061_s10, %s21565_s18  ;;  %s22064_s28 = int_to_ptr.vmem [resolvable:$true] %s437_s28 }
  0xf1   : > { %s21570_s17 = scalar_lea.hbm %s24772_s6, 221184  ;;  %p21571_p9 = scmp.lt.u32.totalorder %s22061_s10, %s24772_s6 }
  0xf2   : > { %p21568_p0 = pnand %p21566_p2, %p24821_p13  ;;  %p21572_p3 = scmp.lt.u32.totalorder %s21570_s17, %s21565_s18 }
  0xf3   : > { %p21574_p8 = scmp.lt.u32.totalorder %s21565_s18, %s22061_s10 }
  0xf4   : > { %p21569_p5 = pneg %p21568_p0  ;;  %p21573_p6 = por %p21572_p3, %p21571_p9 }
  0xf6   : > { %p21575_p7 = por %p21574_p8, %p21573_p6 }
  0xf8   : > { %p21576_p1 = pnand %p21575_p7, %p21569_p5 }
  0xfa   : > { %21579 = shalt.err (!%p21576_p1)
}
  0xfb   : > { %s21580_s1 = scalar_lea.vmem %s22064_s28, 36864  ;;  %s21699_s8 = smov [#allocation13]  }
  0xfc   : > { %p21581_p4 = scmp.ne.s32.totalorder %s22064_s28, %s21580_s1  ;;  %s21585_s30 = sshll.u32 %s21699_s8, 4  ;;  %s21586_s30 = int_to_ptr.vmem [resolvable:$false] %s21585_s30 }
  0xfd   : > { %s21587_s24 = scalar_lea.vmem %s21586_s30, 73728  ;;  %p21588_p2 = scmp.lt.s32.totalorder %s22064_s28, %s21586_s30 }
  0xfe   : > { %p21583_p10 = pnand %p21581_p4, %p24821_p13  ;;  %p21589_p0 = scmp.lt.s32.totalorder %s21587_s24, %s21580_s1 }
 0x100   : > { %p21584_p12 = pneg %p21583_p10  ;;  %p21590_p9 = por %p21589_p0, %p21588_p2 }
 0x102   : > { %p21591_p3 = pnand %p21590_p9, %p21584_p12 }
 0x104   : > { %21594 = shalt.err (!%p21591_p3)
}
 0x105   : > { %s24825_s27 = scalar_lea.sflag [#allocation12], %s21875_s11  ;;  %s18556_s5 = smul.u32 96, %s21878_s22 }
 0x106   : > { %18619 = dma.hbm_to_vmem [thread:$0]  (!%p24822_p11), %s22061_s10, 36864, %s22064_s28, %s24825_s27, %s24823_s21, %s24823_s21, %s21695_s26  }
 0x107   : > { %s18557_s23 = smul.u32 1536, %s21683_s16  ;;  %s451_s29 = scalar_lea.vmem [#allocation14], %s18556_s5 }
 0x108   : > { %s458_s17 = sshll.u32 %s451_s29, 4  ;;  %s448_s25 = scalar_lea.sflag [#allocation15], %s21875_s11  ;;  %s22099_s17 = int_to_ptr.vmem [resolvable:$true] %s458_s17 }
 0x109   : > { %s22097_s14 = scalar_lea.hbm %s24773_s7, %s18557_s23  ;;  %s21600_s26 = scalar_lea.hbm %s24773_s7, 9216 }
 0x10a   : > { %s21595_s12 = scalar_lea.hbm %s22097_s14, 1536  ;;  %p21601_p7 = scmp.lt.u32.totalorder %s22097_s14, %s24773_s7 }
 0x10b   : > { %p21596_p5 = scmp.ne.s32.totalorder %s22097_s14, %s21595_s12  ;;  %p21602_p1 = scmp.lt.u32.totalorder %s21600_s26, %s21595_s12 }
 0x10c   : > { %p21604_p10 = scmp.lt.u32.totalorder %s21595_s12, %s22097_s14 }
 0x10d   : > { %p21598_p6 = pnand %p21596_p5, %p24821_p13  ;;  %p21603_p4 = por %p21602_p1, %p21601_p7 }
 0x10f   : > { %p21599_p8 = pneg %p21598_p6  ;;  %p21605_p12 = por %p21604_p10, %p21603_p4 }
 0x111   : > { %p21606_p2 = pnand %p21605_p12, %p21599_p8 }
 0x113   : > { %21609 = shalt.err (!%p21606_p2)
}
 0x114   : > { %s21610_s28 = scalar_lea.vmem %s22099_s17, 1536  ;;  %s21700_s1 = smov [#allocation14]  }
 0x115   : > { %p21611_p0 = scmp.ne.s32.totalorder %s22099_s17, %s21610_s28  ;;  %s21615_s8 = sshll.u32 %s21700_s1, 4  ;;  %s21616_s8 = int_to_ptr.vmem [resolvable:$false] %s21615_s8 }
 0x116   : > { %s21617_s30 = scalar_lea.vmem %s21616_s8, 3072  ;;  %p21618_p5 = scmp.lt.s32.totalorder %s22099_s17, %s21616_s8 }
 0x117   : > { %p21613_p9 = pnand %p21611_p0, %p24821_p13  ;;  %p21619_p6 = scmp.lt.s32.totalorder %s21617_s30, %s21610_s28 }
 0x119   : > { %p21614_p3 = pneg %p21613_p9  ;;  %p21620_p7 = por %p21619_p6, %p21618_p5 }
 0x11b   : > { %p21621_p1 = pnand %p21620_p7, %p21614_p3 }
 0x11d   : > { %21624 = shalt.err (!%p21621_p1)
}
 0x11e   : > { %s21701_s24 = smov 768   ;;  %s21702_s27 = smov 48  }
 0x11f   : > { %18622 = dma.hbm_to_vmem [thread:$0]  (!%p24822_p11), %s22097_s14, 1536, %s22099_s17, %s448_s25, %s21701_s24, %s21701_s24, %s21702_s27  }
 0x120   : > { %p24826_p13 = scmp.ne.s32.totalorder %s24804_s20, 0 }
 0x121   : > { %p24827_p8 = scmp.eq.s32.totalorder (!%p24826_p13), %s21786_s19, 0 }
 0x122   : > { %470 = sbr.rel (%p24826_p13) target bundleno = 9364 (0x2494), region = 60 }
 0x129   : > { %21642 = dma.done.wait (%p24827_p8), [#allocation4], 128   ;;  %p24828_p4 = pmov %p24827_p8 }
 0x12b   : > { %21644 = vsyncadd (%p24828_p4), [#allocation4], 4294967168  ;;  %p24829_p10 = pmov %p24828_p4 }
 0x12c   : > { %p24830_p12 = pmov %p24828_p4 }
 0x12d   : > { %21646 = dma.done.wait (%p24829_p10), [#allocation6], 864  }
 0x12e   : > { %21648 = vsyncadd (%p24830_p12), [#allocation6], 4294966432  ;;  %s24831_s15 = sld [smem:[#allocation26_spill]]  ;;  %s24832_s13 = sld [smem:[#allocation30_spill]] }
 0x12f   : > { %s484_s11 = sand.u32 1, %s21786_s19  }
 0x130   : > { %s485_s20 = scalar_lea.sflag [#allocation9], %s484_s11 }
 0x134   : > { %s486_s5 = sand.u32 1, %s24831_s15   ;;  %p24833_p11 = scmp.ne.s32.totalorder %s24832_s13, 0 }
 0x135   : > { %s18558_s23 = smul.u32 6912, %s486_s5 }
 0x137   : > { %s22137_s3 = scalar_lea.vmem [#allocation8], %s18558_s23 }
 0x138   : > { %21650 = dma.done.wait (%p24833_p11), %s485_s20, 147456  }
 0x139   : > { %21652 = vsyncadd (%p24833_p11), %s485_s20, 4294819840  ;;  %s18559_s18 = smul.u32 2304, %s486_s5  ;;  %s503_s29 = scalar_lea.sflag [#allocation12], %s484_s11 }
 0x13b   : > { %s22143_s14 = scalar_lea.vmem [#allocation10], %s18559_s18  ;;  %s22145_s17 = scalar_lea.vmem [#allocation11], %s18559_s18 }
 0x13c   : > { %21654 = dma.done.wait (%p24833_p11), %s503_s29, 73728  }
 0x13d   : > { %21656 = vsyncadd (%p24833_p11), %s503_s29, 4294893568  ;;  %s18560_s25 = smul.u32 96, %s486_s5  ;;  %s22151_s12 = scalar_lea.vmem [#allocation13], %s18559_s18 }
 0x13e   : > { %s521_s16 = scalar_lea.sflag [#allocation15], %s484_s11 }
 0x13f   : > { %s22153_s22 = scalar_lea.vmem [#allocation14], %s18560_s25 }
 0x140   : > { %21658 = dma.done.wait (%p24833_p11), %s521_s16, 1536  }
 0x141   : > { %21660 = vsyncadd (%p24833_p11), %s521_s16, 4294965760  ;;  %p24834_p2 = pmov %p24828_p4 }
 0x143   : > { %21662 = dma.done.wait (%p24834_p2), [#allocation15], 12288   ;;  %p24835_p0 = pmov %p24834_p2 }
 0x145   : > { %21664 = vsyncadd (%p24835_p0), [#allocation15], 4294955008  ;;  %p24836_p9 = pmov %p24835_p0 }
 0x146   : > { %p24837_p3 = pmov %p24835_p0 }
 0x147   : > { %21666 = dma.done.wait (%p24836_p9), [#allocation18], 16  }
 0x148   : > { %21668 = vsyncadd (%p24837_p3), [#allocation18], 4294967280  ;;  %p24838_p5 = scmp.ne.s32.totalorder %s21786_s19, 0 }
 0x149   : > { %v591_v0 = vld [vmem:[#allocation5 + $0x8] sm:$0xff] (!%p24838_p5)  ;;  %v590_v1 = vld [vmem:[#allocation5] sm:$0xff] (!%p24838_p5)  ;;  %v589_v2 = vld [vmem:[#allocation3] sm:$0xff] (!%p24838_p5)  ;;  %vm628_vm0 = vcmask (!%p24838_p5), 64512   ;;  %v21703_v3 = vmov (!%p24838_p5), 0.0   ;;  %v598_v8 = vlaneseq (!%p24838_p5) }
 0x14a   : > { %588 = sbr.rel (%p24838_p5) target bundleno = 552 (0x228), region = 104  ;;  %632 = vmatprep.subr.mxu0 (!%p24838_p5), %v591_v0  ;;  %696 = vmatprep.mubr.f32.mxu0 (!%p24838_p5), %v21703_v3  ;;  %v595_v4 = vld [vmem:[#allocation5 + $0x28] sm:$0xff] (!%p24838_p5)  ;;  %v594_v5 = vld [vmem:[#allocation5 + $0x20] sm:$0xff] (!%p24838_p5)  ;;  %v593_v6 = vld [vmem:[#allocation5 + $0x18] sm:$0xff] (!%p24838_p5) }
 0x14b   : > { %633 = vmatpush1.msra.mxu0 (!%p24838_p5), %v590_v1  ;;  %703 = vmatprep.subr.mxu1 (!%p24838_p5), %v593_v6  ;;  %v592_v7 = vld [vmem:[#allocation5 + $0x10] sm:$0xff] (!%p24838_p5)  ;;  %v599_v9 = vshrl.u32 (!%p24838_p5), %v598_v8, 7 }
 0x14c   : > { %16422 = vmatmul.mubr.msk.f32.vlgmr.msra.gmra.mrb[0].mxu0 (!%p24838_p5), %vm628_vm0, %v589_v2  ;;  %774 = vmatprep.subr.mxu0 (!%p24838_p5), %v595_v4  ;;  %v596_v11 = vld [vmem:[#allocation7] sm:$0x3f] (!%p24838_p5) }
 0x14d   : > { %775 = vmatpush1.msra.mxu0 (!%p24838_p5), %v594_v5  ;;  %704 = vmatpush1.msra.mxu1 (!%p24838_p5), %v592_v7  ;;  %v600_v10 = vsub.s32 (!%p24838_p5), 0, %v599_v9  ;;  %v604_v12 = vsub.s32 (!%p24838_p5), 1, %v599_v9  ;;  %v608_v13 = vsub.s32 (!%p24838_p5), 2, %v599_v9  ;;  %v616_v15 = vsub.s32 (!%p24838_p5), 4, %v599_v9 }
 0x14e   : > { %767 = vmatprep.mubr.f32.mxu1 (!%p24838_p5), %v21703_v3  ;;  %838 = vmatprep.mubr.f32.mxu0 (!%p24838_p5), %v21703_v3  ;;  %v612_v16 = vsub.s32 (!%p24838_p5), 3, %v599_v9  ;;  %v620_v18 = vsub.s32 (!%p24838_p5), 5, %v599_v9 }
 0x14f   : > { %16423 = vmatmul.mubr.msk.f32.vlgmr.msra.gmra.mrb[0].mxu1 (!%p24838_p5), %vm628_vm0, %v589_v2  ;;  %v601_v14 = vrot.slane (!%p24838_p5), %v596_v11, %v600_v10  ;;  %v605_v17 = vrot.slane (!%p24838_p5), %v596_v11, %v604_v12  ;;  %v609_v20 = vrot.slane (!%p24838_p5), %v596_v11, %v608_v13  ;;  %v617_v23 = vrot.slane (!%p24838_p5), %v596_v11, %v616_v15 }
 0x150   : > { %16424 = vmatmul.mubr.msk.f32.vlgmr.msra.gmra.mrb[2].mxu0 (!%p24838_p5), %vm628_vm0, %v589_v2  ;;  %v613_v24 = vrot.slane (!%p24838_p5), %v596_v11, %v612_v16  ;;  %v621_v26 = vrot.slane (!%p24838_p5), %v596_v11, %v620_v18 }
 0x21f   : > { %v698_v19 = vpop.f32.mrb[0].mxu0 }
 0x220   : > { %v699_v21 = vadd.f32 %v698_v19, %v601_v14  ;;  %v700_v22 = vpop.f32.mrb[1].mxu0 }
 0x221   : > { %v701_v25 = vadd.f32 %v700_v22, %v605_v17 }
 0x222   : > { %845 = vst [vmem:[#allocation2] sm:$0xff] %v699_v21  ;;  %v769_v27 = vpop.f32.mrb[0].mxu1 }
 0x223   : > { %846 = vst [vmem:[#allocation2 + $0x8] sm:$0xff] %v701_v25  ;;  %v770_v28 = vadd.f32 %v769_v27, %v609_v20  ;;  %v840_v29 = vpop.f32.mrb[2].mxu0  ;;  %v771_v30 = vpop.f32.mrb[1].mxu1 }
 0x224   : > { %v841_v31 = vadd.f32 %v840_v29, %v617_v23  ;;  %v772_v32 = vadd.f32 %v771_v30, %v613_v24  ;;  %v842_v33 = vpop.f32.mrb[3].mxu0 }
 0x225   : > { %847 = vst [vmem:[#allocation2 + $0x10] sm:$0xff] %v770_v28  ;;  %v843_v34 = vadd.f32 %v842_v33, %v621_v26 }
 0x226   : > { %849 = vst [vmem:[#allocation2 + $0x20] sm:$0xff] %v841_v31  ;;  %848 = vst [vmem:[#allocation2 + $0x18] sm:$0xff] %v772_v32 }
 0x227   : > { %850 = vst [vmem:[#allocation2 + $0x28] sm:$0xff] %v843_v34 }
 0x228 PF: > { %v18686_v35 = vld [vmem:[%s22137_s3 + $0x4] ss:$72 sps:$4 sm:$0xff]   ;;  %v18690_v37 = vld [vmem:[%s22137_s3] ss:$72 sps:$4 sm:$0xff]   ;;  %v18692_v39 = vld [vmem:[%s22137_s3 + $0x94] ss:$72 sps:$4 sm:$0xff]  }
 0x229   : > { %v18688_v36 = vld [vmem:[%s22137_s3 + $0x904] ss:$72 sps:$4 sm:$0xff]   ;;  %6059 = vmatprep.subr.bf16.mxu0 %v18686_v35  ;;  %v18691_v38 = vld [vmem:[%s22137_s3 + $0x900] ss:$72 sps:$4 sm:$0xff]   ;;  %v18694_v40 = vld [vmem:[%s22137_s3 + $0x994] ss:$72 sps:$4 sm:$0xff]  }
 0x22a   : > { %6100 = vmatprep.subr.bf16.mxu1 %v18688_v36  ;;  %6060 = vmatpush1.bf16.msra.mxu0 %v18690_v37  ;;  %v18696_v41 = vld [vmem:[%s22137_s3 + $0x90] ss:$72 sps:$4 sm:$0xff]   ;;  %v18698_v43 = vld [vmem:[%s22137_s3 + $0x124] ss:$72 sps:$4 sm:$0xff]   ;;  %v18702_v45 = vld [vmem:[%s22137_s3 + $0x120] ss:$72 sps:$4 sm:$0xff]  }
 0x22b   : > { %6101 = vmatpush1.bf16.msra.mxu1 %v18691_v38  ;;  %6061 = vmatprep.subr.bf16.mxu0 %v18692_v39  ;;  %v18697_v42 = vld [vmem:[%s22137_s3 + $0x990] ss:$72 sps:$4 sm:$0xff]   ;;  %v18700_v44 = vld [vmem:[%s22137_s3 + $0xa24] ss:$72 sps:$4 sm:$0xff]   ;;  %v18703_v46 = vld [vmem:[%s22137_s3 + $0xa20] ss:$72 sps:$4 sm:$0xff]  }
 0x22c   : > { %6102 = vmatprep.subr.bf16.mxu1 %v18694_v40  ;;  %v18704_v47 = vld [vmem:[%s22137_s3 + $0x1b4] ss:$72 sps:$4 sm:$0xff]   ;;  %v18708_v49 = vld [vmem:[%s22137_s3 + $0x1b0] ss:$72 sps:$4 sm:$0xff]   ;;  %v18710_v51 = vld [vmem:[%s22137_s3 + $0x244] ss:$72 sps:$4 sm:$0xff]  }
 0x22d   : > { %v18706_v48 = vld [vmem:[%s22137_s3 + $0xab4] ss:$72 sps:$4 sm:$0xff]   ;;  %v18709_v50 = vld [vmem:[%s22137_s3 + $0xab0] ss:$72 sps:$4 sm:$0xff]   ;;  %v18712_v52 = vld [vmem:[%s22137_s3 + $0xb44] ss:$72 sps:$4 sm:$0xff]  }
 0x22e   : > { %6062 = vmatpush1.bf16.msra.mxu0 %v18696_v41  ;;  %v18714_v53 = vld [vmem:[%s22137_s3 + $0x240] ss:$72 sps:$4 sm:$0xff]   ;;  %v18716_v55 = vld [vmem:[%s22137_s3 + $0x2d4] ss:$72 sps:$4 sm:$0xff]   ;;  %v18720_v57 = vld [vmem:[%s22137_s3 + $0x2d0] ss:$72 sps:$4 sm:$0xff]  }
 0x22f   : > { %6103 = vmatpush1.bf16.msra.mxu1 %v18697_v42  ;;  %6063 = vmatprep.subr.bf16.mxu0 %v18698_v43  ;;  %v18715_v54 = vld [vmem:[%s22137_s3 + $0xb40] ss:$72 sps:$4 sm:$0xff]   ;;  %v18718_v56 = vld [vmem:[%s22137_s3 + $0xbd4] ss:$72 sps:$4 sm:$0xff]   ;;  %v18721_v58 = vld [vmem:[%s22137_s3 + $0xbd0] ss:$72 sps:$4 sm:$0xff]  }
 0x230   : > { %6104 = vmatprep.subr.bf16.mxu1 %v18700_v44  ;;  %v18722_v59 = vld [vmem:[%s22137_s3 + $0x364] ss:$72 sps:$4 sm:$0xff]   ;;  %v18726_v61 = vld [vmem:[%s22137_s3 + $0x360] ss:$72 sps:$4 sm:$0xff]   ;;  %v18728_v63 = vld [vmem:[%s22137_s3 + $0x3f4] ss:$72 sps:$4 sm:$0xff]  }
 0x231   : > { %v18724_v60 = vld [vmem:[%s22137_s3 + $0xc64] ss:$72 sps:$4 sm:$0xff]   ;;  %v18727_v62 = vld [vmem:[%s22137_s3 + $0xc60] ss:$72 sps:$4 sm:$0xff]   ;;  %v18730_v0 = vld [vmem:[%s22137_s3 + $0xcf4] ss:$72 sps:$4 sm:$0xff]  }
 0x232   : > { %6064 = vmatpush1.bf16.msra.mxu0 %v18702_v45  ;;  %v18732_v1 = vld [vmem:[%s22137_s3 + $0x3f0] ss:$72 sps:$4 sm:$0xff]   ;;  %v18734_v3 = vld [vmem:[%s22137_s3 + $0x484] ss:$72 sps:$4 sm:$0xff]   ;;  %v18738_v5 = vld [vmem:[%s22137_s3 + $0x480] ss:$72 sps:$4 sm:$0xff]  }
 0x233   : > { %6105 = vmatpush1.bf16.msra.mxu1 %v18703_v46  ;;  %6065 = vmatprep.subr.bf16.mxu0 %v18704_v47  ;;  %v18733_v2 = vld [vmem:[%s22137_s3 + $0xcf0] ss:$72 sps:$4 sm:$0xff]   ;;  %v18736_v4 = vld [vmem:[%s22137_s3 + $0xd84] ss:$72 sps:$4 sm:$0xff]   ;;  %v18739_v6 = vld [vmem:[%s22137_s3 + $0xd80] ss:$72 sps:$4 sm:$0xff]  }
 0x234   : > { %6106 = vmatprep.subr.bf16.mxu1 %v18706_v48  ;;  %v18740_v7 = vld [vmem:[%s22137_s3 + $0x514] ss:$72 sps:$4 sm:$0xff]   ;;  %v18744_v9 = vld [vmem:[%s22137_s3 + $0x510] ss:$72 sps:$4 sm:$0xff]   ;;  %v18746_v11 = vld [vmem:[%s22137_s3 + $0x5a4] ss:$72 sps:$4 sm:$0xff]  }
 0x235   : > { %v18742_v8 = vld [vmem:[%s22137_s3 + $0xe14] ss:$72 sps:$4 sm:$0xff]   ;;  %v18745_v10 = vld [vmem:[%s22137_s3 + $0xe10] ss:$72 sps:$4 sm:$0xff]   ;;  %v18748_v12 = vld [vmem:[%s22137_s3 + $0xea4] ss:$72 sps:$4 sm:$0xff]  }
 0x236   : > { %6066 = vmatpush1.bf16.msra.mxu0 %v18708_v49  ;;  %v18750_v13 = vld [vmem:[%s22137_s3 + $0x5a0] ss:$72 sps:$4 sm:$0xff]   ;;  %v18752_v15 = vld [vmem:[%s22137_s3 + $0x634] ss:$72 sps:$4 sm:$0xff]   ;;  %v18756_v18 = vld [vmem:[%s22137_s3 + $0x630] ss:$72 sps:$4 sm:$0xff]  }
 0x237   : > { %6107 = vmatpush1.bf16.msra.mxu1 %v18709_v50  ;;  %6067 = vmatprep.subr.bf16.mxu0 %v18710_v51  ;;  %v18751_v14 = vld [vmem:[%s22137_s3 + $0xea0] ss:$72 sps:$4 sm:$0xff]   ;;  %v18754_v16 = vld [vmem:[%s22137_s3 + $0xf34] ss:$72 sps:$4 sm:$0xff]   ;;  %v18757_v19 = vld [vmem:[%s22137_s3 + $0xf30] ss:$72 sps:$4 sm:$0xff]  }
 0x238   : > { %6108 = vmatprep.subr.bf16.mxu1 %v18712_v52  ;;  %v852_v17 = vld [vmem:[#allocation2 + $0x8] sm:$0xff]  ;;  %v854_v21 = vld [vmem:[#allocation2 + $0x18] sm:$0xff]  ;;  %v851_v39 = vld [vmem:[#allocation2] sm:$0xff]  ;;  %s21704_s26 = smov 32   ;;  %vm21706_vm1 = vmmov 0   ;;  %vm7256_vm2 = vcmask 785408  }
 0x239   : > { %v22220_v20 = vpack.c.bf16 %v852_v17, %v852_v17  ;;  %v18758_v22 = vld [vmem:[%s22137_s3 + $0x6c4] ss:$72 sps:$4 sm:$0xff]   ;;  %v22223_v23 = vpack.c.bf16 %v854_v21, %v854_v21  ;;  %v18762_v25 = vld [vmem:[%s22137_s3 + $0x6c0] ss:$72 sps:$4 sm:$0xff]   ;;  %v18764_v27 = vld [vmem:[%s22137_s3 + $0x754] ss:$72 sps:$4 sm:$0xff]   ;;  %v22244_v43 = vpack.c.bf16 %v851_v39, %v851_v39 }
 0x23a   : > { %6068 = vmatpush1.bf16.msra.mxu0 %v18714_v53  ;;  %v18760_v24 = vld [vmem:[%s22137_s3 + $0xfc4] ss:$72 sps:$4 sm:$0xff]   ;;  %v18763_v26 = vld [vmem:[%s22137_s3 + $0xfc0] ss:$72 sps:$4 sm:$0xff]   ;;  %v18766_v28 = vld [vmem:[%s22137_s3 + $0x1054] ss:$72 sps:$4 sm:$0xff]  }
 0x23b   : > { %6109 = vmatpush1.bf16.msra.mxu1 %v18715_v54  ;;  %6069 = vmatprep.subr.bf16.mxu0 %v18716_v55  ;;  %v18768_v29 = vld [vmem:[%s22137_s3 + $0x750] ss:$72 sps:$4 sm:$0xff]   ;;  %v18770_v31 = vld [vmem:[%s22137_s3 + $0x7e4] ss:$72 sps:$4 sm:$0xff]   ;;  %v18774_v33 = vld [vmem:[%s22137_s3 + $0x7e0] ss:$72 sps:$4 sm:$0xff]  }
 0x23c   : > { %6110 = vmatprep.subr.bf16.mxu1 %v18718_v56  ;;  %6091 = vmatprep.mubr.bf16.mxu0 %v22220_v20  ;;  %v18769_v30 = vld [vmem:[%s22137_s3 + $0x1050] ss:$72 sps:$4 sm:$0xff]   ;;  %v18772_v32 = vld [vmem:[%s22137_s3 + $0x10e4] ss:$72 sps:$4 sm:$0xff]   ;;  %v18775_v34 = vld [vmem:[%s22137_s3 + $0x10e0] ss:$72 sps:$4 sm:$0xff]  }
 0x23d   : > { %6132 = vmatprep.mubr.bf16.mxu1 %v22223_v23  ;;  %v18776_v35 = vld [vmem:[%s22137_s3 + $0x874] ss:$72 sps:$4 sm:$0xff]   ;;  %v18780_v37 = vld [vmem:[%s22137_s3 + $0x870] ss:$72 sps:$4 sm:$0xff]   ;;  %v853_v40 = vld [vmem:[#allocation2 + $0x10] sm:$0xff]  ;;  %vm7334_vm3 = vcmask 64512  }
 0x23e   : > { %6070 = vmatpush1.bf16.msra.mxu0 %v18720_v57  ;;  %v18778_v36 = vld [vmem:[%s22137_s3 + $0x1174] ss:$72 sps:$4 sm:$0xff]   ;;  %v18781_v38 = vld [vmem:[%s22137_s3 + $0x1170] ss:$72 sps:$4 sm:$0xff]   ;;  %v18784_v41 = vld [vmem:[%s22137_s3 + $0x1204] ss:$72 sps:$4 sm:$0xff]   ;;  %v22246_v44 = vpack.c.bf16 %v853_v40, %v853_v40 }
 0x23f   : > { %6111 = vmatpush1.bf16.msra.mxu1 %v18721_v58  ;;  %6071 = vmatprep.subr.bf16.mxu0 %v18722_v59  ;;  %v18787_v42 = vld [vmem:[%s22137_s3 + $0xc] ss:$72 sps:$4 sm:$0xff]   ;;  %v18782_v45 = vld [vmem:[%s22137_s3 + $0x1200] ss:$72 sps:$4 sm:$0xff]   ;;  %v18793_v48 = vld [vmem:[%s22137_s3 + $0x9c] ss:$72 sps:$4 sm:$0xff]  }
 0x240   : > { %6112 = vmatprep.subr.bf16.mxu1 %v18724_v60  ;;  %v18785_v46 = vld [vmem:[%s22137_s3 + $0x8] ss:$72 sps:$4 sm:$0xff]   ;;  %v18790_v47 = vld [vmem:[%s22137_s3 + $0x1294] ss:$72 sps:$4 sm:$0xff]   ;;  %v18791_v50 = vld [vmem:[%s22137_s3 + $0x98] ss:$72 sps:$4 sm:$0xff]  }
 0x241   : > { %v18788_v49 = vld [vmem:[%s22137_s3 + $0x1290] ss:$72 sps:$4 sm:$0xff]   ;;  %v18796_v51 = vld [vmem:[%s22137_s3 + $0x1324] ss:$72 sps:$4 sm:$0xff]   ;;  %v18794_v53 = vld [vmem:[%s22137_s3 + $0x1320] ss:$72 sps:$4 sm:$0xff]  }
 0x242   : > { %6072 = vmatpush1.bf16.msra.mxu0 %v18726_v61  ;;  %v18799_v52 = vld [vmem:[%s22137_s3 + $0x12c] ss:$72 sps:$4 sm:$0xff]   ;;  %v18797_v54 = vld [vmem:[%s22137_s3 + $0x128] ss:$72 sps:$4 sm:$0xff]   ;;  %v18805_v56 = vld [vmem:[%s22137_s3 + $0x1bc] ss:$72 sps:$4 sm:$0xff]  }
 0x243   : > { %6113 = vmatpush1.bf16.msra.mxu1 %v18727_v62  ;;  %6073 = vmatprep.subr.bf16.mxu0 %v18728_v63  ;;  %v18802_v55 = vld [vmem:[%s22137_s3 + $0x13b4] ss:$72 sps:$4 sm:$0xff]   ;;  %v18800_v57 = vld [vmem:[%s22137_s3 + $0x13b0] ss:$72 sps:$4 sm:$0xff]   ;;  %v18808_v59 = vld [vmem:[%s22137_s3 + $0x1444] ss:$72 sps:$4 sm:$0xff]  }
 0x244   : > { %6114 = vmatprep.subr.bf16.mxu1 %v18730_v0  ;;  %v18803_v58 = vld [vmem:[%s22137_s3 + $0x1b8] ss:$72 sps:$4 sm:$0xff]   ;;  %v18811_v60 = vld [vmem:[%s22137_s3 + $0x24c] ss:$72 sps:$4 sm:$0xff]   ;;  %v18809_v62 = vld [vmem:[%s22137_s3 + $0x248] ss:$72 sps:$4 sm:$0xff]  }
 0x245   : > { %v18806_v61 = vld [vmem:[%s22137_s3 + $0x1440] ss:$72 sps:$4 sm:$0xff]   ;;  %v18814_v63 = vld [vmem:[%s22137_s3 + $0x14d4] ss:$72 sps:$4 sm:$0xff]   ;;  %v18868_v39 = vld [vmem:[%s22137_s3 + $0x19e4] ss:$72 sps:$4 sm:$0xff]  }
 0x246   : > { %6074 = vmatpush1.bf16.msra.mxu0 %v18732_v1  ;;  %v18817_v0 = vld [vmem:[%s22137_s3 + $0x2dc] ss:$72 sps:$4 sm:$0xff]   ;;  %v18812_v1 = vld [vmem:[%s22137_s3 + $0x14d0] ss:$72 sps:$4 sm:$0xff]   ;;  %v18871_v40 = vld [vmem:[%s22137_s3 + $0x7ec] ss:$72 sps:$4 sm:$0xff]  }
 0x247   : > { %6115 = vmatpush1.bf16.msra.mxu1 %v18733_v2  ;;  %6075 = vmatprep.subr.bf16.mxu0 %v18734_v3  ;;  %v18815_v2 = vld [vmem:[%s22137_s3 + $0x2d8] ss:$72 sps:$4 sm:$0xff]   ;;  %v18820_v3 = vld [vmem:[%s22137_s3 + $0x1564] ss:$72 sps:$4 sm:$0xff]   ;;  %v18838_v17 = vld [vmem:[%s22137_s3 + $0x1714] ss:$72 sps:$4 sm:$0xff]  }
 0x248   : > { %6116 = vmatprep.subr.bf16.mxu1 %v18736_v4  ;;  %v18823_v4 = vld [vmem:[%s22137_s3 + $0x36c] ss:$72 sps:$4 sm:$0xff]   ;;  %v18839_v21 = vld [vmem:[%s22137_s3 + $0x518] ss:$72 sps:$4 sm:$0xff]   ;;  %vm7461_vm4 = vcmask 261120   ;;  %s21707_s21 = smov 64  }
 0x249   : > { %vm8290_vm5 = vcmask 523264   ;;  %s21709_s10 = smov 96   ;;  %p18201_p6 = scmp.ne.s32.totalorder %s21786_s19, 5 }
 0x24a   : > { %6076 = vmatpush1.bf16.msra.mxu0 %v18738_v5  ;;  %v856_v5 = vld [vmem:[#allocation2 + $0x28] sm:$0xff]  ;;  %s24839_s1 = sld [smem:[#allocation35_spill]] (!%p18201_p6) }
 0x24b   : > { %6117 = vmatpush1.bf16.msra.mxu1 %v18739_v6  ;;  %6077 = vmatprep.subr.bf16.mxu0 %v18740_v7  ;;  %v22275_v6 = vpack.c.bf16 %v856_v5, %v856_v5  ;;  %v18818_v7 = vld [vmem:[%s22137_s3 + $0x1560] ss:$72 sps:$4 sm:$0xff]  }
 0x24c   : > { %6118 = vmatprep.subr.bf16.mxu1 %v18742_v8  ;;  %v18821_v8 = vld [vmem:[%s22137_s3 + $0x368] ss:$72 sps:$4 sm:$0xff]  }
 0x24d   : > { %v18902_v5 = vld [vmem:[%s22137_s3 + $0xb48] ss:$72 sps:$4 sm:$0xff]  }
 0x24e   : > { %6078 = vmatpush1.bf16.msra.mxu0 %v18744_v9  ;;  %v18826_v9 = vld [vmem:[%s22137_s3 + $0x15f4] ss:$72 sps:$4 sm:$0xff]  }
 0x24f   : > { %6119 = vmatpush1.bf16.msra.mxu1 %v18745_v10  ;;  %6079 = vmatprep.subr.bf16.mxu0 %v18746_v11  ;;  %v18829_v10 = vld [vmem:[%s22137_s3 + $0x3fc] ss:$72 sps:$4 sm:$0xff]   ;;  %v18824_v11 = vld [vmem:[%s22137_s3 + $0x15f0] ss:$72 sps:$4 sm:$0xff]  }
 0x250   : > { %6120 = vmatprep.subr.bf16.mxu1 %v18748_v12  ;;  %v18827_v12 = vld [vmem:[%s22137_s3 + $0x3f8] ss:$72 sps:$4 sm:$0xff]  }
 0x252   : > { %6080 = vmatpush1.bf16.msra.mxu0 %v18750_v13  ;;  %v18832_v13 = vld [vmem:[%s22137_s3 + $0x1684] ss:$72 sps:$4 sm:$0xff]  }
 0x253   : > { %6121 = vmatpush1.bf16.msra.mxu1 %v18751_v14  ;;  %6081 = vmatprep.subr.bf16.mxu0 %v18752_v15  ;;  %v18835_v14 = vld [vmem:[%s22137_s3 + $0x48c] ss:$72 sps:$4 sm:$0xff]   ;;  %v18830_v15 = vld [vmem:[%s22137_s3 + $0x1680] ss:$72 sps:$4 sm:$0xff]  }
 0x254   : > { %6122 = vmatprep.subr.bf16.mxu1 %v18754_v16  ;;  %v18833_v16 = vld [vmem:[%s22137_s3 + $0x488] ss:$72 sps:$4 sm:$0xff]  }
 0x256   : > { %6082 = vmatpush1.bf16.msra.mxu0 %v18756_v18  ;;  %v18841_v18 = vld [vmem:[%s22137_s3 + $0x51c] ss:$72 sps:$4 sm:$0xff]  }
 0x257   : > { %6123 = vmatpush1.bf16.msra.mxu1 %v18757_v19  ;;  %6083 = vmatprep.subr.bf16.mxu0 %v18758_v22  ;;  %v18836_v19 = vld [vmem:[%s22137_s3 + $0x1710] ss:$72 sps:$4 sm:$0xff]   ;;  %v18844_v22 = vld [vmem:[%s22137_s3 + $0x17a4] ss:$72 sps:$4 sm:$0xff]  }
 0x258   : > { %6124 = vmatprep.subr.bf16.mxu1 %v18760_v24  ;;  %v18847_v24 = vld [vmem:[%s22137_s3 + $0x5ac] ss:$72 sps:$4 sm:$0xff]  }
 0x25a   : > { %6084 = vmatpush1.bf16.msra.mxu0 %v18762_v25  ;;  %v18842_v25 = vld [vmem:[%s22137_s3 + $0x17a0] ss:$72 sps:$4 sm:$0xff]  }
 0x25b   : > { %6125 = vmatpush1.bf16.msra.mxu1 %v18763_v26  ;;  %6085 = vmatprep.subr.bf16.mxu0 %v18764_v27  ;;  %v18845_v26 = vld [vmem:[%s22137_s3 + $0x5a8] ss:$72 sps:$4 sm:$0xff]   ;;  %v18850_v27 = vld [vmem:[%s22137_s3 + $0x1834] ss:$72 sps:$4 sm:$0xff]  }
 0x25c   : > { %6126 = vmatprep.subr.bf16.mxu1 %v18766_v28  ;;  %v18853_v28 = vld [vmem:[%s22137_s3 + $0x63c] ss:$72 sps:$4 sm:$0xff]  }
 0x25e   : > { %6086 = vmatpush1.bf16.msra.mxu0 %v18768_v29  ;;  %v18848_v29 = vld [vmem:[%s22137_s3 + $0x1830] ss:$72 sps:$4 sm:$0xff]  }
 0x25f   : > { %6127 = vmatpush1.bf16.msra.mxu1 %v18769_v30  ;;  %6087 = vmatprep.subr.bf16.mxu0 %v18770_v31  ;;  %v18851_v30 = vld [vmem:[%s22137_s3 + $0x638] ss:$72 sps:$4 sm:$0xff]   ;;  %v18856_v31 = vld [vmem:[%s22137_s3 + $0x18c4] ss:$72 sps:$4 sm:$0xff]  }
 0x260   : > { %6128 = vmatprep.subr.bf16.mxu1 %v18772_v32  ;;  %v18859_v32 = vld [vmem:[%s22137_s3 + $0x6cc] ss:$72 sps:$4 sm:$0xff]  }
 0x262   : > { %6088 = vmatpush1.bf16.msra.mxu0 %v18774_v33  ;;  %v18854_v33 = vld [vmem:[%s22137_s3 + $0x18c0] ss:$72 sps:$4 sm:$0xff]  }
 0x263   : > { %6129 = vmatpush1.bf16.msra.mxu1 %v18775_v34  ;;  %6089 = vmatprep.subr.bf16.mxu0 %v18776_v35  ;;  %v18857_v34 = vld [vmem:[%s22137_s3 + $0x6c8] ss:$72 sps:$4 sm:$0xff]   ;;  %v18862_v35 = vld [vmem:[%s22137_s3 + $0x1954] ss:$72 sps:$4 sm:$0xff]  }
 0x264   : > { %6130 = vmatprep.subr.bf16.mxu1 %v18778_v36  ;;  %v18865_v36 = vld [vmem:[%s22137_s3 + $0x75c] ss:$72 sps:$4 sm:$0xff]  }
 0x266   : > { %6090 = vmatpush1.bf16.msra.mxu0 %v18780_v37  ;;  %v18860_v37 = vld [vmem:[%s22137_s3 + $0x1950] ss:$72 sps:$4 sm:$0xff]  }
 0x267   : > { %6131 = vmatpush1.bf16.msra.mxu1 %v18781_v38  ;;  %6141 = vmatprep.subr.bf16.mxu0 %v18784_v41  ;;  %v18863_v38 = vld [vmem:[%s22137_s3 + $0x758] ss:$72 sps:$4 sm:$0xff]  }
 0x268   : > { %6182 = vmatprep.subr.bf16.mxu1 %v18787_v42  ;;  %v18866_v41 = vld [vmem:[%s22137_s3 + $0x19e0] ss:$72 sps:$4 sm:$0xff]  }
 0x269   : > { %6092 = vmatmul.mubr.bf16.vlgmr.msra.gmra.mrb[0].mxu0 %v22244_v43  ;;  %v18869_v42 = vld [vmem:[%s22137_s3 + $0x7e8] ss:$72 sps:$4 sm:$0xff]  }
 0x26a   : > { %6133 = vmatmul.mubr.bf16.vlgmr.msra.gmra.mrb[0].mxu1 %v22246_v44  ;;  %6142 = vmatpush1.bf16.msra.mxu0 %v18782_v45  ;;  %v18874_v45 = vld [vmem:[%s22137_s3 + $0x1a74] ss:$72 sps:$4 sm:$0xff]  }
 0x26b   : > { %6183 = vmatpush1.bf16.msra.mxu1 %v18785_v46  ;;  %6143 = vmatprep.subr.bf16.mxu0 %v18790_v47  ;;  %v18877_v46 = vld [vmem:[%s22137_s3 + $0x87c] ss:$72 sps:$4 sm:$0xff]   ;;  %v18872_v47 = vld [vmem:[%s22137_s3 + $0x1a70] ss:$72 sps:$4 sm:$0xff]  }
 0x26c   : > { %6184 = vmatprep.subr.bf16.mxu1 %v18793_v48  ;;  %6214 = vmatprep.mubr.bf16.mxu1 %v22220_v20  ;;  %v18875_v48 = vld [vmem:[%s22137_s3 + $0x878] ss:$72 sps:$4 sm:$0xff]  }
 0x26d   : > { %6173 = vmatprep.mubr.bf16.mxu0 %v22275_v6 }
 0x26e   : > { %6144 = vmatpush1.bf16.msra.mxu0 %v18788_v49  ;;  %v855_v49 = vld [vmem:[#allocation2 + $0x20] sm:$0xff] }
 0x26f   : > { %6185 = vmatpush1.bf16.msra.mxu1 %v18791_v50  ;;  %6145 = vmatprep.subr.bf16.mxu0 %v18796_v51  ;;  %v18880_v50 = vld [vmem:[%s22137_s3 + $0x90c] ss:$72 sps:$4 sm:$0xff]  }
 0x270   : > { %6186 = vmatprep.subr.bf16.mxu1 %v18799_v52  ;;  %v18883_v51 = vld [vmem:[%s22137_s3 + $0x120c] ss:$72 sps:$4 sm:$0xff]   ;;  %v22318_v52 = vpack.c.bf16 %v855_v49, %v855_v49 }
 0x271   : > { %v18967_v49 = vld [vmem:[%s22137_s3 + $0x19ec] ss:$72 sps:$4 sm:$0xff]  }
 0x272   : > { %6146 = vmatpush1.bf16.msra.mxu0 %v18794_v53  ;;  %v18878_v53 = vld [vmem:[%s22137_s3 + $0x908] ss:$72 sps:$4 sm:$0xff]  }
 0x273   : > { %6187 = vmatpush1.bf16.msra.mxu1 %v18797_v54  ;;  %6147 = vmatprep.subr.bf16.mxu0 %v18802_v55  ;;  %v18881_v54 = vld [vmem:[%s22137_s3 + $0x1208] ss:$72 sps:$4 sm:$0xff]   ;;  %v18886_v55 = vld [vmem:[%s22137_s3 + $0x99c] ss:$72 sps:$4 sm:$0xff]  }
 0x274   : > { %6188 = vmatprep.subr.bf16.mxu1 %v18805_v56  ;;  %v18889_v56 = vld [vmem:[%s22137_s3 + $0x129c] ss:$72 sps:$4 sm:$0xff]  }
 0x276   : > { %6148 = vmatpush1.bf16.msra.mxu0 %v18800_v57  ;;  %v18884_v57 = vld [vmem:[%s22137_s3 + $0x998] ss:$72 sps:$4 sm:$0xff]  }
 0x277   : > { %6189 = vmatpush1.bf16.msra.mxu1 %v18803_v58  ;;  %6149 = vmatprep.subr.bf16.mxu0 %v18808_v59  ;;  %v18887_v58 = vld [vmem:[%s22137_s3 + $0x1298] ss:$72 sps:$4 sm:$0xff]   ;;  %v18892_v59 = vld [vmem:[%s22137_s3 + $0xa2c] ss:$72 sps:$4 sm:$0xff]  }
 0x278   : > { %6190 = vmatprep.subr.bf16.mxu1 %v18811_v60  ;;  %v18895_v60 = vld [vmem:[%s22137_s3 + $0x132c] ss:$72 sps:$4 sm:$0xff]  }
 0x27a   : > { %6150 = vmatpush1.bf16.msra.mxu0 %v18806_v61  ;;  %v18890_v61 = vld [vmem:[%s22137_s3 + $0xa28] ss:$72 sps:$4 sm:$0xff]  }
 0x27b   : > { %6191 = vmatpush1.bf16.msra.mxu1 %v18809_v62  ;;  %6151 = vmatprep.subr.bf16.mxu0 %v18814_v63  ;;  %v18893_v62 = vld [vmem:[%s22137_s3 + $0x1328] ss:$72 sps:$4 sm:$0xff]   ;;  %v18898_v63 = vld [vmem:[%s22137_s3 + $0xabc] ss:$72 sps:$4 sm:$0xff]  }
 0x27c   : > { %6192 = vmatprep.subr.bf16.mxu1 %v18817_v0  ;;  %v18901_v0 = vld [vmem:[%s22137_s3 + $0x13bc] ss:$72 sps:$4 sm:$0xff]  }
 0x27e   : > { %6152 = vmatpush1.bf16.msra.mxu0 %v18812_v1  ;;  %v18896_v1 = vld [vmem:[%s22137_s3 + $0xab8] ss:$72 sps:$4 sm:$0xff]  }
 0x27f   : > { %6193 = vmatpush1.bf16.msra.mxu1 %v18815_v2  ;;  %6153 = vmatprep.subr.bf16.mxu0 %v18820_v3  ;;  %v18899_v2 = vld [vmem:[%s22137_s3 + $0x13b8] ss:$72 sps:$4 sm:$0xff]   ;;  %v18904_v3 = vld [vmem:[%s22137_s3 + $0xb4c] ss:$72 sps:$4 sm:$0xff]  }
 0x280   : > { %6194 = vmatprep.subr.bf16.mxu1 %v18823_v4  ;;  %v18907_v4 = vld [vmem:[%s22137_s3 + $0x144c] ss:$72 sps:$4 sm:$0xff]  }
 0x282   : > { %6154 = vmatpush1.bf16.msra.mxu0 %v18818_v7  ;;  %v18905_v7 = vld [vmem:[%s22137_s3 + $0x1448] ss:$72 sps:$4 sm:$0xff]  }
 0x283   : > { %6195 = vmatpush1.bf16.msra.mxu1 %v18821_v8  ;;  %6155 = vmatprep.subr.bf16.mxu0 %v18826_v9  ;;  %v18910_v8 = vld [vmem:[%s22137_s3 + $0xbdc] ss:$72 sps:$4 sm:$0xff]  }
 0x284   : > { %6196 = vmatprep.subr.bf16.mxu1 %v18829_v10  ;;  %v18913_v9 = vld [vmem:[%s22137_s3 + $0x14dc] ss:$72 sps:$4 sm:$0xff]   ;;  %v18908_v10 = vld [vmem:[%s22137_s3 + $0xbd8] ss:$72 sps:$4 sm:$0xff]  }
 0x286   : > { %6156 = vmatpush1.bf16.msra.mxu0 %v18824_v11  ;;  %v18911_v11 = vld [vmem:[%s22137_s3 + $0x14d8] ss:$72 sps:$4 sm:$0xff]  }
 0x287   : > { %6197 = vmatpush1.bf16.msra.mxu1 %v18827_v12  ;;  %6157 = vmatprep.subr.bf16.mxu0 %v18832_v13  ;;  %v18916_v12 = vld [vmem:[%s22137_s3 + $0xc6c] ss:$72 sps:$4 sm:$0xff]  }
 0x288   : > { %6198 = vmatprep.subr.bf16.mxu1 %v18835_v14  ;;  %v18919_v13 = vld [vmem:[%s22137_s3 + $0x156c] ss:$72 sps:$4 sm:$0xff]   ;;  %v18914_v14 = vld [vmem:[%s22137_s3 + $0xc68] ss:$72 sps:$4 sm:$0xff]  }
 0x28a   : > { %6158 = vmatpush1.bf16.msra.mxu0 %v18830_v15  ;;  %v18917_v15 = vld [vmem:[%s22137_s3 + $0x1568] ss:$72 sps:$4 sm:$0xff]  }
 0x28b   : > { %6199 = vmatpush1.bf16.msra.mxu1 %v18833_v16  ;;  %6159 = vmatprep.subr.bf16.mxu0 %v18838_v17  ;;  %v18922_v16 = vld [vmem:[%s22137_s3 + $0xcfc] ss:$72 sps:$4 sm:$0xff]  }
 0x28c   : > { %6200 = vmatprep.subr.bf16.mxu1 %v18841_v18  ;;  %v18925_v17 = vld [vmem:[%s22137_s3 + $0x15fc] ss:$72 sps:$4 sm:$0xff]   ;;  %v18920_v18 = vld [vmem:[%s22137_s3 + $0xcf8] ss:$72 sps:$4 sm:$0xff]  }
 0x28e   : > { %6160 = vmatpush1.bf16.msra.mxu0 %v18836_v19  ;;  %v18923_v19 = vld [vmem:[%s22137_s3 + $0x15f8] ss:$72 sps:$4 sm:$0xff]  }
 0x28f   : > { %6201 = vmatpush1.bf16.msra.mxu1 %v18839_v21  ;;  %6161 = vmatprep.subr.bf16.mxu0 %v18844_v22  ;;  %v18928_v21 = vld [vmem:[%s22137_s3 + $0xd8c] ss:$72 sps:$4 sm:$0xff]  }
 0x290   : > { %6202 = vmatprep.subr.bf16.mxu1 %v18847_v24  ;;  %v18931_v22 = vld [vmem:[%s22137_s3 + $0x168c] ss:$72 sps:$4 sm:$0xff]   ;;  %v18926_v24 = vld [vmem:[%s22137_s3 + $0xd88] ss:$72 sps:$4 sm:$0xff]  }
 0x292   : > { %6162 = vmatpush1.bf16.msra.mxu0 %v18842_v25  ;;  %v18929_v25 = vld [vmem:[%s22137_s3 + $0x1688] ss:$72 sps:$4 sm:$0xff]  }
 0x293   : > { %6203 = vmatpush1.bf16.msra.mxu1 %v18845_v26  ;;  %6163 = vmatprep.subr.bf16.mxu0 %v18850_v27  ;;  %v18934_v26 = vld [vmem:[%s22137_s3 + $0xe1c] ss:$72 sps:$4 sm:$0xff]  }
 0x294   : > { %6204 = vmatprep.subr.bf16.mxu1 %v18853_v28  ;;  %v18937_v27 = vld [vmem:[%s22137_s3 + $0x171c] ss:$72 sps:$4 sm:$0xff]   ;;  %v18932_v28 = vld [vmem:[%s22137_s3 + $0xe18] ss:$72 sps:$4 sm:$0xff]  }
 0x296   : > { %6164 = vmatpush1.bf16.msra.mxu0 %v18848_v29  ;;  %v18935_v29 = vld [vmem:[%s22137_s3 + $0x1718] ss:$72 sps:$4 sm:$0xff]  }
 0x297   : > { %6205 = vmatpush1.bf16.msra.mxu1 %v18851_v30  ;;  %6165 = vmatprep.subr.bf16.mxu0 %v18856_v31  ;;  %v18940_v30 = vld [vmem:[%s22137_s3 + $0xeac] ss:$72 sps:$4 sm:$0xff]  }
 0x298   : > { %6206 = vmatprep.subr.bf16.mxu1 %v18859_v32  ;;  %v18943_v31 = vld [vmem:[%s22137_s3 + $0x17ac] ss:$72 sps:$4 sm:$0xff]   ;;  %v18938_v32 = vld [vmem:[%s22137_s3 + $0xea8] ss:$72 sps:$4 sm:$0xff]  }
 0x29a   : > { %6166 = vmatpush1.bf16.msra.mxu0 %v18854_v33  ;;  %v18941_v33 = vld [vmem:[%s22137_s3 + $0x17a8] ss:$72 sps:$4 sm:$0xff]  }
 0x29b   : > { %6207 = vmatpush1.bf16.msra.mxu1 %v18857_v34  ;;  %6167 = vmatprep.subr.bf16.mxu0 %v18862_v35  ;;  %v18946_v34 = vld [vmem:[%s22137_s3 + $0xf3c] ss:$72 sps:$4 sm:$0xff]  }
 0x29c   : > { %6208 = vmatprep.subr.bf16.mxu1 %v18865_v36  ;;  %v18949_v35 = vld [vmem:[%s22137_s3 + $0x183c] ss:$72 sps:$4 sm:$0xff]   ;;  %v18944_v36 = vld [vmem:[%s22137_s3 + $0xf38] ss:$72 sps:$4 sm:$0xff]  }
 0x29e   : > { %6168 = vmatpush1.bf16.msra.mxu0 %v18860_v37  ;;  %v18947_v37 = vld [vmem:[%s22137_s3 + $0x1838] ss:$72 sps:$4 sm:$0xff]  }
 0x29f   : > { %6209 = vmatpush1.bf16.msra.mxu1 %v18863_v38  ;;  %6169 = vmatprep.subr.bf16.mxu0 %v18868_v39  ;;  %v18952_v38 = vld [vmem:[%s22137_s3 + $0xfcc] ss:$72 sps:$4 sm:$0xff]  }
 0x2a0   : > { %6210 = vmatprep.subr.bf16.mxu1 %v18871_v40  ;;  %v18955_v39 = vld [vmem:[%s22137_s3 + $0x18cc] ss:$72 sps:$4 sm:$0xff]   ;;  %v18950_v40 = vld [vmem:[%s22137_s3 + $0xfc8] ss:$72 sps:$4 sm:$0xff]  }
 0x2a2   : > { %6170 = vmatpush1.bf16.msra.mxu0 %v18866_v41  ;;  %v18953_v41 = vld [vmem:[%s22137_s3 + $0x18c8] ss:$72 sps:$4 sm:$0xff]  }
 0x2a3   : > { %6211 = vmatpush1.bf16.msra.mxu1 %v18869_v42  ;;  %6171 = vmatprep.subr.bf16.mxu0 %v18874_v45  ;;  %v18958_v42 = vld [vmem:[%s22137_s3 + $0x105c] ss:$72 sps:$4 sm:$0xff]  }
 0x2a4   : > { %6212 = vmatprep.subr.bf16.mxu1 %v18877_v46  ;;  %v18961_v45 = vld [vmem:[%s22137_s3 + $0x195c] ss:$72 sps:$4 sm:$0xff]   ;;  %v18956_v46 = vld [vmem:[%s22137_s3 + $0x1058] ss:$72 sps:$4 sm:$0xff]  }
 0x2a6   : > { %6172 = vmatpush1.bf16.msra.mxu0 %v18872_v47  ;;  %v18959_v47 = vld [vmem:[%s22137_s3 + $0x1958] ss:$72 sps:$4 sm:$0xff]  }
 0x2a7   : > { %6213 = vmatpush1.bf16.msra.mxu1 %v18875_v48  ;;  %6223 = vmatprep.subr.bf16.mxu0 %v18880_v50  ;;  %v18964_v48 = vld [vmem:[%s22137_s3 + $0x10ec] ss:$72 sps:$4 sm:$0xff]   ;;  %v18962_v50 = vld [vmem:[%s22137_s3 + $0x10e8] ss:$72 sps:$4 sm:$0xff]  }
 0x2a8   : > { %6264 = vmatprep.subr.bf16.mxu1 %v18883_v51  ;;  %v18965_v51 = vld [vmem:[%s22137_s3 + $0x19e8] ss:$72 sps:$4 sm:$0xff]  }
 0x2a9   : > { %6174 = vmatmul.mubr.bf16.vlgmr.msra.gmra.mrb[4].mxu0 %v22318_v52 }
 0x2aa   : > { %6215 = vmatmul.mubr.bf16.vlgmr.msra.gmra.mrb[4].mxu1 %v22244_v43  ;;  %6224 = vmatpush1.bf16.msra.mxu0 %v18878_v53  ;;  %v18970_v53 = vld [vmem:[%s22137_s3 + $0x117c] ss:$72 sps:$4 sm:$0xff]  }
 0x2ab   : > { %6265 = vmatpush1.bf16.msra.mxu1 %v18881_v54  ;;  %6225 = vmatprep.subr.bf16.mxu0 %v18886_v55  ;;  %v18973_v54 = vld [vmem:[%s22137_s3 + $0x1a7c] ss:$72 sps:$4 sm:$0xff]   ;;  %v18968_v55 = vld [vmem:[%s22137_s3 + $0x1178] ss:$72 sps:$4 sm:$0xff]  }
 0x2ac   : > { %6266 = vmatprep.subr.bf16.mxu1 %v18889_v56  ;;  %6255 = vmatprep.mubr.bf16.mxu0 %v22223_v23  ;;  %v18971_v56 = vld [vmem:[%s22137_s3 + $0x1a78] ss:$72 sps:$4 sm:$0xff]  }
 0x2ad   : > { %6296 = vmatprep.mubr.bf16.mxu1 %v22275_v6 }
 0x2ae   : > { %6226 = vmatpush1.bf16.msra.mxu0 %v18884_v57  ;;  %v18976_v57 = vld [vmem:[%s22137_s3 + $0x14] ss:$72 sps:$4 sm:$0xff]  }
 0x2af   : > { %6267 = vmatpush1.bf16.msra.mxu1 %v18887_v58  ;;  %6227 = vmatprep.subr.bf16.mxu0 %v18892_v59  ;;  %v18979_v58 = vld [vmem:[%s22137_s3 + $0x914] ss:$72 sps:$4 sm:$0xff]   ;;  %v18974_v59 = vld [vmem:[%s22137_s3 + $0x10] ss:$72 sps:$4 sm:$0xff]  }
 0x2b0   : > { %6268 = vmatprep.subr.bf16.mxu1 %v18895_v60  ;;  %v18977_v60 = vld [vmem:[%s22137_s3 + $0x910] ss:$72 sps:$4 sm:$0xff]  }
 0x2b2   : > { %6228 = vmatpush1.bf16.msra.mxu0 %v18890_v61  ;;  %v18982_v61 = vld [vmem:[%s22137_s3 + $0xa4] ss:$72 sps:$4 sm:$0xff]  }
 0x2b3   : > { %6269 = vmatpush1.bf16.msra.mxu1 %v18893_v62  ;;  %6229 = vmatprep.subr.bf16.mxu0 %v18898_v63  ;;  %v18985_v62 = vld [vmem:[%s22137_s3 + $0x9a4] ss:$72 sps:$4 sm:$0xff]   ;;  %v18980_v63 = vld [vmem:[%s22137_s3 + $0xa0] ss:$72 sps:$4 sm:$0xff]  }
 0x2b4   : > { %6270 = vmatprep.subr.bf16.mxu1 %v18901_v0  ;;  %v18983_v0 = vld [vmem:[%s22137_s3 + $0x9a0] ss:$72 sps:$4 sm:$0xff]  }
 0x2b6   : > { %6230 = vmatpush1.bf16.msra.mxu0 %v18896_v1  ;;  %v18988_v1 = vld [vmem:[%s22137_s3 + $0x134] ss:$72 sps:$4 sm:$0xff]  }
 0x2b7   : > { %6271 = vmatpush1.bf16.msra.mxu1 %v18899_v2  ;;  %6231 = vmatprep.subr.bf16.mxu0 %v18904_v3  ;;  %v18991_v2 = vld [vmem:[%s22137_s3 + $0xa34] ss:$72 sps:$4 sm:$0xff]   ;;  %v18986_v3 = vld [vmem:[%s22137_s3 + $0x130] ss:$72 sps:$4 sm:$0xff]  }
 0x2b8   : > { %6272 = vmatprep.subr.bf16.mxu1 %v18907_v4  ;;  %v18989_v4 = vld [vmem:[%s22137_s3 + $0xa30] ss:$72 sps:$4 sm:$0xff]  }
 0x2ba   : > { %6232 = vmatpush1.bf16.msra.mxu0 %v18902_v5  ;;  %v18994_v5 = vld [vmem:[%s22137_s3 + $0x1c4] ss:$72 sps:$4 sm:$0xff]  }
 0x2bb   : > { %6273 = vmatpush1.bf16.msra.mxu1 %v18905_v7  ;;  %6233 = vmatprep.subr.bf16.mxu0 %v18910_v8  ;;  %v18997_v7 = vld [vmem:[%s22137_s3 + $0xac4] ss:$72 sps:$4 sm:$0xff]   ;;  %v18992_v8 = vld [vmem:[%s22137_s3 + $0x1c0] ss:$72 sps:$4 sm:$0xff]  }
 0x2bc   : > { %6274 = vmatprep.subr.bf16.mxu1 %v18913_v9  ;;  %v18995_v9 = vld [vmem:[%s22137_s3 + $0xac0] ss:$72 sps:$4 sm:$0xff]  }
 0x2be   : > { %6234 = vmatpush1.bf16.msra.mxu0 %v18908_v10  ;;  %v19000_v10 = vld [vmem:[%s22137_s3 + $0x254] ss:$72 sps:$4 sm:$0xff]  }
 0x2bf   : > { %6275 = vmatpush1.bf16.msra.mxu1 %v18911_v11  ;;  %6235 = vmatprep.subr.bf16.mxu0 %v18916_v12  ;;  %v19003_v11 = vld [vmem:[%s22137_s3 + $0xb54] ss:$72 sps:$4 sm:$0xff]   ;;  %v18998_v12 = vld [vmem:[%s22137_s3 + $0x250] ss:$72 sps:$4 sm:$0xff]  }
 0x2c0   : > { %6276 = vmatprep.subr.bf16.mxu1 %v18919_v13  ;;  %v19001_v13 = vld [vmem:[%s22137_s3 + $0xb50] ss:$72 sps:$4 sm:$0xff]  }
 0x2c2   : > { %6236 = vmatpush1.bf16.msra.mxu0 %v18914_v14  ;;  %v19006_v14 = vld [vmem:[%s22137_s3 + $0x2e4] ss:$72 sps:$4 sm:$0xff]  }
 0x2c3   : > { %6277 = vmatpush1.bf16.msra.mxu1 %v18917_v15  ;;  %6237 = vmatprep.subr.bf16.mxu0 %v18922_v16  ;;  %v19009_v15 = vld [vmem:[%s22137_s3 + $0xbe4] ss:$72 sps:$4 sm:$0xff]   ;;  %v19004_v16 = vld [vmem:[%s22137_s3 + $0x2e0] ss:$72 sps:$4 sm:$0xff]  }
 0x2c4   : > { %6278 = vmatprep.subr.bf16.mxu1 %v18925_v17  ;;  %v19007_v17 = vld [vmem:[%s22137_s3 + $0xbe0] ss:$72 sps:$4 sm:$0xff]  }
 0x2c6   : > { %6238 = vmatpush1.bf16.msra.mxu0 %v18920_v18  ;;  %v19012_v18 = vld [vmem:[%s22137_s3 + $0x374] ss:$72 sps:$4 sm:$0xff]  }
 0x2c7   : > { %6279 = vmatpush1.bf16.msra.mxu1 %v18923_v19  ;;  %6239 = vmatprep.subr.bf16.mxu0 %v18928_v21  ;;  %v19015_v19 = vld [vmem:[%s22137_s3 + $0xc74] ss:$72 sps:$4 sm:$0xff]   ;;  %v19010_v21 = vld [vmem:[%s22137_s3 + $0x370] ss:$72 sps:$4 sm:$0xff]  }
 0x2c8   : > { %6280 = vmatprep.subr.bf16.mxu1 %v18931_v22  ;;  %v19013_v22 = vld [vmem:[%s22137_s3 + $0xc70] ss:$72 sps:$4 sm:$0xff]  }
 0x2ca   : > { %6240 = vmatpush1.bf16.msra.mxu0 %v18926_v24  ;;  %v19018_v24 = vld [vmem:[%s22137_s3 + $0x404] ss:$72 sps:$4 sm:$0xff]  }
 0x2cb   : > { %6281 = vmatpush1.bf16.msra.mxu1 %v18929_v25  ;;  %6241 = vmatprep.subr.bf16.mxu0 %v18934_v26  ;;  %v19021_v25 = vld [vmem:[%s22137_s3 + $0xd04] ss:$72 sps:$4 sm:$0xff]   ;;  %v19016_v26 = vld [vmem:[%s22137_s3 + $0x400] ss:$72 sps:$4 sm:$0xff]  }
 0x2cc   : > { %6282 = vmatprep.subr.bf16.mxu1 %v18937_v27  ;;  %v19019_v27 = vld [vmem:[%s22137_s3 + $0xd00] ss:$72 sps:$4 sm:$0xff]  }
 0x2ce   : > { %6242 = vmatpush1.bf16.msra.mxu0 %v18932_v28  ;;  %v19024_v28 = vld [vmem:[%s22137_s3 + $0x494] ss:$72 sps:$4 sm:$0xff]  }
 0x2cf   : > { %6283 = vmatpush1.bf16.msra.mxu1 %v18935_v29  ;;  %6243 = vmatprep.subr.bf16.mxu0 %v18940_v30  ;;  %v19027_v29 = vld [vmem:[%s22137_s3 + $0xd94] ss:$72 sps:$4 sm:$0xff]   ;;  %v19022_v30 = vld [vmem:[%s22137_s3 + $0x490] ss:$72 sps:$4 sm:$0xff]  }
 0x2d0   : > { %6284 = vmatprep.subr.bf16.mxu1 %v18943_v31  ;;  %v19025_v31 = vld [vmem:[%s22137_s3 + $0xd90] ss:$72 sps:$4 sm:$0xff]  }
 0x2d2   : > { %6244 = vmatpush1.bf16.msra.mxu0 %v18938_v32  ;;  %v19030_v32 = vld [vmem:[%s22137_s3 + $0x524] ss:$72 sps:$4 sm:$0xff]  }
 0x2d3   : > { %6285 = vmatpush1.bf16.msra.mxu1 %v18941_v33  ;;  %6245 = vmatprep.subr.bf16.mxu0 %v18946_v34  ;;  %v19033_v33 = vld [vmem:[%s22137_s3 + $0xe24] ss:$72 sps:$4 sm:$0xff]   ;;  %v19028_v34 = vld [vmem:[%s22137_s3 + $0x520] ss:$72 sps:$4 sm:$0xff]  }
 0x2d4   : > { %6286 = vmatprep.subr.bf16.mxu1 %v18949_v35  ;;  %v19031_v35 = vld [vmem:[%s22137_s3 + $0xe20] ss:$72 sps:$4 sm:$0xff]  }
 0x2d6   : > { %6246 = vmatpush1.bf16.msra.mxu0 %v18944_v36  ;;  %v19036_v36 = vld [vmem:[%s22137_s3 + $0x5b4] ss:$72 sps:$4 sm:$0xff]  }
 0x2d7   : > { %6287 = vmatpush1.bf16.msra.mxu1 %v18947_v37  ;;  %6247 = vmatprep.subr.bf16.mxu0 %v18952_v38  ;;  %v19039_v37 = vld [vmem:[%s22137_s3 + $0xeb4] ss:$72 sps:$4 sm:$0xff]   ;;  %v19034_v38 = vld [vmem:[%s22137_s3 + $0x5b0] ss:$72 sps:$4 sm:$0xff]  }
 0x2d8   : > { %6288 = vmatprep.subr.bf16.mxu1 %v18955_v39  ;;  %v19037_v39 = vld [vmem:[%s22137_s3 + $0xeb0] ss:$72 sps:$4 sm:$0xff]  }
 0x2da   : > { %6248 = vmatpush1.bf16.msra.mxu0 %v18950_v40  ;;  %v19042_v40 = vld [vmem:[%s22137_s3 + $0x644] ss:$72 sps:$4 sm:$0xff]  }
 0x2db   : > { %6289 = vmatpush1.bf16.msra.mxu1 %v18953_v41  ;;  %6249 = vmatprep.subr.bf16.mxu0 %v18958_v42  ;;  %v19045_v41 = vld [vmem:[%s22137_s3 + $0xf44] ss:$72 sps:$4 sm:$0xff]   ;;  %v19040_v42 = vld [vmem:[%s22137_s3 + $0x640] ss:$72 sps:$4 sm:$0xff]  }
 0x2dc   : > { %6290 = vmatprep.subr.bf16.mxu1 %v18961_v45  ;;  %v19043_v45 = vld [vmem:[%s22137_s3 + $0xf40] ss:$72 sps:$4 sm:$0xff]  }
 0x2de   : > { %6250 = vmatpush1.bf16.msra.mxu0 %v18956_v46  ;;  %v19048_v46 = vld [vmem:[%s22137_s3 + $0x6d4] ss:$72 sps:$4 sm:$0xff]  }
 0x2df   : > { %6291 = vmatpush1.bf16.msra.mxu1 %v18959_v47  ;;  %6251 = vmatprep.subr.bf16.mxu0 %v18964_v48  ;;  %v19051_v47 = vld [vmem:[%s22137_s3 + $0xfd4] ss:$72 sps:$4 sm:$0xff]   ;;  %v19046_v48 = vld [vmem:[%s22137_s3 + $0x6d0] ss:$72 sps:$4 sm:$0xff]  }
 0x2e0   : > { %6292 = vmatprep.subr.bf16.mxu1 %v18967_v49  ;;  %v19049_v49 = vld [vmem:[%s22137_s3 + $0xfd0] ss:$72 sps:$4 sm:$0xff]  }
 0x2e2   : > { %6252 = vmatpush1.bf16.msra.mxu0 %v18962_v50  ;;  %v19054_v50 = vld [vmem:[%s22137_s3 + $0x764] ss:$72 sps:$4 sm:$0xff]  }
 0x2e3   : > { %6293 = vmatpush1.bf16.msra.mxu1 %v18965_v51  ;;  %6253 = vmatprep.subr.bf16.mxu0 %v18970_v53  ;;  %v19057_v51 = vld [vmem:[%s22137_s3 + $0x1064] ss:$72 sps:$4 sm:$0xff]   ;;  %v19052_v53 = vld [vmem:[%s22137_s3 + $0x760] ss:$72 sps:$4 sm:$0xff]  }
 0x2e4   : > { %6294 = vmatprep.subr.bf16.mxu1 %v18973_v54  ;;  %v19055_v54 = vld [vmem:[%s22137_s3 + $0x1060] ss:$72 sps:$4 sm:$0xff]  }
 0x2e6   : > { %6254 = vmatpush1.bf16.msra.mxu0 %v18968_v55  ;;  %v19060_v55 = vld [vmem:[%s22137_s3 + $0x7f4] ss:$72 sps:$4 sm:$0xff]  }
 0x2e7   : > { %6295 = vmatpush1.bf16.msra.mxu1 %v18971_v56  ;;  %6305 = vmatprep.subr.bf16.mxu0 %v18976_v57  ;;  %v19063_v56 = vld [vmem:[%s22137_s3 + $0x10f4] ss:$72 sps:$4 sm:$0xff]   ;;  %v19058_v57 = vld [vmem:[%s22137_s3 + $0x7f0] ss:$72 sps:$4 sm:$0xff]  }
 0x2e8   : > { %6346 = vmatprep.subr.bf16.mxu1 %v18979_v58  ;;  %v19061_v58 = vld [vmem:[%s22137_s3 + $0x10f0] ss:$72 sps:$4 sm:$0xff]  }
 0x2e9   : > { %6256 = vmatmul.mubr.bf16.vlgmr.msra.gmra.mrb[8].mxu0 %v22246_v44 }
 0x2ea   : > { %6297 = vmatmul.mubr.bf16.vlgmr.msra.gmra.mrb[8].mxu1 %v22318_v52  ;;  %6306 = vmatpush1.bf16.msra.mxu0 %v18974_v59  ;;  %v19066_v59 = vld [vmem:[%s22137_s3 + $0x884] ss:$72 sps:$4 sm:$0xff]  }
 0x2eb   : > { %6347 = vmatpush1.bf16.msra.mxu1 %v18977_v60  ;;  %6307 = vmatprep.subr.bf16.mxu0 %v18982_v61  ;;  %v19069_v60 = vld [vmem:[%s22137_s3 + $0x1184] ss:$72 sps:$4 sm:$0xff]   ;;  %v19064_v61 = vld [vmem:[%s22137_s3 + $0x880] ss:$72 sps:$4 sm:$0xff]  }
 0x2ec   : > { %6348 = vmatprep.subr.bf16.mxu1 %v18985_v62  ;;  %6337 = vmatprep.mubr.bf16.mxu0 %v22220_v20  ;;  %v19067_v62 = vld [vmem:[%s22137_s3 + $0x1180] ss:$72 sps:$4 sm:$0xff]  }
 0x2ed   : > { %6378 = vmatprep.mubr.bf16.mxu1 %v22223_v23 }
 0x2ee   : > { %6308 = vmatpush1.bf16.msra.mxu0 %v18980_v63  ;;  %v19072_v63 = vld [vmem:[%s22137_s3 + $0x1214] ss:$72 sps:$4 sm:$0xff]  }
 0x2ef   : > { %6349 = vmatpush1.bf16.msra.mxu1 %v18983_v0  ;;  %6309 = vmatprep.subr.bf16.mxu0 %v18988_v1  ;;  %v19075_v0 = vld [vmem:[%s22137_s3 + $0x1c] ss:$72 sps:$4 sm:$0xff]   ;;  %v19070_v1 = vld [vmem:[%s22137_s3 + $0x1210] ss:$72 sps:$4 sm:$0xff]  }
 0x2f0   : > { %6350 = vmatprep.subr.bf16.mxu1 %v18991_v2  ;;  %v19073_v2 = vld [vmem:[%s22137_s3 + $0x18] ss:$72 sps:$4 sm:$0xff]  }
 0x2f2   : > { %6310 = vmatpush1.bf16.msra.mxu0 %v18986_v3  ;;  %v19078_v3 = vld [vmem:[%s22137_s3 + $0x12a4] ss:$72 sps:$4 sm:$0xff]  }
 0x2f3   : > { %6351 = vmatpush1.bf16.msra.mxu1 %v18989_v4  ;;  %6311 = vmatprep.subr.bf16.mxu0 %v18994_v5  ;;  %v19081_v4 = vld [vmem:[%s22137_s3 + $0xac] ss:$72 sps:$4 sm:$0xff]   ;;  %v19076_v5 = vld [vmem:[%s22137_s3 + $0x12a0] ss:$72 sps:$4 sm:$0xff]  }
 0x2f4   : > { %6352 = vmatprep.subr.bf16.mxu1 %v18997_v7  ;;  %v19079_v7 = vld [vmem:[%s22137_s3 + $0xa8] ss:$72 sps:$4 sm:$0xff]  }
 0x2f6   : > { %6312 = vmatpush1.bf16.msra.mxu0 %v18992_v8  ;;  %v19084_v8 = vld [vmem:[%s22137_s3 + $0x1334] ss:$72 sps:$4 sm:$0xff]  }
 0x2f7   : > { %6353 = vmatpush1.bf16.msra.mxu1 %v18995_v9  ;;  %6313 = vmatprep.subr.bf16.mxu0 %v19000_v10  ;;  %v19087_v9 = vld [vmem:[%s22137_s3 + $0x13c] ss:$72 sps:$4 sm:$0xff]   ;;  %v19082_v10 = vld [vmem:[%s22137_s3 + $0x1330] ss:$72 sps:$4 sm:$0xff]  }
 0x2f8   : > { %6354 = vmatprep.subr.bf16.mxu1 %v19003_v11  ;;  %v19085_v11 = vld [vmem:[%s22137_s3 + $0x138] ss:$72 sps:$4 sm:$0xff]  }
 0x2fa   : > { %6314 = vmatpush1.bf16.msra.mxu0 %v18998_v12  ;;  %v19090_v12 = vld [vmem:[%s22137_s3 + $0x13c4] ss:$72 sps:$4 sm:$0xff]  }
 0x2fb   : > { %6355 = vmatpush1.bf16.msra.mxu1 %v19001_v13  ;;  %6315 = vmatprep.subr.bf16.mxu0 %v19006_v14  ;;  %v19093_v13 = vld [vmem:[%s22137_s3 + $0x1cc] ss:$72 sps:$4 sm:$0xff]   ;;  %v19088_v14 = vld [vmem:[%s22137_s3 + $0x13c0] ss:$72 sps:$4 sm:$0xff]  }
 0x2fc   : > { %6356 = vmatprep.subr.bf16.mxu1 %v19009_v15  ;;  %v19091_v15 = vld [vmem:[%s22137_s3 + $0x1c8] ss:$72 sps:$4 sm:$0xff]  }
 0x2fe   : > { %6316 = vmatpush1.bf16.msra.mxu0 %v19004_v16  ;;  %v19096_v16 = vld [vmem:[%s22137_s3 + $0x1454] ss:$72 sps:$4 sm:$0xff]  }
 0x2ff   : > { %6357 = vmatpush1.bf16.msra.mxu1 %v19007_v17  ;;  %6317 = vmatprep.subr.bf16.mxu0 %v19012_v18  ;;  %v19099_v17 = vld [vmem:[%s22137_s3 + $0x25c] ss:$72 sps:$4 sm:$0xff]   ;;  %v19094_v18 = vld [vmem:[%s22137_s3 + $0x1450] ss:$72 sps:$4 sm:$0xff]  }
 0x300   : > { %6358 = vmatprep.subr.bf16.mxu1 %v19015_v19  ;;  %v19097_v19 = vld [vmem:[%s22137_s3 + $0x258] ss:$72 sps:$4 sm:$0xff]  }
 0x302   : > { %6318 = vmatpush1.bf16.msra.mxu0 %v19010_v21  ;;  %v19102_v21 = vld [vmem:[%s22137_s3 + $0x14e4] ss:$72 sps:$4 sm:$0xff]  }
 0x303   : > { %6359 = vmatpush1.bf16.msra.mxu1 %v19013_v22  ;;  %6319 = vmatprep.subr.bf16.mxu0 %v19018_v24  ;;  %v19105_v22 = vld [vmem:[%s22137_s3 + $0x2ec] ss:$72 sps:$4 sm:$0xff]   ;;  %v19100_v24 = vld [vmem:[%s22137_s3 + $0x14e0] ss:$72 sps:$4 sm:$0xff]  }
 0x304   : > { %6360 = vmatprep.subr.bf16.mxu1 %v19021_v25  ;;  %v19103_v25 = vld [vmem:[%s22137_s3 + $0x2e8] ss:$72 sps:$4 sm:$0xff]  }
 0x306   : > { %6320 = vmatpush1.bf16.msra.mxu0 %v19016_v26  ;;  %v19108_v26 = vld [vmem:[%s22137_s3 + $0x1574] ss:$72 sps:$4 sm:$0xff]  }
 0x307   : > { %6361 = vmatpush1.bf16.msra.mxu1 %v19019_v27  ;;  %6321 = vmatprep.subr.bf16.mxu0 %v19024_v28  ;;  %v19111_v27 = vld [vmem:[%s22137_s3 + $0x37c] ss:$72 sps:$4 sm:$0xff]  }
 0x308   : > { %6362 = vmatprep.subr.bf16.mxu1 %v19027_v29 }
 0x30a   : > { %6322 = vmatpush1.bf16.msra.mxu0 %v19022_v30  ;;  %v19106_v30 = vld [vmem:[%s22137_s3 + $0x1570] ss:$72 sps:$4 sm:$0xff]  }
 0x30b   : > { %6363 = vmatpush1.bf16.msra.mxu1 %v19025_v31  ;;  %6323 = vmatprep.subr.bf16.mxu0 %v19030_v32  ;;  %v19109_v31 = vld [vmem:[%s22137_s3 + $0x378] ss:$72 sps:$4 sm:$0xff]  }
 0x30c   : > { %6364 = vmatprep.subr.bf16.mxu1 %v19033_v33 }
 0x30e   : > { %6324 = vmatpush1.bf16.msra.mxu0 %v19028_v34 }
 0x30f   : > { %6365 = vmatpush1.bf16.msra.mxu1 %v19031_v35  ;;  %6325 = vmatprep.subr.bf16.mxu0 %v19036_v36  ;;  %v19114_v35 = vld [vmem:[%s22137_s3 + $0x1604] ss:$72 sps:$4 sm:$0xff]  }
 0x310   : > { %6366 = vmatprep.subr.bf16.mxu1 %v19039_v37 }
 0x312   : > { %6326 = vmatpush1.bf16.msra.mxu0 %v19034_v38 }
 0x313   : > { %6367 = vmatpush1.bf16.msra.mxu1 %v19037_v39  ;;  %6327 = vmatprep.subr.bf16.mxu0 %v19042_v40  ;;  %v19117_v40 = vld [vmem:[%s22137_s3 + $0x40c] ss:$72 sps:$4 sm:$0xff]  }
 0x314   : > { %6368 = vmatprep.subr.bf16.mxu1 %v19045_v41 }
 0x316   : > { %6328 = vmatpush1.bf16.msra.mxu0 %v19040_v42  ;;  %v19112_v42 = vld [vmem:[%s22137_s3 + $0x1600] ss:$72 sps:$4 sm:$0xff]  }
 0x317   : > { %6369 = vmatpush1.bf16.msra.mxu1 %v19043_v45  ;;  %6329 = vmatprep.subr.bf16.mxu0 %v19048_v46  ;;  %v19115_v45 = vld [vmem:[%s22137_s3 + $0x408] ss:$72 sps:$4 sm:$0xff]   ;;  %v19120_v46 = vld [vmem:[%s22137_s3 + $0x1694] ss:$72 sps:$4 sm:$0xff]  }
 0x318   : > { %6370 = vmatprep.subr.bf16.mxu1 %v19051_v47  ;;  %v19123_v47 = vld [vmem:[%s22137_s3 + $0x49c] ss:$72 sps:$4 sm:$0xff]  }
 0x31a   : > { %6330 = vmatpush1.bf16.msra.mxu0 %v19046_v48  ;;  %v19118_v48 = vld [vmem:[%s22137_s3 + $0x1690] ss:$72 sps:$4 sm:$0xff]  }
 0x31b   : > { %6371 = vmatpush1.bf16.msra.mxu1 %v19049_v49  ;;  %6331 = vmatprep.subr.bf16.mxu0 %v19054_v50  ;;  %v19121_v49 = vld [vmem:[%s22137_s3 + $0x498] ss:$72 sps:$4 sm:$0xff]   ;;  %v19126_v50 = vld [vmem:[%s22137_s3 + $0x1724] ss:$72 sps:$4 sm:$0xff]  }
 0x31c   : > { %6372 = vmatprep.subr.bf16.mxu1 %v19057_v51  ;;  %v19129_v51 = vld [vmem:[%s22137_s3 + $0x52c] ss:$72 sps:$4 sm:$0xff]  }
 0x31e   : > { %6332 = vmatpush1.bf16.msra.mxu0 %v19052_v53  ;;  %v19124_v53 = vld [vmem:[%s22137_s3 + $0x1720] ss:$72 sps:$4 sm:$0xff]  }
 0x31f   : > { %6373 = vmatpush1.bf16.msra.mxu1 %v19055_v54  ;;  %6333 = vmatprep.subr.bf16.mxu0 %v19060_v55  ;;  %v19127_v54 = vld [vmem:[%s22137_s3 + $0x528] ss:$72 sps:$4 sm:$0xff]   ;;  %v19132_v55 = vld [vmem:[%s22137_s3 + $0x17b4] ss:$72 sps:$4 sm:$0xff]  }
 0x320   : > { %6374 = vmatprep.subr.bf16.mxu1 %v19063_v56  ;;  %v19135_v56 = vld [vmem:[%s22137_s3 + $0x5bc] ss:$72 sps:$4 sm:$0xff]  }
 0x322   : > { %6334 = vmatpush1.bf16.msra.mxu0 %v19058_v57  ;;  %v19130_v57 = vld [vmem:[%s22137_s3 + $0x17b0] ss:$72 sps:$4 sm:$0xff]  }
 0x323   : > { %6375 = vmatpush1.bf16.msra.mxu1 %v19061_v58  ;;  %6335 = vmatprep.subr.bf16.mxu0 %v19066_v59  ;;  %v19133_v58 = vld [vmem:[%s22137_s3 + $0x5b8] ss:$72 sps:$4 sm:$0xff]   ;;  %v19138_v59 = vld [vmem:[%s22137_s3 + $0x1844] ss:$72 sps:$4 sm:$0xff]  }
 0x324   : > { %6376 = vmatprep.subr.bf16.mxu1 %v19069_v60  ;;  %v19141_v60 = vld [vmem:[%s22137_s3 + $0x64c] ss:$72 sps:$4 sm:$0xff]  }
 0x326   : > { %6336 = vmatpush1.bf16.msra.mxu0 %v19064_v61  ;;  %v19136_v61 = vld [vmem:[%s22137_s3 + $0x1840] ss:$72 sps:$4 sm:$0xff]  }
 0x327   : > { %6377 = vmatpush1.bf16.msra.mxu1 %v19067_v62  ;;  %6387 = vmatprep.subr.bf16.mxu0 %v19072_v63  ;;  %v19139_v62 = vld [vmem:[%s22137_s3 + $0x648] ss:$72 sps:$4 sm:$0xff]   ;;  %v19144_v63 = vld [vmem:[%s22137_s3 + $0x18d4] ss:$72 sps:$4 sm:$0xff]  }
 0x328   : > { %6428 = vmatprep.subr.bf16.mxu1 %v19075_v0  ;;  %v19147_v0 = vld [vmem:[%s22137_s3 + $0x6dc] ss:$72 sps:$4 sm:$0xff]  }
 0x329   : > { %6338 = vmatmul.mubr.bf16.vlgmr.msra.gmra.mrb[12].mxu0 %v22244_v43 }
 0x32a   : > { %6379 = vmatmul.mubr.bf16.vlgmr.msra.gmra.mrb[12].mxu1 %v22246_v44  ;;  %6388 = vmatpush1.bf16.msra.mxu0 %v19070_v1  ;;  %v19142_v1 = vld [vmem:[%s22137_s3 + $0x18d0] ss:$72 sps:$4 sm:$0xff]  }
 0x32b   : > { %6429 = vmatpush1.bf16.msra.mxu1 %v19073_v2  ;;  %6389 = vmatprep.subr.bf16.mxu0 %v19078_v3  ;;  %v19145_v2 = vld [vmem:[%s22137_s3 + $0x6d8] ss:$72 sps:$4 sm:$0xff]   ;;  %v19150_v3 = vld [vmem:[%s22137_s3 + $0x1964] ss:$72 sps:$4 sm:$0xff]  }
 0x32c   : > { %6430 = vmatprep.subr.bf16.mxu1 %v19081_v4  ;;  %6419 = vmatprep.mubr.bf16.mxu0 %v22275_v6  ;;  %v19153_v4 = vld [vmem:[%s22137_s3 + $0x76c] ss:$72 sps:$4 sm:$0xff]  }
 0x32d   : > { %6460 = vmatprep.mubr.bf16.mxu1 %v22220_v20 }
 0x32e   : > { %6390 = vmatpush1.bf16.msra.mxu0 %v19076_v5  ;;  %v19148_v5 = vld [vmem:[%s22137_s3 + $0x1960] ss:$72 sps:$4 sm:$0xff]  }
 0x32f   : > { %6431 = vmatpush1.bf16.msra.mxu1 %v19079_v7  ;;  %6391 = vmatprep.subr.bf16.mxu0 %v19084_v8  ;;  %v19151_v7 = vld [vmem:[%s22137_s3 + $0x768] ss:$72 sps:$4 sm:$0xff]   ;;  %v19156_v8 = vld [vmem:[%s22137_s3 + $0x19f4] ss:$72 sps:$4 sm:$0xff]  }
 0x330   : > { %6432 = vmatprep.subr.bf16.mxu1 %v19087_v9  ;;  %v19159_v9 = vld [vmem:[%s22137_s3 + $0x7fc] ss:$72 sps:$4 sm:$0xff]  }
 0x332   : > { %6392 = vmatpush1.bf16.msra.mxu0 %v19082_v10  ;;  %v19154_v10 = vld [vmem:[%s22137_s3 + $0x19f0] ss:$72 sps:$4 sm:$0xff]  }
 0x333   : > { %6433 = vmatpush1.bf16.msra.mxu1 %v19085_v11  ;;  %6393 = vmatprep.subr.bf16.mxu0 %v19090_v12  ;;  %v19157_v11 = vld [vmem:[%s22137_s3 + $0x7f8] ss:$72 sps:$4 sm:$0xff]   ;;  %v19162_v12 = vld [vmem:[%s22137_s3 + $0x1a84] ss:$72 sps:$4 sm:$0xff]  }
 0x334   : > { %6434 = vmatprep.subr.bf16.mxu1 %v19093_v13  ;;  %v19165_v13 = vld [vmem:[%s22137_s3 + $0x88c] ss:$72 sps:$4 sm:$0xff]  }
 0x336   : > { %6394 = vmatpush1.bf16.msra.mxu0 %v19088_v14  ;;  %v19160_v14 = vld [vmem:[%s22137_s3 + $0x1a80] ss:$72 sps:$4 sm:$0xff]  }
 0x337   : > { %6435 = vmatpush1.bf16.msra.mxu1 %v19091_v15  ;;  %6395 = vmatprep.subr.bf16.mxu0 %v19096_v16  ;;  %v19163_v15 = vld [vmem:[%s22137_s3 + $0x888] ss:$72 sps:$4 sm:$0xff]   ;;  %v19168_v16 = vld [vmem:[%s22137_s3 + $0x91c] ss:$72 sps:$4 sm:$0xff]  }
 0x338   : > { %6436 = vmatprep.subr.bf16.mxu1 %v19099_v17  ;;  %v19171_v17 = vld [vmem:[%s22137_s3 + $0x121c] ss:$72 sps:$4 sm:$0xff]  }
 0x33a   : > { %6396 = vmatpush1.bf16.msra.mxu0 %v19094_v18  ;;  %v19166_v18 = vld [vmem:[%s22137_s3 + $0x918] ss:$72 sps:$4 sm:$0xff]  }
 0x33b   : > { %6437 = vmatpush1.bf16.msra.mxu1 %v19097_v19  ;;  %6397 = vmatprep.subr.bf16.mxu0 %v19102_v21  ;;  %v19169_v19 = vld [vmem:[%s22137_s3 + $0x1218] ss:$72 sps:$4 sm:$0xff]   ;;  %v19174_v21 = vld [vmem:[%s22137_s3 + $0x9ac] ss:$72 sps:$4 sm:$0xff]  }
 0x33c   : > { %6438 = vmatprep.subr.bf16.mxu1 %v19105_v22  ;;  %v6093_v28 = vpop.f32.mrb[0].mxu0  ;;  %v19177_v22 = vld [vmem:[%s22137_s3 + $0x12ac] ss:$72 sps:$4 sm:$0xff]  }
 0x33d   : > { %v6134_v29 = vpop.f32.mrb[0].mxu1  ;;  %v6095_v33 = vpop.f32.mrb[1].mxu0 }
 0x33e   : > { %v22486_v32 = vadd.f32 %v6134_v29, %v6093_v28  ;;  %v6136_v34 = vpop.f32.mrb[1].mxu1  ;;  %6398 = vmatpush1.bf16.msra.mxu0 %v19100_v24  ;;  %v6097_v38 = vpop.f32.mrb[2].mxu0  ;;  %v19172_v24 = vld [vmem:[%s22137_s3 + $0x9a8] ss:$72 sps:$4 sm:$0xff]   ;;  %v19178_v28 = vld [vmem:[%s22137_s3 + $0xa38] ss:$72 sps:$4 sm:$0xff]  }
 0x33f   : > { %v22489_v36 = vadd.f32 %v6136_v34, %v6095_v33  ;;  %v6138_v37 = vpop.f32.mrb[2].mxu1  ;;  %6439 = vmatpush1.bf16.msra.mxu1 %v19103_v25  ;;  %6399 = vmatprep.subr.bf16.mxu0 %v19108_v26  ;;  %v6098_v41 = vpop.f32.mrb[3].mxu0  ;;  %v19175_v25 = vld [vmem:[%s22137_s3 + $0x12a8] ss:$72 sps:$4 sm:$0xff]   ;;  %v19180_v26 = vld [vmem:[%s22137_s3 + $0xa3c] ss:$72 sps:$4 sm:$0xff]  }
 0x340   : > { %v6139_v39 = vpop.f32.mrb[3].mxu1  ;;  %6440 = vmatprep.subr.bf16.mxu1 %v19111_v27  ;;  %v19183_v27 = vld [vmem:[%s22137_s3 + $0x133c] ss:$72 sps:$4 sm:$0xff]   ;;  %v19181_v29 = vld [vmem:[%s22137_s3 + $0x1338] ss:$72 sps:$4 sm:$0xff]  }
 0x341   : > { %v19184_v33 = vld [vmem:[%s22137_s3 + $0xac8] ss:$72 sps:$4 sm:$0xff]   ;;  %v19195_v37 = vld [vmem:[%s22137_s3 + $0x145c] ss:$72 sps:$4 sm:$0xff]   ;;  %v19190_v38 = vld [vmem:[%s22137_s3 + $0xb58] ss:$72 sps:$4 sm:$0xff]  }
 0x342   : > { %6400 = vmatpush1.bf16.msra.mxu0 %v19106_v30  ;;  %v19186_v30 = vld [vmem:[%s22137_s3 + $0xacc] ss:$72 sps:$4 sm:$0xff]   ;;  %v19187_v34 = vld [vmem:[%s22137_s3 + $0x13c8] ss:$72 sps:$4 sm:$0xff]   ;;  %v19193_v39 = vld [vmem:[%s22137_s3 + $0x1458] ss:$72 sps:$4 sm:$0xff]  }
 0x343   : > { %6441 = vmatpush1.bf16.msra.mxu1 %v19109_v31  ;;  %6401 = vmatprep.subr.bf16.mxu0 %v19114_v35  ;;  %v19189_v31 = vld [vmem:[%s22137_s3 + $0x13cc] ss:$72 sps:$4 sm:$0xff]   ;;  %v19192_v35 = vld [vmem:[%s22137_s3 + $0xb5c] ss:$72 sps:$4 sm:$0xff]  }
 0x344   : > { %6442 = vmatprep.subr.bf16.mxu1 %v19117_v40  ;;  %v19198_v40 = vld [vmem:[%s22137_s3 + $0xbec] ss:$72 sps:$4 sm:$0xff]  }
 0x345   : > { %v19201_v41 = vld [vmem:[%s22137_s3 + $0x14ec] ss:$72 sps:$4 sm:$0xff]  }
 0x346   : > { %6402 = vmatpush1.bf16.msra.mxu0 %v19112_v42  ;;  %v19196_v42 = vld [vmem:[%s22137_s3 + $0xbe8] ss:$72 sps:$4 sm:$0xff]  }
 0x347   : > { %6443 = vmatpush1.bf16.msra.mxu1 %v19115_v45  ;;  %6403 = vmatprep.subr.bf16.mxu0 %v19120_v46  ;;  %v19199_v45 = vld [vmem:[%s22137_s3 + $0x14e8] ss:$72 sps:$4 sm:$0xff]   ;;  %v19204_v46 = vld [vmem:[%s22137_s3 + $0xc7c] ss:$72 sps:$4 sm:$0xff]  }
 0x348   : > { %6444 = vmatprep.subr.bf16.mxu1 %v19123_v47  ;;  %v19207_v47 = vld [vmem:[%s22137_s3 + $0x157c] ss:$72 sps:$4 sm:$0xff]  }
 0x34a   : > { %6404 = vmatpush1.bf16.msra.mxu0 %v19118_v48 }
 0x34b   : > { %6445 = vmatpush1.bf16.msra.mxu1 %v19121_v49  ;;  %6405 = vmatprep.subr.bf16.mxu0 %v19126_v50  ;;  %v19202_v50 = vld [vmem:[%s22137_s3 + $0xc78] ss:$72 sps:$4 sm:$0xff]  }
 0x34c   : > { %6446 = vmatprep.subr.bf16.mxu1 %v19129_v51  ;;  %v19205_v51 = vld [vmem:[%s22137_s3 + $0x1578] ss:$72 sps:$4 sm:$0xff]  }
 0x34e   : > { %6406 = vmatpush1.bf16.msra.mxu0 %v19124_v53 }
 0x34f   : > { %6447 = vmatpush1.bf16.msra.mxu1 %v19127_v54  ;;  %6407 = vmatprep.subr.bf16.mxu0 %v19132_v55 }
 0x350   : > { %6448 = vmatprep.subr.bf16.mxu1 %v19135_v56 }
 0x352   : > { %6408 = vmatpush1.bf16.msra.mxu0 %v19130_v57 }
 0x353   : > { %6449 = vmatpush1.bf16.msra.mxu1 %v19133_v58  ;;  %6409 = vmatprep.subr.bf16.mxu0 %v19138_v59 }
 0x354   : > { %6450 = vmatprep.subr.bf16.mxu1 %v19141_v60  ;;  %v19213_v60 = vld [vmem:[%s22137_s3 + $0x160c] ss:$72 sps:$4 sm:$0xff]  }
 0x356   : > { %6410 = vmatpush1.bf16.msra.mxu0 %v19136_v61 }
 0x357   : > { %6451 = vmatpush1.bf16.msra.mxu1 %v19139_v62  ;;  %6411 = vmatprep.subr.bf16.mxu0 %v19144_v63  ;;  %v19211_v62 = vld [vmem:[%s22137_s3 + $0x1608] ss:$72 sps:$4 sm:$0xff]   ;;  %v19216_v63 = vld [vmem:[%s22137_s3 + $0xd9c] ss:$72 sps:$4 sm:$0xff]  }
 0x358   : > { %6452 = vmatprep.subr.bf16.mxu1 %v19147_v0  ;;  %v19219_v0 = vld [vmem:[%s22137_s3 + $0x169c] ss:$72 sps:$4 sm:$0xff]  }
 0x35a   : > { %6412 = vmatpush1.bf16.msra.mxu0 %v19142_v1  ;;  %v19214_v1 = vld [vmem:[%s22137_s3 + $0xd98] ss:$72 sps:$4 sm:$0xff]  }
 0x35b   : > { %6453 = vmatpush1.bf16.msra.mxu1 %v19145_v2  ;;  %6413 = vmatprep.subr.bf16.mxu0 %v19150_v3  ;;  %v19217_v2 = vld [vmem:[%s22137_s3 + $0x1698] ss:$72 sps:$4 sm:$0xff]   ;;  %v19222_v3 = vld [vmem:[%s22137_s3 + $0xe2c] ss:$72 sps:$4 sm:$0xff]  }
 0x35c   : > { %6454 = vmatprep.subr.bf16.mxu1 %v19153_v4  ;;  %v19225_v4 = vld [vmem:[%s22137_s3 + $0x172c] ss:$72 sps:$4 sm:$0xff]  }
 0x35e   : > { %6414 = vmatpush1.bf16.msra.mxu0 %v19148_v5  ;;  %v19220_v5 = vld [vmem:[%s22137_s3 + $0xe28] ss:$72 sps:$4 sm:$0xff]  }
 0x35f   : > { %6455 = vmatpush1.bf16.msra.mxu1 %v19151_v7  ;;  %6415 = vmatprep.subr.bf16.mxu0 %v19156_v8  ;;  %v19223_v7 = vld [vmem:[%s22137_s3 + $0x1728] ss:$72 sps:$4 sm:$0xff]   ;;  %v19228_v8 = vld [vmem:[%s22137_s3 + $0xebc] ss:$72 sps:$4 sm:$0xff]  }
 0x360   : > { %6456 = vmatprep.subr.bf16.mxu1 %v19159_v9  ;;  %v19231_v9 = vld [vmem:[%s22137_s3 + $0x17bc] ss:$72 sps:$4 sm:$0xff]  }
 0x362   : > { %6416 = vmatpush1.bf16.msra.mxu0 %v19154_v10  ;;  %v19226_v10 = vld [vmem:[%s22137_s3 + $0xeb8] ss:$72 sps:$4 sm:$0xff]  }
 0x363   : > { %6457 = vmatpush1.bf16.msra.mxu1 %v19157_v11  ;;  %6417 = vmatprep.subr.bf16.mxu0 %v19162_v12  ;;  %v19229_v11 = vld [vmem:[%s22137_s3 + $0x17b8] ss:$72 sps:$4 sm:$0xff]   ;;  %v19234_v12 = vld [vmem:[%s22137_s3 + $0xf4c] ss:$72 sps:$4 sm:$0xff]  }
 0x364   : > { %6458 = vmatprep.subr.bf16.mxu1 %v19165_v13  ;;  %v19237_v13 = vld [vmem:[%s22137_s3 + $0x184c] ss:$72 sps:$4 sm:$0xff]  }
 0x366   : > { %6418 = vmatpush1.bf16.msra.mxu0 %v19160_v14  ;;  %v19232_v14 = vld [vmem:[%s22137_s3 + $0xf48] ss:$72 sps:$4 sm:$0xff]  }
 0x367   : > { %6459 = vmatpush1.bf16.msra.mxu1 %v19163_v15  ;;  %6469 = vmatprep.subr.bf16.mxu0 %v19168_v16  ;;  %v19235_v15 = vld [vmem:[%s22137_s3 + $0x1848] ss:$72 sps:$4 sm:$0xff]   ;;  %v19240_v16 = vld [vmem:[%s22137_s3 + $0xfdc] ss:$72 sps:$4 sm:$0xff]  }
 0x368   : > { %6510 = vmatprep.subr.bf16.mxu1 %v19171_v17  ;;  %v19243_v17 = vld [vmem:[%s22137_s3 + $0x18dc] ss:$72 sps:$4 sm:$0xff]  }
 0x369   : > { %6420 = vmatmul.mubr.bf16.vlgmr.msra.gmra.mrb[16].mxu0 %v22318_v52 }
 0x36a   : > { %6461 = vmatmul.mubr.bf16.vlgmr.msra.gmra.mrb[16].mxu1 %v22244_v43  ;;  %6470 = vmatpush1.bf16.msra.mxu0 %v19166_v18  ;;  %v19238_v18 = vld [vmem:[%s22137_s3 + $0xfd8] ss:$72 sps:$4 sm:$0xff]  }
 0x36b   : > { %6511 = vmatpush1.bf16.msra.mxu1 %v19169_v19  ;;  %6471 = vmatprep.subr.bf16.mxu0 %v19174_v21  ;;  %v19241_v19 = vld [vmem:[%s22137_s3 + $0x18d8] ss:$72 sps:$4 sm:$0xff]   ;;  %v19246_v21 = vld [vmem:[%s22137_s3 + $0x106c] ss:$72 sps:$4 sm:$0xff]  }
 0x36c   : > { %6512 = vmatprep.subr.bf16.mxu1 %v19177_v22  ;;  %6501 = vmatprep.mubr.bf16.mxu0 %v22223_v23  ;;  %v19249_v22 = vld [vmem:[%s22137_s3 + $0x196c] ss:$72 sps:$4 sm:$0xff]  }
 0x36d   : > { %6542 = vmatprep.mubr.bf16.mxu1 %v22275_v6 }
 0x36e   : > { %6472 = vmatpush1.bf16.msra.mxu0 %v19172_v24  ;;  %v19244_v24 = vld [vmem:[%s22137_s3 + $0x1068] ss:$72 sps:$4 sm:$0xff]  }
 0x36f   : > { %6513 = vmatpush1.bf16.msra.mxu1 %v19175_v25  ;;  %6473 = vmatprep.subr.bf16.mxu0 %v19180_v26  ;;  %v19247_v25 = vld [vmem:[%s22137_s3 + $0x1968] ss:$72 sps:$4 sm:$0xff]   ;;  %v19252_v26 = vld [vmem:[%s22137_s3 + $0x10fc] ss:$72 sps:$4 sm:$0xff]  }
 0x370   : > { %6514 = vmatprep.subr.bf16.mxu1 %v19183_v27  ;;  %v19255_v27 = vld [vmem:[%s22137_s3 + $0x19fc] ss:$72 sps:$4 sm:$0xff]  }
 0x372   : > { %6474 = vmatpush1.bf16.msra.mxu0 %v19178_v28  ;;  %v19250_v28 = vld [vmem:[%s22137_s3 + $0x10f8] ss:$72 sps:$4 sm:$0xff]  }
 0x373   : > { %6515 = vmatpush1.bf16.msra.mxu1 %v19181_v29  ;;  %6475 = vmatprep.subr.bf16.mxu0 %v19186_v30  ;;  %v19253_v29 = vld [vmem:[%s22137_s3 + $0x19f8] ss:$72 sps:$4 sm:$0xff]   ;;  %v19258_v30 = vld [vmem:[%s22137_s3 + $0x118c] ss:$72 sps:$4 sm:$0xff]  }
 0x374   : > { %6516 = vmatprep.subr.bf16.mxu1 %v19189_v31  ;;  %v19261_v31 = vld [vmem:[%s22137_s3 + $0x1a8c] ss:$72 sps:$4 sm:$0xff]  }
 0x376   : > { %6476 = vmatpush1.bf16.msra.mxu0 %v19184_v33  ;;  %v19256_v33 = vld [vmem:[%s22137_s3 + $0x1188] ss:$72 sps:$4 sm:$0xff]  }
 0x377   : > { %6517 = vmatpush1.bf16.msra.mxu1 %v19187_v34  ;;  %6477 = vmatprep.subr.bf16.mxu0 %v19192_v35  ;;  %v19259_v34 = vld [vmem:[%s22137_s3 + $0x1a88] ss:$72 sps:$4 sm:$0xff]   ;;  %v19264_v35 = vld [vmem:[%s22137_s3 + $0x24] ss:$72 sps:$4 sm:$0xff]  }
 0x378   : > { %6518 = vmatprep.subr.bf16.mxu1 %v19195_v37  ;;  %v19267_v37 = vld [vmem:[%s22137_s3 + $0x924] ss:$72 sps:$4 sm:$0xff]  }
 0x37a   : > { %6478 = vmatpush1.bf16.msra.mxu0 %v19190_v38  ;;  %v19262_v38 = vld [vmem:[%s22137_s3 + $0x20] ss:$72 sps:$4 sm:$0xff]  }
 0x37b   : > { %6519 = vmatpush1.bf16.msra.mxu1 %v19193_v39  ;;  %6479 = vmatprep.subr.bf16.mxu0 %v19198_v40  ;;  %v19265_v39 = vld [vmem:[%s22137_s3 + $0x920] ss:$72 sps:$4 sm:$0xff]   ;;  %v19270_v40 = vld [vmem:[%s22137_s3 + $0xb4] ss:$72 sps:$4 sm:$0xff]  }
 0x37c   : > { %6520 = vmatprep.subr.bf16.mxu1 %v19201_v41  ;;  %v6175_v48 = vpop.f32.mrb[4].mxu0  ;;  %v19273_v41 = vld [vmem:[%s22137_s3 + $0x9b4] ss:$72 sps:$4 sm:$0xff]  }
 0x37d   : > { %v22556_v49 = vpop.f32.mrb[4].mxu1  ;;  %v22561_v53 = vadd.f32 %v6175_v48, %v22486_v32  ;;  %v6177_v54 = vpop.f32.mrb[5].mxu0  ;;  %v19210_v32 = vld [vmem:[%s22137_s3 + $0xd0c] ss:$72 sps:$4 sm:$0xff]   ;;  %v19274_v48 = vld [vmem:[%s22137_s3 + $0x140] ss:$72 sps:$4 sm:$0xff]  }
 0x37e   : > { %v22563_v55 = vpop.f32.mrb[5].mxu1  ;;  %v22566_v56 = vadd.f32 %v6177_v54, %v22489_v36  ;;  %6480 = vmatpush1.bf16.msra.mxu0 %v19196_v42  ;;  %v6179_v58 = vpop.f32.mrb[6].mxu0  ;;  %v19208_v36 = vld [vmem:[%s22137_s3 + $0xd08] ss:$72 sps:$4 sm:$0xff]   ;;  %v19285_v54 = vld [vmem:[%s22137_s3 + $0xad4] ss:$72 sps:$4 sm:$0xff]  }
 0x37f   : > { %v6220_v57 = vpop.f32.mrb[6].mxu1  ;;  %6521 = vmatpush1.bf16.msra.mxu1 %v19199_v45  ;;  %6481 = vmatprep.subr.bf16.mxu0 %v19204_v46  ;;  %v6180_v61 = vpop.f32.mrb[7].mxu0  ;;  %v19268_v42 = vld [vmem:[%s22137_s3 + $0xb0] ss:$72 sps:$4 sm:$0xff]   ;;  %v19276_v46 = vld [vmem:[%s22137_s3 + $0x144] ss:$72 sps:$4 sm:$0xff]  }
 0x380   : > { %v6221_v59 = vpop.f32.mrb[7].mxu1  ;;  %6522 = vmatprep.subr.bf16.mxu1 %v19207_v47  ;;  %v19271_v45 = vld [vmem:[%s22137_s3 + $0x9b0] ss:$72 sps:$4 sm:$0xff]   ;;  %v19279_v47 = vld [vmem:[%s22137_s3 + $0xa44] ss:$72 sps:$4 sm:$0xff]  }
 0x381   : > { %v19280_v57 = vld [vmem:[%s22137_s3 + $0x1d0] ss:$72 sps:$4 sm:$0xff]   ;;  %v19288_v59 = vld [vmem:[%s22137_s3 + $0x264] ss:$72 sps:$4 sm:$0xff]   ;;  %v19289_v61 = vld [vmem:[%s22137_s3 + $0xb60] ss:$72 sps:$4 sm:$0xff]  }
 0x382   : > { %6482 = vmatpush1.bf16.msra.mxu0 %v19202_v50  ;;  %v19277_v50 = vld [vmem:[%s22137_s3 + $0xa40] ss:$72 sps:$4 sm:$0xff]   ;;  %v19283_v58 = vld [vmem:[%s22137_s3 + $0xad0] ss:$72 sps:$4 sm:$0xff]  }
 0x383   : > { %6523 = vmatpush1.bf16.msra.mxu1 %v19205_v51  ;;  %6483 = vmatprep.subr.bf16.mxu0 %v19210_v32  ;;  %v19282_v51 = vld [vmem:[%s22137_s3 + $0x1d4] ss:$72 sps:$4 sm:$0xff]   ;;  %v19291_v32 = vld [vmem:[%s22137_s3 + $0xb64] ss:$72 sps:$4 sm:$0xff]  }
 0x384   : > { %6524 = vmatprep.subr.bf16.mxu1 %v19213_v60  ;;  %v19286_v60 = vld [vmem:[%s22137_s3 + $0x260] ss:$72 sps:$4 sm:$0xff]  }
 0x386   : > { %6484 = vmatpush1.bf16.msra.mxu0 %v19208_v36  ;;  %v19294_v36 = vld [vmem:[%s22137_s3 + $0x2f4] ss:$72 sps:$4 sm:$0xff]  }
 0x387   : > { %6525 = vmatpush1.bf16.msra.mxu1 %v19211_v62  ;;  %6485 = vmatprep.subr.bf16.mxu0 %v19216_v63  ;;  %v19297_v62 = vld [vmem:[%s22137_s3 + $0xbf4] ss:$72 sps:$4 sm:$0xff]   ;;  %v19292_v63 = vld [vmem:[%s22137_s3 + $0x2f0] ss:$72 sps:$4 sm:$0xff]  }
 0x388   : > { %6526 = vmatprep.subr.bf16.mxu1 %v19219_v0  ;;  %v19295_v0 = vld [vmem:[%s22137_s3 + $0xbf0] ss:$72 sps:$4 sm:$0xff]  }
 0x38a   : > { %6486 = vmatpush1.bf16.msra.mxu0 %v19214_v1  ;;  %v19300_v1 = vld [vmem:[%s22137_s3 + $0x384] ss:$72 sps:$4 sm:$0xff]  }
 0x38b   : > { %6527 = vmatpush1.bf16.msra.mxu1 %v19217_v2  ;;  %6487 = vmatprep.subr.bf16.mxu0 %v19222_v3  ;;  %v19303_v2 = vld [vmem:[%s22137_s3 + $0xc84] ss:$72 sps:$4 sm:$0xff]  }
 0x38c   : > { %6528 = vmatprep.subr.bf16.mxu1 %v19225_v4 }
 0x38e   : > { %6488 = vmatpush1.bf16.msra.mxu0 %v19220_v5  ;;  %v19298_v5 = vld [vmem:[%s22137_s3 + $0x380] ss:$72 sps:$4 sm:$0xff]  }
 0x38f   : > { %6529 = vmatpush1.bf16.msra.mxu1 %v19223_v7  ;;  %6489 = vmatprep.subr.bf16.mxu0 %v19228_v8 }
 0x390   : > { %6530 = vmatprep.subr.bf16.mxu1 %v19231_v9 }
 0x392   : > { %6490 = vmatpush1.bf16.msra.mxu0 %v19226_v10  ;;  %v19301_v10 = vld [vmem:[%s22137_s3 + $0xc80] ss:$72 sps:$4 sm:$0xff]  }
 0x393   : > { %6531 = vmatpush1.bf16.msra.mxu1 %v19229_v11  ;;  %6491 = vmatprep.subr.bf16.mxu0 %v19234_v12 }
 0x394   : > { %6532 = vmatprep.subr.bf16.mxu1 %v19237_v13 }
 0x396   : > { %6492 = vmatpush1.bf16.msra.mxu0 %v19232_v14 }
 0x397   : > { %6533 = vmatpush1.bf16.msra.mxu1 %v19235_v15  ;;  %6493 = vmatprep.subr.bf16.mxu0 %v19240_v16  ;;  %v19309_v16 = vld [vmem:[%s22137_s3 + $0xd14] ss:$72 sps:$4 sm:$0xff]  }
 0x398   : > { %6534 = vmatprep.subr.bf16.mxu1 %v19243_v17 }
 0x39a   : > { %6494 = vmatpush1.bf16.msra.mxu0 %v19238_v18 }
 0x39b   : > { %6535 = vmatpush1.bf16.msra.mxu1 %v19241_v19  ;;  %6495 = vmatprep.subr.bf16.mxu0 %v19246_v21  ;;  %v19307_v19 = vld [vmem:[%s22137_s3 + $0xd10] ss:$72 sps:$4 sm:$0xff]   ;;  %v19312_v21 = vld [vmem:[%s22137_s3 + $0x4a4] ss:$72 sps:$4 sm:$0xff]  }
 0x39c   : > { %6536 = vmatprep.subr.bf16.mxu1 %v19249_v22  ;;  %v19315_v22 = vld [vmem:[%s22137_s3 + $0xda4] ss:$72 sps:$4 sm:$0xff]  }
 0x39e   : > { %6496 = vmatpush1.bf16.msra.mxu0 %v19244_v24  ;;  %v19310_v24 = vld [vmem:[%s22137_s3 + $0x4a0] ss:$72 sps:$4 sm:$0xff]  }
 0x39f   : > { %6537 = vmatpush1.bf16.msra.mxu1 %v19247_v25  ;;  %6497 = vmatprep.subr.bf16.mxu0 %v19252_v26  ;;  %v19313_v25 = vld [vmem:[%s22137_s3 + $0xda0] ss:$72 sps:$4 sm:$0xff]   ;;  %v19318_v26 = vld [vmem:[%s22137_s3 + $0x534] ss:$72 sps:$4 sm:$0xff]  }
 0x3a0   : > { %6538 = vmatprep.subr.bf16.mxu1 %v19255_v27  ;;  %v19321_v27 = vld [vmem:[%s22137_s3 + $0xe34] ss:$72 sps:$4 sm:$0xff]  }
 0x3a2   : > { %6498 = vmatpush1.bf16.msra.mxu0 %v19250_v28  ;;  %v19316_v28 = vld [vmem:[%s22137_s3 + $0x530] ss:$72 sps:$4 sm:$0xff]  }
 0x3a3   : > { %6539 = vmatpush1.bf16.msra.mxu1 %v19253_v29  ;;  %6499 = vmatprep.subr.bf16.mxu0 %v19258_v30  ;;  %v19319_v29 = vld [vmem:[%s22137_s3 + $0xe30] ss:$72 sps:$4 sm:$0xff]   ;;  %v19324_v30 = vld [vmem:[%s22137_s3 + $0x5c4] ss:$72 sps:$4 sm:$0xff]  }
 0x3a4   : > { %6540 = vmatprep.subr.bf16.mxu1 %v19261_v31  ;;  %v19327_v31 = vld [vmem:[%s22137_s3 + $0xec4] ss:$72 sps:$4 sm:$0xff]  }
 0x3a6   : > { %6500 = vmatpush1.bf16.msra.mxu0 %v19256_v33  ;;  %v19322_v33 = vld [vmem:[%s22137_s3 + $0x5c0] ss:$72 sps:$4 sm:$0xff]  }
 0x3a7   : > { %6541 = vmatpush1.bf16.msra.mxu1 %v19259_v34  ;;  %6551 = vmatprep.subr.bf16.mxu0 %v19264_v35  ;;  %v19325_v34 = vld [vmem:[%s22137_s3 + $0xec0] ss:$72 sps:$4 sm:$0xff]   ;;  %v19330_v35 = vld [vmem:[%s22137_s3 + $0x654] ss:$72 sps:$4 sm:$0xff]  }
 0x3a8   : > { %6592 = vmatprep.subr.bf16.mxu1 %v19267_v37  ;;  %v19333_v37 = vld [vmem:[%s22137_s3 + $0xf54] ss:$72 sps:$4 sm:$0xff]  }
 0x3a9   : > { %6502 = vmatmul.mubr.bf16.vlgmr.msra.gmra.mrb[20].mxu0 %v22246_v44 }
 0x3aa   : > { %6543 = vmatmul.mubr.bf16.vlgmr.msra.gmra.mrb[20].mxu1 %v22318_v52  ;;  %6552 = vmatpush1.bf16.msra.mxu0 %v19262_v38  ;;  %v19328_v38 = vld [vmem:[%s22137_s3 + $0x650] ss:$72 sps:$4 sm:$0xff]  }
 0x3ab   : > { %6593 = vmatpush1.bf16.msra.mxu1 %v19265_v39  ;;  %6553 = vmatprep.subr.bf16.mxu0 %v19270_v40  ;;  %v19331_v39 = vld [vmem:[%s22137_s3 + $0xf50] ss:$72 sps:$4 sm:$0xff]   ;;  %v19336_v40 = vld [vmem:[%s22137_s3 + $0x6e4] ss:$72 sps:$4 sm:$0xff]  }
 0x3ac   : > { %6594 = vmatprep.subr.bf16.mxu1 %v19273_v41  ;;  %6583 = vmatprep.mubr.bf16.mxu0 %v22220_v20  ;;  %v19339_v41 = vld [vmem:[%s22137_s3 + $0xfe4] ss:$72 sps:$4 sm:$0xff]  }
 0x3ad   : > { %6624 = vmatprep.mubr.bf16.mxu1 %v22223_v23 }
 0x3ae   : > { %6554 = vmatpush1.bf16.msra.mxu0 %v19268_v42  ;;  %v19334_v42 = vld [vmem:[%s22137_s3 + $0x6e0] ss:$72 sps:$4 sm:$0xff]  }
 0x3af   : > { %6595 = vmatpush1.bf16.msra.mxu1 %v19271_v45  ;;  %6555 = vmatprep.subr.bf16.mxu0 %v19276_v46  ;;  %v19337_v45 = vld [vmem:[%s22137_s3 + $0xfe0] ss:$72 sps:$4 sm:$0xff]   ;;  %v19342_v46 = vld [vmem:[%s22137_s3 + $0x774] ss:$72 sps:$4 sm:$0xff]  }
 0x3b0   : > { %6596 = vmatprep.subr.bf16.mxu1 %v19279_v47  ;;  %v19345_v47 = vld [vmem:[%s22137_s3 + $0x1074] ss:$72 sps:$4 sm:$0xff]  }
 0x3b2   : > { %6556 = vmatpush1.bf16.msra.mxu0 %v19274_v48  ;;  %v19340_v48 = vld [vmem:[%s22137_s3 + $0x770] ss:$72 sps:$4 sm:$0xff]  }
 0x3b3   : > { %6597 = vmatpush1.bf16.msra.mxu1 %v19277_v50  ;;  %6557 = vmatprep.subr.bf16.mxu0 %v19282_v51  ;;  %v19343_v50 = vld [vmem:[%s22137_s3 + $0x1070] ss:$72 sps:$4 sm:$0xff]   ;;  %v19348_v51 = vld [vmem:[%s22137_s3 + $0x804] ss:$72 sps:$4 sm:$0xff]  }
 0x3b4   : > { %6598 = vmatprep.subr.bf16.mxu1 %v19285_v54  ;;  %v19351_v54 = vld [vmem:[%s22137_s3 + $0x1104] ss:$72 sps:$4 sm:$0xff]  }
 0x3b6   : > { %6558 = vmatpush1.bf16.msra.mxu0 %v19280_v57  ;;  %v19346_v57 = vld [vmem:[%s22137_s3 + $0x800] ss:$72 sps:$4 sm:$0xff]  }
 0x3b7   : > { %6599 = vmatpush1.bf16.msra.mxu1 %v19283_v58  ;;  %6559 = vmatprep.subr.bf16.mxu0 %v19288_v59  ;;  %v19349_v58 = vld [vmem:[%s22137_s3 + $0x1100] ss:$72 sps:$4 sm:$0xff]   ;;  %v19354_v59 = vld [vmem:[%s22137_s3 + $0x894] ss:$72 sps:$4 sm:$0xff]  }
 0x3b8   : > { %6600 = vmatprep.subr.bf16.mxu1 %v19291_v32  ;;  %v19357_v32 = vld [vmem:[%s22137_s3 + $0x1194] ss:$72 sps:$4 sm:$0xff]  }
 0x3ba   : > { %6560 = vmatpush1.bf16.msra.mxu0 %v19286_v60  ;;  %v19352_v60 = vld [vmem:[%s22137_s3 + $0x890] ss:$72 sps:$4 sm:$0xff]  }
 0x3bb   : > { %6601 = vmatpush1.bf16.msra.mxu1 %v19289_v61  ;;  %6561 = vmatprep.subr.bf16.mxu0 %v19294_v36  ;;  %v19355_v61 = vld [vmem:[%s22137_s3 + $0x1190] ss:$72 sps:$4 sm:$0xff]   ;;  %v19360_v36 = vld [vmem:[%s22137_s3 + $0x1224] ss:$72 sps:$4 sm:$0xff]  }
 0x3bc   : > { %6602 = vmatprep.subr.bf16.mxu1 %v19297_v62  ;;  %v6257_v3 = vpop.f32.mrb[8].mxu0  ;;  %v19363_v62 = vld [vmem:[%s22137_s3 + $0x2c] ss:$72 sps:$4 sm:$0xff]  }
 0x3bd   : > { %v6298_v4 = vpop.f32.mrb[8].mxu1  ;;  %v6258_v7 = vadd.f32 %v6257_v3, %v22556_v49  ;;  %v6259_v8 = vpop.f32.mrb[9].mxu0  ;;  %v19306_v49 = vld [vmem:[%s22137_s3 + $0x414] ss:$72 sps:$4 sm:$0xff]   ;;  %v19364_v3 = vld [vmem:[%s22137_s3 + $0x12b0] ss:$72 sps:$4 sm:$0xff]  }
 0x3be   : > { %v6300_v9 = vpop.f32.mrb[9].mxu1  ;;  %v6260_v11 = vadd.f32 %v6259_v8, %v22563_v55  ;;  %6562 = vmatpush1.bf16.msra.mxu0 %v19292_v63  ;;  %v6261_v13 = vpop.f32.mrb[10].mxu0  ;;  %v19304_v55 = vld [vmem:[%s22137_s3 + $0x410] ss:$72 sps:$4 sm:$0xff]   ;;  %v19358_v63 = vld [vmem:[%s22137_s3 + $0x1220] ss:$72 sps:$4 sm:$0xff]  }
 0x3bf   : > { %v6302_v12 = vpop.f32.mrb[10].mxu1  ;;  %6603 = vmatpush1.bf16.msra.mxu1 %v19295_v0  ;;  %v22638_v14 = vadd.f32 %v6298_v4, %v6258_v7  ;;  %6563 = vmatprep.subr.bf16.mxu0 %v19300_v1  ;;  %v6262_v17 = vpop.f32.mrb[11].mxu0  ;;  %v19361_v0 = vld [vmem:[%s22137_s3 + $0x28] ss:$72 sps:$4 sm:$0xff]   ;;  %v19366_v1 = vld [vmem:[%s22137_s3 + $0x12b4] ss:$72 sps:$4 sm:$0xff]  }
 0x3c0   : > { %v6303_v15 = vpop.f32.mrb[11].mxu1  ;;  %6604 = vmatprep.subr.bf16.mxu1 %v19303_v2  ;;  %v22642_v18 = vadd.f32 %v6300_v9, %v6260_v11  ;;  %v19369_v2 = vld [vmem:[%s22137_s3 + $0xbc] ss:$72 sps:$4 sm:$0xff]   ;;  %v19367_v4 = vld [vmem:[%s22137_s3 + $0xb8] ss:$72 sps:$4 sm:$0xff]  }
 0x3c1   : > { %v19375_v7 = vld [vmem:[%s22137_s3 + $0x14c] ss:$72 sps:$4 sm:$0xff]   ;;  %v19370_v8 = vld [vmem:[%s22137_s3 + $0x1340] ss:$72 sps:$4 sm:$0xff]   ;;  %v19381_v11 = vld [vmem:[%s22137_s3 + $0x1dc] ss:$72 sps:$4 sm:$0xff]  }
 0x3c2   : > { %6564 = vmatpush1.bf16.msra.mxu0 %v19298_v5  ;;  %v19372_v5 = vld [vmem:[%s22137_s3 + $0x1344] ss:$72 sps:$4 sm:$0xff]   ;;  %v19373_v9 = vld [vmem:[%s22137_s3 + $0x148] ss:$72 sps:$4 sm:$0xff]   ;;  %v19379_v13 = vld [vmem:[%s22137_s3 + $0x1d8] ss:$72 sps:$4 sm:$0xff]  }
 0x3c3   : > { %6605 = vmatpush1.bf16.msra.mxu1 %v19301_v10  ;;  %6565 = vmatprep.subr.bf16.mxu0 %v19306_v49  ;;  %v19378_v10 = vld [vmem:[%s22137_s3 + $0x13d4] ss:$72 sps:$4 sm:$0xff]   ;;  %v19376_v12 = vld [vmem:[%s22137_s3 + $0x13d0] ss:$72 sps:$4 sm:$0xff]   ;;  %v19384_v15 = vld [vmem:[%s22137_s3 + $0x1464] ss:$72 sps:$4 sm:$0xff]  }
 0x3c4   : > { %6606 = vmatprep.subr.bf16.mxu1 %v19309_v16  ;;  %v19387_v49 = vld [vmem:[%s22137_s3 + $0x26c] ss:$72 sps:$4 sm:$0xff]   ;;  %v19382_v16 = vld [vmem:[%s22137_s3 + $0x1460] ss:$72 sps:$4 sm:$0xff]  }
 0x3c5   : > { %v19385_v17 = vld [vmem:[%s22137_s3 + $0x268] ss:$72 sps:$4 sm:$0xff]  }
 0x3c6   : > { %6566 = vmatpush1.bf16.msra.mxu0 %v19304_v55  ;;  %v19390_v55 = vld [vmem:[%s22137_s3 + $0x14f4] ss:$72 sps:$4 sm:$0xff]  }
 0x3c7   : > { %6607 = vmatpush1.bf16.msra.mxu1 %v19307_v19  ;;  %6567 = vmatprep.subr.bf16.mxu0 %v19312_v21  ;;  %v19393_v19 = vld [vmem:[%s22137_s3 + $0x2fc] ss:$72 sps:$4 sm:$0xff]   ;;  %v19388_v21 = vld [vmem:[%s22137_s3 + $0x14f0] ss:$72 sps:$4 sm:$0xff]  }
 0x3c8   : > { %6608 = vmatprep.subr.bf16.mxu1 %v19315_v22  ;;  %v19391_v22 = vld [vmem:[%s22137_s3 + $0x2f8] ss:$72 sps:$4 sm:$0xff]  }
 0x3ca   : > { %6568 = vmatpush1.bf16.msra.mxu0 %v19310_v24  ;;  %v19396_v24 = vld [vmem:[%s22137_s3 + $0x1584] ss:$72 sps:$4 sm:$0xff]  }
 0x3cb   : > { %6609 = vmatpush1.bf16.msra.mxu1 %v19313_v25  ;;  %6569 = vmatprep.subr.bf16.mxu0 %v19318_v26  ;;  %v19399_v25 = vld [vmem:[%s22137_s3 + $0x38c] ss:$72 sps:$4 sm:$0xff]  }
 0x3cc   : > { %6610 = vmatprep.subr.bf16.mxu1 %v19321_v27 }
 0x3ce   : > { %6570 = vmatpush1.bf16.msra.mxu0 %v19316_v28  ;;  %v19394_v28 = vld [vmem:[%s22137_s3 + $0x1580] ss:$72 sps:$4 sm:$0xff]  }
 0x3cf   : > { %6611 = vmatpush1.bf16.msra.mxu1 %v19319_v29  ;;  %6571 = vmatprep.subr.bf16.mxu0 %v19324_v30  ;;  %v19397_v29 = vld [vmem:[%s22137_s3 + $0x388] ss:$72 sps:$4 sm:$0xff]  }
 0x3d0   : > { %6612 = vmatprep.subr.bf16.mxu1 %v19327_v31 }
 0x3d2   : > { %6572 = vmatpush1.bf16.msra.mxu0 %v19322_v33 }
 0x3d3   : > { %6613 = vmatpush1.bf16.msra.mxu1 %v19325_v34  ;;  %6573 = vmatprep.subr.bf16.mxu0 %v19330_v35 }
 0x3d4   : > { %6614 = vmatprep.subr.bf16.mxu1 %v19333_v37 }
 0x3d6   : > { %6574 = vmatpush1.bf16.msra.mxu0 %v19328_v38 }
 0x3d7   : > { %6615 = vmatpush1.bf16.msra.mxu1 %v19331_v39  ;;  %6575 = vmatprep.subr.bf16.mxu0 %v19336_v40  ;;  %v19402_v39 = vld [vmem:[%s22137_s3 + $0x1614] ss:$72 sps:$4 sm:$0xff]  }
 0x3d8   : > { %6616 = vmatprep.subr.bf16.mxu1 %v19339_v41  ;;  %v19405_v40 = vld [vmem:[%s22137_s3 + $0x41c] ss:$72 sps:$4 sm:$0xff]  }
 0x3da   : > { %6576 = vmatpush1.bf16.msra.mxu0 %v19334_v42  ;;  %v19400_v42 = vld [vmem:[%s22137_s3 + $0x1610] ss:$72 sps:$4 sm:$0xff]  }
 0x3db   : > { %6617 = vmatpush1.bf16.msra.mxu1 %v19337_v45  ;;  %6577 = vmatprep.subr.bf16.mxu0 %v19342_v46  ;;  %v19403_v45 = vld [vmem:[%s22137_s3 + $0x418] ss:$72 sps:$4 sm:$0xff]   ;;  %v19408_v46 = vld [vmem:[%s22137_s3 + $0x16a4] ss:$72 sps:$4 sm:$0xff]  }
 0x3dc   : > { %6618 = vmatprep.subr.bf16.mxu1 %v19345_v47  ;;  %v19411_v47 = vld [vmem:[%s22137_s3 + $0x4ac] ss:$72 sps:$4 sm:$0xff]  }
 0x3de   : > { %6578 = vmatpush1.bf16.msra.mxu0 %v19340_v48  ;;  %v19406_v48 = vld [vmem:[%s22137_s3 + $0x16a0] ss:$72 sps:$4 sm:$0xff]  }
 0x3df   : > { %6619 = vmatpush1.bf16.msra.mxu1 %v19343_v50  ;;  %6579 = vmatprep.subr.bf16.mxu0 %v19348_v51  ;;  %v19409_v50 = vld [vmem:[%s22137_s3 + $0x4a8] ss:$72 sps:$4 sm:$0xff]   ;;  %v19414_v51 = vld [vmem:[%s22137_s3 + $0x1734] ss:$72 sps:$4 sm:$0xff]  }
 0x3e0   : > { %6620 = vmatprep.subr.bf16.mxu1 %v19351_v54  ;;  %v19417_v54 = vld [vmem:[%s22137_s3 + $0x53c] ss:$72 sps:$4 sm:$0xff]  }
 0x3e2   : > { %6580 = vmatpush1.bf16.msra.mxu0 %v19346_v57  ;;  %v19412_v57 = vld [vmem:[%s22137_s3 + $0x1730] ss:$72 sps:$4 sm:$0xff]  }
 0x3e3   : > { %6621 = vmatpush1.bf16.msra.mxu1 %v19349_v58  ;;  %6581 = vmatprep.subr.bf16.mxu0 %v19354_v59  ;;  %v19415_v58 = vld [vmem:[%s22137_s3 + $0x538] ss:$72 sps:$4 sm:$0xff]   ;;  %v19420_v59 = vld [vmem:[%s22137_s3 + $0x17c4] ss:$72 sps:$4 sm:$0xff]  }
 0x3e4   : > { %6622 = vmatprep.subr.bf16.mxu1 %v19357_v32  ;;  %v19423_v32 = vld [vmem:[%s22137_s3 + $0x5cc] ss:$72 sps:$4 sm:$0xff]  }
 0x3e6   : > { %6582 = vmatpush1.bf16.msra.mxu0 %v19352_v60  ;;  %v19418_v60 = vld [vmem:[%s22137_s3 + $0x17c0] ss:$72 sps:$4 sm:$0xff]  }
 0x3e7   : > { %6623 = vmatpush1.bf16.msra.mxu1 %v19355_v61  ;;  %6633 = vmatprep.subr.bf16.mxu0 %v19360_v36  ;;  %v19421_v61 = vld [vmem:[%s22137_s3 + $0x5c8] ss:$72 sps:$4 sm:$0xff]   ;;  %v19426_v36 = vld [vmem:[%s22137_s3 + $0x1854] ss:$72 sps:$4 sm:$0xff]  }
 0x3e8   : > { %6674 = vmatprep.subr.bf16.mxu1 %v19363_v62  ;;  %v19429_v62 = vld [vmem:[%s22137_s3 + $0x65c] ss:$72 sps:$4 sm:$0xff]  }
 0x3e9   : > { %6584 = vmatmul.mubr.bf16.vlgmr.msra.gmra.mrb[24].mxu0 %v22244_v43 }
 0x3ea   : > { %6625 = vmatmul.mubr.bf16.vlgmr.msra.gmra.mrb[24].mxu1 %v22246_v44  ;;  %6634 = vmatpush1.bf16.msra.mxu0 %v19358_v63  ;;  %v19424_v63 = vld [vmem:[%s22137_s3 + $0x1850] ss:$72 sps:$4 sm:$0xff]  }
 0x3eb   : > { %6675 = vmatpush1.bf16.msra.mxu1 %v19361_v0  ;;  %6635 = vmatprep.subr.bf16.mxu0 %v19366_v1  ;;  %v19427_v0 = vld [vmem:[%s22137_s3 + $0x658] ss:$72 sps:$4 sm:$0xff]   ;;  %v19432_v1 = vld [vmem:[%s22137_s3 + $0x18e4] ss:$72 sps:$4 sm:$0xff]  }
 0x3ec   : > { %6676 = vmatprep.subr.bf16.mxu1 %v19369_v2  ;;  %6665 = vmatprep.mubr.bf16.mxu0 %v22275_v6  ;;  %v19435_v2 = vld [vmem:[%s22137_s3 + $0x6ec] ss:$72 sps:$4 sm:$0xff]  }
 0x3ed   : > { %6706 = vmatprep.mubr.bf16.mxu1 %v22220_v20 }
 0x3ee   : > { %6636 = vmatpush1.bf16.msra.mxu0 %v19364_v3  ;;  %v19430_v3 = vld [vmem:[%s22137_s3 + $0x18e0] ss:$72 sps:$4 sm:$0xff]  }
 0x3ef   : > { %6677 = vmatpush1.bf16.msra.mxu1 %v19367_v4  ;;  %6637 = vmatprep.subr.bf16.mxu0 %v19372_v5  ;;  %v19433_v4 = vld [vmem:[%s22137_s3 + $0x6e8] ss:$72 sps:$4 sm:$0xff]   ;;  %v19438_v5 = vld [vmem:[%s22137_s3 + $0x1974] ss:$72 sps:$4 sm:$0xff]  }
 0x3f0   : > { %6678 = vmatprep.subr.bf16.mxu1 %v19375_v7  ;;  %v19441_v7 = vld [vmem:[%s22137_s3 + $0x77c] ss:$72 sps:$4 sm:$0xff]  }
 0x3f2   : > { %6638 = vmatpush1.bf16.msra.mxu0 %v19370_v8  ;;  %v19436_v8 = vld [vmem:[%s22137_s3 + $0x1970] ss:$72 sps:$4 sm:$0xff]  }
 0x3f3   : > { %6679 = vmatpush1.bf16.msra.mxu1 %v19373_v9  ;;  %6639 = vmatprep.subr.bf16.mxu0 %v19378_v10  ;;  %v19439_v9 = vld [vmem:[%s22137_s3 + $0x778] ss:$72 sps:$4 sm:$0xff]   ;;  %v19444_v10 = vld [vmem:[%s22137_s3 + $0x1a04] ss:$72 sps:$4 sm:$0xff]  }
 0x3f4   : > { %6680 = vmatprep.subr.bf16.mxu1 %v19381_v11  ;;  %v19447_v11 = vld [vmem:[%s22137_s3 + $0x80c] ss:$72 sps:$4 sm:$0xff]  }
 0x3f6   : > { %6640 = vmatpush1.bf16.msra.mxu0 %v19376_v12  ;;  %v19442_v12 = vld [vmem:[%s22137_s3 + $0x1a00] ss:$72 sps:$4 sm:$0xff]  }
 0x3f7   : > { %6681 = vmatpush1.bf16.msra.mxu1 %v19379_v13  ;;  %6641 = vmatprep.subr.bf16.mxu0 %v19384_v15  ;;  %v19445_v13 = vld [vmem:[%s22137_s3 + $0x808] ss:$72 sps:$4 sm:$0xff]   ;;  %v19450_v15 = vld [vmem:[%s22137_s3 + $0x1a94] ss:$72 sps:$4 sm:$0xff]  }
 0x3f8   : > { %6682 = vmatprep.subr.bf16.mxu1 %v19387_v49  ;;  %v19453_v49 = vld [vmem:[%s22137_s3 + $0x89c] ss:$72 sps:$4 sm:$0xff]  }
 0x3fa   : > { %6642 = vmatpush1.bf16.msra.mxu0 %v19382_v16  ;;  %v19448_v16 = vld [vmem:[%s22137_s3 + $0x1a90] ss:$72 sps:$4 sm:$0xff]  }
 0x3fb   : > { %6683 = vmatpush1.bf16.msra.mxu1 %v19385_v17  ;;  %6643 = vmatprep.subr.bf16.mxu0 %v19390_v55  ;;  %v19451_v17 = vld [vmem:[%s22137_s3 + $0x898] ss:$72 sps:$4 sm:$0xff]   ;;  %v19456_v55 = vld [vmem:[%s22137_s3 + $0x92c] ss:$72 sps:$4 sm:$0xff]  }
 0x3fc   : > { %6684 = vmatprep.subr.bf16.mxu1 %v19393_v19  ;;  %v6339_v26 = vpop.f32.mrb[12].mxu0  ;;  %v19459_v19 = vld [vmem:[%s22137_s3 + $0x122c] ss:$72 sps:$4 sm:$0xff]  }
 0x3fd   : > { %v6380_v27 = vpop.f32.mrb[12].mxu1  ;;  %v6341_v31 = vpop.f32.mrb[13].mxu0 }
 0x3fe   : > { %v22710_v30 = vadd.f32 %v6380_v27, %v6339_v26  ;;  %v6382_v33 = vpop.f32.mrb[13].mxu1  ;;  %6644 = vmatpush1.bf16.msra.mxu0 %v19388_v21  ;;  %v6343_v37 = vpop.f32.mrb[14].mxu0  ;;  %v19454_v21 = vld [vmem:[%s22137_s3 + $0x928] ss:$72 sps:$4 sm:$0xff]   ;;  %v19460_v26 = vld [vmem:[%s22137_s3 + $0x9b8] ss:$72 sps:$4 sm:$0xff]  }
 0x3ff   : > { %v22712_v34 = vadd.f32 %v6382_v33, %v6341_v31  ;;  %v6384_v35 = vpop.f32.mrb[14].mxu1  ;;  %6685 = vmatpush1.bf16.msra.mxu1 %v19391_v22  ;;  %6645 = vmatprep.subr.bf16.mxu0 %v19396_v24  ;;  %v6344_v41 = vpop.f32.mrb[15].mxu0  ;;  %v19457_v22 = vld [vmem:[%s22137_s3 + $0x1228] ss:$72 sps:$4 sm:$0xff]   ;;  %v19462_v24 = vld [vmem:[%s22137_s3 + $0x9bc] ss:$72 sps:$4 sm:$0xff]  }
 0x400   : > { %v6385_v38 = vpop.f32.mrb[15].mxu1  ;;  %6686 = vmatprep.subr.bf16.mxu1 %v19399_v25  ;;  %v19465_v25 = vld [vmem:[%s22137_s3 + $0x12bc] ss:$72 sps:$4 sm:$0xff]   ;;  %v19463_v27 = vld [vmem:[%s22137_s3 + $0x12b8] ss:$72 sps:$4 sm:$0xff]  }
 0x401   : > { %v19466_v31 = vld [vmem:[%s22137_s3 + $0xa48] ss:$72 sps:$4 sm:$0xff]   ;;  %v19474_v35 = vld [vmem:[%s22137_s3 + $0xadc] ss:$72 sps:$4 sm:$0xff]   ;;  %v19472_v38 = vld [vmem:[%s22137_s3 + $0xad8] ss:$72 sps:$4 sm:$0xff]  }
 0x402   : > { %6646 = vmatpush1.bf16.msra.mxu0 %v19394_v28  ;;  %v19468_v28 = vld [vmem:[%s22137_s3 + $0xa4c] ss:$72 sps:$4 sm:$0xff]   ;;  %v19469_v33 = vld [vmem:[%s22137_s3 + $0x1348] ss:$72 sps:$4 sm:$0xff]   ;;  %v19477_v37 = vld [vmem:[%s22137_s3 + $0x13dc] ss:$72 sps:$4 sm:$0xff]  }
 0x403   : > { %6687 = vmatpush1.bf16.msra.mxu1 %v19397_v29  ;;  %6647 = vmatprep.subr.bf16.mxu0 %v19402_v39  ;;  %v19471_v29 = vld [vmem:[%s22137_s3 + $0x134c] ss:$72 sps:$4 sm:$0xff]   ;;  %v19475_v39 = vld [vmem:[%s22137_s3 + $0x13d8] ss:$72 sps:$4 sm:$0xff]  }
 0x404   : > { %6688 = vmatprep.subr.bf16.mxu1 %v19405_v40  ;;  %v19480_v40 = vld [vmem:[%s22137_s3 + $0xb6c] ss:$72 sps:$4 sm:$0xff]  }
 0x405   : > { %v19483_v41 = vld [vmem:[%s22137_s3 + $0x146c] ss:$72 sps:$4 sm:$0xff]  }
 0x406   : > { %6648 = vmatpush1.bf16.msra.mxu0 %v19400_v42  ;;  %v19478_v42 = vld [vmem:[%s22137_s3 + $0xb68] ss:$72 sps:$4 sm:$0xff]  }
 0x407   : > { %6689 = vmatpush1.bf16.msra.mxu1 %v19403_v45  ;;  %6649 = vmatprep.subr.bf16.mxu0 %v19408_v46  ;;  %v19481_v45 = vld [vmem:[%s22137_s3 + $0x1468] ss:$72 sps:$4 sm:$0xff]   ;;  %v19486_v46 = vld [vmem:[%s22137_s3 + $0xbfc] ss:$72 sps:$4 sm:$0xff]  }
 0x408   : > { %6690 = vmatprep.subr.bf16.mxu1 %v19411_v47  ;;  %v19489_v47 = vld [vmem:[%s22137_s3 + $0x14fc] ss:$72 sps:$4 sm:$0xff]  }
 0x40a   : > { %6650 = vmatpush1.bf16.msra.mxu0 %v19406_v48  ;;  %v19484_v48 = vld [vmem:[%s22137_s3 + $0xbf8] ss:$72 sps:$4 sm:$0xff]  }
 0x40b   : > { %6691 = vmatpush1.bf16.msra.mxu1 %v19409_v50  ;;  %6651 = vmatprep.subr.bf16.mxu0 %v19414_v51  ;;  %v19487_v50 = vld [vmem:[%s22137_s3 + $0x14f8] ss:$72 sps:$4 sm:$0xff]   ;;  %v19492_v51 = vld [vmem:[%s22137_s3 + $0xc8c] ss:$72 sps:$4 sm:$0xff]  }
 0x40c   : > { %6692 = vmatprep.subr.bf16.mxu1 %v19417_v54  ;;  %v19495_v54 = vld [vmem:[%s22137_s3 + $0x158c] ss:$72 sps:$4 sm:$0xff]  }
 0x40e   : > { %6652 = vmatpush1.bf16.msra.mxu0 %v19412_v57 }
 0x40f   : > { %6693 = vmatpush1.bf16.msra.mxu1 %v19415_v58  ;;  %6653 = vmatprep.subr.bf16.mxu0 %v19420_v59  ;;  %v19490_v59 = vld [vmem:[%s22137_s3 + $0xc88] ss:$72 sps:$4 sm:$0xff]  }
 0x410   : > { %6694 = vmatprep.subr.bf16.mxu1 %v19423_v32  ;;  %v19493_v32 = vld [vmem:[%s22137_s3 + $0x1588] ss:$72 sps:$4 sm:$0xff]  }
 0x412   : > { %6654 = vmatpush1.bf16.msra.mxu0 %v19418_v60 }
 0x413   : > { %6695 = vmatpush1.bf16.msra.mxu1 %v19421_v61  ;;  %6655 = vmatprep.subr.bf16.mxu0 %v19426_v36 }
 0x414   : > { %6696 = vmatprep.subr.bf16.mxu1 %v19429_v62 }
 0x416   : > { %6656 = vmatpush1.bf16.msra.mxu0 %v19424_v63 }
 0x417   : > { %6697 = vmatpush1.bf16.msra.mxu1 %v19427_v0  ;;  %6657 = vmatprep.subr.bf16.mxu0 %v19432_v1 }
 0x418   : > { %6698 = vmatprep.subr.bf16.mxu1 %v19435_v2  ;;  %v19501_v2 = vld [vmem:[%s22137_s3 + $0x161c] ss:$72 sps:$4 sm:$0xff]  }
 0x41a   : > { %6658 = vmatpush1.bf16.msra.mxu0 %v19430_v3 }
 0x41b   : > { %6699 = vmatpush1.bf16.msra.mxu1 %v19433_v4  ;;  %6659 = vmatprep.subr.bf16.mxu0 %v19438_v5  ;;  %v19499_v4 = vld [vmem:[%s22137_s3 + $0x1618] ss:$72 sps:$4 sm:$0xff]   ;;  %v19504_v5 = vld [vmem:[%s22137_s3 + $0xdac] ss:$72 sps:$4 sm:$0xff]  }
 0x41c   : > { %6700 = vmatprep.subr.bf16.mxu1 %v19441_v7  ;;  %v19507_v7 = vld [vmem:[%s22137_s3 + $0x16ac] ss:$72 sps:$4 sm:$0xff]  }
 0x41e   : > { %6660 = vmatpush1.bf16.msra.mxu0 %v19436_v8  ;;  %v19502_v8 = vld [vmem:[%s22137_s3 + $0xda8] ss:$72 sps:$4 sm:$0xff]  }
 0x41f   : > { %6701 = vmatpush1.bf16.msra.mxu1 %v19439_v9  ;;  %6661 = vmatprep.subr.bf16.mxu0 %v19444_v10  ;;  %v19505_v9 = vld [vmem:[%s22137_s3 + $0x16a8] ss:$72 sps:$4 sm:$0xff]   ;;  %v19510_v10 = vld [vmem:[%s22137_s3 + $0xe3c] ss:$72 sps:$4 sm:$0xff]  }
 0x420   : > { %6702 = vmatprep.subr.bf16.mxu1 %v19447_v11  ;;  %v19513_v11 = vld [vmem:[%s22137_s3 + $0x173c] ss:$72 sps:$4 sm:$0xff]  }
 0x422   : > { %6662 = vmatpush1.bf16.msra.mxu0 %v19442_v12  ;;  %v19508_v12 = vld [vmem:[%s22137_s3 + $0xe38] ss:$72 sps:$4 sm:$0xff]  }
 0x423   : > { %6703 = vmatpush1.bf16.msra.mxu1 %v19445_v13  ;;  %6663 = vmatprep.subr.bf16.mxu0 %v19450_v15  ;;  %v19511_v13 = vld [vmem:[%s22137_s3 + $0x1738] ss:$72 sps:$4 sm:$0xff]   ;;  %v19516_v15 = vld [vmem:[%s22137_s3 + $0xecc] ss:$72 sps:$4 sm:$0xff]  }
 0x424   : > { %6704 = vmatprep.subr.bf16.mxu1 %v19453_v49  ;;  %v19519_v49 = vld [vmem:[%s22137_s3 + $0x17cc] ss:$72 sps:$4 sm:$0xff]  }
 0x426   : > { %6664 = vmatpush1.bf16.msra.mxu0 %v19448_v16  ;;  %v19514_v16 = vld [vmem:[%s22137_s3 + $0xec8] ss:$72 sps:$4 sm:$0xff]  }
 0x427   : > { %6705 = vmatpush1.bf16.msra.mxu1 %v19451_v17  ;;  %6715 = vmatprep.subr.bf16.mxu0 %v19456_v55  ;;  %v19517_v17 = vld [vmem:[%s22137_s3 + $0x17c8] ss:$72 sps:$4 sm:$0xff]   ;;  %v19522_v55 = vld [vmem:[%s22137_s3 + $0xf5c] ss:$72 sps:$4 sm:$0xff]  }
 0x428   : > { %6756 = vmatprep.subr.bf16.mxu1 %v19459_v19  ;;  %v19525_v19 = vld [vmem:[%s22137_s3 + $0x185c] ss:$72 sps:$4 sm:$0xff]  }
 0x429   : > { %6666 = vmatmul.mubr.bf16.vlgmr.msra.gmra.mrb[28].mxu0 %v22318_v52 }
 0x42a   : > { %6707 = vmatmul.mubr.bf16.vlgmr.msra.gmra.mrb[28].mxu1 %v22244_v43  ;;  %6716 = vmatpush1.bf16.msra.mxu0 %v19454_v21  ;;  %v19520_v21 = vld [vmem:[%s22137_s3 + $0xf58] ss:$72 sps:$4 sm:$0xff]  }
 0x42b   : > { %6757 = vmatpush1.bf16.msra.mxu1 %v19457_v22  ;;  %6717 = vmatprep.subr.bf16.mxu0 %v19462_v24  ;;  %v19523_v22 = vld [vmem:[%s22137_s3 + $0x1858] ss:$72 sps:$4 sm:$0xff]   ;;  %v19528_v24 = vld [vmem:[%s22137_s3 + $0xfec] ss:$72 sps:$4 sm:$0xff]  }
 0x42c   : > { %6758 = vmatprep.subr.bf16.mxu1 %v19465_v25  ;;  %6747 = vmatprep.mubr.bf16.mxu0 %v22223_v23  ;;  %v19531_v25 = vld [vmem:[%s22137_s3 + $0x18ec] ss:$72 sps:$4 sm:$0xff]  }
 0x42d   : > { %6788 = vmatprep.mubr.bf16.mxu1 %v22275_v6 }
 0x42e   : > { %6718 = vmatpush1.bf16.msra.mxu0 %v19460_v26  ;;  %v19526_v26 = vld [vmem:[%s22137_s3 + $0xfe8] ss:$72 sps:$4 sm:$0xff]  }
 0x42f   : > { %6759 = vmatpush1.bf16.msra.mxu1 %v19463_v27  ;;  %6719 = vmatprep.subr.bf16.mxu0 %v19468_v28  ;;  %v19529_v27 = vld [vmem:[%s22137_s3 + $0x18e8] ss:$72 sps:$4 sm:$0xff]   ;;  %v19534_v28 = vld [vmem:[%s22137_s3 + $0x107c] ss:$72 sps:$4 sm:$0xff]  }
 0x430   : > { %6760 = vmatprep.subr.bf16.mxu1 %v19471_v29  ;;  %v19537_v29 = vld [vmem:[%s22137_s3 + $0x197c] ss:$72 sps:$4 sm:$0xff]  }
 0x432   : > { %6720 = vmatpush1.bf16.msra.mxu0 %v19466_v31  ;;  %v19532_v31 = vld [vmem:[%s22137_s3 + $0x1078] ss:$72 sps:$4 sm:$0xff]  }
 0x433   : > { %6761 = vmatpush1.bf16.msra.mxu1 %v19469_v33  ;;  %6721 = vmatprep.subr.bf16.mxu0 %v19474_v35  ;;  %v19535_v33 = vld [vmem:[%s22137_s3 + $0x1978] ss:$72 sps:$4 sm:$0xff]   ;;  %v19540_v35 = vld [vmem:[%s22137_s3 + $0x110c] ss:$72 sps:$4 sm:$0xff]  }
 0x434   : > { %6762 = vmatprep.subr.bf16.mxu1 %v19477_v37  ;;  %v19543_v37 = vld [vmem:[%s22137_s3 + $0x1a0c] ss:$72 sps:$4 sm:$0xff]  }
 0x436   : > { %6722 = vmatpush1.bf16.msra.mxu0 %v19472_v38  ;;  %v19538_v38 = vld [vmem:[%s22137_s3 + $0x1108] ss:$72 sps:$4 sm:$0xff]  }
 0x437   : > { %6763 = vmatpush1.bf16.msra.mxu1 %v19475_v39  ;;  %6723 = vmatprep.subr.bf16.mxu0 %v19480_v40  ;;  %v19541_v39 = vld [vmem:[%s22137_s3 + $0x1a08] ss:$72 sps:$4 sm:$0xff]   ;;  %v19546_v40 = vld [vmem:[%s22137_s3 + $0x119c] ss:$72 sps:$4 sm:$0xff]  }
 0x438   : > { %6764 = vmatprep.subr.bf16.mxu1 %v19483_v41  ;;  %v19549_v41 = vld [vmem:[%s22137_s3 + $0x1a9c] ss:$72 sps:$4 sm:$0xff]  }
 0x43a   : > { %6724 = vmatpush1.bf16.msra.mxu0 %v19478_v42  ;;  %v19544_v42 = vld [vmem:[%s22137_s3 + $0x1198] ss:$72 sps:$4 sm:$0xff]  }
 0x43b   : > { %6765 = vmatpush1.bf16.msra.mxu1 %v19481_v45  ;;  %6725 = vmatprep.subr.bf16.mxu0 %v19486_v46  ;;  %v19547_v45 = vld [vmem:[%s22137_s3 + $0x1a98] ss:$72 sps:$4 sm:$0xff]   ;;  %v19552_v46 = vld [vmem:[%s22137_s3 + $0x34] ss:$72 sps:$4 sm:$0xff]  }
 0x43c   : > { %6766 = vmatprep.subr.bf16.mxu1 %v19489_v47  ;;  %v6421_v57 = vpop.f32.mrb[16].mxu0  ;;  %v19555_v47 = vld [vmem:[%s22137_s3 + $0x934] ss:$72 sps:$4 sm:$0xff]  }
 0x43d   : > { %v22780_v58 = vpop.f32.mrb[16].mxu1  ;;  %v22785_v60 = vadd.f32 %v6421_v57, %v22710_v30  ;;  %v6423_v61 = vpop.f32.mrb[17].mxu0  ;;  %v19498_v30 = vld [vmem:[%s22137_s3 + $0xd1c] ss:$72 sps:$4 sm:$0xff]   ;;  %v19556_v57 = vld [vmem:[%s22137_s3 + $0xc0] ss:$72 sps:$4 sm:$0xff]  }
 0x43e   : > { %v22787_v36 = vpop.f32.mrb[17].mxu1  ;;  %v22790_v62 = vadd.f32 %v6423_v61, %v22712_v34  ;;  %6726 = vmatpush1.bf16.msra.mxu0 %v19484_v48  ;;  %v6425_v0 = vpop.f32.mrb[18].mxu0  ;;  %v19496_v34 = vld [vmem:[%s22137_s3 + $0xd18] ss:$72 sps:$4 sm:$0xff]   ;;  %v19567_v61 = vld [vmem:[%s22137_s3 + $0xa54] ss:$72 sps:$4 sm:$0xff]  }
 0x43f   : > { %v6466_v63 = vpop.f32.mrb[18].mxu1  ;;  %6767 = vmatpush1.bf16.msra.mxu1 %v19487_v50  ;;  %6727 = vmatprep.subr.bf16.mxu0 %v19492_v51  ;;  %v6426_v3 = vpop.f32.mrb[19].mxu0  ;;  %v19550_v48 = vld [vmem:[%s22137_s3 + $0x30] ss:$72 sps:$4 sm:$0xff]   ;;  %v19558_v51 = vld [vmem:[%s22137_s3 + $0xc4] ss:$72 sps:$4 sm:$0xff]  }
 0x440   : > { %v6467_v1 = vpop.f32.mrb[19].mxu1  ;;  %6768 = vmatprep.subr.bf16.mxu1 %v19495_v54  ;;  %v19553_v50 = vld [vmem:[%s22137_s3 + $0x930] ss:$72 sps:$4 sm:$0xff]   ;;  %v19561_v54 = vld [vmem:[%s22137_s3 + $0x9c4] ss:$72 sps:$4 sm:$0xff]  }
 0x441   : > { %v19562_v63 = vld [vmem:[%s22137_s3 + $0x150] ss:$72 sps:$4 sm:$0xff]   ;;  %v19570_v1 = vld [vmem:[%s22137_s3 + $0x1e4] ss:$72 sps:$4 sm:$0xff]   ;;  %v19571_v3 = vld [vmem:[%s22137_s3 + $0xae0] ss:$72 sps:$4 sm:$0xff]  }
 0x442   : > { %6728 = vmatpush1.bf16.msra.mxu0 %v19490_v59  ;;  %v19559_v59 = vld [vmem:[%s22137_s3 + $0x9c0] ss:$72 sps:$4 sm:$0xff]   ;;  %v19565_v0 = vld [vmem:[%s22137_s3 + $0xa50] ss:$72 sps:$4 sm:$0xff]  }
 0x443   : > { %6769 = vmatpush1.bf16.msra.mxu1 %v19493_v32  ;;  %6729 = vmatprep.subr.bf16.mxu0 %v19498_v30  ;;  %v19564_v32 = vld [vmem:[%s22137_s3 + $0x154] ss:$72 sps:$4 sm:$0xff]   ;;  %v19573_v30 = vld [vmem:[%s22137_s3 + $0xae4] ss:$72 sps:$4 sm:$0xff]  }
 0x444   : > { %6770 = vmatprep.subr.bf16.mxu1 %v19501_v2  ;;  %v19568_v2 = vld [vmem:[%s22137_s3 + $0x1e0] ss:$72 sps:$4 sm:$0xff]  }
 0x446   : > { %6730 = vmatpush1.bf16.msra.mxu0 %v19496_v34  ;;  %v7166_v34 = vlaneseq }
 0x447   : > { %6771 = vmatpush1.bf16.msra.mxu1 %v19499_v4  ;;  %6731 = vmatprep.subr.bf16.mxu0 %v19504_v5  ;;  %v19576_v4 = vld [vmem:[%s22137_s3 + $0x274] ss:$72 sps:$4 sm:$0xff]  }
 0x448   : > { %6772 = vmatprep.subr.bf16.mxu1 %v19507_v7  ;;  %v19579_v5 = vld [vmem:[%s22137_s3 + $0xb74] ss:$72 sps:$4 sm:$0xff]   ;;  %v19574_v7 = vld [vmem:[%s22137_s3 + $0x270] ss:$72 sps:$4 sm:$0xff]  }
 0x44a   : > { %6732 = vmatpush1.bf16.msra.mxu0 %v19502_v8  ;;  %v19577_v8 = vld [vmem:[%s22137_s3 + $0xb70] ss:$72 sps:$4 sm:$0xff]  }
 0x44b   : > { %6773 = vmatpush1.bf16.msra.mxu1 %v19505_v9  ;;  %6733 = vmatprep.subr.bf16.mxu0 %v19510_v10  ;;  %v22852_v9 = vshrl.u32 %v7166_v34, 7  ;;  %v19582_v10 = vld [vmem:[%s22137_s3 + $0x304] ss:$72 sps:$4 sm:$0xff]  }
 0x44c   : > { %6774 = vmatprep.subr.bf16.mxu1 %v19513_v11  ;;  %v19585_v11 = vld [vmem:[%s22137_s3 + $0xc04] ss:$72 sps:$4 sm:$0xff]  }
 0x44d   : > { %v19621_v34 = vld [vmem:[%s22137_s3 + $0xf64] ss:$72 sps:$4 sm:$0xff]  }
 0x44e   : > { %6734 = vmatpush1.bf16.msra.mxu0 %v19508_v12  ;;  %v19580_v12 = vld [vmem:[%s22137_s3 + $0x300] ss:$72 sps:$4 sm:$0xff]  }
 0x44f   : > { %6775 = vmatpush1.bf16.msra.mxu1 %v19511_v13  ;;  %6735 = vmatprep.subr.bf16.mxu0 %v19516_v15  ;;  %v19583_v13 = vld [vmem:[%s22137_s3 + $0xc00] ss:$72 sps:$4 sm:$0xff]   ;;  %v22859_v15 = vsub.s32 1, %v22852_v9 }
 0x450   : > { %6776 = vmatprep.subr.bf16.mxu1 %v19519_v49  ;;  %v857_v49 = vld [vmem:[%s22153_s22] sm:$0xff] }
 0x452   : > { %6736 = vmatpush1.bf16.msra.mxu0 %v19514_v16  ;;  %v19588_v16 = vld [vmem:[%s22137_s3 + $0x394] ss:$72 sps:$4 sm:$0xff]  }
 0x453   : > { %6777 = vmatpush1.bf16.msra.mxu1 %v19517_v17  ;;  %6737 = vmatprep.subr.bf16.mxu0 %v19522_v55  ;;  %v19591_v17 = vld [vmem:[%s22137_s3 + $0xc94] ss:$72 sps:$4 sm:$0xff]  }
 0x454   : > { %6778 = vmatprep.subr.bf16.mxu1 %v19525_v19 }
 0x456   : > { %6738 = vmatpush1.bf16.msra.mxu0 %v19520_v21  ;;  %v19586_v21 = vld [vmem:[%s22137_s3 + $0x390] ss:$72 sps:$4 sm:$0xff]  }
 0x457   : > { %6779 = vmatpush1.bf16.msra.mxu1 %v19523_v22  ;;  %6739 = vmatprep.subr.bf16.mxu0 %v19528_v24  ;;  %v19589_v22 = vld [vmem:[%s22137_s3 + $0xc90] ss:$72 sps:$4 sm:$0xff]  }
 0x458   : > { %6780 = vmatprep.subr.bf16.mxu1 %v19531_v25 }
 0x45a   : > { %6740 = vmatpush1.bf16.msra.mxu0 %v19526_v26 }
 0x45b   : > { %6781 = vmatpush1.bf16.msra.mxu1 %v19529_v27  ;;  %6741 = vmatprep.subr.bf16.mxu0 %v19534_v28  ;;  %v7199_v27 = vrot.slane %v857_v49, %v22859_v15  ;;  %v19594_v28 = vld [vmem:[%s22137_s3 + $0x424] ss:$72 sps:$4 sm:$0xff]   ;;  %v19628_v49 = vld [vmem:[%s22137_s3 + $0x780] ss:$72 sps:$4 sm:$0xff]  }
 0x45c   : > { %6782 = vmatprep.subr.bf16.mxu1 %v19537_v29 }
 0x45e   : > { %6742 = vmatpush1.bf16.msra.mxu0 %v19532_v31 }
 0x45f   : > { %6783 = vmatpush1.bf16.msra.mxu1 %v19535_v33  ;;  %6743 = vmatprep.subr.bf16.mxu0 %v19540_v35 }
 0x460   : > { %6784 = vmatprep.subr.bf16.mxu1 %v19543_v37 }
 0x462   : > { %6744 = vmatpush1.bf16.msra.mxu0 %v19538_v38  ;;  %v858_v38 = vld [vmem:[%s22153_s22 + $0x8] sm:$0xff] }
 0x463   : > { %6785 = vmatpush1.bf16.msra.mxu1 %v19541_v39  ;;  %6745 = vmatprep.subr.bf16.mxu0 %v19546_v40  ;;  %v19597_v40 = vld [vmem:[%s22137_s3 + $0xd24] ss:$72 sps:$4 sm:$0xff]  }
 0x464   : > { %6786 = vmatprep.subr.bf16.mxu1 %v19549_v41  ;;  %v22873_v41 = vsub.s32 0, %v22852_v9 }
 0x466   : > { %6746 = vmatpush1.bf16.msra.mxu0 %v19544_v42 }
 0x467   : > { %6787 = vmatpush1.bf16.msra.mxu1 %v19547_v45  ;;  %6797 = vmatprep.subr.bf16.mxu0 %v19552_v46  ;;  %v19592_v45 = vld [vmem:[%s22137_s3 + $0x420] ss:$72 sps:$4 sm:$0xff]  }
 0x468   : > { %6838 = vmatprep.subr.bf16.mxu1 %v19555_v47  ;;  %v19595_v46 = vld [vmem:[%s22137_s3 + $0xd20] ss:$72 sps:$4 sm:$0xff]   ;;  %v19600_v47 = vld [vmem:[%s22137_s3 + $0x4b4] ss:$72 sps:$4 sm:$0xff]  }
 0x469   : > { %6748 = vmatmul.mubr.bf16.vlgmr.msra.gmra.mrb[32].mxu0 %v22246_v44 }
 0x46a   : > { %6789 = vmatmul.mubr.bf16.vlgmr.msra.gmra.mrb[32].mxu1 %v22318_v52  ;;  %6798 = vmatpush1.bf16.msra.mxu0 %v19550_v48  ;;  %v19603_v48 = vld [vmem:[%s22137_s3 + $0xdb4] ss:$72 sps:$4 sm:$0xff]  }
 0x46b   : > { %6839 = vmatpush1.bf16.msra.mxu1 %v19553_v50  ;;  %6799 = vmatprep.subr.bf16.mxu0 %v19558_v51  ;;  %v7173_v50 = vrot.slane %v858_v38, %v22873_v41 }
 0x46c   : > { %6840 = vmatprep.subr.bf16.mxu1 %v19561_v54  ;;  %6829 = vmatprep.mubr.bf16.mxu0 %v22220_v20  ;;  %v19598_v54 = vld [vmem:[%s22137_s3 + $0x4b0] ss:$72 sps:$4 sm:$0xff]  }
 0x46d   : > { %6870 = vmatprep.mubr.bf16.mxu1 %v22223_v23 }
 0x46e   : > { %6800 = vmatpush1.bf16.msra.mxu0 %v19556_v57  ;;  %v19601_v57 = vld [vmem:[%s22137_s3 + $0xdb0] ss:$72 sps:$4 sm:$0xff]  }
 0x46f   : > { %6841 = vmatpush1.bf16.msra.mxu1 %v19559_v59  ;;  %6801 = vmatprep.subr.bf16.mxu0 %v19564_v32  ;;  %v19606_v59 = vld [vmem:[%s22137_s3 + $0x544] ss:$72 sps:$4 sm:$0xff]  }
 0x470   : > { %6842 = vmatprep.subr.bf16.mxu1 %v19567_v61  ;;  %v19609_v32 = vld [vmem:[%s22137_s3 + $0xe44] ss:$72 sps:$4 sm:$0xff]   ;;  %v22894_v61 = vadd.f32 %v7173_v50, %v22566_v56  ;;  %v19610_v56 = vld [vmem:[%s22137_s3 + $0x5d0] ss:$72 sps:$4 sm:$0xff]   ;;  %v19672_v50 = vld [vmem:[%s22137_s3 + $0x1474] ss:$72 sps:$4 sm:$0xff]  }
 0x472   : > { %6802 = vmatpush1.bf16.msra.mxu0 %v19562_v63  ;;  %v19604_v63 = vld [vmem:[%s22137_s3 + $0x540] ss:$72 sps:$4 sm:$0xff]  }
 0x473   : > { %6843 = vmatpush1.bf16.msra.mxu1 %v19565_v0  ;;  %6803 = vmatprep.subr.bf16.mxu0 %v19570_v1  ;;  %v19607_v0 = vld [vmem:[%s22137_s3 + $0xe40] ss:$72 sps:$4 sm:$0xff]   ;;  %v19612_v1 = vld [vmem:[%s22137_s3 + $0x5d4] ss:$72 sps:$4 sm:$0xff]  }
 0x474   : > { %6844 = vmatprep.subr.bf16.mxu1 %v19573_v30  ;;  %v19615_v30 = vld [vmem:[%s22137_s3 + $0xed4] ss:$72 sps:$4 sm:$0xff]  }
 0x476   : > { %6804 = vmatpush1.bf16.msra.mxu0 %v19568_v2  ;;  %v19613_v2 = vld [vmem:[%s22137_s3 + $0xed0] ss:$72 sps:$4 sm:$0xff]  }
 0x477   : > { %6845 = vmatpush1.bf16.msra.mxu1 %v19571_v3  ;;  %6805 = vmatprep.subr.bf16.mxu0 %v19576_v4  ;;  %v19618_v3 = vld [vmem:[%s22137_s3 + $0x664] ss:$72 sps:$4 sm:$0xff]   ;;  %v19616_v4 = vld [vmem:[%s22137_s3 + $0x660] ss:$72 sps:$4 sm:$0xff]  }
 0x478   : > { %6846 = vmatprep.subr.bf16.mxu1 %v19579_v5  ;;  %v19619_v5 = vld [vmem:[%s22137_s3 + $0xf60] ss:$72 sps:$4 sm:$0xff]  }
 0x47a   : > { %6806 = vmatpush1.bf16.msra.mxu0 %v19574_v7  ;;  %v19624_v7 = vld [vmem:[%s22137_s3 + $0x6f4] ss:$72 sps:$4 sm:$0xff]  }
 0x47b   : > { %6847 = vmatpush1.bf16.msra.mxu1 %v19577_v8  ;;  %6807 = vmatprep.subr.bf16.mxu0 %v19582_v10  ;;  %v19627_v8 = vld [vmem:[%s22137_s3 + $0xff4] ss:$72 sps:$4 sm:$0xff]   ;;  %v19622_v10 = vld [vmem:[%s22137_s3 + $0x6f0] ss:$72 sps:$4 sm:$0xff]  }
 0x47c   : > { %6848 = vmatprep.subr.bf16.mxu1 %v19585_v11  ;;  %v6503_v55 = vpop.f32.mrb[20].mxu0  ;;  %v19625_v11 = vld [vmem:[%s22137_s3 + $0xff0] ss:$72 sps:$4 sm:$0xff]  }
 0x47d   : > { %v6544_v19 = vpop.f32.mrb[20].mxu1  ;;  %v6504_v24 = vadd.f32 %v6503_v55, %v22780_v58  ;;  %v6505_v25 = vpop.f32.mrb[21].mxu0  ;;  %v19639_v55 = vld [vmem:[%s22137_s3 + $0x1114] ss:$72 sps:$4 sm:$0xff]  }
 0x47e   : > { %v6546_v26 = vpop.f32.mrb[21].mxu1  ;;  %v6506_v29 = vadd.f32 %v6505_v25, %v22787_v36  ;;  %6808 = vmatpush1.bf16.msra.mxu0 %v19580_v12  ;;  %v6507_v33 = vpop.f32.mrb[22].mxu0  ;;  %v7203_v36 = vrot.slane %v858_v38, %v22859_v15  ;;  %v19630_v12 = vld [vmem:[%s22137_s3 + $0x784] ss:$72 sps:$4 sm:$0xff]   ;;  %v19640_v25 = vld [vmem:[%s22137_s3 + $0x8a0] ss:$72 sps:$4 sm:$0xff]  }
 0x47f   : > { %v6548_v31 = vpop.f32.mrb[22].mxu1  ;;  %6849 = vmatpush1.bf16.msra.mxu1 %v19583_v13  ;;  %v6545_v35 = vadd.f32 %v6544_v19, %v6504_v24  ;;  %6809 = vmatprep.subr.bf16.mxu0 %v19588_v16  ;;  %v6508_v58 = vpop.f32.mrb[23].mxu0  ;;  %v19633_v13 = vld [vmem:[%s22137_s3 + $0x1084] ss:$72 sps:$4 sm:$0xff]   ;;  %v19631_v16 = vld [vmem:[%s22137_s3 + $0x1080] ss:$72 sps:$4 sm:$0xff]  }
 0x480   : > { %v6549_v37 = vpop.f32.mrb[23].mxu1  ;;  %6850 = vmatprep.subr.bf16.mxu1 %v19591_v17  ;;  %v6547_v39 = vadd.f32 %v6546_v26, %v6506_v29  ;;  %v19636_v17 = vld [vmem:[%s22137_s3 + $0x814] ss:$72 sps:$4 sm:$0xff]   ;;  %v19634_v19 = vld [vmem:[%s22137_s3 + $0x810] ss:$72 sps:$4 sm:$0xff]  }
 0x481   : > { %v22876_v42 = vadd.f32 %v7199_v27, %v6545_v35  ;;  %v19645_v24 = vld [vmem:[%s22137_s3 + $0x11a4] ss:$72 sps:$4 sm:$0xff]   ;;  %v19643_v26 = vld [vmem:[%s22137_s3 + $0x11a0] ss:$72 sps:$4 sm:$0xff]   ;;  %v19648_v27 = vld [vmem:[%s22137_s3 + $0x1234] ss:$72 sps:$4 sm:$0xff]  }
 0x482   : > { %6810 = vmatpush1.bf16.msra.mxu0 %v19586_v21  ;;  %v22885_v51 = vadd.f32 %v7203_v36, %v6547_v39  ;;  %v19637_v21 = vld [vmem:[%s22137_s3 + $0x1110] ss:$72 sps:$4 sm:$0xff]   ;;  %v19654_v33 = vld [vmem:[%s22137_s3 + $0x12c4] ss:$72 sps:$4 sm:$0xff]   ;;  %v19652_v37 = vld [vmem:[%s22137_s3 + $0x12c0] ss:$72 sps:$4 sm:$0xff]  }
 0x483   : > { %6851 = vmatpush1.bf16.msra.mxu1 %v19589_v22  ;;  %7464 = vrot.lane.b32.xlu1 %v22876_v42, %s21704_s26  ;;  %v19642_v22 = vld [vmem:[%s22137_s3 + $0x8a4] ss:$72 sps:$4 sm:$0xff]   ;;  %v19646_v29 = vld [vmem:[%s22137_s3 + $0x1230] ss:$72 sps:$4 sm:$0xff]   ;;  %v19660_v38 = vld [vmem:[%s22137_s3 + $0x1354] ss:$72 sps:$4 sm:$0xff]  }
 0x484   : > { %6811 = vmatprep.subr.bf16.mxu0 %v19594_v28  ;;  %6852 = vmatprep.subr.bf16.mxu1 %v19597_v40  ;;  %v19651_v28 = vld [vmem:[%s22137_s3 + $0x3c] ss:$72 sps:$4 sm:$0xff]   ;;  %v19649_v31 = vld [vmem:[%s22137_s3 + $0x38] ss:$72 sps:$4 sm:$0xff]   ;;  %v19657_v35 = vld [vmem:[%s22137_s3 + $0xcc] ss:$72 sps:$4 sm:$0xff]  }
 0x485   : > { %v19655_v58 = vld [vmem:[%s22137_s3 + $0xc8] ss:$72 sps:$4 sm:$0xff]   ;;  %v19663_v39 = vld [vmem:[%s22137_s3 + $0x15c] ss:$72 sps:$4 sm:$0xff]   ;;  %v19661_v36 = vld [vmem:[%s22137_s3 + $0x158] ss:$72 sps:$4 sm:$0xff]  }
 0x486   : > { %6812 = vmatpush1.bf16.msra.mxu0 %v19592_v45  ;;  %v19658_v40 = vld [vmem:[%s22137_s3 + $0x1350] ss:$72 sps:$4 sm:$0xff]   ;;  %v19666_v45 = vld [vmem:[%s22137_s3 + $0x13e4] ss:$72 sps:$4 sm:$0xff]  }
 0x487   : > { %6853 = vmatpush1.bf16.msra.mxu1 %v19595_v46  ;;  %7466 = vrot.lane.b32.xlu1 %v22885_v51, %s21704_s26  ;;  %v19669_v46 = vld [vmem:[%s22137_s3 + $0x1ec] ss:$72 sps:$4 sm:$0xff]  }
 0x488   : > { %6813 = vmatprep.subr.bf16.mxu0 %v19600_v47  ;;  %6854 = vmatprep.subr.bf16.mxu1 %v19603_v48  ;;  %v19664_v47 = vld [vmem:[%s22137_s3 + $0x13e0] ss:$72 sps:$4 sm:$0xff]  }
 0x489   : > { %v19667_v48 = vld [vmem:[%s22137_s3 + $0x1e8] ss:$72 sps:$4 sm:$0xff]  }
 0x48a   : > { %6814 = vmatpush1.bf16.msra.mxu0 %v19598_v54  ;;  %v19675_v54 = vld [vmem:[%s22137_s3 + $0x27c] ss:$72 sps:$4 sm:$0xff]  }
 0x48b   : > { %6855 = vmatpush1.bf16.msra.mxu1 %v19601_v57  ;;  %7459 = vrot.lane.b32.xlu1 %v22894_v61, %s21704_s26  ;;  %v19670_v57 = vld [vmem:[%s22137_s3 + $0x1470] ss:$72 sps:$4 sm:$0xff]  }
 0x48c   : > { %6815 = vmatprep.subr.bf16.mxu0 %v19606_v59  ;;  %6856 = vmatprep.subr.bf16.mxu1 %v19609_v32  ;;  %v19673_v59 = vld [vmem:[%s22137_s3 + $0x278] ss:$72 sps:$4 sm:$0xff]   ;;  %v19678_v32 = vld [vmem:[%s22137_s3 + $0x1504] ss:$72 sps:$4 sm:$0xff]  }
 0x48e   : > { %6816 = vmatpush1.bf16.msra.mxu0 %v19604_v63  ;;  %v19681_v63 = vld [vmem:[%s22137_s3 + $0x30c] ss:$72 sps:$4 sm:$0xff]  }
 0x48f   : > { %6857 = vmatpush1.bf16.msra.mxu1 %v19607_v0  ;;  %6817 = vmatprep.subr.bf16.mxu0 %v19612_v1  ;;  %v19676_v0 = vld [vmem:[%s22137_s3 + $0x1500] ss:$72 sps:$4 sm:$0xff]  }
 0x490   : > { %6858 = vmatprep.subr.bf16.mxu1 %v19615_v30  ;;  %v19679_v1 = vld [vmem:[%s22137_s3 + $0x308] ss:$72 sps:$4 sm:$0xff]   ;;  %v19684_v30 = vld [vmem:[%s22137_s3 + $0x1594] ss:$72 sps:$4 sm:$0xff]  }
 0x492   : > { %6818 = vmatpush1.bf16.msra.mxu0 %v19610_v56  ;;  %v19687_v56 = vld [vmem:[%s22137_s3 + $0x39c] ss:$72 sps:$4 sm:$0xff]  }
 0x493   : > { %6859 = vmatpush1.bf16.msra.mxu1 %v19613_v2  ;;  %6819 = vmatprep.subr.bf16.mxu0 %v19618_v3 }
 0x494   : > { %6860 = vmatprep.subr.bf16.mxu1 %v19621_v34  ;;  %v19682_v34 = vld [vmem:[%s22137_s3 + $0x1590] ss:$72 sps:$4 sm:$0xff]  }
 0x496   : > { %6820 = vmatpush1.bf16.msra.mxu0 %v19616_v4  ;;  %v19685_v4 = vld [vmem:[%s22137_s3 + $0x398] ss:$72 sps:$4 sm:$0xff]  }
 0x497   : > { %6861 = vmatpush1.bf16.msra.mxu1 %v19619_v5  ;;  %6821 = vmatprep.subr.bf16.mxu0 %v19624_v7 }
 0x498   : > { %6862 = vmatprep.subr.bf16.mxu1 %v19627_v8 }
 0x49a   : > { %6822 = vmatpush1.bf16.msra.mxu0 %v19622_v10  ;;  %v19690_v10 = vld [vmem:[%s22137_s3 + $0x1624] ss:$72 sps:$4 sm:$0xff]  }
 0x49b   : > { %6863 = vmatpush1.bf16.msra.mxu1 %v19625_v11  ;;  %6823 = vmatprep.subr.bf16.mxu0 %v19630_v12  ;;  %v19693_v11 = vld [vmem:[%s22137_s3 + $0x42c] ss:$72 sps:$4 sm:$0xff]  }
 0x49c   : > { %6864 = vmatprep.subr.bf16.mxu1 %v19633_v13 }
 0x49e   : > { %6824 = vmatpush1.bf16.msra.mxu0 %v19628_v49 }
 0x49f   : > { %6865 = vmatpush1.bf16.msra.mxu1 %v19631_v16  ;;  %6825 = vmatprep.subr.bf16.mxu0 %v19636_v17 }
 0x4a0   : > { %6866 = vmatprep.subr.bf16.mxu1 %v19639_v55  ;;  %v19688_v55 = vld [vmem:[%s22137_s3 + $0x1620] ss:$72 sps:$4 sm:$0xff]  }
 0x4a2   : > { %6826 = vmatpush1.bf16.msra.mxu0 %v19634_v19  ;;  %v19691_v19 = vld [vmem:[%s22137_s3 + $0x428] ss:$72 sps:$4 sm:$0xff]  }
 0x4a3   : > { %6867 = vmatpush1.bf16.msra.mxu1 %v19637_v21  ;;  %6827 = vmatprep.subr.bf16.mxu0 %v19642_v22  ;;  %v19696_v21 = vld [vmem:[%s22137_s3 + $0x16b4] ss:$72 sps:$4 sm:$0xff]  }
 0x4a4   : > { %6868 = vmatprep.subr.bf16.mxu1 %v19645_v24  ;;  %v19699_v22 = vld [vmem:[%s22137_s3 + $0x4bc] ss:$72 sps:$4 sm:$0xff]   ;;  %v19694_v24 = vld [vmem:[%s22137_s3 + $0x16b0] ss:$72 sps:$4 sm:$0xff]  }
 0x4a6   : > { %6828 = vmatpush1.bf16.msra.mxu0 %v19640_v25  ;;  %v19697_v25 = vld [vmem:[%s22137_s3 + $0x4b8] ss:$72 sps:$4 sm:$0xff]  }
 0x4a7   : > { %6869 = vmatpush1.bf16.msra.mxu1 %v19643_v26  ;;  %6879 = vmatprep.subr.bf16.mxu0 %v19648_v27  ;;  %v19702_v26 = vld [vmem:[%s22137_s3 + $0x1744] ss:$72 sps:$4 sm:$0xff]  }
 0x4a8   : > { %6920 = vmatprep.subr.bf16.mxu1 %v19651_v28  ;;  %v19705_v27 = vld [vmem:[%s22137_s3 + $0x54c] ss:$72 sps:$4 sm:$0xff]   ;;  %v19700_v28 = vld [vmem:[%s22137_s3 + $0x1740] ss:$72 sps:$4 sm:$0xff]  }
 0x4a9   : > { %6830 = vmatmul.mubr.bf16.vlgmr.msra.gmra.mrb[36].mxu0 %v22244_v43 }
 0x4aa   : > { %6871 = vmatmul.mubr.bf16.vlgmr.msra.gmra.mrb[36].mxu1 %v22246_v44  ;;  %6880 = vmatpush1.bf16.msra.mxu0 %v19646_v29  ;;  %v19703_v29 = vld [vmem:[%s22137_s3 + $0x548] ss:$72 sps:$4 sm:$0xff]  }
 0x4ab   : > { %6921 = vmatpush1.bf16.msra.mxu1 %v19649_v31  ;;  %6881 = vmatprep.subr.bf16.mxu0 %v19654_v33  ;;  %v19708_v31 = vld [vmem:[%s22137_s3 + $0x17d4] ss:$72 sps:$4 sm:$0xff]  }
 0x4ac   : > { %6922 = vmatprep.subr.bf16.mxu1 %v19657_v35  ;;  %6911 = vmatprep.mubr.bf16.mxu0 %v22275_v6  ;;  %v19711_v33 = vld [vmem:[%s22137_s3 + $0x5dc] ss:$72 sps:$4 sm:$0xff]   ;;  %v19706_v35 = vld [vmem:[%s22137_s3 + $0x17d0] ss:$72 sps:$4 sm:$0xff]  }
 0x4ad   : > { %6952 = vmatprep.mubr.bf16.mxu1 %v22220_v20 }
 0x4ae   : > { %6882 = vmatpush1.bf16.msra.mxu0 %v19652_v37  ;;  %v19709_v37 = vld [vmem:[%s22137_s3 + $0x5d8] ss:$72 sps:$4 sm:$0xff]  }
 0x4af   : > { %6923 = vmatpush1.bf16.msra.mxu1 %v19655_v58  ;;  %6883 = vmatprep.subr.bf16.mxu0 %v19660_v38  ;;  %v19714_v58 = vld [vmem:[%s22137_s3 + $0x1864] ss:$72 sps:$4 sm:$0xff]  }
 0x4b0   : > { %6924 = vmatprep.subr.bf16.mxu1 %v19663_v39  ;;  %v19717_v38 = vld [vmem:[%s22137_s3 + $0x66c] ss:$72 sps:$4 sm:$0xff]   ;;  %v19712_v39 = vld [vmem:[%s22137_s3 + $0x1860] ss:$72 sps:$4 sm:$0xff]  }
 0x4b2   : > { %6884 = vmatpush1.bf16.msra.mxu0 %v19658_v40  ;;  %v19715_v40 = vld [vmem:[%s22137_s3 + $0x668] ss:$72 sps:$4 sm:$0xff]  }
 0x4b3   : > { %6925 = vmatpush1.bf16.msra.mxu1 %v19661_v36  ;;  %6885 = vmatprep.subr.bf16.mxu0 %v19666_v45  ;;  %v19720_v36 = vld [vmem:[%s22137_s3 + $0x18f4] ss:$72 sps:$4 sm:$0xff]  }
 0x4b4   : > { %6926 = vmatprep.subr.bf16.mxu1 %v19669_v46  ;;  %v19723_v45 = vld [vmem:[%s22137_s3 + $0x6fc] ss:$72 sps:$4 sm:$0xff]   ;;  %v19718_v46 = vld [vmem:[%s22137_s3 + $0x18f0] ss:$72 sps:$4 sm:$0xff]  }
 0x4b6   : > { %6886 = vmatpush1.bf16.msra.mxu0 %v19664_v47  ;;  %v19721_v47 = vld [vmem:[%s22137_s3 + $0x6f8] ss:$72 sps:$4 sm:$0xff]  }
 0x4b7   : > { %6927 = vmatpush1.bf16.msra.mxu1 %v19667_v48  ;;  %6887 = vmatprep.subr.bf16.mxu0 %v19672_v50  ;;  %v19726_v48 = vld [vmem:[%s22137_s3 + $0x1984] ss:$72 sps:$4 sm:$0xff]  }
 0x4b8   : > { %6928 = vmatprep.subr.bf16.mxu1 %v19675_v54  ;;  %v19729_v50 = vld [vmem:[%s22137_s3 + $0x78c] ss:$72 sps:$4 sm:$0xff]   ;;  %v19724_v54 = vld [vmem:[%s22137_s3 + $0x1980] ss:$72 sps:$4 sm:$0xff]  }
 0x4ba   : > { %6888 = vmatpush1.bf16.msra.mxu0 %v19670_v57  ;;  %v19727_v57 = vld [vmem:[%s22137_s3 + $0x788] ss:$72 sps:$4 sm:$0xff]  }
 0x4bb   : > { %6929 = vmatpush1.bf16.msra.mxu1 %v19673_v59  ;;  %6889 = vmatprep.subr.bf16.mxu0 %v19678_v32  ;;  %v19732_v59 = vld [vmem:[%s22137_s3 + $0x1a14] ss:$72 sps:$4 sm:$0xff]  }
 0x4bc   : > { %6930 = vmatprep.subr.bf16.mxu1 %v19681_v63  ;;  %v6585_v2 = vpop.f32.mrb[24].mxu0  ;;  %v19735_v32 = vld [vmem:[%s22137_s3 + $0x81c] ss:$72 sps:$4 sm:$0xff]   ;;  %v19730_v63 = vld [vmem:[%s22137_s3 + $0x1a10] ss:$72 sps:$4 sm:$0xff]  }
 0x4bd   : > { %v6626_v3 = vpop.f32.mrb[24].mxu1  ;;  %v6587_v7 = vpop.f32.mrb[25].mxu0 }
 0x4be   : > { %v22956_v5 = vadd.f32 %v6626_v3, %v6585_v2  ;;  %v6628_v8 = vpop.f32.mrb[25].mxu1  ;;  %6890 = vmatpush1.bf16.msra.mxu0 %v19676_v0  ;;  %v6589_v49 = vpop.f32.mrb[26].mxu0  ;;  %v19733_v0 = vld [vmem:[%s22137_s3 + $0x818] ss:$72 sps:$4 sm:$0xff]   ;;  %v19739_v2 = vld [vmem:[%s22137_s3 + $0x8a8] ss:$72 sps:$4 sm:$0xff]  }
 0x4bf   : > { %v22960_v12 = vadd.f32 %v6628_v8, %v6587_v7  ;;  %v6630_v13 = vpop.f32.mrb[26].mxu1  ;;  %6931 = vmatpush1.bf16.msra.mxu1 %v19679_v1  ;;  %6891 = vmatprep.subr.bf16.mxu0 %v19684_v30  ;;  %v6590_v17 = vpop.f32.mrb[27].mxu0  ;;  %v19738_v1 = vld [vmem:[%s22137_s3 + $0x1aa4] ss:$72 sps:$4 sm:$0xff]   ;;  %v19745_v7 = vld [vmem:[%s22137_s3 + $0x1238] ss:$72 sps:$4 sm:$0xff]  }
 0x4c0   : > { %v6631_v16 = vpop.f32.mrb[27].mxu1  ;;  %6932 = vmatprep.subr.bf16.mxu1 %v19687_v56  ;;  %v19741_v30 = vld [vmem:[%s22137_s3 + $0x8ac] ss:$72 sps:$4 sm:$0xff]   ;;  %v19736_v56 = vld [vmem:[%s22137_s3 + $0x1aa0] ss:$72 sps:$4 sm:$0xff]  }
 0x4c1   : > { %v19744_v3 = vld [vmem:[%s22137_s3 + $0x93c] ss:$72 sps:$4 sm:$0xff]   ;;  %v19750_v8 = vld [vmem:[%s22137_s3 + $0x9cc] ss:$72 sps:$4 sm:$0xff]   ;;  %v19751_v13 = vld [vmem:[%s22137_s3 + $0x12c8] ss:$72 sps:$4 sm:$0xff]  }
 0x4c2   : > { %6892 = vmatpush1.bf16.msra.mxu0 %v19682_v34  ;;  %v19747_v34 = vld [vmem:[%s22137_s3 + $0x123c] ss:$72 sps:$4 sm:$0xff]   ;;  %v19754_v17 = vld [vmem:[%s22137_s3 + $0xa58] ss:$72 sps:$4 sm:$0xff]  }
 0x4c3   : > { %6933 = vmatpush1.bf16.msra.mxu1 %v19685_v4  ;;  %6893 = vmatprep.subr.bf16.mxu0 %v19690_v10  ;;  %v19742_v4 = vld [vmem:[%s22137_s3 + $0x938] ss:$72 sps:$4 sm:$0xff]   ;;  %v19753_v10 = vld [vmem:[%s22137_s3 + $0x12cc] ss:$72 sps:$4 sm:$0xff]   ;;  %v19756_v49 = vld [vmem:[%s22137_s3 + $0xa5c] ss:$72 sps:$4 sm:$0xff]  }
 0x4c4   : > { %6934 = vmatprep.subr.bf16.mxu1 %v19693_v11  ;;  %v19748_v11 = vld [vmem:[%s22137_s3 + $0x9c8] ss:$72 sps:$4 sm:$0xff]   ;;  %v19759_v16 = vld [vmem:[%s22137_s3 + $0x135c] ss:$72 sps:$4 sm:$0xff]  }
 0x4c6   : > { %6894 = vmatpush1.bf16.msra.mxu0 %v19688_v55  ;;  %v19757_v55 = vld [vmem:[%s22137_s3 + $0x1358] ss:$72 sps:$4 sm:$0xff]  }
 0x4c7   : > { %6935 = vmatpush1.bf16.msra.mxu1 %v19691_v19  ;;  %6895 = vmatprep.subr.bf16.mxu0 %v19696_v21  ;;  %v19762_v19 = vld [vmem:[%s22137_s3 + $0xaec] ss:$72 sps:$4 sm:$0xff]  }
 0x4c8   : > { %6936 = vmatprep.subr.bf16.mxu1 %v19699_v22  ;;  %v19765_v21 = vld [vmem:[%s22137_s3 + $0x13ec] ss:$72 sps:$4 sm:$0xff]   ;;  %v19760_v22 = vld [vmem:[%s22137_s3 + $0xae8] ss:$72 sps:$4 sm:$0xff]  }
 0x4ca   : > { %6896 = vmatpush1.bf16.msra.mxu0 %v19694_v24  ;;  %v19763_v24 = vld [vmem:[%s22137_s3 + $0x13e8] ss:$72 sps:$4 sm:$0xff]  }
 0x4cb   : > { %6937 = vmatpush1.bf16.msra.mxu1 %v19697_v25  ;;  %6897 = vmatprep.subr.bf16.mxu0 %v19702_v26  ;;  %v19768_v25 = vld [vmem:[%s22137_s3 + $0xb7c] ss:$72 sps:$4 sm:$0xff]  }
 0x4cc   : > { %6938 = vmatprep.subr.bf16.mxu1 %v19705_v27  ;;  %v19771_v26 = vld [vmem:[%s22137_s3 + $0x147c] ss:$72 sps:$4 sm:$0xff]   ;;  %v19766_v27 = vld [vmem:[%s22137_s3 + $0xb78] ss:$72 sps:$4 sm:$0xff]  }
 0x4ce   : > { %6898 = vmatpush1.bf16.msra.mxu0 %v19700_v28  ;;  %v19769_v28 = vld [vmem:[%s22137_s3 + $0x1478] ss:$72 sps:$4 sm:$0xff]  }
 0x4cf   : > { %6939 = vmatpush1.bf16.msra.mxu1 %v19703_v29  ;;  %6899 = vmatprep.subr.bf16.mxu0 %v19708_v31  ;;  %v19774_v29 = vld [vmem:[%s22137_s3 + $0xc0c] ss:$72 sps:$4 sm:$0xff]  }
 0x4d0   : > { %6940 = vmatprep.subr.bf16.mxu1 %v19711_v33  ;;  %v19777_v31 = vld [vmem:[%s22137_s3 + $0x150c] ss:$72 sps:$4 sm:$0xff]   ;;  %v19772_v33 = vld [vmem:[%s22137_s3 + $0xc08] ss:$72 sps:$4 sm:$0xff]  }
 0x4d2   : > { %6900 = vmatpush1.bf16.msra.mxu0 %v19706_v35  ;;  %v19775_v35 = vld [vmem:[%s22137_s3 + $0x1508] ss:$72 sps:$4 sm:$0xff]  }
 0x4d3   : > { %6941 = vmatpush1.bf16.msra.mxu1 %v19709_v37  ;;  %6901 = vmatprep.subr.bf16.mxu0 %v19714_v58  ;;  %v19780_v37 = vld [vmem:[%s22137_s3 + $0xc9c] ss:$72 sps:$4 sm:$0xff]  }
 0x4d4   : > { %6942 = vmatprep.subr.bf16.mxu1 %v19717_v38  ;;  %v19783_v58 = vld [vmem:[%s22137_s3 + $0x159c] ss:$72 sps:$4 sm:$0xff]  }
 0x4d6   : > { %6902 = vmatpush1.bf16.msra.mxu0 %v19712_v39 }
 0x4d7   : > { %6943 = vmatpush1.bf16.msra.mxu1 %v19715_v40  ;;  %6903 = vmatprep.subr.bf16.mxu0 %v19720_v36  ;;  %v19778_v40 = vld [vmem:[%s22137_s3 + $0xc98] ss:$72 sps:$4 sm:$0xff]  }
 0x4d8   : > { %6944 = vmatprep.subr.bf16.mxu1 %v19723_v45 }
 0x4da   : > { %6904 = vmatpush1.bf16.msra.mxu0 %v19718_v46 }
 0x4db   : > { %6945 = vmatpush1.bf16.msra.mxu1 %v19721_v47  ;;  %6905 = vmatprep.subr.bf16.mxu0 %v19726_v48  ;;  %v19781_v47 = vld [vmem:[%s22137_s3 + $0x1598] ss:$72 sps:$4 sm:$0xff]  }
 0x4dc   : > { %6946 = vmatprep.subr.bf16.mxu1 %v19729_v50 }
 0x4de   : > { %6906 = vmatpush1.bf16.msra.mxu0 %v19724_v54 }
 0x4df   : > { %6947 = vmatpush1.bf16.msra.mxu1 %v19727_v57  ;;  %6907 = vmatprep.subr.bf16.mxu0 %v19732_v59  ;;  %v19786_v57 = vld [vmem:[%s22137_s3 + $0xd2c] ss:$72 sps:$4 sm:$0xff]  }
 0x4e0   : > { %6948 = vmatprep.subr.bf16.mxu1 %v19735_v32  ;;  %v19784_v32 = vld [vmem:[%s22137_s3 + $0xd28] ss:$72 sps:$4 sm:$0xff]  }
 0x4e2   : > { %6908 = vmatpush1.bf16.msra.mxu0 %v19730_v63  ;;  %v19787_v63 = vld [vmem:[%s22137_s3 + $0x1628] ss:$72 sps:$4 sm:$0xff]  }
 0x4e3   : > { %6949 = vmatpush1.bf16.msra.mxu1 %v19733_v0  ;;  %6909 = vmatprep.subr.bf16.mxu0 %v19738_v1  ;;  %v19795_v1 = vld [vmem:[%s22137_s3 + $0x16bc] ss:$72 sps:$4 sm:$0xff]  }
 0x4e4   : > { %6950 = vmatprep.subr.bf16.mxu1 %v19741_v30  ;;  %v19790_v30 = vld [vmem:[%s22137_s3 + $0xdb8] ss:$72 sps:$4 sm:$0xff]  }
 0x4e6   : > { %6910 = vmatpush1.bf16.msra.mxu0 %v19736_v56  ;;  %v19793_v56 = vld [vmem:[%s22137_s3 + $0x16b8] ss:$72 sps:$4 sm:$0xff]  }
 0x4e7   : > { %6951 = vmatpush1.bf16.msra.mxu1 %v19739_v2  ;;  %6961 = vmatprep.subr.bf16.mxu0 %v19744_v3  ;;  %v19798_v2 = vld [vmem:[%s22137_s3 + $0xe4c] ss:$72 sps:$4 sm:$0xff]  }
 0x4e8   : > { %7002 = vmatprep.subr.bf16.mxu1 %v19747_v34  ;;  %v19801_v3 = vld [vmem:[%s22137_s3 + $0x174c] ss:$72 sps:$4 sm:$0xff]   ;;  %v19796_v34 = vld [vmem:[%s22137_s3 + $0xe48] ss:$72 sps:$4 sm:$0xff]  }
 0x4e9   : > { %6912 = vmatmul.mubr.bf16.vlgmr.msra.gmra.mrb[40].mxu0 %v22318_v52 }
 0x4ea   : > { %6953 = vmatmul.mubr.bf16.vlgmr.msra.gmra.mrb[40].mxu1 %v22244_v43  ;;  %6962 = vmatpush1.bf16.msra.mxu0 %v19742_v4  ;;  %v19799_v4 = vld [vmem:[%s22137_s3 + $0x1748] ss:$72 sps:$4 sm:$0xff]  }
 0x4eb   : > { %7003 = vmatpush1.bf16.msra.mxu1 %v19745_v7  ;;  %6963 = vmatprep.subr.bf16.mxu0 %v19750_v8  ;;  %v19804_v7 = vld [vmem:[%s22137_s3 + $0xedc] ss:$72 sps:$4 sm:$0xff]  }
 0x4ec   : > { %7004 = vmatprep.subr.bf16.mxu1 %v19753_v10  ;;  %6993 = vmatprep.mubr.bf16.mxu0 %v22223_v23  ;;  %v19807_v8 = vld [vmem:[%s22137_s3 + $0x17dc] ss:$72 sps:$4 sm:$0xff]   ;;  %v19802_v10 = vld [vmem:[%s22137_s3 + $0xed8] ss:$72 sps:$4 sm:$0xff]  }
 0x4ed   : > { %7034 = vmatprep.mubr.bf16.mxu1 %v22275_v6 }
 0x4ee   : > { %6964 = vmatpush1.bf16.msra.mxu0 %v19748_v11  ;;  %v19805_v11 = vld [vmem:[%s22137_s3 + $0x17d8] ss:$72 sps:$4 sm:$0xff]  }
 0x4ef   : > { %7005 = vmatpush1.bf16.msra.mxu1 %v19751_v13  ;;  %6965 = vmatprep.subr.bf16.mxu0 %v19756_v49  ;;  %v19810_v13 = vld [vmem:[%s22137_s3 + $0xf6c] ss:$72 sps:$4 sm:$0xff]  }
 0x4f0   : > { %7006 = vmatprep.subr.bf16.mxu1 %v19759_v16  ;;  %v19813_v49 = vld [vmem:[%s22137_s3 + $0x186c] ss:$72 sps:$4 sm:$0xff]   ;;  %v19808_v16 = vld [vmem:[%s22137_s3 + $0xf68] ss:$72 sps:$4 sm:$0xff]  }
 0x4f2   : > { %6966 = vmatpush1.bf16.msra.mxu0 %v19754_v17  ;;  %v19811_v17 = vld [vmem:[%s22137_s3 + $0x1868] ss:$72 sps:$4 sm:$0xff]  }
 0x4f3   : > { %7007 = vmatpush1.bf16.msra.mxu1 %v19757_v55  ;;  %6967 = vmatprep.subr.bf16.mxu0 %v19762_v19  ;;  %v19816_v55 = vld [vmem:[%s22137_s3 + $0xffc] ss:$72 sps:$4 sm:$0xff]  }
 0x4f4   : > { %7008 = vmatprep.subr.bf16.mxu1 %v19765_v21  ;;  %v19819_v19 = vld [vmem:[%s22137_s3 + $0x18fc] ss:$72 sps:$4 sm:$0xff]   ;;  %v19814_v21 = vld [vmem:[%s22137_s3 + $0xff8] ss:$72 sps:$4 sm:$0xff]  }
 0x4f6   : > { %6968 = vmatpush1.bf16.msra.mxu0 %v19760_v22  ;;  %v19817_v22 = vld [vmem:[%s22137_s3 + $0x18f8] ss:$72 sps:$4 sm:$0xff]  }
 0x4f7   : > { %7009 = vmatpush1.bf16.msra.mxu1 %v19763_v24  ;;  %6969 = vmatprep.subr.bf16.mxu0 %v19768_v25  ;;  %v19822_v24 = vld [vmem:[%s22137_s3 + $0x108c] ss:$72 sps:$4 sm:$0xff]  }
 0x4f8   : > { %7010 = vmatprep.subr.bf16.mxu1 %v19771_v26  ;;  %v19825_v25 = vld [vmem:[%s22137_s3 + $0x198c] ss:$72 sps:$4 sm:$0xff]   ;;  %v19820_v26 = vld [vmem:[%s22137_s3 + $0x1088] ss:$72 sps:$4 sm:$0xff]  }
 0x4fa   : > { %6970 = vmatpush1.bf16.msra.mxu0 %v19766_v27  ;;  %v19823_v27 = vld [vmem:[%s22137_s3 + $0x1988] ss:$72 sps:$4 sm:$0xff]  }
 0x4fb   : > { %7011 = vmatpush1.bf16.msra.mxu1 %v19769_v28  ;;  %6971 = vmatprep.subr.bf16.mxu0 %v19774_v29  ;;  %v19828_v28 = vld [vmem:[%s22137_s3 + $0x111c] ss:$72 sps:$4 sm:$0xff]  }
 0x4fc   : > { %7012 = vmatprep.subr.bf16.mxu1 %v19777_v31  ;;  %v6667_v38 = vpop.f32.mrb[28].mxu0  ;;  %v19831_v29 = vld [vmem:[%s22137_s3 + $0x1a1c] ss:$72 sps:$4 sm:$0xff]   ;;  %v19826_v31 = vld [vmem:[%s22137_s3 + $0x1118] ss:$72 sps:$4 sm:$0xff]  }
 0x4fd   : > { %v23026_v39 = vpop.f32.mrb[28].mxu1  ;;  %v23030_v36 = vadd.f32 %v6667_v38, %v22956_v5  ;;  %v6669_v45 = vpop.f32.mrb[29].mxu0  ;;  %v19789_v5 = vld [vmem:[%s22137_s3 + $0x162c] ss:$72 sps:$4 sm:$0xff]   ;;  %v19835_v38 = vld [vmem:[%s22137_s3 + $0x1aa8] ss:$72 sps:$4 sm:$0xff]  }
 0x4fe   : > { %v23032_v46 = vpop.f32.mrb[29].mxu1  ;;  %v23036_v48 = vadd.f32 %v6669_v45, %v22960_v12  ;;  %6972 = vmatpush1.bf16.msra.mxu0 %v19772_v33  ;;  %v6671_v59 = vpop.f32.mrb[30].mxu0  ;;  %v19792_v12 = vld [vmem:[%s22137_s3 + $0xdbc] ss:$72 sps:$4 sm:$0xff]   ;;  %v19829_v33 = vld [vmem:[%s22137_s3 + $0x1a18] ss:$72 sps:$4 sm:$0xff]  }
 0x4ff   : > { %v6712_v50 = vpop.f32.mrb[30].mxu1  ;;  %7013 = vmatpush1.bf16.msra.mxu1 %v19775_v35  ;;  %6973 = vmatprep.subr.bf16.mxu0 %v19780_v37  ;;  %v6672_v0 = vpop.f32.mrb[31].mxu0  ;;  %v19834_v35 = vld [vmem:[%s22137_s3 + $0x11ac] ss:$72 sps:$4 sm:$0xff]   ;;  %v19847_v59 = vld [vmem:[%s22137_s3 + $0x9d0] ss:$72 sps:$4 sm:$0xff]  }
 0x500   : > { %v6713_v54 = vpop.f32.mrb[31].mxu1  ;;  %7014 = vmatprep.subr.bf16.mxu1 %v19783_v58  ;;  %v19837_v37 = vld [vmem:[%s22137_s3 + $0x1aac] ss:$72 sps:$4 sm:$0xff]   ;;  %v19832_v58 = vld [vmem:[%s22137_s3 + $0x11a8] ss:$72 sps:$4 sm:$0xff]  }
 0x501   : > { %v19843_v45 = vld [vmem:[%s22137_s3 + $0x944] ss:$72 sps:$4 sm:$0xff]   ;;  %v19841_v50 = vld [vmem:[%s22137_s3 + $0x940] ss:$72 sps:$4 sm:$0xff]   ;;  %v19846_v54 = vld [vmem:[%s22137_s3 + $0xd4] ss:$72 sps:$4 sm:$0xff]  }
 0x502   : > { %6974 = vmatpush1.bf16.msra.mxu0 %v19778_v40  ;;  %v19840_v40 = vld [vmem:[%s22137_s3 + $0x44] ss:$72 sps:$4 sm:$0xff]   ;;  %v19850_v0 = vld [vmem:[%s22137_s3 + $0x160] ss:$72 sps:$4 sm:$0xff]  }
 0x503   : > { %7015 = vmatpush1.bf16.msra.mxu1 %v19781_v47  ;;  %6975 = vmatprep.subr.bf16.mxu0 %v19786_v57  ;;  %v19838_v47 = vld [vmem:[%s22137_s3 + $0x40] ss:$72 sps:$4 sm:$0xff]   ;;  %v19849_v57 = vld [vmem:[%s22137_s3 + $0x9d4] ss:$72 sps:$4 sm:$0xff]  }
 0x504   : > { %7016 = vmatprep.subr.bf16.mxu1 %v19789_v5  ;;  %v19844_v5 = vld [vmem:[%s22137_s3 + $0xd0] ss:$72 sps:$4 sm:$0xff]  }
 0x506   : > { %6976 = vmatpush1.bf16.msra.mxu0 %v19784_v32  ;;  %v19852_v32 = vld [vmem:[%s22137_s3 + $0x164] ss:$72 sps:$4 sm:$0xff]  }
 0x507   : > { %7017 = vmatpush1.bf16.msra.mxu1 %v19787_v63  ;;  %6977 = vmatprep.subr.bf16.mxu0 %v19792_v12  ;;  %v19855_v63 = vld [vmem:[%s22137_s3 + $0xa64] ss:$72 sps:$4 sm:$0xff]   ;;  %v19853_v12 = vld [vmem:[%s22137_s3 + $0xa60] ss:$72 sps:$4 sm:$0xff]  }
 0x508   : > { %7018 = vmatprep.subr.bf16.mxu1 %v19795_v1  ;;  %v19858_v1 = vld [vmem:[%s22137_s3 + $0x1f4] ss:$72 sps:$4 sm:$0xff]  }
 0x50a   : > { %6978 = vmatpush1.bf16.msra.mxu0 %v19790_v30  ;;  %v19861_v30 = vld [vmem:[%s22137_s3 + $0xaf4] ss:$72 sps:$4 sm:$0xff]  }
 0x50b   : > { %7019 = vmatpush1.bf16.msra.mxu1 %v19793_v56  ;;  %6979 = vmatprep.subr.bf16.mxu0 %v19798_v2  ;;  %v19856_v56 = vld [vmem:[%s22137_s3 + $0x1f0] ss:$72 sps:$4 sm:$0xff]  }
 0x50c   : > { %7020 = vmatprep.subr.bf16.mxu1 %v19801_v3  ;;  %v19859_v2 = vld [vmem:[%s22137_s3 + $0xaf0] ss:$72 sps:$4 sm:$0xff]   ;;  %v19864_v3 = vld [vmem:[%s22137_s3 + $0x284] ss:$72 sps:$4 sm:$0xff]  }
 0x50e   : > { %6980 = vmatpush1.bf16.msra.mxu0 %v19796_v34  ;;  %v19867_v34 = vld [vmem:[%s22137_s3 + $0xb84] ss:$72 sps:$4 sm:$0xff]  }
 0x50f   : > { %7021 = vmatpush1.bf16.msra.mxu1 %v19799_v4  ;;  %6981 = vmatprep.subr.bf16.mxu0 %v19804_v7  ;;  %v19870_v4 = vld [vmem:[%s22137_s3 + $0x314] ss:$72 sps:$4 sm:$0xff]  }
 0x510   : > { %7022 = vmatprep.subr.bf16.mxu1 %v19807_v8  ;;  %v19873_v7 = vld [vmem:[%s22137_s3 + $0xc14] ss:$72 sps:$4 sm:$0xff]   ;;  %v19868_v8 = vld [vmem:[%s22137_s3 + $0x310] ss:$72 sps:$4 sm:$0xff]  }
 0x512   : > { %6982 = vmatpush1.bf16.msra.mxu0 %v19802_v10  ;;  %v19871_v10 = vld [vmem:[%s22137_s3 + $0xc10] ss:$72 sps:$4 sm:$0xff]  }
 0x513   : > { %7023 = vmatpush1.bf16.msra.mxu1 %v19805_v11  ;;  %6983 = vmatprep.subr.bf16.mxu0 %v19810_v13  ;;  %v19876_v11 = vld [vmem:[%s22137_s3 + $0x3a4] ss:$72 sps:$4 sm:$0xff]  }
 0x514   : > { %7024 = vmatprep.subr.bf16.mxu1 %v19813_v49  ;;  %v19879_v13 = vld [vmem:[%s22137_s3 + $0xca4] ss:$72 sps:$4 sm:$0xff]  }
 0x516   : > { %6984 = vmatpush1.bf16.msra.mxu0 %v19808_v16 }
 0x517   : > { %7025 = vmatpush1.bf16.msra.mxu1 %v19811_v17  ;;  %6985 = vmatprep.subr.bf16.mxu0 %v19816_v55  ;;  %v19874_v17 = vld [vmem:[%s22137_s3 + $0x3a0] ss:$72 sps:$4 sm:$0xff]  }
 0x518   : > { %7026 = vmatprep.subr.bf16.mxu1 %v19819_v19  ;;  %v19877_v55 = vld [vmem:[%s22137_s3 + $0xca0] ss:$72 sps:$4 sm:$0xff]  }
 0x51a   : > { %6986 = vmatpush1.bf16.msra.mxu0 %v19814_v21 }
 0x51b   : > { %7027 = vmatpush1.bf16.msra.mxu1 %v19817_v22  ;;  %6987 = vmatprep.subr.bf16.mxu0 %v19822_v24  ;;  %v19882_v24 = vld [vmem:[%s22137_s3 + $0x434] ss:$72 sps:$4 sm:$0xff]  }
 0x51c   : > { %7028 = vmatprep.subr.bf16.mxu1 %v19825_v25  ;;  %v19885_v25 = vld [vmem:[%s22137_s3 + $0xd34] ss:$72 sps:$4 sm:$0xff]  }
 0x51e   : > { %6988 = vmatpush1.bf16.msra.mxu0 %v19820_v26 }
 0x51f   : > { %7029 = vmatpush1.bf16.msra.mxu1 %v19823_v27  ;;  %6989 = vmatprep.subr.bf16.mxu0 %v19828_v28 }
 0x520   : > { %7030 = vmatprep.subr.bf16.mxu1 %v19831_v29 }
 0x522   : > { %6990 = vmatpush1.bf16.msra.mxu0 %v19826_v31 }
 0x523   : > { %7031 = vmatpush1.bf16.msra.mxu1 %v19829_v33  ;;  %6991 = vmatprep.subr.bf16.mxu0 %v19834_v35  ;;  %v19880_v35 = vld [vmem:[%s22137_s3 + $0x430] ss:$72 sps:$4 sm:$0xff]  }
 0x524   : > { %7032 = vmatprep.subr.bf16.mxu1 %v19837_v37  ;;  %v19883_v37 = vld [vmem:[%s22137_s3 + $0xd30] ss:$72 sps:$4 sm:$0xff]  }
 0x526   : > { %6992 = vmatpush1.bf16.msra.mxu0 %v19832_v58  ;;  %v19891_v58 = vld [vmem:[%s22137_s3 + $0xdc4] ss:$72 sps:$4 sm:$0xff]  }
 0x527   : > { %7033 = vmatpush1.bf16.msra.mxu1 %v19835_v38  ;;  %7043 = vmatprep.subr.bf16.mxu0 %v19840_v40  ;;  %v19886_v38 = vld [vmem:[%s22137_s3 + $0x4c0] ss:$72 sps:$4 sm:$0xff]  }
 0x528   : > { %7084 = vmatprep.subr.bf16.mxu1 %v19843_v45  ;;  %v19889_v40 = vld [vmem:[%s22137_s3 + $0xdc0] ss:$72 sps:$4 sm:$0xff]   ;;  %v19894_v45 = vld [vmem:[%s22137_s3 + $0x554] ss:$72 sps:$4 sm:$0xff]  }
 0x529   : > { %6994 = vmatmul.mubr.bf16.vlgmr.msra.gmra.mrb[44].mxu0 %v22246_v44 }
 0x52a   : > { %7035 = vmatmul.mubr.bf16.vlgmr.msra.gmra.mrb[44].mxu1 %v22318_v52  ;;  %7044 = vmatpush1.bf16.msra.mxu0 %v19838_v47  ;;  %v19897_v47 = vld [vmem:[%s22137_s3 + $0xe54] ss:$72 sps:$4 sm:$0xff]  }
 0x52b   : > { %7085 = vmatpush1.bf16.msra.mxu1 %v19841_v50  ;;  %7045 = vmatprep.subr.bf16.mxu0 %v19846_v54  ;;  %v19892_v50 = vld [vmem:[%s22137_s3 + $0x550] ss:$72 sps:$4 sm:$0xff]  }
 0x52c   : > { %7086 = vmatprep.subr.bf16.mxu1 %v19849_v57  ;;  %7075 = vmatprep.mubr.bf16.mxu0 %v22220_v20  ;;  %v19862_v20 = vld [vmem:[%s22137_s3 + $0x280] ss:$72 sps:$4 sm:$0xff]   ;;  %v19895_v54 = vld [vmem:[%s22137_s3 + $0xe50] ss:$72 sps:$4 sm:$0xff]   ;;  %v19900_v57 = vld [vmem:[%s22137_s3 + $0x5e4] ss:$72 sps:$4 sm:$0xff]  }
 0x52d   : > { %7116 = vmatprep.mubr.bf16.mxu1 %v22223_v23  ;;  %v19865_v23 = vld [vmem:[%s22137_s3 + $0xb80] ss:$72 sps:$4 sm:$0xff]  }
 0x52e   : > { %7046 = vmatpush1.bf16.msra.mxu0 %v19844_v5  ;;  %v19903_v5 = vld [vmem:[%s22137_s3 + $0xee4] ss:$72 sps:$4 sm:$0xff]  }
 0x52f   : > { %7087 = vmatpush1.bf16.msra.mxu1 %v19847_v59  ;;  %7047 = vmatprep.subr.bf16.mxu0 %v19852_v32  ;;  %v19898_v59 = vld [vmem:[%s22137_s3 + $0x5e0] ss:$72 sps:$4 sm:$0xff]  }
 0x530   : > { %7088 = vmatprep.subr.bf16.mxu1 %v19855_v63  ;;  %v19901_v32 = vld [vmem:[%s22137_s3 + $0xee0] ss:$72 sps:$4 sm:$0xff]   ;;  %v19906_v63 = vld [vmem:[%s22137_s3 + $0x674] ss:$72 sps:$4 sm:$0xff]  }
 0x532   : > { %7048 = vmatpush1.bf16.msra.mxu0 %v19850_v0  ;;  %v19909_v0 = vld [vmem:[%s22137_s3 + $0xf74] ss:$72 sps:$4 sm:$0xff]  }
 0x533   : > { %7089 = vmatpush1.bf16.msra.mxu1 %v19853_v12  ;;  %7049 = vmatprep.subr.bf16.mxu0 %v19858_v1  ;;  %v19904_v12 = vld [vmem:[%s22137_s3 + $0x670] ss:$72 sps:$4 sm:$0xff]  }
 0x534   : > { %7090 = vmatprep.subr.bf16.mxu1 %v19861_v30  ;;  %v19907_v1 = vld [vmem:[%s22137_s3 + $0xf70] ss:$72 sps:$4 sm:$0xff]   ;;  %v19912_v30 = vld [vmem:[%s22137_s3 + $0x704] ss:$72 sps:$4 sm:$0xff]  }
 0x536   : > { %7050 = vmatpush1.bf16.msra.mxu0 %v19856_v56  ;;  %v19915_v56 = vld [vmem:[%s22137_s3 + $0x1004] ss:$72 sps:$4 sm:$0xff]  }
 0x537   : > { %7091 = vmatpush1.bf16.msra.mxu1 %v19859_v2  ;;  %7051 = vmatprep.subr.bf16.mxu0 %v19864_v3  ;;  %v19910_v2 = vld [vmem:[%s22137_s3 + $0x700] ss:$72 sps:$4 sm:$0xff]  }
 0x538   : > { %7092 = vmatprep.subr.bf16.mxu1 %v19867_v34  ;;  %v19913_v3 = vld [vmem:[%s22137_s3 + $0x1000] ss:$72 sps:$4 sm:$0xff]   ;;  %v19918_v34 = vld [vmem:[%s22137_s3 + $0x794] ss:$72 sps:$4 sm:$0xff]  }
 0x53a   : > { %7052 = vmatpush1.bf16.msra.mxu0 %v19862_v20  ;;  %v19921_v20 = vld [vmem:[%s22137_s3 + $0x1094] ss:$72 sps:$4 sm:$0xff]  }
 0x53b   : > { %7093 = vmatpush1.bf16.msra.mxu1 %v19865_v23  ;;  %7053 = vmatprep.subr.bf16.mxu0 %v19870_v4  ;;  %v19916_v23 = vld [vmem:[%s22137_s3 + $0x790] ss:$72 sps:$4 sm:$0xff]  }
 0x53c   : > { %7094 = vmatprep.subr.bf16.mxu1 %v19873_v7  ;;  %v6749_v49 = vpop.f32.mrb[32].mxu0  ;;  %v19919_v4 = vld [vmem:[%s22137_s3 + $0x1090] ss:$72 sps:$4 sm:$0xff]   ;;  %v19924_v7 = vld [vmem:[%s22137_s3 + $0x824] ss:$72 sps:$4 sm:$0xff]  }
 0x53d   : > { %v6790_v16 = vpop.f32.mrb[32].mxu1  ;;  %v6750_v19 = vadd.f32 %v6749_v49, %v23026_v39  ;;  %v6751_v21 = vpop.f32.mrb[33].mxu0  ;;  %v19933_v49 = vld [vmem:[%s22137_s3 + $0x11b4] ss:$72 sps:$4 sm:$0xff]  }
 0x53e   : > { %v6792_v22 = vpop.f32.mrb[33].mxu1  ;;  %v6752_v26 = vadd.f32 %v6751_v21, %v23032_v46  ;;  %7054 = vmatpush1.bf16.msra.mxu0 %v19868_v8  ;;  %v6753_v28 = vpop.f32.mrb[34].mxu0  ;;  %v19888_v46 = vld [vmem:[%s22137_s3 + $0x4c4] ss:$72 sps:$4 sm:$0xff]   ;;  %v19939_v21 = vld [vmem:[%s22137_s3 + $0x12d4] ss:$72 sps:$4 sm:$0xff]  }
 0x53f   : > { %v6794_v27 = vpop.f32.mrb[34].mxu1  ;;  %7095 = vmatpush1.bf16.msra.mxu1 %v19871_v10  ;;  %v23110_v29 = vadd.f32 %v6790_v16, %v6750_v19  ;;  %7055 = vmatprep.subr.bf16.mxu0 %v19876_v11  ;;  %v6754_v31 = vpop.f32.mrb[35].mxu0  ;;  %v19927_v8 = vld [vmem:[%s22137_s3 + $0x1124] ss:$72 sps:$4 sm:$0xff]   ;;  %v19922_v10 = vld [vmem:[%s22137_s3 + $0x820] ss:$72 sps:$4 sm:$0xff]  }
 0x540   : > { %v6795_v39 = vpop.f32.mrb[35].mxu1  ;;  %7096 = vmatprep.subr.bf16.mxu1 %v19879_v13  ;;  %v23112_v33 = vadd.f32 %v6792_v22, %v6752_v26  ;;  %v19925_v11 = vld [vmem:[%s22137_s3 + $0x1120] ss:$72 sps:$4 sm:$0xff]   ;;  %v19930_v13 = vld [vmem:[%s22137_s3 + $0x8b4] ss:$72 sps:$4 sm:$0xff]   ;;  %v21705_v22 = vmov 0.0  }
 0x541   : > { %v19928_v16 = vld [vmem:[%s22137_s3 + $0x8b0] ss:$72 sps:$4 sm:$0xff]   ;;  %v19934_v19 = vld [vmem:[%s22137_s3 + $0x1240] ss:$72 sps:$4 sm:$0xff]   ;;  %v19948_v39 = vld [vmem:[%s22137_s3 + $0x1484] ss:$72 sps:$4 sm:$0xff]  }
 0x542   : > { %7056 = vmatpush1.bf16.msra.mxu0 %v19874_v17  ;;  %v19931_v17 = vld [vmem:[%s22137_s3 + $0x11b0] ss:$72 sps:$4 sm:$0xff]   ;;  %v23160_v26 = vld [vmem:[%s22153_s22] sm:$0xff] }
 0x543   : > { %7097 = vmatpush1.bf16.msra.mxu1 %v19877_v55  ;;  %7057 = vmatprep.subr.bf16.mxu0 %v19882_v24  ;;  %v19936_v55 = vld [vmem:[%s22137_s3 + $0x1244] ss:$72 sps:$4 sm:$0xff]   ;;  %v19937_v24 = vld [vmem:[%s22137_s3 + $0x12d0] ss:$72 sps:$4 sm:$0xff]   ;;  %v7169_v27 = vrot.slane %v23160_v26, %v22873_v41  ;;  %v19946_v31 = vld [vmem:[%s22137_s3 + $0x1480] ss:$72 sps:$4 sm:$0xff]  }
 0x544   : > { %7098 = vmatprep.subr.bf16.mxu1 %v19885_v25  ;;  %v19942_v25 = vld [vmem:[%s22137_s3 + $0x1364] ss:$72 sps:$4 sm:$0xff]  }
 0x545   : > { %v23169_v28 = vadd.f32 %v7169_v27, %v22561_v53  ;;  %v19949_v53 = vld [vmem:[%s22137_s3 + $0x1510] ss:$72 sps:$4 sm:$0xff]  }
 0x546   : > { %7058 = vmatpush1.bf16.msra.mxu0 %v19880_v35  ;;  %v19954_v35 = vld [vmem:[%s22137_s3 + $0x15a4] ss:$72 sps:$4 sm:$0xff]  }
 0x547   : > { %7099 = vmatpush1.bf16.msra.mxu1 %v19883_v37  ;;  %7059 = vmatprep.subr.bf16.mxu0 %v19888_v46 }
 0x548   : > { %7100 = vmatprep.subr.bf16.mxu1 %v19891_v58  ;;  %v19952_v58 = vld [vmem:[%s22137_s3 + $0x15a0] ss:$72 sps:$4 sm:$0xff]  }
 0x54a   : > { %7060 = vmatpush1.bf16.msra.mxu0 %v19886_v38 }
 0x54b   : > { %7101 = vmatpush1.bf16.msra.mxu1 %v19889_v40  ;;  %7061 = vmatprep.subr.bf16.mxu0 %v19894_v45 }
 0x54c   : > { %7102 = vmatprep.subr.bf16.mxu1 %v19897_v47  ;;  %v19957_v47 = vld [vmem:[%s22137_s3 + $0x1634] ss:$72 sps:$4 sm:$0xff]  }
 0x54e   : > { %7062 = vmatpush1.bf16.msra.mxu0 %v19892_v50 }
 0x54f   : > { %7103 = vmatpush1.bf16.msra.mxu1 %v19895_v54  ;;  %7063 = vmatprep.subr.bf16.mxu0 %v19900_v57 }
 0x550   : > { %7104 = vmatprep.subr.bf16.mxu1 %v19903_v5 }
 0x552   : > { %7064 = vmatpush1.bf16.msra.mxu0 %v19898_v59 }
 0x553   : > { %7105 = vmatpush1.bf16.msra.mxu1 %v19901_v32  ;;  %7065 = vmatprep.subr.bf16.mxu0 %v19906_v63  ;;  %v19955_v32 = vld [vmem:[%s22137_s3 + $0x1630] ss:$72 sps:$4 sm:$0xff]   ;;  %v19960_v63 = vld [vmem:[%s22137_s3 + $0x16c4] ss:$72 sps:$4 sm:$0xff]  }
 0x554   : > { %7106 = vmatprep.subr.bf16.mxu1 %v19909_v0  ;;  %v19958_v0 = vld [vmem:[%s22137_s3 + $0x16c0] ss:$72 sps:$4 sm:$0xff]  }
 0x556   : > { %7066 = vmatpush1.bf16.msra.mxu0 %v19904_v12  ;;  %v19963_v12 = vld [vmem:[%s22137_s3 + $0x1754] ss:$72 sps:$4 sm:$0xff]  }
 0x557   : > { %7107 = vmatpush1.bf16.msra.mxu1 %v19907_v1  ;;  %7067 = vmatprep.subr.bf16.mxu0 %v19912_v30  ;;  %v19961_v1 = vld [vmem:[%s22137_s3 + $0x1750] ss:$72 sps:$4 sm:$0xff]   ;;  %v19966_v30 = vld [vmem:[%s22137_s3 + $0x17e4] ss:$72 sps:$4 sm:$0xff]  }
 0x558   : > { %7108 = vmatprep.subr.bf16.mxu1 %v19915_v56  ;;  %v19964_v56 = vld [vmem:[%s22137_s3 + $0x17e0] ss:$72 sps:$4 sm:$0xff]  }
 0x55a   : > { %7068 = vmatpush1.bf16.msra.mxu0 %v19910_v2  ;;  %v19969_v2 = vld [vmem:[%s22137_s3 + $0x1874] ss:$72 sps:$4 sm:$0xff]  }
 0x55b   : > { %7109 = vmatpush1.bf16.msra.mxu1 %v19913_v3  ;;  %7069 = vmatprep.subr.bf16.mxu0 %v19918_v34  ;;  %v19967_v3 = vld [vmem:[%s22137_s3 + $0x1870] ss:$72 sps:$4 sm:$0xff]   ;;  %v19972_v34 = vld [vmem:[%s22137_s3 + $0x1904] ss:$72 sps:$4 sm:$0xff]  }
 0x55c   : > { %7110 = vmatprep.subr.bf16.mxu1 %v19921_v20  ;;  %v19970_v20 = vld [vmem:[%s22137_s3 + $0x1900] ss:$72 sps:$4 sm:$0xff]  }
 0x55e   : > { %7070 = vmatpush1.bf16.msra.mxu0 %v19916_v23  ;;  %v19975_v23 = vld [vmem:[%s22137_s3 + $0x1994] ss:$72 sps:$4 sm:$0xff]  }
 0x55f   : > { %7111 = vmatpush1.bf16.msra.mxu1 %v19919_v4  ;;  %7071 = vmatprep.subr.bf16.mxu0 %v19924_v7  ;;  %v19973_v4 = vld [vmem:[%s22137_s3 + $0x1990] ss:$72 sps:$4 sm:$0xff]   ;;  %v19978_v7 = vld [vmem:[%s22137_s3 + $0x1a24] ss:$72 sps:$4 sm:$0xff]  }
 0x560   : > { %7112 = vmatprep.subr.bf16.mxu1 %v19927_v8  ;;  %v19976_v8 = vld [vmem:[%s22137_s3 + $0x1a20] ss:$72 sps:$4 sm:$0xff]  }
 0x562   : > { %7072 = vmatpush1.bf16.msra.mxu0 %v19922_v10  ;;  %v19981_v10 = vld [vmem:[%s22137_s3 + $0x1ab4] ss:$72 sps:$4 sm:$0xff]  }
 0x563   : > { %7113 = vmatpush1.bf16.msra.mxu1 %v19925_v11  ;;  %7073 = vmatprep.subr.bf16.mxu0 %v19930_v13  ;;  %v19979_v11 = vld [vmem:[%s22137_s3 + $0x1ab0] ss:$72 sps:$4 sm:$0xff]   ;;  %v23203_v13 = vsub.s32 2, %v22852_v9 }
 0x564   : > { %7114 = vmatprep.subr.bf16.mxu1 %v19933_v49 }
 0x565   : > { %v7229_v49 = vrot.slane %v23160_v26, %v23203_v13 }
 0x566   : > { %7074 = vmatpush1.bf16.msra.mxu0 %v19928_v16 }
 0x567   : > { %7115 = vmatpush1.bf16.msra.mxu1 %v19931_v17  ;;  %7125 = vmatprep.subr.bf16.mxu0 %v19936_v55 }
 0x568   : > { %18342 = vmatprep.subr.mxu1 %v21705_v22 }
 0x569   : > { %7076 = vmatmul.mubr.bf16.vlgmr.msra.gmra.mrb[48].mxu0 %v22244_v43  ;;  %v19940_v43 = vld [vmem:[%s22137_s3 + $0x1360] ss:$72 sps:$4 sm:$0xff]  }
 0x56a   : > { %7117 = vmatmul.mubr.bf16.vlgmr.msra.gmra.mrb[48].mxu1 %v22246_v44  ;;  %7126 = vmatpush1.bf16.msra.mxu0 %v19934_v19  ;;  %v19945_v44 = vld [vmem:[%s22137_s3 + $0x13f4] ss:$72 sps:$4 sm:$0xff]  }
 0x56b   : > { %18344 = vmatprep.mubr.msk.f32.mxu1 %vm21706_vm1, %v21705_v22  ;;  %7127 = vmatprep.subr.bf16.mxu0 %v19939_v21 }
 0x56c   : > { %7157 = vmatprep.mubr.bf16.mxu0 %v22275_v6  ;;  %v19943_v6 = vld [vmem:[%s22137_s3 + $0x13f0] ss:$72 sps:$4 sm:$0xff]  }
 0x56e   : > { %7128 = vmatpush1.bf16.msra.mxu0 %v19937_v24 }
 0x56f   : > { %7129 = vmatprep.subr.bf16.mxu0 %v19942_v25 }
 0x570   : > { %18343 = vmatpush3.xpose.msk.msra.mxu1 %vm7256_vm2, %v22876_v42  ;;  %v19951_v42 = vld [vmem:[%s22137_s3 + $0x1514] ss:$72 sps:$4 sm:$0xff]  }
 0x571   : > { %18347 = vmatprep.subr.mxu1 %v21705_v22 }
 0x572   : > { %7130 = vmatpush1.bf16.msra.mxu0 %v19940_v43 }
 0x573   : > { %18345 = vmatmul.mubr.msk.f32.vlgmr.msra.gmra.mrb[52].mxu1 %vm7256_vm2, %v23169_v28  ;;  %7131 = vmatprep.subr.bf16.mxu0 %v19945_v44 }
 0x574   : > { %18349 = vmatprep.mubr.msk.f32.mxu1 %vm21706_vm1, %v21705_v22 }
 0x576   : > { %7132 = vmatpush1.bf16.msra.mxu0 %v19943_v6 }
 0x577   : > { %7133 = vmatprep.subr.bf16.mxu0 %v19948_v39 }
 0x57a   : > { %7134 = vmatpush1.bf16.msra.mxu0 %v19946_v31 }
 0x57b   : > { %7135 = vmatprep.subr.bf16.mxu0 %v19951_v42 }
 0x57c   : > { %v6831_v37 = vpop.f32.mrb[36].mxu0 }
 0x57d   : > { %v6872_v46 = vpop.f32.mrb[36].mxu1  ;;  %v6833_v40 = vpop.f32.mrb[37].mxu0 }
 0x57e   : > { %v6873_v38 = vadd.f32 %v6872_v46, %v6831_v37  ;;  %v6874_v45 = vpop.f32.mrb[37].mxu1  ;;  %7136 = vmatpush1.bf16.msra.mxu0 %v19949_v53  ;;  %v6835_v57 = vpop.f32.mrb[38].mxu0 }
 0x57f   : > { %v6875_v50 = vadd.f32 %v6874_v45, %v6833_v40  ;;  %v6876_v54 = vpop.f32.mrb[38].mxu1  ;;  %7137 = vmatprep.subr.bf16.mxu0 %v19954_v35  ;;  %v6836_v59 = vpop.f32.mrb[39].mxu0 }
 0x580   : > { %v6877_v5 = vpop.f32.mrb[39].mxu1 }
 0x582   : > { %7138 = vmatpush1.bf16.msra.mxu0 %v19952_v58 }
 0x583   : > { %7139 = vmatprep.subr.bf16.mxu0 %v19957_v47 }
 0x586   : > { %7140 = vmatpush1.bf16.msra.mxu0 %v19955_v32 }
 0x587   : > { %7141 = vmatprep.subr.bf16.mxu0 %v19960_v63 }
 0x58a   : > { %7142 = vmatpush1.bf16.msra.mxu0 %v19958_v0 }
 0x58b   : > { %7143 = vmatprep.subr.bf16.mxu0 %v19963_v12 }
 0x58e   : > { %7144 = vmatpush1.bf16.msra.mxu0 %v19961_v1 }
 0x58f   : > { %7145 = vmatprep.subr.bf16.mxu0 %v19966_v30 }
 0x592   : > { %7146 = vmatpush1.bf16.msra.mxu0 %v19964_v56 }
 0x593   : > { %7147 = vmatprep.subr.bf16.mxu0 %v19969_v2 }
 0x596   : > { %7148 = vmatpush1.bf16.msra.mxu0 %v19967_v3 }
 0x597   : > { %7149 = vmatprep.subr.bf16.mxu0 %v19972_v34 }
 0x59a   : > { %7150 = vmatpush1.bf16.msra.mxu0 %v19970_v20 }
 0x59b   : > { %7151 = vmatprep.subr.bf16.mxu0 %v19975_v23 }
 0x59e   : > { %7152 = vmatpush1.bf16.msra.mxu0 %v19973_v4 }
 0x59f   : > { %7153 = vmatprep.subr.bf16.mxu0 %v19978_v7 }
 0x5a2   : > { %7154 = vmatpush1.bf16.msra.mxu0 %v19976_v8 }
 0x5a3   : > { %7155 = vmatprep.subr.bf16.mxu0 %v19981_v10 }
 0x5a6   : > { %7156 = vmatpush1.bf16.msra.mxu0 %v19979_v11 }
 0x5a9   : > { %7158 = vmatmul.mubr.bf16.vlgmr.msra.gmra.mrb[52].mxu0 %v22318_v52 }
 0x5bc   : > { %v6913_v16 = vpop.f32.mrb[40].mxu0 }
 0x5bd   : > { %v6954_v17 = vpop.f32.mrb[40].mxu1  ;;  %v6914_v55 = vadd.f32 %v6913_v16, %v6873_v38  ;;  %v6915_v19 = vpop.f32.mrb[41].mxu0 }
 0x5be   : > { %v6956_v21 = vpop.f32.mrb[41].mxu1  ;;  %v23207_v24 = vadd.f32 %v6915_v19, %v6875_v50  ;;  %v6917_v27 = vpop.f32.mrb[42].mxu0 }
 0x5bf   : > { %v6958_v25 = vpop.f32.mrb[42].mxu1  ;;  %v23209_v43 = vadd.f32 %v7229_v49, %v6914_v55  ;;  %v6918_v6 = vpop.f32.mrb[43].mxu0 }
 0x5c0   : > { %v6959_v44 = vpop.f32.mrb[43].mxu1 }
 0x5c1   : > { %18348 = vmatpush3.msra.mxu1 %v23209_v43 }
 0x5c2   : > { %18352 = vmatprep.subr.mxu1 %v21705_v22 }
 0x5fc   : > { %v6995_v52 = vpop.f32.mrb[44].mxu0 }
 0x5fd   : > { %v7036_v39 = vpop.f32.mrb[44].mxu1  ;;  %v6996_v26 = vadd.f32 %v6995_v52, %v6954_v17  ;;  %v6997_v31 = vpop.f32.mrb[45].mxu0 }
 0x5fe   : > { %v7038_v42 = vpop.f32.mrb[45].mxu1  ;;  %v6998_v53 = vadd.f32 %v6997_v31, %v6956_v21  ;;  %v6999_v37 = vpop.f32.mrb[46].mxu0 }
 0x5ff   : > { %v7040_v35 = vpop.f32.mrb[46].mxu1  ;;  %v23213_v46 = vadd.f32 %v7036_v39, %v6996_v26  ;;  %v7000_v38 = vpop.f32.mrb[47].mxu0 }
 0x600   : > { %v7041_v58 = vpop.f32.mrb[47].mxu1  ;;  %v23215_v40 = vadd.f32 %v7038_v42, %v6998_v53  ;;  %v7465_v17 = vpop.permute.xlu1 %7464  ;;  %v23241_v53 = vld [vmem:[%s22153_s22 + $0x10] sm:$0xff] }
 0x601   : > { %v7207_v35 = vrot.slane %v23241_v53, %v22859_v15 }
 0x603   : > { %v23248_v37 = vadd.f32 %v7207_v35, %v23030_v36  ;;  %v20021_v35 = vld [vmem:[%s22143_s14 + $0x8] ss:$24 sps:$4 sm:$0xff]  }
 0x604   : > { %v7467_v55 = vpop.permute.xlu1 %7466 }
 0x605   : > { %v7468_v25 = vsel %vm7461_vm4, %v7465_v17, %v7467_v55  ;;  %v19996_v17 = vld [vmem:[%s22143_s14 + $0x184] ss:$24 sps:$4 sm:$0xff]   ;;  %v19994_v55 = vld [vmem:[%s22143_s14 + $0x180] ss:$24 sps:$4 sm:$0xff]  }
 0x608   : > { %v7460_v44 = vpop.permute.xlu1 %7459 }
 0x63c   : > { %v7077_v45 = vpop.f32.mrb[48].mxu0 }
 0x63d   : > { %v7118_v47 = vpop.f32.mrb[48].mxu1  ;;  %v7079_v54 = vpop.f32.mrb[49].mxu0 }
 0x63e   : > { %v7119_v50 = vadd.f32 %v7118_v47, %v7077_v45  ;;  %v7120_v57 = vpop.f32.mrb[49].mxu1  ;;  %v7081_v32 = vpop.f32.mrb[50].mxu0 }
 0x63f   : > { %v7121_v5 = vadd.f32 %v7120_v57, %v7079_v54  ;;  %v7122_v59 = vpop.f32.mrb[50].mxu1  ;;  %v7082_v0 = vpop.f32.mrb[51].mxu0  ;;  %v19985_v54 = vld [vmem:[%s22143_s14 + $0x130] ss:$24 sps:$4 sm:$0xff]   ;;  %v19987_v57 = vld [vmem:[%s22143_s14 + $0x134] ss:$24 sps:$4 sm:$0xff]  }
 0x640   : > { %v7123_v63 = vpop.f32.mrb[51].mxu1  ;;  %7938 = vmatprep.subr.bf16.mxu0 %v19987_v57  ;;  %v19991_v59 = vld [vmem:[%s22143_s14 + $0x160] ss:$24 sps:$4 sm:$0xff]   ;;  %v19999_v32 = vld [vmem:[%s22143_s14 + $0x194] ss:$24 sps:$4 sm:$0xff]  }
 0x641   : > { %7939 = vmatpush1.bf16.msra.mxu0 %v19985_v54  ;;  %v19997_v63 = vld [vmem:[%s22143_s14 + $0x190] ss:$24 sps:$4 sm:$0xff]   ;;  %v20003_v0 = vld [vmem:[%s22143_s14 + $0x1c0] ss:$24 sps:$4 sm:$0xff]  }
 0x642   : > { %v20030_v54 = vld [vmem:[%s22143_s14 + $0x188] ss:$24 sps:$4 sm:$0xff]  }
 0x643   : > { %v20033_v57 = vld [vmem:[%s22143_s14 + $0x68] ss:$24 sps:$4 sm:$0xff]  }
 0x646   : > { %v7329_v12 = vpop.f32.mrb[52].mxu1 }
 0x647   : > { %v7333_v1 = vmul.f32 0.10206208, %v7329_v12  ;;  %v18346_v30 = vpop.f32.mrb[53].mxu1  ;;  %v20011_v12 = vld [vmem:[%s22143_s14 + $0x1f4] ss:$24 sps:$4 sm:$0xff]  }
 0x648   : > { %v20017_v30 = vld [vmem:[%s22143_s14 + $0x224] ss:$24 sps:$4 sm:$0xff]  }
 0x649   : > { %v7335_v56 = vsel %vm7334_vm3, %v7333_v1, -inf }
 0x64a   : > { %7336 = vmax.xlane.f32.xlu0 %v7335_v56  ;;  %v20015_v56 = vld [vmem:[%s22143_s14 + $0x220] ss:$24 sps:$4 sm:$0xff]  }
 0x67c   : > { %v7159_v2 = vpop.f32.mrb[52].mxu0 }
 0x67d   : > { %v23218_v3 = vadd.f32 %v7159_v2, %v7119_v50  ;;  %v7161_v34 = vpop.f32.mrb[53].mxu0 }
 0x67e   : > { %v23220_v20 = vadd.f32 %v7161_v34, %v7121_v5  ;;  %v7163_v23 = vpop.f32.mrb[54].mxu0  ;;  %v19993_v5 = vld [vmem:[%s22143_s14 + $0x164] ss:$24 sps:$4 sm:$0xff]  }
 0x67f   : > { %v7164_v4 = vpop.f32.mrb[55].mxu0  ;;  %7940 = vmatprep.subr.bf16.mxu0 %v19993_v5  ;;  %v19984_v34 = vld [vmem:[%s22143_s14 + $0x124] ss:$24 sps:$4 sm:$0xff]  }
 0x680   : > { %7941 = vmatpush1.bf16.msra.mxu0 %v19991_v59  ;;  %v20038_v5 = vld [vmem:[%s22143_s14 + $0x1bc] ss:$24 sps:$4 sm:$0xff]  }
 0x681   : > { %7942 = vmatprep.subr.bf16.mxu0 %v19999_v32  ;;  %v20041_v59 = vld [vmem:[%s22143_s14 + $0x9c] ss:$24 sps:$4 sm:$0xff]   ;;  %v20036_v32 = vld [vmem:[%s22143_s14 + $0x1b8] ss:$24 sps:$4 sm:$0xff]  }
 0x684   : > { %7943 = vmatpush1.bf16.msra.mxu0 %v19997_v63  ;;  %v20039_v63 = vld [vmem:[%s22143_s14 + $0x98] ss:$24 sps:$4 sm:$0xff]  }
 0x6d7   : > { %v7337_v7 = vpop.xlane.xlu0 %7336 }
 0x6d8   : > { %v7338_v8 = vsub.f32 %v7333_v1, %v7337_v7  ;;  %v20009_v1 = vld [vmem:[%s22143_s14 + $0x1f0] ss:$24 sps:$4 sm:$0xff]  }
 0x6da   : > { %v7339_v10 = vmul.f32 1.442695, %v7338_v8 }
 0x6dc   : > { %21278 = vpow2.f32 %v7339_v10  ;;  %v19982_v10 = vld [vmem:[%s22143_s14 + $0x120] ss:$24 sps:$4 sm:$0xff]  }
 0x6e6   : > { %v21279_v11 = vpop.eup %21278 }
 0x6e7   : > { %v7341_v49 = vsel %vm7334_vm3, %v21279_v11, 0.0 }
 0x6e8   : > { %7342 = vadd.xlane.f32.xlu0 %v7341_v49  ;;  %v19990_v49 = vld [vmem:[%s22143_s14 + $0x154] ss:$24 sps:$4 sm:$0xff]  }
 0x6fe   : > { %7457 = vrot.lane.b32.xlu0 %v23169_v28, %s21704_s26 }
 0x775   : > { %v7343_v16 = vpop.xlane.xlu0 %7342 }
 0x776   : > { %21280 = vrcp.f32 %v7343_v16  ;;  %v19988_v16 = vld [vmem:[%s22143_s14 + $0x150] ss:$24 sps:$4 sm:$0xff]  }
 0x779   : > { %v7458_v27 = vpop.permute.xlu0 %7457 }
 0x77a   : > { %v7462_v28 = vsel %vm7461_vm4, %v7458_v27, %v7460_v44  ;;  %v20006_v27 = vld [vmem:[%s22143_s14 + $0x1e0] ss:$24 sps:$4 sm:$0xff]   ;;  %v20014_v44 = vld [vmem:[%s22143_s14 + $0x214] ss:$24 sps:$4 sm:$0xff]  }
 0x780   : > { %v21281_v19 = vpop.eup %21280 }
 0x781   : > { %v7345_v21 = vmul.f32 %v21281_v19, %v21279_v11  ;;  %v20002_v19 = vld [vmem:[%s22143_s14 + $0x1b4] ss:$24 sps:$4 sm:$0xff]  }
 0x783   : > { %18350 = vmatmul.mubr.msk.f32.vlgmr.msra.gmra.mrb[54].mxu1 %vm7334_vm3, %v7345_v21  ;;  %v20000_v21 = vld [vmem:[%s22143_s14 + $0x1b0] ss:$24 sps:$4 sm:$0xff]  }
 0x784   : > { %18353 = vmatpush3.xpose.msk.msra.mxu1 %vm7256_vm2, %v7468_v25  ;;  %18354 = vmatprep.mubr.msk.f32.mxu1 %vm21706_vm1, %v21705_v22  ;;  %v20008_v25 = vld [vmem:[%s22143_s14 + $0x1e4] ss:$24 sps:$4 sm:$0xff]  }
 0x785   : > { %18357 = vmatprep.subr.mxu1 %v21705_v22 }
 0x787   : > { %18355 = vmatmul.mubr.msk.f32.vlgmr.msra.gmra.mrb[56].mxu1 %vm7256_vm2, %v7462_v28  ;;  %v20012_v28 = vld [vmem:[%s22143_s14 + $0x210] ss:$24 sps:$4 sm:$0xff]  }
 0x788   : > { %18359 = vmatprep.mubr.msk.f32.mxu1 %vm21706_vm1, %v21705_v22 }
 0x856   : > { %v23235_v6 = vpop.f32.mrb[54].mxu1 }
 0x857   : > { %v18351_v52 = vpop.f32.mrb[55].mxu1 }
 0x858   : > { %v20020_v52 = vld [vmem:[%s22143_s14 + $0x12c] ss:$24 sps:$4 sm:$0xff]  }
 0x85a   : > { %v7539_v39 = vpop.f32.mrb[56].mxu1 }
 0x85b   : > { %v7543_v26 = vmul.f32 0.10206208, %v7539_v39  ;;  %v18356_v31 = vpop.f32.mrb[57].mxu1  ;;  %v21708_v39 = vmov 0  }
 0x85c   : > { %7970 = vmatprep.mubr.bf16.mxu0 %v21708_v39 }
 0x85d   : > { %v7544_v42 = vsel %vm7334_vm3, %v7543_v26, -inf }
 0x85e   : > { %7545 = vmax.xlane.f32.xlu1 %v7544_v42  ;;  %v20018_v42 = vld [vmem:[%s22143_s14 + $0x128] ss:$24 sps:$4 sm:$0xff]  }
 0x86f   : > { %7557 = vrot.lane.b32.xlu1 %v23209_v43, %s21704_s26  ;;  %v7177_v43 = vrot.slane %v23241_v53, %v22873_v41 }
 0x871   : > { %v23257_v58 = vadd.f32 %v7177_v43, %v22638_v14 }
 0x873   : > { %8293 = vrot.lane.b32.xlu1 %v22885_v51, %s21707_s21 }
 0x877   : > { %8295 = vrot.lane.b32.xlu1 %v23248_v37, %s21707_s21 }
 0x87b   : > { %8286 = vrot.lane.b32.xlu1 %v22894_v61, %s21707_s21  ;;  %v21315_v61 = vld [vmem:[%s22153_s22 + $0x8] sm:$0xff] }
 0x87c   : > { %v7233_v50 = vrot.slane %v21315_v61, %v23203_v13  ;;  %v20032_v61 = vld [vmem:[%s22143_s14 + $0x18c] ss:$24 sps:$4 sm:$0xff]  }
 0x87e   : > { %v23265_v14 = vadd.f32 %v7233_v50, %v23207_v24  ;;  %v20005_v24 = vld [vmem:[%s22143_s14 + $0x1c4] ss:$24 sps:$4 sm:$0xff]  }
 0x87f   : > { %8288 = vrot.lane.b32.xlu1 %v23257_v58, %s21707_s21  ;;  %7944 = vmatprep.subr.bf16.mxu0 %v20005_v24  ;;  %v20035_v50 = vld [vmem:[%s22143_s14 + $0x6c] ss:$24 sps:$4 sm:$0xff]  }
 0x880   : > { %7945 = vmatpush1.bf16.msra.mxu0 %v20003_v0  ;;  %v20044_v24 = vld [vmem:[%s22143_s14 + $0x1ec] ss:$24 sps:$4 sm:$0xff]  }
 0x881   : > { %7946 = vmatprep.subr.bf16.mxu0 %v20011_v12  ;;  %v20047_v0 = vld [vmem:[%s22143_s14 + $0xcc] ss:$24 sps:$4 sm:$0xff]   ;;  %v20042_v12 = vld [vmem:[%s22143_s14 + $0x1e8] ss:$24 sps:$4 sm:$0xff]  }
 0x884   : > { %7947 = vmatpush1.bf16.msra.mxu0 %v20009_v1  ;;  %v20045_v1 = vld [vmem:[%s22143_s14 + $0xc8] ss:$24 sps:$4 sm:$0xff]  }
 0x885   : > { %7948 = vmatprep.subr.bf16.mxu0 %v20017_v30  ;;  %v20050_v30 = vld [vmem:[%s22143_s14 + $0x21c] ss:$24 sps:$4 sm:$0xff]  }
 0x888   : > { %7949 = vmatpush1.bf16.msra.mxu0 %v20015_v56  ;;  %v20053_v56 = vld [vmem:[%s22143_s14 + $0xfc] ss:$24 sps:$4 sm:$0xff]  }
 0x8eb   : > { %v7546_v51 = vpop.xlane.xlu1 %7545 }
 0x8ec   : > { %v7547_v36 = vsub.f32 %v7543_v26, %v7546_v51  ;;  %v20023_v26 = vld [vmem:[%s22143_s14 + $0xc] ss:$24 sps:$4 sm:$0xff]  }
 0x8ed   : > { %8203 = vmatprep.subr.bf16.mxu0 %v20023_v26  ;;  %v20078_v26 = vld [vmem:[%s22143_s14 + $0x70] ss:$24 sps:$4 sm:$0xff]  }
 0x8ee   : > { %v7548_v38 = vmul.f32 1.442695, %v7547_v36  ;;  %v20026_v36 = vld [vmem:[%s22143_s14 + $0x15c] ss:$24 sps:$4 sm:$0xff]  }
 0x8ef   : > { %v7558_v23 = vpop.permute.xlu1 %7557 }
 0x8f0   : > { %21282 = vpow2.f32 %v7548_v38  ;;  %v20029_v38 = vld [vmem:[%s22143_s14 + $0x3c] ss:$24 sps:$4 sm:$0xff]  }
 0x8fa   : > { %v21283_v45 = vpop.eup %21282 }
 0x8fb   : > { %v7550_v47 = vsel %vm7334_vm3, %v21283_v45, 0.0 }
 0x8fc   : > { %7551 = vadd.xlane.f32.xlu0 %v7550_v47  ;;  %v20027_v47 = vld [vmem:[%s22143_s14 + $0x38] ss:$24 sps:$4 sm:$0xff]  }
 0x912   : > { %7559 = vrot.lane.b32.xlu0 %v23265_v14, %s21704_s26 }
 0x989   : > { %v7552_v2 = vpop.xlane.xlu0 %7551 }
 0x98a   : > { %21284 = vrcp.f32 %v7552_v2  ;;  %v20048_v2 = vld [vmem:[%s22143_s14 + $0x218] ss:$24 sps:$4 sm:$0xff]  }
 0x98d   : > { %v7560_v4 = vpop.permute.xlu0 %7559 }
 0x98e   : > { %v7561_v7 = vsel %vm7461_vm4, %v7558_v23, %v7560_v4  ;;  %v20056_v23 = vld [vmem:[%s22143_s14 + $0x4] ss:$24 sps:$4 sm:$0xff]   ;;  %v20054_v4 = vld [vmem:[%s22143_s14] ss:$24 sps:$4 sm:$0xff]  }
 0x98f   : > { %18358 = vmatpush3.msra.mxu1 %v7561_v7  ;;  %v7419_v7 = vpack.c.bf16 %v23235_v6, %v23235_v6  ;;  %v20060_v6 = vld [vmem:[%s22143_s14 + $0x60] ss:$24 sps:$4 sm:$0xff]  }
 0x990   : > { %7856 = vmatprep.subr.bf16.mxu1 %v19984_v34  ;;  %v20051_v34 = vld [vmem:[%s22143_s14 + $0xf8] ss:$24 sps:$4 sm:$0xff]  }
 0x994   : > { %v21285_v8 = vpop.eup %21284 }
 0x995   : > { %v7554_v11 = vmul.f32 %v21285_v8, %v21283_v45  ;;  %v20024_v45 = vld [vmem:[%s22143_s14 + $0x158] ss:$24 sps:$4 sm:$0xff]   ;;  %v20059_v8 = vld [vmem:[%s22143_s14 + $0x34] ss:$24 sps:$4 sm:$0xff]  }
 0x997   : > { %18360 = vmatmul.mubr.msk.f32.vlgmr.msra.gmra.mrb[58].mxu1 %vm7334_vm3, %v7554_v11  ;;  %v20062_v11 = vld [vmem:[%s22143_s14 + $0x64] ss:$24 sps:$4 sm:$0xff]  }
 0x998   : > { %7857 = vmatpush1.bf16.msra.mxu1 %v19982_v10  ;;  %7888 = vmatprep.mubr.bf16.mxu1 %v21708_v39  ;;  %v20057_v10 = vld [vmem:[%s22143_s14 + $0x30] ss:$24 sps:$4 sm:$0xff]  }
 0x999   : > { %7858 = vmatprep.subr.bf16.mxu1 %v19990_v49  ;;  %v20065_v49 = vld [vmem:[%s22143_s14 + $0x94] ss:$24 sps:$4 sm:$0xff]  }
 0x99c   : > { %7859 = vmatpush1.bf16.msra.mxu1 %v19988_v16  ;;  %v20063_v16 = vld [vmem:[%s22143_s14 + $0x90] ss:$24 sps:$4 sm:$0xff]  }
 0x99d   : > { %7860 = vmatprep.subr.bf16.mxu1 %v19996_v17  ;;  %v20068_v17 = vld [vmem:[%s22143_s14 + $0xc4] ss:$24 sps:$4 sm:$0xff]  }
 0x9a0   : > { %7861 = vmatpush1.bf16.msra.mxu1 %v19994_v55  ;;  %v20066_v55 = vld [vmem:[%s22143_s14 + $0xc0] ss:$24 sps:$4 sm:$0xff]  }
 0x9a1   : > { %7862 = vmatprep.subr.bf16.mxu1 %v20002_v19  ;;  %v20071_v19 = vld [vmem:[%s22143_s14 + $0xf4] ss:$24 sps:$4 sm:$0xff]  }
 0x9a4   : > { %7863 = vmatpush1.bf16.msra.mxu1 %v20000_v21  ;;  %v20069_v21 = vld [vmem:[%s22143_s14 + $0xf0] ss:$24 sps:$4 sm:$0xff]  }
 0x9a5   : > { %7864 = vmatprep.subr.bf16.mxu1 %v20008_v25  ;;  %v20074_v25 = vld [vmem:[%s22143_s14 + $0x14] ss:$24 sps:$4 sm:$0xff]  }
 0x9a8   : > { %7865 = vmatpush1.bf16.msra.mxu1 %v20006_v27  ;;  %v20072_v27 = vld [vmem:[%s22143_s14 + $0x10] ss:$24 sps:$4 sm:$0xff]  }
 0x9a9   : > { %7866 = vmatprep.subr.bf16.mxu1 %v20014_v44  ;;  %v20077_v44 = vld [vmem:[%s22143_s14 + $0x44] ss:$24 sps:$4 sm:$0xff]  }
 0x9ac   : > { %7867 = vmatpush1.bf16.msra.mxu1 %v20012_v28  ;;  %v20075_v28 = vld [vmem:[%s22143_s14 + $0x40] ss:$24 sps:$4 sm:$0xff]  }
 0x9ad   : > { %7897 = vmatprep.subr.bf16.mxu1 %v20020_v52  ;;  %v20080_v52 = vld [vmem:[%s22143_s14 + $0x74] ss:$24 sps:$4 sm:$0xff]  }
 0xa6a   : > { %v7632_v31 = vpop.f32.mrb[58].mxu1 }
 0xa6b   : > { %v7636_v43 = vpack.c.bf16 %v7632_v31, %v7632_v31  ;;  %v18361_v51 = vpop.f32.mrb[59].mxu1  ;;  %v20083_v31 = vld [vmem:[%s22143_s14 + $0xa4] ss:$24 sps:$4 sm:$0xff]  }
 0xa6c   : > { %v20084_v51 = vld [vmem:[%s22143_s14 + $0xd0] ss:$24 sps:$4 sm:$0xff]  }
 0xa6d   : > { %17331 = vmatmul.mubr.msk.bf16.vlgmr.msra.gmra.mrb[60].mxu1 %vm7256_vm2, %v7636_v43  ;;  %17333 = vmatmul.mubr.msk.bf16.vlgmr.msra.gmra.mrb[56].mxu0 %vm7256_vm2, %v7636_v43 }
 0xa6e   : > { %7898 = vmatpush1.bf16.msra.mxu1 %v20018_v42  ;;  %8204 = vmatpush1.bf16.msra.mxu0 %v20021_v35  ;;  %v20081_v42 = vld [vmem:[%s22143_s14 + $0xa0] ss:$24 sps:$4 sm:$0xff]   ;;  %v20086_v35 = vld [vmem:[%s22143_s14 + $0xd4] ss:$24 sps:$4 sm:$0xff]  }
 0xa6f   : > { %7899 = vmatprep.subr.bf16.mxu1 %v20026_v36  ;;  %8205 = vmatprep.subr.bf16.mxu0 %v20029_v38  ;;  %v20089_v36 = vld [vmem:[%s22143_s14 + $0x104] ss:$24 sps:$4 sm:$0xff]  }
 0xa70   : > { %7929 = vmatprep.mubr.bf16.mxu1 %v21708_v39  ;;  %8235 = vmatprep.mubr.bf16.mxu0 %v21708_v39 }
 0xa72   : > { %7900 = vmatpush1.bf16.msra.mxu1 %v20024_v45  ;;  %8206 = vmatpush1.bf16.msra.mxu0 %v20027_v47  ;;  %v20087_v45 = vld [vmem:[%s22143_s14 + $0x100] ss:$24 sps:$4 sm:$0xff]  }
 0xa73   : > { %7901 = vmatprep.subr.bf16.mxu1 %v20032_v61  ;;  %8207 = vmatprep.subr.bf16.mxu0 %v20035_v50 }
 0xa76   : > { %7902 = vmatpush1.bf16.msra.mxu1 %v20030_v54  ;;  %8208 = vmatpush1.bf16.msra.mxu0 %v20033_v57 }
 0xa77   : > { %7903 = vmatprep.subr.bf16.mxu1 %v20038_v5  ;;  %8209 = vmatprep.subr.bf16.mxu0 %v20041_v59 }
 0xa7a   : > { %7904 = vmatpush1.bf16.msra.mxu1 %v20036_v32  ;;  %8210 = vmatpush1.bf16.msra.mxu0 %v20039_v63 }
 0xa7b   : > { %7905 = vmatprep.subr.bf16.mxu1 %v20044_v24  ;;  %8211 = vmatprep.subr.bf16.mxu0 %v20047_v0 }
 0xa7e   : > { %7906 = vmatpush1.bf16.msra.mxu1 %v20042_v12  ;;  %8212 = vmatpush1.bf16.msra.mxu0 %v20045_v1 }
 0xa7f   : > { %7907 = vmatprep.subr.bf16.mxu1 %v20050_v30  ;;  %8213 = vmatprep.subr.bf16.mxu0 %v20053_v56 }
 0xa82   : > { %7908 = vmatpush1.bf16.msra.mxu1 %v20048_v2  ;;  %8214 = vmatpush1.bf16.msra.mxu0 %v20051_v34 }
 0xa83   : > { %8162 = vmatprep.subr.bf16.mxu1 %v20056_v23 }
 0xa85   : > { %17332 = vmatmul.mubr.msk.bf16.vlgmr.msra.gmra.mrb[64].mxu1 %vm7256_vm2, %v7636_v43  ;;  %17371 = vmatmul.mubr.msk.bf16.vlgmr.msra.gmra.mrb[60].mxu0 %vm7256_vm2, %v7419_v7  ;;  %v8294_v43 = vpop.permute.xlu1 %8293 }
 0xa86   : > { %8163 = vmatpush1.bf16.msra.mxu1 %v20054_v4  ;;  %8194 = vmatprep.mubr.bf16.mxu1 %v21708_v39 }
 0xa87   : > { %8164 = vmatprep.subr.bf16.mxu1 %v20059_v8  ;;  %8757 = vmatprep.mubr.bf16.mxu0 %v21708_v39 }
 0xa89   : > { %v8296_v38 = vpop.permute.xlu1 %8295 }
 0xa8a   : > { %8165 = vmatpush1.bf16.msra.mxu1 %v20057_v10  ;;  %v8297_v61 = vsel %vm8290_vm5, %v8294_v43, %v8296_v38 }
 0xa8b   : > { %8166 = vmatprep.subr.bf16.mxu1 %v20062_v11 }
 0xa8d   : > { %v8287_v47 = vpop.permute.xlu1 %8286 }
 0xa8e   : > { %8167 = vmatpush1.bf16.msra.mxu1 %v20060_v6 }
 0xa8f   : > { %8168 = vmatprep.subr.bf16.mxu1 %v20065_v49 }
 0xa91   : > { %v8289_v50 = vpop.permute.xlu1 %8288 }
 0xa92   : > { %8169 = vmatpush1.bf16.msra.mxu1 %v20063_v16  ;;  %v8291_v54 = vsel %vm8290_vm5, %v8287_v47, %v8289_v50  ;;  %v20095_v47 = vld [vmem:[%s22143_s14 + $0x27c] ss:$24 sps:$4 sm:$0xff]   ;;  %v20101_v50 = vld [vmem:[%s22143_s14 + $0x2ac] ss:$24 sps:$4 sm:$0xff]  }
 0xa93   : > { %8170 = vmatprep.subr.bf16.mxu1 %v20068_v17 }
 0xa96   : > { %8171 = vmatpush1.bf16.msra.mxu1 %v20066_v55 }
 0xa97   : > { %8172 = vmatprep.subr.bf16.mxu1 %v20071_v19 }
 0xa9a   : > { %8173 = vmatpush1.bf16.msra.mxu1 %v20069_v21 }
 0xa9b   : > { %8244 = vmatprep.subr.bf16.mxu1 %v20074_v25 }
 0xa9d   : > { %17370 = vmatmul.mubr.msk.bf16.vlgmr.msra.gmra.mrb[68].mxu1 %vm7256_vm2, %v7419_v7 }
 0xa9e   : > { %8245 = vmatpush1.bf16.msra.mxu1 %v20072_v27  ;;  %8276 = vmatprep.mubr.bf16.mxu1 %v21708_v39 }
 0xa9f   : > { %8246 = vmatprep.subr.bf16.mxu1 %v20077_v44 }
 0xaa2   : > { %8247 = vmatpush1.bf16.msra.mxu1 %v20075_v28 }
 0xaa3   : > { %8248 = vmatprep.subr.bf16.mxu1 %v20080_v52 }
 0xaa6   : > { %8249 = vmatpush1.bf16.msra.mxu1 %v20078_v26 }
 0xaa7   : > { %8250 = vmatprep.subr.bf16.mxu1 %v20083_v31 }
 0xaaa   : > { %8251 = vmatpush1.bf16.msra.mxu1 %v20081_v42 }
 0xaab   : > { %8252 = vmatprep.subr.bf16.mxu1 %v20086_v35  ;;  %v7237_v35 = vrot.slane %v23241_v53, %v23203_v13 }
 0xaad   : > { %v23384_v43 = vadd.f32 %v7237_v35, %v23213_v46  ;;  %v20090_v46 = vld [vmem:[%s22143_s14 + $0x248] ss:$24 sps:$4 sm:$0xff]  }
 0xaae   : > { %8253 = vmatpush1.bf16.msra.mxu1 %v20084_v51 }
 0xaaf   : > { %8254 = vmatprep.subr.bf16.mxu1 %v20089_v36 }
 0xab2   : > { %8255 = vmatpush1.bf16.msra.mxu1 %v20087_v45 }
 0xab3   : > { %18362 = vmatprep.subr.mxu1 %v21705_v22 }
 0xab5   : > { %17372 = vmatmul.mubr.msk.bf16.vlgmr.msra.gmra.mrb[72].mxu1 %vm7256_vm2, %v7419_v7 }
 0xab6   : > { %18364 = vmatprep.mubr.msk.f32.mxu1 %vm21706_vm1, %v21705_v22 }
 0xabb   : > { %18363 = vmatpush3.xpose.msk.msra.mxu1 %vm7256_vm2, %v8297_v61  ;;  %v20093_v61 = vld [vmem:[%s22143_s14 + $0x278] ss:$24 sps:$4 sm:$0xff]  }
 0xabc   : > { %18367 = vmatprep.subr.mxu1 %v21705_v22 }
 0xabe   : > { %18365 = vmatmul.mubr.msk.f32.vlgmr.msra.gmra.mrb[76].mxu1 %vm7256_vm2, %v8291_v54  ;;  %v20099_v54 = vld [vmem:[%s22143_s14 + $0x2a8] ss:$24 sps:$4 sm:$0xff]  }
 0xabf   : > { %18369 = vmatprep.mubr.msk.f32.mxu1 %vm21706_vm1, %v21705_v22 }
 0xb40   : > { %v7890_v57 = vpop.f32.mrb[60].mxu1  ;;  %v7972_v5 = vpop.f32.mrb[56].mxu0 }
 0xb41   : > { %v7892_v59 = vpop.f32.mrb[61].mxu1  ;;  %v7974_v32 = vpop.f32.mrb[57].mxu0 }
 0xb42   : > { %v7894_v63 = vpop.f32.mrb[62].mxu1  ;;  %v7976_v24 = vpop.f32.mrb[58].mxu0 }
 0xb43   : > { %v7895_v0 = vpop.f32.mrb[63].mxu1  ;;  %v7977_v12 = vpop.f32.mrb[59].mxu0  ;;  %v20098_v24 = vld [vmem:[%s22143_s14 + $0x244] ss:$24 sps:$4 sm:$0xff]  }
 0xb58   : > { %v7931_v1 = vpop.f32.mrb[64].mxu1  ;;  %v8237_v30 = vpop.f32.mrb[60].mxu0 }
 0xb59   : > { %v23368_v56 = vadd.f32 %v8237_v30, %v7931_v1  ;;  %v7933_v2 = vpop.f32.mrb[65].mxu1  ;;  %v8239_v34 = vpop.f32.mrb[61].mxu0 }
 0xb5a   : > { %v23370_v23 = vadd.f32 %v8239_v34, %v7933_v2  ;;  %v7935_v4 = vpop.f32.mrb[66].mxu1  ;;  %v8241_v7 = vpop.f32.mrb[62].mxu0  ;;  %v20096_v2 = vld [vmem:[%s22143_s14 + $0x240] ss:$24 sps:$4 sm:$0xff]  }
 0xb5b   : > { %v7936_v8 = vpop.f32.mrb[67].mxu1  ;;  %v8242_v10 = vpop.f32.mrb[63].mxu0  ;;  %v20104_v4 = vld [vmem:[%s22143_s14 + $0x274] ss:$24 sps:$4 sm:$0xff]   ;;  %v20102_v7 = vld [vmem:[%s22143_s14 + $0x270] ss:$24 sps:$4 sm:$0xff]  }
 0xb5c   : > { %v20110_v8 = vld [vmem:[%s22143_s14 + $0x2a4] ss:$24 sps:$4 sm:$0xff]   ;;  %v20108_v10 = vld [vmem:[%s22143_s14 + $0x2a0] ss:$24 sps:$4 sm:$0xff]  }
 0xb70   : > { %v8196_v11 = vpop.f32.mrb[68].mxu1 }
 0xb71   : > { %v23372_v6 = vadd.f32 %v8196_v11, %v7890_v57  ;;  %v8198_v49 = vpop.f32.mrb[69].mxu1  ;;  %v20107_v57 = vld [vmem:[%s22143_s14 + $0x2dc] ss:$24 sps:$4 sm:$0xff]  }
 0xb72   : > { %v23374_v16 = vadd.f32 %v8198_v49, %v7892_v59  ;;  %v8200_v17 = vpop.f32.mrb[70].mxu1  ;;  %v20119_v59 = vld [vmem:[%s22143_s14 + $0x33c] ss:$24 sps:$4 sm:$0xff]   ;;  %v20114_v49 = vld [vmem:[%s22143_s14 + $0x2d0] ss:$24 sps:$4 sm:$0xff]  }
 0xb73   : > { %v8201_v55 = vpop.f32.mrb[71].mxu1  ;;  %v20116_v11 = vld [vmem:[%s22143_s14 + $0x2d4] ss:$24 sps:$4 sm:$0xff]   ;;  %v20122_v17 = vld [vmem:[%s22143_s14 + $0x304] ss:$24 sps:$4 sm:$0xff]  }
 0xb74   : > { %v20120_v55 = vld [vmem:[%s22143_s14 + $0x300] ss:$24 sps:$4 sm:$0xff]  }
 0xb88   : > { %v8278_v19 = vpop.f32.mrb[72].mxu1 }
 0xb89   : > { %v23376_v21 = vadd.f32 %v8278_v19, %v7972_v5  ;;  %v8280_v25 = vpop.f32.mrb[73].mxu1  ;;  %v20111_v5 = vld [vmem:[%s22143_s14 + $0x308] ss:$24 sps:$4 sm:$0xff]   ;;  %v20125_v19 = vld [vmem:[%s22143_s14 + $0x334] ss:$24 sps:$4 sm:$0xff]  }
 0xb8a   : > { %v23378_v27 = vadd.f32 %v8280_v25, %v7974_v32  ;;  %v8282_v44 = vpop.f32.mrb[74].mxu1  ;;  %v20117_v32 = vld [vmem:[%s22143_s14 + $0x338] ss:$24 sps:$4 sm:$0xff]  }
 0xb8b   : > { %v8283_v28 = vpop.f32.mrb[75].mxu1  ;;  %v20123_v25 = vld [vmem:[%s22143_s14 + $0x330] ss:$24 sps:$4 sm:$0xff]   ;;  %v20128_v44 = vld [vmem:[%s22143_s14 + $0x254] ss:$24 sps:$4 sm:$0xff]  }
 0xb91   : > { %v8368_v52 = vpop.f32.mrb[76].mxu1 }
 0xb92   : > { %v8372_v26 = vmul.f32 0.10206208, %v8368_v52  ;;  %v18366_v31 = vpop.f32.mrb[77].mxu1  ;;  %v20126_v52 = vld [vmem:[%s22143_s14 + $0x250] ss:$24 sps:$4 sm:$0xff]  }
 0xb94   : > { %v8373_v42 = vsel %vm7334_vm3, %v8372_v26, -inf }
 0xb95   : > { %8374 = vmax.xlane.f32.xlu1 %v8373_v42  ;;  %v20131_v42 = vld [vmem:[%s22143_s14 + $0x284] ss:$24 sps:$4 sm:$0xff]  }
 0xba6   : > { %8387 = vrot.lane.b32.xlu1 %v23384_v43, %s21707_s21 }
 0xbaa   : > { %8815 = vrot.lane.b32.xlu1 %v23248_v37, %s21709_s10  ;;  %v20092_v37 = vld [vmem:[%s22143_s14 + $0x24c] ss:$24 sps:$4 sm:$0xff]  }
 0xbab   : > { %8725 = vmatprep.subr.bf16.mxu0 %v20092_v37  ;;  %v20140_v37 = vld [vmem:[%s22143_s14 + $0x314] ss:$24 sps:$4 sm:$0xff]  }
 0xbac   : > { %8726 = vmatpush1.bf16.msra.mxu0 %v20090_v46  ;;  %v20135_v46 = vld [vmem:[%s22143_s14 + $0x2e0] ss:$24 sps:$4 sm:$0xff]  }
 0xbad   : > { %8727 = vmatprep.subr.bf16.mxu0 %v20095_v47  ;;  %v20138_v47 = vld [vmem:[%s22143_s14 + $0x310] ss:$24 sps:$4 sm:$0xff]  }
 0xbb0   : > { %8728 = vmatpush1.bf16.msra.mxu0 %v20093_v61  ;;  %v20143_v61 = vld [vmem:[%s22143_s14 + $0x344] ss:$24 sps:$4 sm:$0xff]  }
 0xbb1   : > { %8729 = vmatprep.subr.bf16.mxu0 %v20101_v50  ;;  %v20141_v50 = vld [vmem:[%s22143_s14 + $0x340] ss:$24 sps:$4 sm:$0xff]  }
 0xbb4   : > { %8730 = vmatpush1.bf16.msra.mxu0 %v20099_v54 }
 0xbb5   : > { %8731 = vmatprep.subr.bf16.mxu0 %v20107_v57 }
 0xc22   : > { %v8375_v51 = vpop.xlane.xlu1 %8374 }
 0xc23   : > { %v8376_v36 = vsub.f32 %v8372_v26, %v8375_v51  ;;  %v20129_v51 = vld [vmem:[%s22143_s14 + $0x280] ss:$24 sps:$4 sm:$0xff]  }
 0xc25   : > { %v8377_v38 = vmul.f32 1.442695, %v8376_v36  ;;  %v20134_v36 = vld [vmem:[%s22143_s14 + $0x2b4] ss:$24 sps:$4 sm:$0xff]  }
 0xc26   : > { %v8388_v0 = vpop.permute.xlu1 %8387 }
 0xc27   : > { %21286 = vpow2.f32 %v8377_v38  ;;  %v20132_v38 = vld [vmem:[%s22143_s14 + $0x2b0] ss:$24 sps:$4 sm:$0xff]  }
 0xc2a   : > { %v8816_v35 = vpop.permute.xlu1 %8815 }
 0xc31   : > { %v21287_v45 = vpop.eup %21286 }
 0xc32   : > { %v8379_v53 = vsel %vm7334_vm3, %v21287_v45, 0.0 }
 0xc33   : > { %8380 = vadd.xlane.f32.xlu0 %v8379_v53 }
 0xc49   : > { %8385 = vrot.lane.b32.xlu0 %v23265_v14, %s21707_s21  ;;  %v20105_v14 = vld [vmem:[%s22143_s14 + $0x2d8] ss:$24 sps:$4 sm:$0xff]  }
 0xc4a   : > { %8732 = vmatpush1.bf16.msra.mxu0 %v20105_v14 }
 0xc4d   : > { %8813 = vrot.lane.b32.xlu0 %v23257_v58, %s21709_s10  ;;  %v20113_v58 = vld [vmem:[%s22143_s14 + $0x30c] ss:$24 sps:$4 sm:$0xff]  }
 0xc4e   : > { %8733 = vmatprep.subr.bf16.mxu0 %v20113_v58 }
 0xc4f   : > { %8734 = vmatpush1.bf16.msra.mxu0 %v20111_v5 }
 0xc50   : > { %8735 = vmatprep.subr.bf16.mxu0 %v20119_v59 }
 0xc53   : > { %8736 = vmatpush1.bf16.msra.mxu0 %v20117_v32 }
 0xc54   : > { %18372 = vmatprep.subr.mxu0 %v21705_v22 }
 0xcc0   : > { %v8381_v63 = vpop.xlane.xlu0 %8380 }
 0xcc1   : > { %21288 = vrcp.f32 %v8381_v63 }
 0xcc4   : > { %v8386_v12 = vpop.permute.xlu0 %8385 }
 0xcc5   : > { %v8389_v1 = vsel %vm8290_vm5, %v8386_v12, %v8388_v0 }
 0xcc6   : > { %18368 = vmatpush3.msra.mxu1 %v8389_v1 }
 0xcc7   : > { %8684 = vmatprep.subr.bf16.mxu1 %v20098_v24 }
 0xcc8   : > { %v8814_v53 = vpop.permute.xlu0 %8813 }
 0xccb   : > { %v21289_v30 = vpop.eup %21288 }
 0xccc   : > { %v8383_v34 = vmul.f32 %v21289_v30, %v21287_v45  ;;  %v20137_v45 = vld [vmem:[%s22143_s14 + $0x2e4] ss:$24 sps:$4 sm:$0xff]  }
 0xcce   : > { %18370 = vmatmul.mubr.msk.f32.vlgmr.msra.gmra.mrb[78].mxu1 %vm7334_vm3, %v8383_v34 }
 0xccf   : > { %8685 = vmatpush1.bf16.msra.mxu1 %v20096_v2  ;;  %8716 = vmatprep.mubr.bf16.mxu1 %v21708_v39 }
 0xcd0   : > { %8686 = vmatprep.subr.bf16.mxu1 %v20104_v4 }
 0xcd3   : > { %8687 = vmatpush1.bf16.msra.mxu1 %v20102_v7 }
 0xcd4   : > { %8688 = vmatprep.subr.bf16.mxu1 %v20110_v8 }
 0xcd7   : > { %8689 = vmatpush1.bf16.msra.mxu1 %v20108_v10 }
 0xcd8   : > { %8690 = vmatprep.subr.bf16.mxu1 %v20116_v11 }
 0xcdb   : > { %8691 = vmatpush1.bf16.msra.mxu1 %v20114_v49 }
 0xcdc   : > { %8692 = vmatprep.subr.bf16.mxu1 %v20122_v17 }
 0xcdf   : > { %8693 = vmatpush1.bf16.msra.mxu1 %v20120_v55 }
 0xce0   : > { %8694 = vmatprep.subr.bf16.mxu1 %v20125_v19  ;;  %v23473_v19 = vld [vmem:[%s22153_s22 + $0x18] sm:$0xff] }
 0xce3   : > { %8695 = vmatpush1.bf16.msra.mxu1 %v20123_v25  ;;  %v7181_v25 = vrot.slane %v23473_v19, %v22873_v41 }
 0xce4   : > { %8766 = vmatprep.subr.bf16.mxu1 %v20128_v44 }
 0xda1   : > { %v8460_v28 = vpop.f32.mrb[78].mxu1 }
 0xda2   : > { %v8464_v26 = vpack.c.bf16 %v8460_v28, %v8460_v28  ;;  %v18371_v31 = vpop.f32.mrb[79].mxu1  ;;  %v20144_v28 = vld [vmem:[%s22143_s14 + $0x368] ss:$24 sps:$4 sm:$0xff]  }
 0xda3   : > { %v20149_v31 = vld [vmem:[%s22143_s14 + $0x39c] ss:$24 sps:$4 sm:$0xff]  }
 0xda4   : > { %17412 = vmatmul.mubr.msk.bf16.vlgmr.msra.gmra.mrb[80].mxu1 %vm7256_vm2, %v8464_v26  ;;  %17413 = vmatmul.mubr.msk.bf16.vlgmr.msra.gmra.mrb[64].mxu0 %vm7256_vm2, %v8464_v26 }
 0xda5   : > { %8767 = vmatpush1.bf16.msra.mxu1 %v20126_v52  ;;  %18373 = vmatpush3.xpose.msk.msra.mxu0 %vm7256_vm2, %v8816_v35  ;;  %v20146_v52 = vld [vmem:[%s22143_s14 + $0x36c] ss:$24 sps:$4 sm:$0xff]   ;;  %v20161_v35 = vld [vmem:[%s22143_s14 + $0x3fc] ss:$24 sps:$4 sm:$0xff]  }
 0xda6   : > { %8768 = vmatprep.subr.bf16.mxu1 %v20131_v42  ;;  %18374 = vmatprep.mubr.msk.f32.mxu0 %vm21706_vm1, %v21705_v22  ;;  %v20153_v42 = vld [vmem:[%s22143_s14 + $0x3c8] ss:$24 sps:$4 sm:$0xff]  }
 0xda7   : > { %8798 = vmatprep.mubr.bf16.mxu1 %v21708_v39  ;;  %18377 = vmatprep.subr.mxu0 %v21705_v22 }
 0xda9   : > { %8769 = vmatpush1.bf16.msra.mxu1 %v20129_v51  ;;  %v20167_v51 = vld [vmem:[%s22143_s14 + $0x42c] ss:$24 sps:$4 sm:$0xff]  }
 0xdaa   : > { %8770 = vmatprep.subr.bf16.mxu1 %v20134_v36  ;;  %v20165_v36 = vld [vmem:[%s22143_s14 + $0x428] ss:$24 sps:$4 sm:$0xff]  }
 0xdac   : > { %18375 = vmatmul.mubr.msk.f32.vlgmr.msra.gmra.mrb[68].mxu0 %vm7256_vm2, %v8814_v53 }
 0xdad   : > { %8771 = vmatpush1.bf16.msra.mxu1 %v20132_v38  ;;  %18379 = vmatprep.mubr.msk.f32.mxu0 %vm21706_vm1, %v21705_v22  ;;  %v20173_v38 = vld [vmem:[%s22143_s14 + $0x45c] ss:$24 sps:$4 sm:$0xff]  }
 0xdae   : > { %8772 = vmatprep.subr.bf16.mxu1 %v20137_v45  ;;  %v20171_v45 = vld [vmem:[%s22143_s14 + $0x458] ss:$24 sps:$4 sm:$0xff]  }
 0xdb1   : > { %8773 = vmatpush1.bf16.msra.mxu1 %v20135_v46  ;;  %v20152_v46 = vld [vmem:[%s22143_s14 + $0x364] ss:$24 sps:$4 sm:$0xff]  }
 0xdb2   : > { %8774 = vmatprep.subr.bf16.mxu1 %v20140_v37 }
 0xdb5   : > { %8775 = vmatpush1.bf16.msra.mxu1 %v20138_v47 }
 0xdb6   : > { %8776 = vmatprep.subr.bf16.mxu1 %v20143_v61  ;;  %v20150_v61 = vld [vmem:[%s22143_s14 + $0x360] ss:$24 sps:$4 sm:$0xff]  }
 0xdb9   : > { %8777 = vmatpush1.bf16.msra.mxu1 %v20141_v50 }
 0xdba   : > { %9240 = vmatprep.subr.bf16.mxu1 %v20146_v52  ;;  %v20192_v52 = vld [vmem:[%s22143_s14 + $0x430] ss:$24 sps:$4 sm:$0xff]  }
 0xdbc   : > { %17414 = vmatmul.mubr.msk.bf16.vlgmr.msra.gmra.mrb[84].mxu1 %vm7256_vm2, %v8464_v26  ;;  %v23487_v26 = vadd.f32 %v7181_v25, %v22642_v18  ;;  %v20159_v18 = vld [vmem:[%s22143_s14 + $0x3f8] ss:$24 sps:$4 sm:$0xff]  }
 0xdbd   : > { %9272 = vmatprep.mubr.bf16.mxu1 %v21708_v39  ;;  %9241 = vmatpush1.bf16.msra.mxu1 %v20144_v28  ;;  %v20194_v28 = vld [vmem:[%s22143_s14 + $0x434] ss:$24 sps:$4 sm:$0xff]  }
 0xdbe   : > { %9242 = vmatprep.subr.bf16.mxu1 %v20149_v31  ;;  %v20197_v31 = vld [vmem:[%s22143_s14 + $0x464] ss:$24 sps:$4 sm:$0xff]  }
 0xe77   : > { %v8718_v54 = vpop.f32.mrb[80].mxu1  ;;  %v8759_v57 = vpop.f32.mrb[64].mxu0 }
 0xe78   : > { %v23448_v14 = vadd.f32 %v8718_v54, %v23372_v6  ;;  %v23451_v58 = vadd.f32 %v8759_v57, %v23368_v56  ;;  %v8720_v5 = vpop.f32.mrb[81].mxu1  ;;  %v8761_v59 = vpop.f32.mrb[65].mxu0  ;;  %v20158_v54 = vld [vmem:[%s22143_s14 + $0x394] ss:$24 sps:$4 sm:$0xff]   ;;  %v20156_v57 = vld [vmem:[%s22143_s14 + $0x390] ss:$24 sps:$4 sm:$0xff]  }
 0xe79   : > { %v23454_v32 = vadd.f32 %v8720_v5, %v23374_v16  ;;  %v23457_v63 = vadd.f32 %v8761_v59, %v23370_v23  ;;  %v8722_v24 = vpop.f32.mrb[82].mxu1  ;;  %v8763_v0 = vpop.f32.mrb[66].mxu0  ;;  %v20164_v5 = vld [vmem:[%s22143_s14 + $0x3c4] ss:$24 sps:$4 sm:$0xff]   ;;  %v20162_v59 = vld [vmem:[%s22143_s14 + $0x3c0] ss:$24 sps:$4 sm:$0xff]  }
 0xe7a   : > { %v8723_v12 = vpop.f32.mrb[83].mxu1  ;;  %v8764_v1 = vpop.f32.mrb[67].mxu0  ;;  %v20170_v24 = vld [vmem:[%s22143_s14 + $0x3f4] ss:$24 sps:$4 sm:$0xff]   ;;  %v20168_v0 = vld [vmem:[%s22143_s14 + $0x3f0] ss:$24 sps:$4 sm:$0xff]  }
 0xe7b   : > { %v20176_v12 = vld [vmem:[%s22143_s14 + $0x424] ss:$24 sps:$4 sm:$0xff]   ;;  %v20174_v1 = vld [vmem:[%s22143_s14 + $0x420] ss:$24 sps:$4 sm:$0xff]  }
 0xe7f   : > { %v8887_v30 = vpop.f32.mrb[68].mxu0 }
 0xe80   : > { %v8891_v2 = vmul.f32 0.10206208, %v8887_v30  ;;  %v18376_v34 = vpop.f32.mrb[69].mxu0  ;;  %v20179_v30 = vld [vmem:[%s22143_s14 + $0x454] ss:$24 sps:$4 sm:$0xff]  }
 0xe81   : > { %v20182_v34 = vld [vmem:[%s22143_s14 + $0x374] ss:$24 sps:$4 sm:$0xff]  }
 0xe82   : > { %v8892_v6 = vsel %vm7334_vm3, %v8891_v2, -inf }
 0xe83   : > { %8893 = vmax.xlane.f32.xlu1 %v8892_v6  ;;  %v7211_v6 = vrot.slane %v23473_v19, %v22859_v15 }
 0xe8f   : > { %v8800_v56 = vpop.f32.mrb[84].mxu1 }
 0xe90   : > { %v23461_v4 = vadd.f32 %v8800_v56, %v23376_v21  ;;  %v8802_v16 = vpop.f32.mrb[85].mxu1  ;;  %v23468_v21 = vld [vmem:[%s22153_s22 + $0x20] sm:$0xff] }
 0xe91   : > { %v23464_v23 = vadd.f32 %v8802_v16, %v23378_v27  ;;  %v8804_v7 = vpop.f32.mrb[86].mxu1  ;;  %v7215_v27 = vrot.slane %v23468_v21, %v22859_v15  ;;  %v20180_v16 = vld [vmem:[%s22143_s14 + $0x370] ss:$24 sps:$4 sm:$0xff]  }
 0xe92   : > { %v8805_v8 = vpop.f32.mrb[87].mxu1 }
 0xe93   : > { %v23480_v44 = vadd.f32 %v7215_v27, %v23110_v29  ;;  %v20147_v29 = vld [vmem:[%s22143_s14 + $0x398] ss:$24 sps:$4 sm:$0xff]   ;;  %v20191_v27 = vld [vmem:[%s22143_s14 + $0x404] ss:$24 sps:$4 sm:$0xff]  }
 0xe94   : > { %9243 = vmatpush1.bf16.msra.mxu1 %v20147_v29  ;;  %v20195_v29 = vld [vmem:[%s22143_s14 + $0x460] ss:$24 sps:$4 sm:$0xff]  }
 0xf10   : > { %v8894_v10 = vpop.xlane.xlu1 %8893 }
 0xf11   : > { %v8895_v11 = vsub.f32 %v8891_v2, %v8894_v10  ;;  %v20177_v2 = vld [vmem:[%s22143_s14 + $0x450] ss:$24 sps:$4 sm:$0xff]   ;;  %v20185_v10 = vld [vmem:[%s22143_s14 + $0x3a4] ss:$24 sps:$4 sm:$0xff]  }
 0xf13   : > { %v8896_v49 = vmul.f32 1.442695, %v8895_v11  ;;  %v23522_v11 = vadd.f32 %v7211_v6, %v23036_v48  ;;  %v7241_v48 = vrot.slane %v23473_v19, %v23203_v13  ;;  %v20189_v19 = vld [vmem:[%s22143_s14 + $0x400] ss:$24 sps:$4 sm:$0xff]  }
 0xf14   : > { %v20201_v6 = vld [vmem:[%s22143_s14 + $0x4b8] ss:$24 sps:$4 sm:$0xff]  }
 0xf15   : > { %21290 = vpow2.f32 %v8896_v49  ;;  %v20183_v49 = vld [vmem:[%s22143_s14 + $0x3a0] ss:$24 sps:$4 sm:$0xff]   ;;  %v23539_v25 = vadd.f32 %v7241_v48, %v23215_v40 }
 0xf1f   : > { %v21291_v17 = vpop.eup %21290 }
 0xf20   : > { %v8898_v55 = vsel %vm7334_vm3, %v21291_v17, 0.0 }
 0xf21   : > { %8899 = vadd.xlane.f32.xlu0 %v8898_v55  ;;  %v20186_v55 = vld [vmem:[%s22143_s14 + $0x3d0] ss:$24 sps:$4 sm:$0xff]  }
 0xf37   : > { %8903 = vrot.lane.b32.xlu0 %v23384_v43, %s21709_s10  ;;  %v20155_v43 = vld [vmem:[%s22143_s14 + $0x3cc] ss:$24 sps:$4 sm:$0xff]  }
 0xf38   : > { %9244 = vmatprep.subr.bf16.mxu1 %v20155_v43 }
 0xf39   : > { %9245 = vmatpush1.bf16.msra.mxu1 %v20153_v42 }
 0xf3a   : > { %9246 = vmatprep.subr.bf16.mxu1 %v20161_v35 }
 0xf3b   : > { %9847 = vrot.lane.b32.xlu0 %v23480_v44, %s21704_s26 }
 0xf3d   : > { %9247 = vmatpush1.bf16.msra.mxu1 %v20159_v18 }
 0xf3e   : > { %9248 = vmatprep.subr.bf16.mxu1 %v20167_v51 }
 0xf3f   : > { %9839 = vrot.lane.b32.xlu0 %v23487_v26, %s21704_s26 }
 0xf41   : > { %9249 = vmatpush1.bf16.msra.mxu1 %v20165_v36 }
 0xf42   : > { %9250 = vmatprep.subr.bf16.mxu1 %v20173_v38 }
 0xf45   : > { %9251 = vmatpush1.bf16.msra.mxu1 %v20171_v45 }
 0xf46   : > { %18382 = vmatprep.subr.mxu1 %v21705_v22 }
 0xfae   : > { %v8900_v53 = vpop.xlane.xlu0 %8899 }
 0xfaf   : > { %21292 = vrcp.f32 %v8900_v53 }
 0xfb2   : > { %v8904_v37 = vpop.permute.xlu0 %8903 }
 0xfb3   : > { %18378 = vmatpush3.msra.mxu0 %v8904_v37 }
 0xfb4   : > { %9199 = vmatprep.subr.bf16.mxu0 %v20152_v46 }
 0xfb9   : > { %v21293_v47 = vpop.eup %21292 }
 0xfba   : > { %v8902_v50 = vmul.f32 %v21293_v47, %v21291_v17  ;;  %v20188_v17 = vld [vmem:[%s22143_s14 + $0x3d4] ss:$24 sps:$4 sm:$0xff]  }
 0xfbc   : > { %18380 = vmatmul.mubr.msk.f32.vlgmr.msra.gmra.mrb[70].mxu0 %vm7334_vm3, %v8902_v50 }
 0xfbd   : > { %9200 = vmatpush1.bf16.msra.mxu0 %v20150_v61  ;;  %9231 = vmatprep.mubr.bf16.mxu0 %v21708_v39 }
 0xfbe   : > { %9201 = vmatprep.subr.bf16.mxu0 %v20158_v54 }
 0xfc1   : > { %9202 = vmatpush1.bf16.msra.mxu0 %v20156_v57 }
 0xfc2   : > { %9203 = vmatprep.subr.bf16.mxu0 %v20164_v5 }
 0xfc5   : > { %9204 = vmatpush1.bf16.msra.mxu0 %v20162_v59 }
 0xfc6   : > { %9205 = vmatprep.subr.bf16.mxu0 %v20170_v24 }
 0xfc9   : > { %9206 = vmatpush1.bf16.msra.mxu0 %v20168_v0 }
 0xfca   : > { %9207 = vmatprep.subr.bf16.mxu0 %v20176_v12  ;;  %v7185_v12 = vrot.slane %v23468_v21, %v22873_v41 }
 0xfcd   : > { %9208 = vmatpush1.bf16.msra.mxu0 %v20174_v1  ;;  %v20198_v1 = vld [vmem:[%s22143_s14 + $0x488] ss:$24 sps:$4 sm:$0xff]  }
 0xfce   : > { %9209 = vmatprep.subr.bf16.mxu0 %v20179_v30  ;;  %v20200_v30 = vld [vmem:[%s22143_s14 + $0x48c] ss:$24 sps:$4 sm:$0xff]  }
 0xfd1   : > { %9210 = vmatpush1.bf16.msra.mxu0 %v20177_v2  ;;  %v20203_v2 = vld [vmem:[%s22143_s14 + $0x4bc] ss:$24 sps:$4 sm:$0xff]  }
 0xfd2   : > { %9281 = vmatprep.subr.bf16.mxu0 %v20182_v34  ;;  %v20206_v34 = vld [vmem:[%s22143_s14 + $0x484] ss:$24 sps:$4 sm:$0xff]  }
0x108f   : > { %v8975_v56 = vpop.f32.mrb[70].mxu0 }
0x1090   : > { %v8979_v7 = vpack.c.bf16 %v8975_v56, %v8975_v56  ;;  %v18381_v8 = vpop.f32.mrb[71].mxu0  ;;  %v20209_v56 = vld [vmem:[%s22143_s14 + $0x4ec] ss:$24 sps:$4 sm:$0xff]  }
0x1091   : > { %v20221_v8 = vld [vmem:[%s22143_s14 + $0x54c] ss:$24 sps:$4 sm:$0xff]  }
0x1092   : > { %17454 = vmatmul.mubr.msk.bf16.vlgmr.msra.gmra.mrb[72].mxu0 %vm7256_vm2, %v8979_v7  ;;  %17455 = vmatmul.mubr.msk.bf16.vlgmr.msra.gmra.mrb[88].mxu1 %vm7256_vm2, %v8979_v7 }
0x1093   : > { %9282 = vmatpush1.bf16.msra.mxu0 %v20180_v16  ;;  %18383 = vmatpush3.xpose.msk.msra.mxu1 %vm7256_vm2, %v23522_v11  ;;  %v20215_v16 = vld [vmem:[%s22143_s14 + $0x51c] ss:$24 sps:$4 sm:$0xff]  }
0x1094   : > { %9283 = vmatprep.subr.bf16.mxu0 %v20185_v10  ;;  %18384 = vmatprep.mubr.msk.f32.mxu1 %vm21706_vm1, %v21705_v22  ;;  %v20219_v10 = vld [vmem:[%s22143_s14 + $0x548] ss:$24 sps:$4 sm:$0xff]  }
0x1095   : > { %18387 = vmatprep.subr.mxu1 %v21705_v22  ;;  %9313 = vmatprep.mubr.bf16.mxu0 %v21708_v39 }
0x1097   : > { %9284 = vmatpush1.bf16.msra.mxu0 %v20183_v49  ;;  %v20225_v49 = vld [vmem:[%s22143_s14 + $0x578] ss:$24 sps:$4 sm:$0xff]  }
0x1098   : > { %9285 = vmatprep.subr.bf16.mxu0 %v20188_v17 }
0x109a   : > { %18385 = vmatmul.mubr.msk.f32.vlgmr.msra.gmra.mrb[92].mxu1 %vm7256_vm2, %v23487_v26 }
0x109b   : > { %9286 = vmatpush1.bf16.msra.mxu0 %v20186_v55  ;;  %18388 = vmatpush3.msra.mxu1 %v23539_v25  ;;  %v20204_v55 = vld [vmem:[%s22143_s14 + $0x480] ss:$24 sps:$4 sm:$0xff]  }
0x109c   : > { %9287 = vmatprep.subr.bf16.mxu0 %v20191_v27  ;;  %18389 = vmatprep.mubr.msk.f32.mxu1 %vm21706_vm1, %v21705_v22 }
0x109d   : > { %9709 = vmatprep.subr.bf16.mxu1 %v20206_v34  ;;  %v20249_v34 = vld [vmem:[%s22143_s14 + $0x580] ss:$24 sps:$4 sm:$0xff]  }
0x109f   : > { %9288 = vmatpush1.bf16.msra.mxu0 %v20189_v19  ;;  %v20212_v19 = vld [vmem:[%s22143_s14 + $0x4b4] ss:$24 sps:$4 sm:$0xff]  }
0x10a0   : > { %9289 = vmatprep.subr.bf16.mxu0 %v20194_v28  ;;  %v20210_v28 = vld [vmem:[%s22143_s14 + $0x4b0] ss:$24 sps:$4 sm:$0xff]  }
0x10a3   : > { %9290 = vmatpush1.bf16.msra.mxu0 %v20192_v52  ;;  %v20218_v52 = vld [vmem:[%s22143_s14 + $0x4e4] ss:$24 sps:$4 sm:$0xff]  }
0x10a4   : > { %9291 = vmatprep.subr.bf16.mxu0 %v20197_v31  ;;  %v20216_v31 = vld [vmem:[%s22143_s14 + $0x4e0] ss:$24 sps:$4 sm:$0xff]  }
0x10a7   : > { %9292 = vmatpush1.bf16.msra.mxu0 %v20195_v29  ;;  %v20224_v29 = vld [vmem:[%s22143_s14 + $0x514] ss:$24 sps:$4 sm:$0xff]  }
0x10a8   : > { %9750 = vmatprep.subr.bf16.mxu0 %v20200_v30  ;;  %v20246_v30 = vld [vmem:[%s22143_s14 + $0x550] ss:$24 sps:$4 sm:$0xff]  }
0x10aa   : > { %17456 = vmatmul.mubr.msk.bf16.vlgmr.msra.gmra.mrb[76].mxu0 %vm7256_vm2, %v8979_v7  ;;  %v20213_v7 = vld [vmem:[%s22143_s14 + $0x518] ss:$24 sps:$4 sm:$0xff]  }
0x10ab   : > { %9782 = vmatprep.mubr.bf16.mxu0 %v21708_v39  ;;  %9751 = vmatpush1.bf16.msra.mxu0 %v20198_v1  ;;  %v20248_v1 = vld [vmem:[%s22143_s14 + $0x554] ss:$24 sps:$4 sm:$0xff]  }
0x10ac   : > { %9752 = vmatprep.subr.bf16.mxu0 %v20203_v2  ;;  %v20251_v2 = vld [vmem:[%s22143_s14 + $0x584] ss:$24 sps:$4 sm:$0xff]  }
0x10af   : > { %9753 = vmatpush1.bf16.msra.mxu0 %v20201_v6 }
0x10b0   : > { %9754 = vmatprep.subr.bf16.mxu0 %v20209_v56 }
0x1165   : > { %v9233_v40 = vpop.f32.mrb[72].mxu0  ;;  %v9274_v26 = vpop.f32.mrb[88].mxu1 }
0x1166   : > { %v23554_v43 = vadd.f32 %v9233_v40, %v23448_v14  ;;  %v23557_v42 = vadd.f32 %v9274_v26, %v23451_v58  ;;  %v9235_v35 = vpop.f32.mrb[73].mxu0  ;;  %v9276_v18 = vpop.f32.mrb[89].mxu1  ;;  %v20222_v40 = vld [vmem:[%s22143_s14 + $0x510] ss:$24 sps:$4 sm:$0xff]   ;;  %v20230_v26 = vld [vmem:[%s22143_s14 + $0x544] ss:$24 sps:$4 sm:$0xff]  }
0x1167   : > { %v23560_v51 = vadd.f32 %v9235_v35, %v23454_v32  ;;  %v23563_v36 = vadd.f32 %v9276_v18, %v23457_v63  ;;  %v9237_v38 = vpop.f32.mrb[74].mxu0  ;;  %v9278_v45 = vpop.f32.mrb[90].mxu1  ;;  %v20228_v35 = vld [vmem:[%s22143_s14 + $0x540] ss:$24 sps:$4 sm:$0xff]   ;;  %v20233_v18 = vld [vmem:[%s22143_s14 + $0x574] ss:$24 sps:$4 sm:$0xff]  }
0x1168   : > { %v9238_v53 = vpop.f32.mrb[75].mxu0  ;;  %v9279_v46 = vpop.f32.mrb[91].mxu1  ;;  %v20231_v38 = vld [vmem:[%s22143_s14 + $0x570] ss:$24 sps:$4 sm:$0xff]   ;;  %v20236_v45 = vld [vmem:[%s22143_s14 + $0x494] ss:$24 sps:$4 sm:$0xff]  }
0x116d   : > { %v9400_v37 = vpop.f32.mrb[92].mxu1 }
0x116e   : > { %v9404_v47 = vmul.f32 0.10206208, %v9400_v37  ;;  %v18386_v61 = vpop.f32.mrb[93].mxu1  ;;  %v20234_v37 = vld [vmem:[%s22143_s14 + $0x490] ss:$24 sps:$4 sm:$0xff]  }
0x1170   : > { %v9405_v14 = vsel %vm7334_vm3, %v9404_v47, -inf }
0x1171   : > { %9406 = vmax.xlane.f32.xlu1 %v9405_v14  ;;  %v20239_v14 = vld [vmem:[%s22143_s14 + $0x4c4] ss:$24 sps:$4 sm:$0xff]  }
0x117d   : > { %v9315_v58 = vpop.f32.mrb[76].mxu0 }
0x117e   : > { %v23567_v50 = vadd.f32 %v9315_v58, %v23461_v4  ;;  %v9317_v32 = vpop.f32.mrb[77].mxu0  ;;  %v9848_v58 = vpop.permute.xlu0 %9847 }
0x117f   : > { %v23570_v63 = vadd.f32 %v9317_v32, %v23464_v23  ;;  %v9319_v54 = vpop.f32.mrb[78].mxu0  ;;  %v23578_v23 = vadd.f32 %v7185_v12, %v22785_v60  ;;  %v20207_v60 = vld [vmem:[%s22143_s14 + $0x4e8] ss:$24 sps:$4 sm:$0xff]  }
0x1180   : > { %v9320_v57 = vpop.f32.mrb[79].mxu0  ;;  %9755 = vmatpush1.bf16.msra.mxu0 %v20207_v60  ;;  %v20237_v54 = vld [vmem:[%s22143_s14 + $0x4c0] ss:$24 sps:$4 sm:$0xff]  }
0x1181   : > { %9756 = vmatprep.subr.bf16.mxu0 %v20215_v16  ;;  %v20242_v57 = vld [vmem:[%s22143_s14 + $0x4f4] ss:$24 sps:$4 sm:$0xff]   ;;  %v20243_v12 = vld [vmem:[%s22143_s14 + $0x520] ss:$24 sps:$4 sm:$0xff]  }
0x1184   : > { %9757 = vmatpush1.bf16.msra.mxu0 %v20213_v7 }
0x1185   : > { %9758 = vmatprep.subr.bf16.mxu0 %v20221_v8 }
0x1188   : > { %9759 = vmatpush1.bf16.msra.mxu0 %v20219_v10 }
0x11fe   : > { %v9407_v5 = vpop.xlane.xlu1 %9406 }
0x11ff   : > { %v9408_v59 = vsub.f32 %v9404_v47, %v9407_v5 }
0x1201   : > { %v9409_v24 = vmul.f32 1.442695, %v9408_v59  ;;  %v20240_v59 = vld [vmem:[%s22143_s14 + $0x4f0] ss:$24 sps:$4 sm:$0xff]  }
0x1203   : > { %21294 = vpow2.f32 %v9409_v24  ;;  %v9840_v24 = vpop.permute.xlu0 %9839 }
0x120d   : > { %v21295_v0 = vpop.eup %21294 }
0x120e   : > { %v9411_v4 = vsel %vm7334_vm3, %v21295_v0, 0.0 }
0x120f   : > { %9412 = vadd.xlane.f32.xlu1 %v9411_v4 }
0x1220   : > { %9845 = vrot.lane.b32.xlu1 %v23522_v11, %s21704_s26  ;;  %v20227_v11 = vld [vmem:[%s22143_s14 + $0x57c] ss:$24 sps:$4 sm:$0xff]  }
0x1221   : > { %9760 = vmatprep.subr.bf16.mxu0 %v20227_v11 }
0x1222   : > { %9761 = vmatpush1.bf16.msra.mxu0 %v20225_v49 }
0x1223   : > { %18392 = vmatprep.subr.mxu0 %v21705_v22 }
0x1224   : > { %9841 = vrot.lane.b32.xlu1 %v23578_v23, %s21704_s26 }
0x129c   : > { %v9413_v17 = vpop.xlane.xlu1 %9412 }
0x129d   : > { %21296 = vrcp.f32 %v9413_v17 }
0x12a0   : > { %v9846_v53 = vpop.permute.xlu1 %9845 }
0x12a1   : > { %v9849_v32 = vsel %vm7461_vm4, %v9846_v53, %v9848_v58  ;;  %v20254_v53 = vld [vmem:[%s22143_s14 + $0x5ac] ss:$24 sps:$4 sm:$0xff]   ;;  %v20273_v58 = vld [vmem:[%s22143_s14 + $0x668] ss:$24 sps:$4 sm:$0xff]  }
0x12a4   : > { %v9842_v5 = vpop.permute.xlu1 %9841 }
0x12a5   : > { %v9843_v4 = vsel %vm7461_vm4, %v9840_v24, %v9842_v5  ;;  %v20260_v5 = vld [vmem:[%s22143_s14 + $0x5a4] ss:$24 sps:$4 sm:$0xff]  }
0x12a7   : > { %v21297_v48 = vpop.eup %21296 }
0x12a8   : > { %v9415_v27 = vmul.f32 %v21297_v48, %v21295_v0  ;;  %v20245_v0 = vld [vmem:[%s22143_s14 + $0x524] ss:$24 sps:$4 sm:$0xff]  }
0x12aa   : > { %18390 = vmatmul.mubr.msk.f32.vlgmr.msra.gmra.mrb[94].mxu1 %vm7334_vm3, %v9415_v27 }
0x12ab   : > { %9710 = vmatpush1.bf16.msra.mxu1 %v20204_v55  ;;  %9741 = vmatprep.mubr.bf16.mxu1 %v21708_v39 }
0x12ac   : > { %9711 = vmatprep.subr.bf16.mxu1 %v20212_v19 }
0x12af   : > { %9712 = vmatpush1.bf16.msra.mxu1 %v20210_v28 }
0x12b0   : > { %9713 = vmatprep.subr.bf16.mxu1 %v20218_v52 }
0x12b3   : > { %9714 = vmatpush1.bf16.msra.mxu1 %v20216_v31 }
0x12b4   : > { %9715 = vmatprep.subr.bf16.mxu1 %v20224_v29 }
0x12b7   : > { %9716 = vmatpush1.bf16.msra.mxu1 %v20222_v40 }
0x12b8   : > { %9717 = vmatprep.subr.bf16.mxu1 %v20230_v26 }
0x12bb   : > { %9718 = vmatpush1.bf16.msra.mxu1 %v20228_v35 }
0x12bc   : > { %9719 = vmatprep.subr.bf16.mxu1 %v20233_v18  ;;  %v23664_v18 = vld [vmem:[%s22153_s22 + $0x28] sm:$0xff] }
0x12bf   : > { %9720 = vmatpush1.bf16.msra.mxu1 %v20231_v38  ;;  %v7189_v38 = vrot.slane %v23664_v18, %v22873_v41 }
0x12c0   : > { %9791 = vmatprep.subr.bf16.mxu1 %v20236_v45 }
0x137d   : > { %v9485_v46 = vpop.f32.mrb[94].mxu1 }
0x137e   : > { %v9489_v47 = vpack.c.bf16 %v9485_v46, %v9485_v46  ;;  %v18391_v61 = vpop.f32.mrb[95].mxu1  ;;  %v20257_v46 = vld [vmem:[%s22143_s14 + $0x5dc] ss:$24 sps:$4 sm:$0xff]  }
0x137f   : > { %v20267_v61 = vld [vmem:[%s22143_s14 + $0x638] ss:$24 sps:$4 sm:$0xff]  }
0x1380   : > { %17496 = vmatmul.mubr.msk.bf16.vlgmr.msra.gmra.mrb[96].mxu1 %vm7256_vm2, %v9489_v47  ;;  %17497 = vmatmul.mubr.msk.bf16.vlgmr.msra.gmra.mrb[80].mxu0 %vm7256_vm2, %v9489_v47 }
0x1381   : > { %9792 = vmatpush1.bf16.msra.mxu1 %v20234_v37  ;;  %18393 = vmatpush3.xpose.msk.msra.mxu0 %vm7256_vm2, %v9849_v32  ;;  %v20263_v37 = vld [vmem:[%s22143_s14 + $0x60c] ss:$24 sps:$4 sm:$0xff]   ;;  %v20281_v32 = vld [vmem:[%s22143_s14 + $0x69c] ss:$24 sps:$4 sm:$0xff]  }
0x1382   : > { %9793 = vmatprep.subr.bf16.mxu1 %v20239_v14  ;;  %18394 = vmatprep.mubr.msk.f32.mxu0 %vm21706_vm1, %v21705_v22  ;;  %v20275_v14 = vld [vmem:[%s22143_s14 + $0x66c] ss:$24 sps:$4 sm:$0xff]  }
0x1383   : > { %9823 = vmatprep.mubr.bf16.mxu1 %v21708_v39  ;;  %18397 = vmatprep.subr.mxu0 %v21705_v22 }
0x1385   : > { %9794 = vmatpush1.bf16.msra.mxu1 %v20237_v54  ;;  %v20279_v54 = vld [vmem:[%s22143_s14 + $0x698] ss:$24 sps:$4 sm:$0xff]  }
0x1386   : > { %9795 = vmatprep.subr.bf16.mxu1 %v20242_v57 }
0x1388   : > { %18395 = vmatmul.mubr.msk.f32.vlgmr.msra.gmra.mrb[84].mxu0 %vm7256_vm2, %v9843_v4 }
0x1389   : > { %9796 = vmatpush1.bf16.msra.mxu1 %v20240_v59  ;;  %18399 = vmatprep.mubr.msk.f32.mxu0 %vm21706_vm1, %v21705_v22 }
0x138a   : > { %9797 = vmatprep.subr.bf16.mxu1 %v20245_v0 }
0x138d   : > { %9798 = vmatpush1.bf16.msra.mxu1 %v20243_v12  ;;  %v20258_v12 = vld [vmem:[%s22143_s14 + $0x5a0] ss:$24 sps:$4 sm:$0xff]  }
0x138e   : > { %9799 = vmatprep.subr.bf16.mxu1 %v20248_v1 }
0x1391   : > { %9800 = vmatpush1.bf16.msra.mxu1 %v20246_v30  ;;  %v20266_v30 = vld [vmem:[%s22143_s14 + $0x5d4] ss:$24 sps:$4 sm:$0xff]  }
0x1392   : > { %9801 = vmatprep.subr.bf16.mxu1 %v20251_v2  ;;  %v20264_v2 = vld [vmem:[%s22143_s14 + $0x5d0] ss:$24 sps:$4 sm:$0xff]  }
0x1395   : > { %9802 = vmatpush1.bf16.msra.mxu1 %v20249_v34  ;;  %v20272_v34 = vld [vmem:[%s22143_s14 + $0x604] ss:$24 sps:$4 sm:$0xff]  }
0x1396   : > { %10278 = vmatprep.subr.bf16.mxu1 %v20254_v53  ;;  %v20300_v53 = vld [vmem:[%s22143_s14 + $0x670] ss:$24 sps:$4 sm:$0xff]  }
0x1398   : > { %17498 = vmatmul.mubr.msk.bf16.vlgmr.msra.gmra.mrb[100].mxu1 %vm7256_vm2, %v9489_v47  ;;  %v20261_v47 = vld [vmem:[%s22143_s14 + $0x608] ss:$24 sps:$4 sm:$0xff]  }
0x1399   : > { %10310 = vmatprep.mubr.bf16.mxu1 %v21708_v39 }
0x1453   : > { %v9743_v6 = vpop.f32.mrb[96].mxu1  ;;  %v9784_v56 = vpop.f32.mrb[80].mxu0 }
0x1454   : > { %v23636_v60 = vadd.f32 %v9743_v6, %v23554_v43  ;;  %v23639_v16 = vadd.f32 %v9784_v56, %v23557_v42  ;;  %v9745_v7 = vpop.f32.mrb[97].mxu1  ;;  %v9786_v8 = vpop.f32.mrb[81].mxu0  ;;  %v20270_v6 = vld [vmem:[%s22143_s14 + $0x600] ss:$24 sps:$4 sm:$0xff]   ;;  %v20278_v56 = vld [vmem:[%s22143_s14 + $0x634] ss:$24 sps:$4 sm:$0xff]  }
0x1455   : > { %v23642_v10 = vadd.f32 %v9745_v7, %v23560_v51  ;;  %v23645_v11 = vadd.f32 %v9786_v8, %v23563_v36  ;;  %v9747_v49 = vpop.f32.mrb[98].mxu1  ;;  %v9788_v17 = vpop.f32.mrb[82].mxu0  ;;  %v20276_v7 = vld [vmem:[%s22143_s14 + $0x630] ss:$24 sps:$4 sm:$0xff]   ;;  %v20284_v8 = vld [vmem:[%s22143_s14 + $0x664] ss:$24 sps:$4 sm:$0xff]  }
0x1456   : > { %v9748_v48 = vpop.f32.mrb[99].mxu1  ;;  %v9789_v55 = vpop.f32.mrb[83].mxu0  ;;  %v20282_v49 = vld [vmem:[%s22143_s14 + $0x660] ss:$24 sps:$4 sm:$0xff]   ;;  %v20287_v17 = vld [vmem:[%s22143_s14 + $0x694] ss:$24 sps:$4 sm:$0xff]  }
0x1457   : > { %v20285_v48 = vld [vmem:[%s22143_s14 + $0x690] ss:$24 sps:$4 sm:$0xff]   ;;  %v20290_v55 = vld [vmem:[%s22143_s14 + $0x5b4] ss:$24 sps:$4 sm:$0xff]  }
0x145b   : > { %v9920_v27 = vpop.f32.mrb[84].mxu0 }
0x145c   : > { %v9924_v19 = vmul.f32 0.10206208, %v9920_v27  ;;  %v18396_v28 = vpop.f32.mrb[85].mxu0 }
0x145d   : > { %v20288_v28 = vld [vmem:[%s22143_s14 + $0x5b0] ss:$24 sps:$4 sm:$0xff]  }
0x145e   : > { %v9925_v43 = vsel %vm7334_vm3, %v9924_v19, -inf }
0x145f   : > { %9926 = vmax.xlane.f32.xlu0 %v9925_v43 }
0x146b   : > { %v9825_v42 = vpop.f32.mrb[100].mxu1 }
0x146c   : > { %v23649_v52 = vadd.f32 %v9825_v42, %v23567_v50  ;;  %v9827_v51 = vpop.f32.mrb[101].mxu1 }
0x146d   : > { %v23652_v31 = vadd.f32 %v9827_v51, %v23570_v63  ;;  %v9829_v36 = vpop.f32.mrb[102].mxu1  ;;  %v20293_v51 = vld [vmem:[%s22143_s14 + $0x5e4] ss:$24 sps:$4 sm:$0xff]  }
0x146e   : > { %v9830_v29 = vpop.f32.mrb[103].mxu1 }
0x1475   : > { %9938 = vrot.lane.b32.xlu0 %v23539_v25, %s21704_s26  ;;  %v7245_v25 = vrot.slane %v23468_v21, %v23203_v13  ;;  %v23681_v21 = vadd.f32 %v7189_v38, %v22790_v62  ;;  %v20269_v62 = vld [vmem:[%s22143_s14 + $0x63c] ss:$24 sps:$4 sm:$0xff]   ;;  %v20297_v38 = vld [vmem:[%s22143_s14 + $0x640] ss:$24 sps:$4 sm:$0xff]  }
0x1479   : > { %10373 = vrot.lane.b32.xlu0 %v23480_v44, %s21707_s21  ;;  %v7219_v44 = vrot.slane %v23664_v18, %v22859_v15 }
0x147b   : > { %v23676_v45 = vadd.f32 %v7219_v44, %v23112_v33  ;;  %v20255_v33 = vld [vmem:[%s22143_s14 + $0x5d8] ss:$24 sps:$4 sm:$0xff]  }
0x147d   : > { %10367 = vrot.lane.b32.xlu0 %v23578_v23, %s21707_s21  ;;  %v23669_v23 = vadd.f32 %v7245_v25, %v23218_v3  ;;  %v20252_v3 = vld [vmem:[%s22143_s14 + $0x5a8] ss:$24 sps:$4 sm:$0xff]   ;;  %v20299_v25 = vld [vmem:[%s22143_s14 + $0x644] ss:$24 sps:$4 sm:$0xff]  }
0x147e   : > { %10279 = vmatpush1.bf16.msra.mxu1 %v20252_v3  ;;  %v20302_v3 = vld [vmem:[%s22143_s14 + $0x674] ss:$24 sps:$4 sm:$0xff]  }
0x147f   : > { %10280 = vmatprep.subr.bf16.mxu1 %v20257_v46  ;;  %v20305_v46 = vld [vmem:[%s22143_s14 + $0x6a4] ss:$24 sps:$4 sm:$0xff]  }
0x1482   : > { %10281 = vmatpush1.bf16.msra.mxu1 %v20255_v33  ;;  %v20303_v33 = vld [vmem:[%s22143_s14 + $0x6a0] ss:$24 sps:$4 sm:$0xff]  }
0x1483   : > { %10282 = vmatprep.subr.bf16.mxu1 %v20263_v37 }
0x1486   : > { %10283 = vmatpush1.bf16.msra.mxu1 %v20261_v47 }
0x1487   : > { %10284 = vmatprep.subr.bf16.mxu1 %v20269_v62 }
0x148a   : > { %10285 = vmatpush1.bf16.msra.mxu1 %v20267_v61 }
0x148b   : > { %10286 = vmatprep.subr.bf16.mxu1 %v20275_v14 }
0x148e   : > { %10287 = vmatpush1.bf16.msra.mxu1 %v20273_v58 }
0x148f   : > { %10288 = vmatprep.subr.bf16.mxu1 %v20281_v32 }
0x1492   : > { %10289 = vmatpush1.bf16.msra.mxu1 %v20279_v54 }
0x1493   : > { %18402 = vmatprep.subr.mxu1 %v21705_v22 }
0x14ec   : > { %v9927_v40 = vpop.xlane.xlu0 %9926 }
0x14ed   : > { %v9928_v26 = vsub.f32 %v9924_v19, %v9927_v40  ;;  %v20291_v40 = vld [vmem:[%s22143_s14 + $0x5e0] ss:$24 sps:$4 sm:$0xff]  }
0x14ef   : > { %v9929_v50 = vmul.f32 1.442695, %v9928_v26  ;;  %v20296_v26 = vld [vmem:[%s22143_s14 + $0x614] ss:$24 sps:$4 sm:$0xff]  }
0x14f0   : > { %v9939_v59 = vpop.permute.xlu0 %9938 }
0x14f1   : > { %21298 = vpow2.f32 %v9929_v50 }
0x14f4   : > { %v10374_v36 = vpop.permute.xlu0 %10373 }
0x14fb   : > { %v21299_v63 = vpop.eup %21298 }
0x14fc   : > { %v9931_v35 = vsel %vm7334_vm3, %v21299_v63, 0.0 }
0x14fd   : > { %9932 = vadd.xlane.f32.xlu1 %v9931_v35  ;;  %v10368_v35 = vpop.permute.xlu0 %10367 }
0x150e   : > { %9940 = vrot.lane.b32.xlu1 %v23669_v23, %s21704_s26 }
0x1512   : > { %10375 = vrot.lane.b32.xlu1 %v23676_v45, %s21707_s21 }
0x1516   : > { %10369 = vrot.lane.b32.xlu1 %v23681_v21, %s21707_s21 }
0x158a   : > { %v9933_v57 = vpop.xlane.xlu1 %9932 }
0x158b   : > { %21300 = vrcp.f32 %v9933_v57 }
0x158e   : > { %v9941_v24 = vpop.permute.xlu1 %9940 }
0x158f   : > { %v9942_v0 = vsel %vm7461_vm4, %v9939_v59, %v9941_v24 }
0x1590   : > { %18398 = vmatpush3.msra.mxu0 %v9942_v0 }
0x1591   : > { %10237 = vmatprep.subr.bf16.mxu0 %v20260_v5 }
0x1592   : > { %v10376_v27 = vpop.permute.xlu1 %10375 }
0x1593   : > { %v10377_v29 = vsel %vm8290_vm5, %v10374_v36, %v10376_v27  ;;  %v20327_v27 = vld [vmem:[%s22143_s14 + $0x788] ss:$24 sps:$4 sm:$0xff]  }
0x1595   : > { %v21301_v4 = vpop.eup %21300 }
0x1596   : > { %v9935_v1 = vmul.f32 %v21301_v4, %v21299_v63  ;;  %v10370_v50 = vpop.permute.xlu1 %10369  ;;  %v20294_v63 = vld [vmem:[%s22143_s14 + $0x610] ss:$24 sps:$4 sm:$0xff]  }
0x1597   : > { %v10371_v44 = vsel %vm8290_vm5, %v10368_v35, %v10370_v50  ;;  %v20318_v35 = vld [vmem:[%s22143_s14 + $0x6f0] ss:$24 sps:$4 sm:$0xff]  }
0x1598   : > { %18400 = vmatmul.mubr.msk.f32.vlgmr.msra.gmra.mrb[86].mxu0 %vm7334_vm3, %v9935_v1 }
0x1599   : > { %10238 = vmatpush1.bf16.msra.mxu0 %v20258_v12  ;;  %10269 = vmatprep.mubr.bf16.mxu0 %v21708_v39 }
0x159a   : > { %10239 = vmatprep.subr.bf16.mxu0 %v20266_v30 }
0x159d   : > { %10240 = vmatpush1.bf16.msra.mxu0 %v20264_v2 }
0x159e   : > { %10241 = vmatprep.subr.bf16.mxu0 %v20272_v34 }
0x15a1   : > { %10242 = vmatpush1.bf16.msra.mxu0 %v20270_v6 }
0x15a2   : > { %10243 = vmatprep.subr.bf16.mxu0 %v20278_v56 }
0x15a5   : > { %10244 = vmatpush1.bf16.msra.mxu0 %v20276_v7  ;;  %v7249_v7 = vrot.slane %v23664_v18, %v23203_v13  ;;  %v20317_v13 = vld [vmem:[%s22143_s14 + $0x72c] ss:$24 sps:$4 sm:$0xff]  }
0x15a6   : > { %10245 = vmatprep.subr.bf16.mxu0 %v20284_v8  ;;  %v20308_v8 = vld [vmem:[%s22143_s14 + $0x6cc] ss:$24 sps:$4 sm:$0xff]  }
0x15a9   : > { %10246 = vmatpush1.bf16.msra.mxu0 %v20282_v49  ;;  %v20311_v49 = vld [vmem:[%s22143_s14 + $0x6fc] ss:$24 sps:$4 sm:$0xff]  }
0x15aa   : > { %10247 = vmatprep.subr.bf16.mxu0 %v20287_v17  ;;  %v20309_v17 = vld [vmem:[%s22143_s14 + $0x6f8] ss:$24 sps:$4 sm:$0xff]  }
0x15ad   : > { %10248 = vmatpush1.bf16.msra.mxu0 %v20285_v48  ;;  %v20323_v48 = vld [vmem:[%s22143_s14 + $0x75c] ss:$24 sps:$4 sm:$0xff]  }
0x15ae   : > { %10319 = vmatprep.subr.bf16.mxu0 %v20290_v55  ;;  %v20321_v55 = vld [vmem:[%s22143_s14 + $0x758] ss:$24 sps:$4 sm:$0xff]  }
0x166b   : > { %v10013_v19 = vpop.f32.mrb[86].mxu0 }
0x166c   : > { %v10017_v43 = vpack.c.bf16 %v10013_v19, %v10013_v19  ;;  %v18401_v42 = vpop.f32.mrb[87].mxu0  ;;  %v20335_v19 = vld [vmem:[%s22143_s14 + $0x7bc] ss:$24 sps:$4 sm:$0xff]  }
0x166d   : > { %v20314_v42 = vld [vmem:[%s22143_s14 + $0x6c4] ss:$24 sps:$4 sm:$0xff]  }
0x166e   : > { %17538 = vmatmul.mubr.msk.bf16.vlgmr.msra.gmra.mrb[88].mxu0 %vm7256_vm2, %v10017_v43  ;;  %17539 = vmatmul.mubr.msk.bf16.vlgmr.msra.gmra.mrb[104].mxu1 %vm7256_vm2, %v10017_v43 }
0x166f   : > { %10320 = vmatpush1.bf16.msra.mxu0 %v20288_v28  ;;  %18403 = vmatpush3.xpose.msk.msra.mxu1 %vm7256_vm2, %v10377_v29  ;;  %v20333_v28 = vld [vmem:[%s22143_s14 + $0x7b8] ss:$24 sps:$4 sm:$0xff]  }
0x1670   : > { %10321 = vmatprep.subr.bf16.mxu0 %v20293_v51  ;;  %18404 = vmatprep.mubr.msk.f32.mxu1 %vm21706_vm1, %v21705_v22 }
0x1671   : > { %10351 = vmatprep.mubr.bf16.mxu0 %v21708_v39  ;;  %18407 = vmatprep.subr.mxu1 %v21705_v22 }
0x1673   : > { %10322 = vmatpush1.bf16.msra.mxu0 %v20291_v40 }
0x1674   : > { %10323 = vmatprep.subr.bf16.mxu0 %v20296_v26  ;;  %v20312_v26 = vld [vmem:[%s22143_s14 + $0x6c0] ss:$24 sps:$4 sm:$0xff]  }
0x1676   : > { %18405 = vmatmul.mubr.msk.f32.vlgmr.msra.gmra.mrb[108].mxu1 %vm7256_vm2, %v10371_v44  ;;  %v20324_v44 = vld [vmem:[%s22143_s14 + $0x720] ss:$24 sps:$4 sm:$0xff]  }
0x1677   : > { %10324 = vmatpush1.bf16.msra.mxu0 %v20294_v63  ;;  %18409 = vmatprep.mubr.msk.f32.mxu1 %vm21706_vm1, %v21705_v22  ;;  %v20320_v63 = vld [vmem:[%s22143_s14 + $0x6f4] ss:$24 sps:$4 sm:$0xff]  }
0x1678   : > { %10325 = vmatprep.subr.bf16.mxu0 %v20299_v25  ;;  %v20326_v25 = vld [vmem:[%s22143_s14 + $0x724] ss:$24 sps:$4 sm:$0xff]  }
0x167b   : > { %10326 = vmatpush1.bf16.msra.mxu0 %v20297_v38  ;;  %v20332_v38 = vld [vmem:[%s22143_s14 + $0x754] ss:$24 sps:$4 sm:$0xff]  }
0x167c   : > { %10327 = vmatprep.subr.bf16.mxu0 %v20302_v3  ;;  %v20330_v3 = vld [vmem:[%s22143_s14 + $0x750] ss:$24 sps:$4 sm:$0xff]  }
0x167f   : > { %10328 = vmatpush1.bf16.msra.mxu0 %v20300_v53  ;;  %v20338_v53 = vld [vmem:[%s22143_s14 + $0x784] ss:$24 sps:$4 sm:$0xff]  }
0x1680   : > { %10329 = vmatprep.subr.bf16.mxu0 %v20305_v46  ;;  %v20336_v46 = vld [vmem:[%s22143_s14 + $0x780] ss:$24 sps:$4 sm:$0xff]  }
0x1683   : > { %10330 = vmatpush1.bf16.msra.mxu0 %v20303_v33  ;;  %v20341_v33 = vld [vmem:[%s22143_s14 + $0x7b4] ss:$24 sps:$4 sm:$0xff]  }
0x1684   : > { %10805 = vmatprep.subr.bf16.mxu0 %v20308_v8 }
0x1686   : > { %17540 = vmatmul.mubr.msk.bf16.vlgmr.msra.gmra.mrb[92].mxu0 %vm7256_vm2, %v10017_v43 }
0x1687   : > { %10837 = vmatprep.mubr.bf16.mxu0 %v21708_v39 }
0x1741   : > { %v10271_v37 = vpop.f32.mrb[88].mxu0  ;;  %v10312_v47 = vpop.f32.mrb[104].mxu1 }
0x1742   : > { %v23740_v62 = vadd.f32 %v10271_v37, %v23636_v60  ;;  %v23743_v61 = vadd.f32 %v10312_v47, %v23639_v16  ;;  %v10273_v14 = vpop.f32.mrb[89].mxu0  ;;  %v10314_v58 = vpop.f32.mrb[105].mxu1  ;;  %v20339_v37 = vld [vmem:[%s22143_s14 + $0x7b0] ss:$24 sps:$4 sm:$0xff]   ;;  %v20344_v47 = vld [vmem:[%s22143_s14 + $0x6d4] ss:$24 sps:$4 sm:$0xff]  }
0x1743   : > { %v23746_v32 = vadd.f32 %v10273_v14, %v23642_v10  ;;  %v23749_v54 = vadd.f32 %v10314_v58, %v23645_v11  ;;  %v10275_v57 = vpop.f32.mrb[90].mxu0  ;;  %v10316_v5 = vpop.f32.mrb[106].mxu1  ;;  %v20342_v58 = vld [vmem:[%s22143_s14 + $0x6d0] ss:$24 sps:$4 sm:$0xff]  }
0x1744   : > { %v10276_v59 = vpop.f32.mrb[91].mxu0  ;;  %v10317_v24 = vpop.f32.mrb[107].mxu1 }
0x1745   : > { %v20347_v59 = vld [vmem:[%s22143_s14 + $0x704] ss:$24 sps:$4 sm:$0xff]  }
0x1749   : > { %v10448_v0 = vpop.f32.mrb[108].mxu1 }
0x174a   : > { %v10452_v4 = vmul.f32 0.10206208, %v10448_v0  ;;  %v18406_v12 = vpop.f32.mrb[109].mxu1  ;;  %v20345_v0 = vld [vmem:[%s22143_s14 + $0x700] ss:$24 sps:$4 sm:$0xff]  }
0x174b   : > { %v20348_v12 = vld [vmem:[%s22143_s14 + $0x730] ss:$24 sps:$4 sm:$0xff]  }
0x174c   : > { %v10453_v60 = vsel %vm7334_vm3, %v10452_v4, -inf }
0x174d   : > { %10454 = vmax.xlane.f32.xlu0 %v10453_v60  ;;  %v20353_v60 = vld [vmem:[%s22143_s14 + $0x764] ss:$24 sps:$4 sm:$0xff]  }
0x1759   : > { %v10353_v16 = vpop.f32.mrb[92].mxu0 }
0x175a   : > { %v23753_v1 = vadd.f32 %v10353_v16, %v23649_v52  ;;  %v10355_v30 = vpop.f32.mrb[93].mxu0 }
0x175b   : > { %v23756_v10 = vadd.f32 %v10355_v30, %v23652_v31  ;;  %v10357_v11 = vpop.f32.mrb[94].mxu0  ;;  %v20351_v30 = vld [vmem:[%s22143_s14 + $0x760] ss:$24 sps:$4 sm:$0xff]  }
0x175c   : > { %v10358_v2 = vpop.f32.mrb[95].mxu0  ;;  %v20356_v11 = vld [vmem:[%s22143_s14 + $0x794] ss:$24 sps:$4 sm:$0xff]  }
0x175d   : > { %v20354_v2 = vld [vmem:[%s22143_s14 + $0x790] ss:$24 sps:$4 sm:$0xff]  }
0x1763   : > { %10465 = vrot.lane.b32.xlu0 %v23669_v23, %s21707_s21  ;;  %v23766_v23 = vadd.f32 %v7249_v7, %v23220_v20  ;;  %v20315_v20 = vld [vmem:[%s22143_s14 + $0x728] ss:$24 sps:$4 sm:$0xff]  }
0x1767   : > { %10895 = vrot.lane.b32.xlu0 %v23676_v45, %s21709_s10  ;;  %v20306_v45 = vld [vmem:[%s22143_s14 + $0x6c8] ss:$24 sps:$4 sm:$0xff]  }
0x1768   : > { %10806 = vmatpush1.bf16.msra.mxu0 %v20306_v45 }
0x1769   : > { %10807 = vmatprep.subr.bf16.mxu0 %v20311_v49 }
0x176c   : > { %10808 = vmatpush1.bf16.msra.mxu0 %v20309_v17 }
0x176d   : > { %10809 = vmatprep.subr.bf16.mxu0 %v20317_v13 }
0x1770   : > { %10810 = vmatpush1.bf16.msra.mxu0 %v20315_v20 }
0x1771   : > { %10811 = vmatprep.subr.bf16.mxu0 %v20323_v48 }
0x1774   : > { %10812 = vmatpush1.bf16.msra.mxu0 %v20321_v55 }
0x17da   : > { %v10455_v34 = vpop.xlane.xlu0 %10454 }
0x17db   : > { %v10456_v6 = vsub.f32 %v10452_v4, %v10455_v34  ;;  %v20350_v4 = vld [vmem:[%s22143_s14 + $0x734] ss:$24 sps:$4 sm:$0xff]   ;;  %v20359_v34 = vld [vmem:[%s22143_s14 + $0x7c4] ss:$24 sps:$4 sm:$0xff]  }
0x17dd   : > { %v10457_v52 = vmul.f32 1.442695, %v10456_v6  ;;  %v20357_v6 = vld [vmem:[%s22143_s14 + $0x7c0] ss:$24 sps:$4 sm:$0xff]  }
0x17de   : > { %v10466_v51 = vpop.permute.xlu0 %10465 }
0x17df   : > { %21302 = vpow2.f32 %v10457_v52 }
0x17e2   : > { %v10896_v24 = vpop.permute.xlu0 %10895 }
0x17e9   : > { %v21303_v56 = vpop.eup %21302 }
0x17ea   : > { %v10459_v31 = vsel %vm7334_vm3, %v21303_v56, 0.0 }
0x17eb   : > { %10460 = vadd.xlane.f32.xlu1 %v10459_v31 }
0x17fc   : > { %10467 = vrot.lane.b32.xlu1 %v23766_v23, %s21707_s21 }
0x1800   : > { %10893 = vrot.lane.b32.xlu1 %v23681_v21, %s21709_s10  ;;  %v20329_v21 = vld [vmem:[%s22143_s14 + $0x78c] ss:$24 sps:$4 sm:$0xff]  }
0x1801   : > { %10813 = vmatprep.subr.bf16.mxu0 %v20329_v21 }
0x1802   : > { %10814 = vmatpush1.bf16.msra.mxu0 %v20327_v27 }
0x1803   : > { %10815 = vmatprep.subr.bf16.mxu0 %v20335_v19 }
0x1806   : > { %10816 = vmatpush1.bf16.msra.mxu0 %v20333_v28 }
0x1807   : > { %18412 = vmatprep.subr.mxu0 %v21705_v22 }
0x1878   : > { %v10461_v43 = vpop.xlane.xlu1 %10460 }
0x1879   : > { %21304 = vrcp.f32 %v10461_v43 }
0x187c   : > { %v10468_v36 = vpop.permute.xlu1 %10467 }
0x187d   : > { %v10469_v29 = vsel %vm8290_vm5, %v10466_v51, %v10468_v36 }
0x187e   : > { %18408 = vmatpush3.msra.mxu1 %v10469_v29 }
0x187f   : > { %10764 = vmatprep.subr.bf16.mxu1 %v20314_v42 }
0x1880   : > { %v10894_v16 = vpop.permute.xlu1 %10893 }
0x1883   : > { %v21305_v40 = vpop.eup %21304 }
0x1884   : > { %v10463_v50 = vmul.f32 %v21305_v40, %v21303_v56 }
0x1886   : > { %18410 = vmatmul.mubr.msk.f32.vlgmr.msra.gmra.mrb[110].mxu1 %vm7334_vm3, %v10463_v50  ;;  %v20365_v50 = vld [vmem:[%s22143_s14 + $0x7ec] ss:$24 sps:$4 sm:$0xff]  }
0x1887   : > { %10765 = vmatpush1.bf16.msra.mxu1 %v20312_v26  ;;  %10796 = vmatprep.mubr.bf16.mxu1 %v21708_v39  ;;  %v20363_v26 = vld [vmem:[%s22143_s14 + $0x7e8] ss:$24 sps:$4 sm:$0xff]  }
0x1888   : > { %10766 = vmatprep.subr.bf16.mxu1 %v20320_v63  ;;  %v20371_v63 = vld [vmem:[%s22143_s14 + $0x81c] ss:$24 sps:$4 sm:$0xff]  }
0x188b   : > { %10767 = vmatpush1.bf16.msra.mxu1 %v20318_v35  ;;  %v20375_v35 = vld [vmem:[%s22143_s14 + $0x848] ss:$24 sps:$4 sm:$0xff]  }
0x188c   : > { %10768 = vmatprep.subr.bf16.mxu1 %v20326_v25  ;;  %v20377_v25 = vld [vmem:[%s22143_s14 + $0x84c] ss:$24 sps:$4 sm:$0xff]  }
0x188f   : > { %10769 = vmatpush1.bf16.msra.mxu1 %v20324_v44  ;;  %v20381_v44 = vld [vmem:[%s22143_s14 + $0x878] ss:$24 sps:$4 sm:$0xff]  }
0x1890   : > { %10770 = vmatprep.subr.bf16.mxu1 %v20332_v38  ;;  %v20383_v38 = vld [vmem:[%s22143_s14 + $0x87c] ss:$24 sps:$4 sm:$0xff]  }
0x1893   : > { %10771 = vmatpush1.bf16.msra.mxu1 %v20330_v3  ;;  %v20387_v3 = vld [vmem:[%s22143_s14 + $0x8a8] ss:$24 sps:$4 sm:$0xff]  }
0x1894   : > { %10772 = vmatprep.subr.bf16.mxu1 %v20338_v53  ;;  %v20389_v53 = vld [vmem:[%s22143_s14 + $0x8ac] ss:$24 sps:$4 sm:$0xff]  }
0x1897   : > { %10773 = vmatpush1.bf16.msra.mxu1 %v20336_v46  ;;  %v20393_v46 = vld [vmem:[%s22143_s14 + $0x8d8] ss:$24 sps:$4 sm:$0xff]  }
0x1898   : > { %10774 = vmatprep.subr.bf16.mxu1 %v20341_v33  ;;  %v20395_v33 = vld [vmem:[%s22143_s14 + $0x8dc] ss:$24 sps:$4 sm:$0xff]  }
0x189b   : > { %10775 = vmatpush1.bf16.msra.mxu1 %v20339_v37 }
0x189c   : > { %10846 = vmatprep.subr.bf16.mxu1 %v20344_v47 }
0x1959   : > { %v10540_v14 = vpop.f32.mrb[110].mxu1 }
0x195a   : > { %v10544_v57 = vpack.c.bf16 %v10540_v14, %v10540_v14  ;;  %v18411_v5 = vpop.f32.mrb[111].mxu1  ;;  %v20360_v14 = vld [vmem:[%s22143_s14 + $0x7e0] ss:$24 sps:$4 sm:$0xff]  }
0x195b   : > { %v20366_v5 = vld [vmem:[%s22143_s14 + $0x810] ss:$24 sps:$4 sm:$0xff]  }
0x195c   : > { %17580 = vmatmul.mubr.msk.bf16.vlgmr.msra.gmra.mrb[112].mxu1 %vm7256_vm2, %v10544_v57  ;;  %17581 = vmatmul.mubr.msk.bf16.vlgmr.msra.gmra.mrb[96].mxu0 %vm7256_vm2, %v10544_v57 }
0x195d   : > { %10847 = vmatpush1.bf16.msra.mxu1 %v20342_v58  ;;  %18413 = vmatpush3.xpose.msk.msra.mxu0 %vm7256_vm2, %v10896_v24  ;;  %v20372_v24 = vld [vmem:[%s22143_s14 + $0x840] ss:$24 sps:$4 sm:$0xff]  }
0x195e   : > { %10848 = vmatprep.subr.bf16.mxu1 %v20347_v59  ;;  %18414 = vmatprep.mubr.msk.f32.mxu0 %vm21706_vm1, %v21705_v22  ;;  %v20374_v59 = vld [vmem:[%s22143_s14 + $0x844] ss:$24 sps:$4 sm:$0xff]  }
0x195f   : > { %10878 = vmatprep.mubr.bf16.mxu1 %v21708_v39  ;;  %18417 = vmatprep.subr.mxu0 %v21705_v22 }
0x1961   : > { %10849 = vmatpush1.bf16.msra.mxu1 %v20345_v0  ;;  %v20380_v0 = vld [vmem:[%s22143_s14 + $0x874] ss:$24 sps:$4 sm:$0xff]  }
0x1962   : > { %10850 = vmatprep.subr.bf16.mxu1 %v20350_v4  ;;  %v20378_v4 = vld [vmem:[%s22143_s14 + $0x870] ss:$24 sps:$4 sm:$0xff]  }
0x1964   : > { %18415 = vmatmul.mubr.msk.f32.vlgmr.msra.gmra.mrb[100].mxu0 %vm7256_vm2, %v10894_v16  ;;  %v20392_v16 = vld [vmem:[%s22143_s14 + $0x8d4] ss:$24 sps:$4 sm:$0xff]  }
0x1965   : > { %10851 = vmatpush1.bf16.msra.mxu1 %v20348_v12  ;;  %18419 = vmatprep.mubr.msk.f32.mxu0 %vm21706_vm1, %v21705_v22  ;;  %v20386_v12 = vld [vmem:[%s22143_s14 + $0x8a4] ss:$24 sps:$4 sm:$0xff]  }
0x1966   : > { %10852 = vmatprep.subr.bf16.mxu1 %v20353_v60  ;;  %v20384_v60 = vld [vmem:[%s22143_s14 + $0x8a0] ss:$24 sps:$4 sm:$0xff]  }
0x1969   : > { %10853 = vmatpush1.bf16.msra.mxu1 %v20351_v30  ;;  %v20390_v30 = vld [vmem:[%s22143_s14 + $0x8d0] ss:$24 sps:$4 sm:$0xff]  }
0x196a   : > { %10854 = vmatprep.subr.bf16.mxu1 %v20356_v11  ;;  %v20398_v11 = vld [vmem:[%s22143_s14 + $0x7f4] ss:$24 sps:$4 sm:$0xff]  }
0x196d   : > { %10855 = vmatpush1.bf16.msra.mxu1 %v20354_v2 }
0x196e   : > { %10856 = vmatprep.subr.bf16.mxu1 %v20359_v34  ;;  %v20396_v34 = vld [vmem:[%s22143_s14 + $0x7f0] ss:$24 sps:$4 sm:$0xff]  }
0x1971   : > { %10857 = vmatpush1.bf16.msra.mxu1 %v20357_v6 }
0x1972   : > { %11320 = vmatprep.subr.bf16.mxu1 %v20365_v50  ;;  %v23898_v50 = vld [vmem:[%s22153_s22 + $0x8] sm:$0xff] }
0x1974   : > { %17582 = vmatmul.mubr.msk.bf16.vlgmr.msra.gmra.mrb[116].mxu1 %vm7256_vm2, %v10544_v57  ;;  %v20368_v57 = vld [vmem:[%s22143_s14 + $0x814] ss:$24 sps:$4 sm:$0xff]  }
0x1975   : > { %11352 = vmatprep.mubr.bf16.mxu1 %v21708_v39  ;;  %11321 = vmatpush1.bf16.msra.mxu1 %v20363_v26  ;;  %v23894_v26 = vld [vmem:[%s22153_s22] sm:$0xff] }
0x1976   : > { %11322 = vmatprep.subr.bf16.mxu1 %v20371_v63  ;;  %v23902_v63 = vld [vmem:[%s22153_s22 + $0x10] sm:$0xff] }
0x1a2f   : > { %v10798_v52 = vpop.f32.mrb[112].mxu1  ;;  %v10839_v56 = vpop.f32.mrb[96].mxu0 }
0x1a30   : > { %v23825_v31 = vadd.f32 %v10798_v52, %v23740_v62  ;;  %v23828_v22 = vadd.f32 %v10839_v56, %v23743_v61  ;;  %v10800_v7 = vpop.f32.mrb[113].mxu1  ;;  %v10841_v45 = vpop.f32.mrb[97].mxu0  ;;  %v20401_v56 = vld [vmem:[%s22143_s14 + $0x824] ss:$24 sps:$4 sm:$0xff]  }
0x1a31   : > { %v23831_v8 = vadd.f32 %v10800_v7, %v23746_v32  ;;  %v23834_v49 = vadd.f32 %v10841_v45, %v23749_v54  ;;  %v10802_v17 = vpop.f32.mrb[114].mxu1  ;;  %v10843_v13 = vpop.f32.mrb[98].mxu0  ;;  %v20399_v7 = vld [vmem:[%s22143_s14 + $0x820] ss:$24 sps:$4 sm:$0xff]   ;;  %v20404_v45 = vld [vmem:[%s22143_s14 + $0x854] ss:$24 sps:$4 sm:$0xff]  }
0x1a32   : > { %v10803_v20 = vpop.f32.mrb[115].mxu1  ;;  %v10844_v48 = vpop.f32.mrb[99].mxu0  ;;  %v20402_v17 = vld [vmem:[%s22143_s14 + $0x850] ss:$24 sps:$4 sm:$0xff]   ;;  %v20407_v13 = vld [vmem:[%s22143_s14 + $0x884] ss:$24 sps:$4 sm:$0xff]  }
0x1a33   : > { %v20405_v20 = vld [vmem:[%s22143_s14 + $0x880] ss:$24 sps:$4 sm:$0xff]   ;;  %v20410_v48 = vld [vmem:[%s22143_s14 + $0x8b4] ss:$24 sps:$4 sm:$0xff]  }
0x1a37   : > { %v10967_v55 = vpop.f32.mrb[100].mxu0 }
0x1a38   : > { %v10971_v21 = vmul.f32 0.10206208, %v10967_v55  ;;  %v18416_v27 = vpop.f32.mrb[101].mxu0  ;;  %v20408_v55 = vld [vmem:[%s22143_s14 + $0x8b0] ss:$24 sps:$4 sm:$0xff]  }
0x1a39   : > { %v20411_v27 = vld [vmem:[%s22143_s14 + $0x8e0] ss:$24 sps:$4 sm:$0xff]  }
0x1a3a   : > { %v10972_v62 = vsel %vm7334_vm3, %v10971_v21, -inf }
0x1a3b   : > { %10973 = vmax.xlane.f32.xlu0 %v10972_v62 }
0x1a47   : > { %v10880_v61 = vpop.f32.mrb[116].mxu1 }
0x1a48   : > { %v23838_v19 = vadd.f32 %v10880_v61, %v23753_v1  ;;  %v10882_v32 = vpop.f32.mrb[117].mxu1 }
0x1a49   : > { %v23841_v54 = vadd.f32 %v10882_v32, %v23756_v10  ;;  %v10884_v28 = vpop.f32.mrb[118].mxu1  ;;  %v20362_v10 = vld [vmem:[%s22143_s14 + $0x7e4] ss:$24 sps:$4 sm:$0xff]  }
0x1a4a   : > { %v10885_v43 = vpop.f32.mrb[119].mxu1 }
0x1a51   : > { %10983 = vrot.lane.b32.xlu0 %v23766_v23, %s21709_s10  ;;  %v20369_v23 = vld [vmem:[%s22143_s14 + $0x818] ss:$24 sps:$4 sm:$0xff]  }
0x1a52   : > { %11323 = vmatpush1.bf16.msra.mxu1 %v20369_v23 }
0x1a53   : > { %11324 = vmatprep.subr.bf16.mxu1 %v20377_v25 }
0x1a56   : > { %11325 = vmatpush1.bf16.msra.mxu1 %v20375_v35  ;;  %v21319_v35 = vld [vmem:[#allocation2] sm:$0xff] }
0x1a57   : > { %11326 = vmatprep.subr.bf16.mxu1 %v20383_v38 }
0x1a5a   : > { %11327 = vmatpush1.bf16.msra.mxu1 %v20381_v44  ;;  %v21320_v44 = vld [vmem:[#allocation2 + $0x8] sm:$0xff] }
0x1a5b   : > { %11328 = vmatprep.subr.bf16.mxu1 %v20389_v53  ;;  %v23910_v53 = vld [vmem:[%s22153_s22 + $0x18] sm:$0xff] }
0x1a5e   : > { %11329 = vmatpush1.bf16.msra.mxu1 %v20387_v3 }
0x1a5f   : > { %11330 = vmatprep.subr.bf16.mxu1 %v20395_v33 }
0x1a62   : > { %11331 = vmatpush1.bf16.msra.mxu1 %v20393_v46 }
0x1ac8   : > { %v10974_v42 = vpop.xlane.xlu0 %10973 }
0x1ac9   : > { %v10975_v51 = vsub.f32 %v10971_v21, %v10974_v42  ;;  %v20413_v21 = vld [vmem:[%s22143_s14 + $0x8e4] ss:$24 sps:$4 sm:$0xff]  }
0x1acb   : > { %v10976_v36 = vmul.f32 1.442695, %v10975_v51 }
0x1acc   : > { %v10984_v29 = vpop.permute.xlu0 %10983 }
0x1acd   : > { %21306 = vpow2.f32 %v10976_v36  ;;  %18418 = vmatpush3.msra.mxu0 %v10984_v29 }
0x1ace   : > { %11279 = vmatprep.subr.bf16.mxu0 %v20362_v10  ;;  %v11410_v10 = vsub.s32 3, %v22852_v9 }
0x1ad0   : > { %v11423_v46 = vrot.slane %v23910_v53, %v11410_v10 }
0x1ad7   : > { %v21307_v1 = vpop.eup %21306 }
0x1ad8   : > { %v10978_v40 = vsel %vm7334_vm3, %v21307_v1, 0.0 }
0x1ad9   : > { %10979 = vadd.xlane.f32.xlu1 %v10978_v40 }
0x1b66   : > { %v10980_v37 = vpop.xlane.xlu1 %10979 }
0x1b67   : > { %21308 = vrcp.f32 %v10980_v37  ;;  %v21322_v37 = vld [vmem:[#allocation2 + $0x10] sm:$0xff] }
0x1b71   : > { %v21309_v47 = vpop.eup %21308 }
0x1b72   : > { %v10982_v58 = vmul.f32 %v21309_v47, %v21307_v1 }
0x1b74   : > { %18420 = vmatmul.mubr.msk.f32.vlgmr.msra.gmra.mrb[102].mxu0 %vm7334_vm3, %v10982_v58  ;;  %v23918_v58 = vld [vmem:[%s22153_s22 + $0x20] sm:$0xff] }
0x1b75   : > { %11280 = vmatpush1.bf16.msra.mxu0 %v20360_v14  ;;  %11311 = vmatprep.mubr.bf16.mxu0 %v21708_v39 }
0x1b76   : > { %11281 = vmatprep.subr.bf16.mxu0 %v20368_v57  ;;  %v11427_v57 = vrot.slane %v23918_v58, %v11410_v10 }
0x1b79   : > { %11282 = vmatpush1.bf16.msra.mxu0 %v20366_v5 }
0x1b7a   : > { %11283 = vmatprep.subr.bf16.mxu0 %v20374_v59  ;;  %v11431_v59 = vrot.slane %v23664_v18, %v11410_v10 }
0x1b7d   : > { %11284 = vmatpush1.bf16.msra.mxu0 %v20372_v24 }
0x1b7e   : > { %11285 = vmatprep.subr.bf16.mxu0 %v20380_v0 }
0x1b81   : > { %11286 = vmatpush1.bf16.msra.mxu0 %v20378_v4 }
0x1b82   : > { %11287 = vmatprep.subr.bf16.mxu0 %v20386_v12 }
0x1b85   : > { %11288 = vmatpush1.bf16.msra.mxu0 %v20384_v60 }
0x1b86   : > { %11289 = vmatprep.subr.bf16.mxu0 %v20392_v16  ;;  %v21324_v16 = vld [vmem:[#allocation2 + $0x18] sm:$0xff] }
0x1b89   : > { %11290 = vmatpush1.bf16.msra.mxu0 %v20390_v30 }
0x1b8a   : > { %11361 = vmatprep.subr.bf16.mxu0 %v20398_v11 }
0x1c47   : > { %v11055_v2 = vpop.f32.mrb[102].mxu0 }
0x1c48   : > { %v11059_v6 = vpack.c.bf16 %v11055_v2, %v11055_v2  ;;  %v18421_v52 = vpop.f32.mrb[103].mxu0 }
0x1c49   : > { %v21326_v52 = vld [vmem:[#allocation2 + $0x28] sm:$0xff] }
0x1c4a   : > { %17622 = vmatmul.mubr.msk.bf16.vlgmr.msra.gmra.mrb[104].mxu0 %vm7256_vm2, %v11059_v6  ;;  %17623 = vmatmul.mubr.msk.bf16.vlgmr.msra.gmra.mrb[120].mxu1 %vm7256_vm2, %v11059_v6 }
0x1c4b   : > { %11362 = vmatpush1.bf16.msra.mxu0 %v20396_v34  ;;  %11393 = vmatprep.mubr.bf16.mxu0 %v21708_v39  ;;  %v21325_v34 = vld [vmem:[#allocation2 + $0x20] sm:$0xff] }
0x1c4c   : > { %11363 = vmatprep.subr.bf16.mxu0 %v20401_v56 }
0x1c4f   : > { %11364 = vmatpush1.bf16.msra.mxu0 %v20399_v7 }
0x1c50   : > { %11365 = vmatprep.subr.bf16.mxu0 %v20404_v45  ;;  %v20414_v45 = vld [vmem:[%s22145_s17] ss:$24 sps:$4 sm:$0xff]  }
0x1c53   : > { %11366 = vmatpush1.bf16.msra.mxu0 %v20402_v17  ;;  %v20416_v17 = vld [vmem:[%s22145_s17 + $0x4] ss:$24 sps:$4 sm:$0xff]  }
0x1c54   : > { %11367 = vmatprep.subr.bf16.mxu0 %v20407_v13  ;;  %v20417_v13 = vld [vmem:[%s22145_s17 + $0x8] ss:$24 sps:$4 sm:$0xff]   ;;  %13299 = vmatprep.subr.bf16.mxu1 %v20416_v17 }
0x1c55   : > { %13300 = vmatpush1.bf16.msra.mxu1 %v20414_v45 }
0x1c57   : > { %11368 = vmatpush1.bf16.msra.mxu0 %v20405_v20  ;;  %v20419_v20 = vld [vmem:[%s22145_s17 + $0xc] ss:$24 sps:$4 sm:$0xff]  }
0x1c58   : > { %11369 = vmatprep.subr.bf16.mxu0 %v20410_v48  ;;  %v20422_v48 = vld [vmem:[%s22145_s17 + $0x34] ss:$24 sps:$4 sm:$0xff]  }
0x1c59   : > { %13301 = vmatprep.subr.bf16.mxu1 %v20422_v48 }
0x1c5b   : > { %11370 = vmatpush1.bf16.msra.mxu0 %v20408_v55  ;;  %v20425_v55 = vld [vmem:[%s22145_s17 + $0x3c] ss:$24 sps:$4 sm:$0xff]  }
0x1c5c   : > { %11371 = vmatprep.subr.bf16.mxu0 %v20413_v21  ;;  %v20420_v21 = vld [vmem:[%s22145_s17 + $0x30] ss:$24 sps:$4 sm:$0xff]  }
0x1c5d   : > { %13302 = vmatpush1.bf16.msra.mxu1 %v20420_v21 }
0x1c5f   : > { %11372 = vmatpush1.bf16.msra.mxu0 %v20411_v27  ;;  %v20423_v27 = vld [vmem:[%s22145_s17 + $0x38] ss:$24 sps:$4 sm:$0xff]  }
0x1c60   : > { %13422 = vmatprep.subr.bf16.mxu0 %v20419_v20 }
0x1c62   : > { %17624 = vmatmul.mubr.msk.bf16.vlgmr.msra.gmra.mrb[108].mxu0 %vm7256_vm2, %v11059_v6 }
0x1c63   : > { %13423 = vmatpush1.bf16.msra.mxu0 %v20417_v13 }
0x1c64   : > { %13424 = vmatprep.subr.bf16.mxu0 %v20425_v55 }
0x1c67   : > { %13425 = vmatpush1.bf16.msra.mxu0 %v20423_v27 }
0x1d1d   : > { %v11313_v39 = vpop.f32.mrb[104].mxu0  ;;  %v11354_v62 = vpop.f32.mrb[120].mxu1 }
0x1d1e   : > { %v11402_v61 = vadd.f32 %v11313_v39, %v23825_v31  ;;  %v11404_v32 = vadd.f32 %v11354_v62, %v23828_v22  ;;  %v11315_v28 = vpop.f32.mrb[105].mxu0  ;;  %v11356_v43 = vpop.f32.mrb[121].mxu1  ;;  %v11411_v31 = vrot.slane %v23894_v26, %v11410_v10  ;;  %v11415_v22 = vrot.slane %v23898_v50, %v11410_v10  ;;  %v20428_v39 = vld [vmem:[%s22145_s17 + $0x64] ss:$24 sps:$4 sm:$0xff]  }
0x1d1f   : > { %v11403_v42 = vadd.f32 %v11315_v28, %v23831_v8  ;;  %v11405_v51 = vadd.f32 %v11356_v43, %v23834_v49  ;;  %v11317_v36 = vpop.f32.mrb[106].mxu0  ;;  %v11358_v29 = vpop.f32.mrb[122].mxu1  ;;  %v11419_v49 = vrot.slane %v23902_v63, %v11410_v10  ;;  %v20431_v62 = vld [vmem:[%s22145_s17 + $0x6c] ss:$24 sps:$4 sm:$0xff]   ;;  %13303 = vmatprep.subr.bf16.mxu1 %v20428_v39  ;;  %v20437_v43 = vld [vmem:[%s22145_s17 + $0x9c] ss:$24 sps:$4 sm:$0xff]  }
0x1d20   : > { %v11318_v1 = vpop.f32.mrb[107].mxu0  ;;  %v11359_v40 = vpop.f32.mrb[123].mxu1  ;;  %v11432_v23 = vadd.f32 %v11411_v31, %v11402_v61  ;;  %v20426_v61 = vld [vmem:[%s22145_s17 + $0x60] ss:$24 sps:$4 sm:$0xff]   ;;  %v20434_v28 = vld [vmem:[%s22145_s17 + $0x94] ss:$24 sps:$4 sm:$0xff]   ;;  %13426 = vmatprep.subr.bf16.mxu0 %v20431_v62 }
0x1d21   : > { %v11433_v8 = vadd.f32 %v11415_v22, %v11403_v42  ;;  %v11434_v3 = vadd.f32 %v11419_v49, %v11404_v32  ;;  %v11435_v14 = vadd.f32 %v11423_v46, %v11405_v51  ;;  %v20429_v32 = vld [vmem:[%s22145_s17 + $0x68] ss:$24 sps:$4 sm:$0xff]   ;;  %13304 = vmatpush1.bf16.msra.mxu1 %v20426_v61  ;;  %v20435_v51 = vld [vmem:[%s22145_s17 + $0x98] ss:$24 sps:$4 sm:$0xff]   ;;  %v20440_v36 = vld [vmem:[%s22145_s17 + $0xc4] ss:$24 sps:$4 sm:$0xff]  }
0x1d22   : > { %v23905_v25 = vadd.f32 %v21319_v35, %v11432_v23  ;;  %v20432_v42 = vld [vmem:[%s22145_s17 + $0x90] ss:$24 sps:$4 sm:$0xff]   ;;  %13427 = vmatpush1.bf16.msra.mxu0 %v20429_v32  ;;  %13305 = vmatprep.subr.bf16.mxu1 %v20434_v28  ;;  %v20443_v29 = vld [vmem:[%s22145_s17 + $0xcc] ss:$24 sps:$4 sm:$0xff]   ;;  %v20438_v1 = vld [vmem:[%s22145_s17 + $0xc0] ss:$24 sps:$4 sm:$0xff]  }
0x1d23   : > { %v23907_v38 = vadd.f32 %v21320_v44, %v11433_v8  ;;  %v23915_v47 = vadd.f32 %v21322_v37, %v11434_v3  ;;  %v23925_v30 = vadd.f32 %v21324_v16, %v11435_v14  ;;  %13428 = vmatprep.subr.bf16.mxu0 %v20437_v43  ;;  %v20441_v40 = vld [vmem:[%s22145_s17 + $0xc8] ss:$24 sps:$4 sm:$0xff]   ;;  %v20446_v10 = vld [vmem:[%s22145_s17 + $0xf4] ss:$24 sps:$4 sm:$0xff]   ;;  %v20447_v23 = vld [vmem:[%s22145_s17 + $0xf8] ss:$24 sps:$4 sm:$0xff]  }
0x1d24   : > { %v20449_v31 = vld [vmem:[%s22145_s17 + $0xfc] ss:$24 sps:$4 sm:$0xff]   ;;  %v20444_v22 = vld [vmem:[%s22145_s17 + $0xf0] ss:$24 sps:$4 sm:$0xff]   ;;  %v20455_v49 = vld [vmem:[%s22145_s17 + $0x12c] ss:$24 sps:$4 sm:$0xff]  }
0x1d25   : > { %v11444_v33 = vadd.f32 %v23907_v38, %v23905_v25  ;;  %13306 = vmatpush1.bf16.msra.mxu1 %v20432_v42  ;;  %v20452_v8 = vld [vmem:[%s22145_s17 + $0x124] ss:$24 sps:$4 sm:$0xff]   ;;  %v20450_v35 = vld [vmem:[%s22145_s17 + $0x120] ss:$24 sps:$4 sm:$0xff]   ;;  %v20458_v3 = vld [vmem:[%s22145_s17 + $0x154] ss:$24 sps:$4 sm:$0xff]  }
0x1d26   : > { %13429 = vmatpush1.bf16.msra.mxu0 %v20435_v51  ;;  %13307 = vmatprep.subr.bf16.mxu1 %v20440_v36  ;;  %v20453_v44 = vld [vmem:[%s22145_s17 + $0x128] ss:$24 sps:$4 sm:$0xff]   ;;  %v20461_v46 = vld [vmem:[%s22145_s17 + $0x15c] ss:$24 sps:$4 sm:$0xff]   ;;  %v20459_v37 = vld [vmem:[%s22145_s17 + $0x158] ss:$24 sps:$4 sm:$0xff]  }
0x1d27   : > { %v11445_v4 = vadd.f32 %v11444_v33, %v23915_v47  ;;  %13430 = vmatprep.subr.bf16.mxu0 %v20443_v29  ;;  %v20456_v33 = vld [vmem:[%s22145_s17 + $0x150] ss:$24 sps:$4 sm:$0xff]   ;;  %v20464_v14 = vld [vmem:[%s22145_s17 + $0x184] ss:$24 sps:$4 sm:$0xff]   ;;  %v20486_v28 = vld [vmem:[%s22145_s17 + $0x240] ss:$24 sps:$4 sm:$0xff]  }
0x1d28   : > { %v20479_v16 = vld [vmem:[%s22145_s17 + $0x1ec] ss:$24 sps:$4 sm:$0xff]   ;;  %v20485_v39 = vld [vmem:[%s22145_s17 + $0x21c] ss:$24 sps:$4 sm:$0xff]   ;;  %v20480_v62 = vld [vmem:[%s22145_s17 + $0x210] ss:$24 sps:$4 sm:$0xff]  }
0x1d29   : > { %v11446_v6 = vadd.f32 %v11445_v4, %v23925_v30  ;;  %13308 = vmatpush1.bf16.msra.mxu1 %v20438_v1  ;;  %v20468_v4 = vld [vmem:[%s22145_s17 + $0x1b0] ss:$24 sps:$4 sm:$0xff]   ;;  %v20488_v32 = vld [vmem:[%s22145_s17 + $0x244] ss:$24 sps:$4 sm:$0xff]   ;;  %v20494_v51 = vld [vmem:[%s22145_s17 + $0x274] ss:$24 sps:$4 sm:$0xff]  }
0x1d2a   : > { %13431 = vmatpush1.bf16.msra.mxu0 %v20441_v40  ;;  %13309 = vmatprep.subr.bf16.mxu1 %v20446_v10  ;;  %v20483_v61 = vld [vmem:[%s22145_s17 + $0x218] ss:$24 sps:$4 sm:$0xff]   ;;  %v20489_v43 = vld [vmem:[%s22145_s17 + $0x248] ss:$24 sps:$4 sm:$0xff]   ;;  %v20491_v42 = vld [vmem:[%s22145_s17 + $0x24c] ss:$24 sps:$4 sm:$0xff]  }
0x1d2b   : > { %13432 = vmatprep.subr.bf16.mxu0 %v20449_v31  ;;  %v20497_v36 = vld [vmem:[%s22145_s17 + $0x27c] ss:$24 sps:$4 sm:$0xff]   ;;  %v20492_v29 = vld [vmem:[%s22145_s17 + $0x270] ss:$24 sps:$4 sm:$0xff]   ;;  %v20503_v10 = vld [vmem:[%s22145_s17 + $0x2ac] ss:$24 sps:$4 sm:$0xff]  }
0x1d2c   : > { %v20495_v1 = vld [vmem:[%s22145_s17 + $0x278] ss:$24 sps:$4 sm:$0xff]   ;;  %v20500_v40 = vld [vmem:[%s22145_s17 + $0x2a4] ss:$24 sps:$4 sm:$0xff]  }
0x1d2d   : > { %13310 = vmatpush1.bf16.msra.mxu1 %v20444_v22  ;;  %v20498_v31 = vld [vmem:[%s22145_s17 + $0x2a0] ss:$24 sps:$4 sm:$0xff]  }
0x1d2e   : > { %13433 = vmatpush1.bf16.msra.mxu0 %v20447_v23  ;;  %13311 = vmatprep.subr.bf16.mxu1 %v20452_v8  ;;  %v20501_v22 = vld [vmem:[%s22145_s17 + $0x2a8] ss:$24 sps:$4 sm:$0xff]   ;;  %v20506_v23 = vld [vmem:[%s22145_s17 + $0x2d4] ss:$24 sps:$4 sm:$0xff]  }
0x1d2f   : > { %13434 = vmatprep.subr.bf16.mxu0 %v20455_v49  ;;  %v20509_v8 = vld [vmem:[%s22145_s17 + $0x2dc] ss:$24 sps:$4 sm:$0xff]   ;;  %v20504_v49 = vld [vmem:[%s22145_s17 + $0x2d0] ss:$24 sps:$4 sm:$0xff]  }
0x1d31   : > { %13312 = vmatpush1.bf16.msra.mxu1 %v20450_v35  ;;  %v20507_v35 = vld [vmem:[%s22145_s17 + $0x2d8] ss:$24 sps:$4 sm:$0xff]  }
0x1d32   : > { %13435 = vmatpush1.bf16.msra.mxu0 %v20453_v44  ;;  %13313 = vmatprep.subr.bf16.mxu1 %v20458_v3  ;;  %v20512_v44 = vld [vmem:[%s22145_s17 + $0x304] ss:$24 sps:$4 sm:$0xff]  }
0x1d33   : > { %13436 = vmatprep.subr.bf16.mxu0 %v20461_v46  ;;  %v20515_v3 = vld [vmem:[%s22145_s17 + $0x30c] ss:$24 sps:$4 sm:$0xff]  }
0x1d35   : > { %v11395_v5 = vpop.f32.mrb[108].mxu0  ;;  %13314 = vmatpush1.bf16.msra.mxu1 %v20456_v33 }
0x1d36   : > { %v11406_v24 = vadd.f32 %v11395_v5, %v23838_v19  ;;  %v11397_v0 = vpop.f32.mrb[109].mxu0  ;;  %v20462_v5 = vld [vmem:[%s22145_s17 + $0x180] ss:$24 sps:$4 sm:$0xff]   ;;  %13437 = vmatpush1.bf16.msra.mxu0 %v20459_v37  ;;  %13315 = vmatprep.subr.bf16.mxu1 %v20464_v14  ;;  %v11483_v14 = vsub.s32 6, %v22852_v9 }
0x1d37   : > { %v11407_v12 = vadd.f32 %v11397_v0, %v23841_v54  ;;  %v11399_v60 = vpop.f32.mrb[110].mxu0  ;;  %v20473_v0 = vld [vmem:[%s22145_s17 + $0x1bc] ss:$24 sps:$4 sm:$0xff]  }
0x1d38   : > { %v11436_v11 = vadd.f32 %v11427_v57, %v11406_v24  ;;  %v11400_v2 = vpop.f32.mrb[111].mxu0  ;;  %v20467_v57 = vld [vmem:[%s22145_s17 + $0x18c] ss:$24 sps:$4 sm:$0xff]  }
0x1d39   : > { %v11437_v18 = vadd.f32 %v11431_v59, %v11407_v12  ;;  %v20465_v59 = vld [vmem:[%s22145_s17 + $0x188] ss:$24 sps:$4 sm:$0xff]   ;;  %v20470_v24 = vld [vmem:[%s22145_s17 + $0x1b4] ss:$24 sps:$4 sm:$0xff]   ;;  %13438 = vmatprep.subr.bf16.mxu0 %v20467_v57  ;;  %13316 = vmatpush1.bf16.msra.mxu1 %v20462_v5  ;;  %v20471_v12 = vld [vmem:[%s22145_s17 + $0x1b8] ss:$24 sps:$4 sm:$0xff]   ;;  %v11488_v5 = vrot.slane %v23898_v50, %v11483_v14 }
0x1d3a   : > { %v23927_v19 = vadd.f32 %v21325_v34, %v11436_v11  ;;  %13439 = vmatpush1.bf16.msra.mxu0 %v20465_v59  ;;  %13317 = vmatprep.subr.bf16.mxu1 %v20470_v24  ;;  %v20476_v60 = vld [vmem:[%s22145_s17 + $0x1e4] ss:$24 sps:$4 sm:$0xff]   ;;  %v20474_v11 = vld [vmem:[%s22145_s17 + $0x1e0] ss:$24 sps:$4 sm:$0xff]   ;;  %v11513_v57 = vsub.s32 7, %v22852_v9  ;;  %v11484_v59 = vrot.slane %v23894_v26, %v11483_v14  ;;  %v11496_v24 = vrot.slane %v23910_v53, %v11483_v14 }
0x1d3b   : > { %v23930_v54 = vadd.f32 %v21326_v52, %v11437_v18  ;;  %13440 = vmatprep.subr.bf16.mxu0 %v20473_v0  ;;  %v20477_v2 = vld [vmem:[%s22145_s17 + $0x1e8] ss:$24 sps:$4 sm:$0xff]   ;;  %v11492_v0 = vrot.slane %v23902_v63, %v11483_v14 }
0x1d3c   : > { %v11447_v56 = vadd.f32 %v11446_v6, %v23927_v19 }
0x1d3d   : > { %13318 = vmatpush1.bf16.msra.mxu1 %v20468_v4  ;;  %v21327_v4 = vld [vmem:[%s22153_s22 + $0x28] sm:$0xff] }
0x1d3e   : > { %v11448_v7 = vadd.f32 %v11447_v56, %v23930_v54  ;;  %13441 = vmatpush1.bf16.msra.mxu0 %v20471_v12  ;;  %13319 = vmatprep.subr.bf16.mxu1 %v20476_v60  ;;  %v11504_v12 = vrot.slane %v21327_v4, %v11483_v14  ;;  %v11500_v60 = vrot.slane %v23918_v58, %v11483_v14  ;;  %v20546_v14 = vld [vmem:[%s22145_s17 + $0x420] ss:$24 sps:$4 sm:$0xff]  }
0x1d3f   : > { %13442 = vmatprep.subr.bf16.mxu0 %v20479_v16 }
0x1d40   : > { %11449 = vadd.xlane.f32.xlu1 %v11448_v7 }
0x1d41   : > { %13320 = vmatpush1.bf16.msra.mxu1 %v20474_v11  ;;  %v11518_v11 = vrot.slane %v23898_v50, %v11513_v57 }
0x1d42   : > { %13443 = vmatpush1.bf16.msra.mxu0 %v20477_v2  ;;  %v11514_v2 = vrot.slane %v23894_v26, %v11513_v57  ;;  %v11530_v26 = vrot.slane %v23918_v58, %v11513_v57 }
0x1d43   : > { %13444 = vmatprep.subr.bf16.mxu0 %v20485_v39 }
0x1d46   : > { %13445 = vmatpush1.bf16.msra.mxu0 %v20483_v61  ;;  %v20521_v61 = vld [vmem:[%s22145_s17 + $0x33c] ss:$24 sps:$4 sm:$0xff]  }
0x1d47   : > { %13446 = vmatprep.subr.bf16.mxu0 %v20491_v42  ;;  %v20524_v42 = vld [vmem:[%s22145_s17 + $0x364] ss:$24 sps:$4 sm:$0xff]  }
0x1d4a   : > { %13447 = vmatpush1.bf16.msra.mxu0 %v20489_v43  ;;  %v20519_v43 = vld [vmem:[%s22145_s17 + $0x338] ss:$24 sps:$4 sm:$0xff]  }
0x1d4b   : > { %13448 = vmatprep.subr.bf16.mxu0 %v20497_v36  ;;  %v20522_v36 = vld [vmem:[%s22145_s17 + $0x360] ss:$24 sps:$4 sm:$0xff]  }
0x1d4e   : > { %13449 = vmatpush1.bf16.msra.mxu0 %v20495_v1  ;;  %v20530_v1 = vld [vmem:[%s22145_s17 + $0x394] ss:$24 sps:$4 sm:$0xff]  }
0x1d4f   : > { %13450 = vmatprep.subr.bf16.mxu0 %v20503_v10  ;;  %v20528_v10 = vld [vmem:[%s22145_s17 + $0x390] ss:$24 sps:$4 sm:$0xff]  }
0x1d52   : > { %13451 = vmatpush1.bf16.msra.mxu0 %v20501_v22  ;;  %v20536_v22 = vld [vmem:[%s22145_s17 + $0x3c4] ss:$24 sps:$4 sm:$0xff]  }
0x1d53   : > { %13452 = vmatprep.subr.bf16.mxu0 %v20509_v8  ;;  %v20534_v8 = vld [vmem:[%s22145_s17 + $0x3c0] ss:$24 sps:$4 sm:$0xff]  }
0x1d56   : > { %13453 = vmatpush1.bf16.msra.mxu0 %v20507_v35  ;;  %v20542_v35 = vld [vmem:[%s22145_s17 + $0x3f4] ss:$24 sps:$4 sm:$0xff]  }
0x1d57   : > { %13463 = vmatprep.subr.bf16.mxu0 %v20515_v3  ;;  %v20540_v3 = vld [vmem:[%s22145_s17 + $0x3f0] ss:$24 sps:$4 sm:$0xff]  }
0x1dcd   : > { %v11450_v18 = vpop.xlane.xlu1 %11449 }
0x1dce   : > { %v11452_v34 = vmul.f32 0.0013020834, %v11450_v18  ;;  %v11526_v18 = vrot.slane %v23910_v53, %v11513_v57 }
0x1dd0   : > { %v23979_v6 = vsub.f32 %v23905_v25, %v11452_v34  ;;  %v23982_v52 = vsub.f32 %v23907_v38, %v11452_v34  ;;  %v23985_v56 = vsub.f32 %v23915_v47, %v11452_v34  ;;  %v23988_v7 = vsub.f32 %v23925_v30, %v11452_v34 }
0x1dd1   : > { %v23995_v25 = vsub.f32 %v23927_v19, %v11452_v34  ;;  %v24000_v30 = vsub.f32 %v23930_v54, %v11452_v34  ;;  %v20482_v54 = vld [vmem:[%s22145_s17 + $0x214] ss:$24 sps:$4 sm:$0xff]   ;;  %v11522_v34 = vrot.slane %v23902_v63, %v11513_v57 }
0x1dd2   : > { %v11459_v45 = vmul.f32 %v23979_v6, %v23979_v6  ;;  %v11460_v17 = vmul.f32 %v23982_v52, %v23982_v52  ;;  %v11461_v38 = vmul.f32 %v23985_v56, %v23985_v56  ;;  %v11462_v13 = vmul.f32 %v23988_v7, %v23988_v7  ;;  %13321 = vmatprep.subr.bf16.mxu1 %v20482_v54  ;;  %v20513_v54 = vld [vmem:[%s22145_s17 + $0x308] ss:$24 sps:$4 sm:$0xff]  }
0x1dd3   : > { %v11463_v48 = vmul.f32 %v23995_v25, %v23995_v25  ;;  %v11464_v19 = vmul.f32 %v24000_v30, %v24000_v30  ;;  %13322 = vmatpush1.bf16.msra.mxu1 %v20480_v62  ;;  %v20518_v62 = vld [vmem:[%s22145_s17 + $0x334] ss:$24 sps:$4 sm:$0xff]  }
0x1dd4   : > { %v11465_v47 = vadd.f32 %v11460_v17, %v11459_v45  ;;  %13323 = vmatprep.subr.bf16.mxu1 %v20488_v32 }
0x1dd6   : > { %v11466_v20 = vadd.f32 %v11465_v47, %v11461_v38 }
0x1dd7   : > { %13324 = vmatpush1.bf16.msra.mxu1 %v20486_v28  ;;  %v20516_v28 = vld [vmem:[%s22145_s17 + $0x330] ss:$24 sps:$4 sm:$0xff]  }
0x1dd8   : > { %v11467_v55 = vadd.f32 %v11466_v20, %v11462_v13  ;;  %13325 = vmatprep.subr.bf16.mxu1 %v20494_v51  ;;  %v11534_v20 = vrot.slane %v21327_v4, %v11513_v57  ;;  %v20527_v51 = vld [vmem:[%s22145_s17 + $0x36c] ss:$24 sps:$4 sm:$0xff]   ;;  %v20549_v57 = vld [vmem:[%s22145_s17 + $0x428] ss:$24 sps:$4 sm:$0xff]  }
0x1dd9   : > { %v20560_v4 = vld [vmem:[%s22145_s17 + $0x484] ss:$24 sps:$4 sm:$0xff]  }
0x1dda   : > { %v11468_v21 = vadd.f32 %v11467_v55, %v11463_v48 }
0x1ddb   : > { %13326 = vmatpush1.bf16.msra.mxu1 %v20492_v29  ;;  %v20525_v29 = vld [vmem:[%s22145_s17 + $0x368] ss:$24 sps:$4 sm:$0xff]  }
0x1ddc   : > { %v11469_v27 = vadd.f32 %v11468_v21, %v11464_v19  ;;  %13327 = vmatprep.subr.bf16.mxu1 %v20500_v40  ;;  %v20533_v40 = vld [vmem:[%s22145_s17 + $0x39c] ss:$24 sps:$4 sm:$0xff]  }
0x1dde   : > { %11470 = vadd.xlane.f32.xlu1 %v11469_v27  ;;  %v20510_v27 = vld [vmem:[%s22145_s17 + $0x300] ss:$24 sps:$4 sm:$0xff]  }
0x1ddf   : > { %13328 = vmatpush1.bf16.msra.mxu1 %v20498_v31  ;;  %v20531_v31 = vld [vmem:[%s22145_s17 + $0x398] ss:$24 sps:$4 sm:$0xff]  }
0x1de0   : > { %13329 = vmatprep.subr.bf16.mxu1 %v20506_v23  ;;  %v20539_v23 = vld [vmem:[%s22145_s17 + $0x3cc] ss:$24 sps:$4 sm:$0xff]  }
0x1de3   : > { %13330 = vmatpush1.bf16.msra.mxu1 %v20504_v49  ;;  %v20537_v49 = vld [vmem:[%s22145_s17 + $0x3c8] ss:$24 sps:$4 sm:$0xff]  }
0x1de4   : > { %13340 = vmatprep.subr.bf16.mxu1 %v20512_v44  ;;  %v20545_v44 = vld [vmem:[%s22145_s17 + $0x3fc] ss:$24 sps:$4 sm:$0xff]  }
0x1e6b   : > { %v11471_v46 = vpop.xlane.xlu1 %11470 }
0x1e6c   : > { %v11472_v33 = vmul.f32 0.0013020834, %v11471_v46  ;;  %v20543_v46 = vld [vmem:[%s22145_s17 + $0x3f8] ss:$24 sps:$4 sm:$0xff]  }
0x1e6e   : > { %v11473_v37 = vadd.f32 1e-05, %v11472_v33  ;;  %v20548_v33 = vld [vmem:[%s22145_s17 + $0x424] ss:$24 sps:$4 sm:$0xff]  }
0x1e70   : > { %21310 = vrsqrt.f32 %v11473_v37  ;;  %v20551_v37 = vld [vmem:[%s22145_s17 + $0x42c] ss:$24 sps:$4 sm:$0xff]  }
0x1e7a   : > { %v21311_v16 = vpop.eup %21310 }
0x1e7b   : > { %v11476_v45 = vmul.f32 %v21311_v16, %v23982_v52  ;;  %v11475_v17 = vmul.f32 %v21311_v16, %v23979_v6  ;;  %v11478_v38 = vmul.f32 %v21311_v16, %v23988_v7  ;;  %v11477_v47 = vmul.f32 %v21311_v16, %v23985_v56 }
0x1e7c   : > { %v11480_v13 = vmul.f32 %v21311_v16, %v24000_v30  ;;  %v11479_v50 = vmul.f32 %v21311_v16, %v23995_v25  ;;  %v20561_v16 = vld [vmem:[%s22145_s17 + $0x488] ss:$24 sps:$4 sm:$0xff]  }
0x1e7d   : > { %v11506_v53 = vmul.f32 %v11488_v5, %v11476_v45  ;;  %v11505_v48 = vmul.f32 %v11484_v59, %v11475_v17  ;;  %v11508_v63 = vmul.f32 %v11496_v24, %v11478_v38  ;;  %v11507_v52 = vmul.f32 %v11492_v0, %v11477_v47  ;;  %v20554_v5 = vld [vmem:[%s22145_s17 + $0x454] ss:$24 sps:$4 sm:$0xff]   ;;  %v20552_v24 = vld [vmem:[%s22145_s17 + $0x450] ss:$24 sps:$4 sm:$0xff]   ;;  %v20572_v45 = vld [vmem:[%s22145_s17 + $0x4e4] ss:$24 sps:$4 sm:$0xff]  }
0x1e7e   : > { %v11510_v6 = vmul.f32 %v11504_v12, %v11480_v13  ;;  %v11509_v55 = vmul.f32 %v11500_v60, %v11479_v50  ;;  %v20557_v59 = vld [vmem:[%s22145_s17 + $0x45c] ss:$24 sps:$4 sm:$0xff]   ;;  %v20555_v0 = vld [vmem:[%s22145_s17 + $0x458] ss:$24 sps:$4 sm:$0xff]   ;;  %v20563_v12 = vld [vmem:[%s22145_s17 + $0x48c] ss:$24 sps:$4 sm:$0xff]  }
0x1e7f   : > { %v24049_v7 = vadd.f32 %v11518_v11, %v11506_v53  ;;  %v24051_v56 = vadd.f32 %v11514_v2, %v11505_v48  ;;  %v24053_v30 = vadd.f32 %v11522_v34, %v11507_v52  ;;  %v24055_v19 = vadd.f32 %v11526_v18, %v11508_v63  ;;  %v20558_v60 = vld [vmem:[%s22145_s17 + $0x480] ss:$24 sps:$4 sm:$0xff]   ;;  %v20566_v11 = vld [vmem:[%s22145_s17 + $0x4b4] ss:$24 sps:$4 sm:$0xff]   ;;  %v20564_v18 = vld [vmem:[%s22145_s17 + $0x4b0] ss:$24 sps:$4 sm:$0xff]  }
0x1e80   : > { %v24057_v25 = vadd.f32 %v11534_v20, %v11510_v6  ;;  %v24059_v58 = vadd.f32 %v11530_v26, %v11509_v55  ;;  %v20569_v2 = vld [vmem:[%s22145_s17 + $0x4bc] ss:$24 sps:$4 sm:$0xff]   ;;  %v20567_v34 = vld [vmem:[%s22145_s17 + $0x4b8] ss:$24 sps:$4 sm:$0xff]   ;;  %v20575_v17 = vld [vmem:[%s22145_s17 + $0x4ec] ss:$24 sps:$4 sm:$0xff]  }
0x1e81   : > { %v24063_v21 = vpack.c.bf16 %v24049_v7, %v24049_v7  ;;  %v24069_v39 = vpack.c.bf16 %v24051_v56, %v24051_v56  ;;  %v24079_v32 = vpack.c.bf16 %v24055_v19, %v24055_v19  ;;  %v20570_v38 = vld [vmem:[%s22145_s17 + $0x4e0] ss:$24 sps:$4 sm:$0xff]   ;;  %v20578_v13 = vld [vmem:[%s22145_s17 + $0x514] ss:$24 sps:$4 sm:$0xff]   ;;  %v20576_v50 = vld [vmem:[%s22145_s17 + $0x510] ss:$24 sps:$4 sm:$0xff]  }
0x1e82   : > { %v20573_v47 = vld [vmem:[%s22145_s17 + $0x4e8] ss:$24 sps:$4 sm:$0xff]   ;;  %v20581_v20 = vld [vmem:[%s22145_s17 + $0x51c] ss:$24 sps:$4 sm:$0xff]   ;;  %v20579_v26 = vld [vmem:[%s22145_s17 + $0x518] ss:$24 sps:$4 sm:$0xff]  }
0x1e83   : > { %13331 = vmatprep.mubr.bf16.mxu1 %v24063_v21  ;;  %13454 = vmatprep.mubr.bf16.mxu0 %v24063_v21  ;;  %v20584_v53 = vld [vmem:[%s22145_s17 + $0x544] ss:$24 sps:$4 sm:$0xff]   ;;  %v20582_v63 = vld [vmem:[%s22145_s17 + $0x540] ss:$24 sps:$4 sm:$0xff]   ;;  %v20590_v6 = vld [vmem:[%s22145_s17 + $0x574] ss:$24 sps:$4 sm:$0xff]  }
0x1e84   : > { %13332 = vmatmul.mubr.bf16.vlgmr.msra.gmra.mrb[124].mxu1 %v24069_v39  ;;  %13455 = vmatmul.mubr.bf16.vlgmr.msra.gmra.mrb[112].mxu0 %v24069_v39  ;;  %v20587_v48 = vld [vmem:[%s22145_s17 + $0x54c] ss:$24 sps:$4 sm:$0xff]   ;;  %v20585_v52 = vld [vmem:[%s22145_s17 + $0x548] ss:$24 sps:$4 sm:$0xff]   ;;  %v20593_v55 = vld [vmem:[%s22145_s17 + $0x57c] ss:$24 sps:$4 sm:$0xff]  }
0x1e85   : > { %13341 = vmatpush1.bf16.msra.mxu1 %v20510_v27  ;;  %13464 = vmatpush1.bf16.msra.mxu0 %v20513_v54  ;;  %v20588_v27 = vld [vmem:[%s22145_s17 + $0x570] ss:$24 sps:$4 sm:$0xff]  }
0x1e86   : > { %13372 = vmatprep.mubr.bf16.mxu1 %v24079_v32  ;;  %13495 = vmatprep.mubr.bf16.mxu0 %v24079_v32  ;;  %v20591_v54 = vld [vmem:[%s22145_s17 + $0x578] ss:$24 sps:$4 sm:$0xff]  }
0x1e87   : > { %13342 = vmatprep.subr.bf16.mxu1 %v20518_v62  ;;  %13465 = vmatprep.subr.bf16.mxu0 %v20521_v61  ;;  %v20596_v62 = vld [vmem:[%s22145_s17 + $0x5a4] ss:$24 sps:$4 sm:$0xff]  }
0x1e88   : > { %v20599_v61 = vld [vmem:[%s22145_s17 + $0x5ac] ss:$24 sps:$4 sm:$0xff]  }
0x1e89   : > { %13343 = vmatpush1.bf16.msra.mxu1 %v20516_v28  ;;  %13466 = vmatpush1.bf16.msra.mxu0 %v20519_v43  ;;  %v20594_v28 = vld [vmem:[%s22145_s17 + $0x5a0] ss:$24 sps:$4 sm:$0xff]  }
0x1e8a   : > { %13344 = vmatprep.subr.bf16.mxu1 %v20524_v42  ;;  %13467 = vmatprep.subr.bf16.mxu0 %v20527_v51  ;;  %v20597_v43 = vld [vmem:[%s22145_s17 + $0x5a8] ss:$24 sps:$4 sm:$0xff]   ;;  %v20602_v42 = vld [vmem:[%s22145_s17 + $0x5d4] ss:$24 sps:$4 sm:$0xff]  }
0x1e8b   : > { %v20605_v51 = vld [vmem:[%s22145_s17 + $0x5dc] ss:$24 sps:$4 sm:$0xff]  }
0x1e8d   : > { %13345 = vmatpush1.bf16.msra.mxu1 %v20522_v36  ;;  %13468 = vmatpush1.bf16.msra.mxu0 %v20525_v29  ;;  %v20600_v36 = vld [vmem:[%s22145_s17 + $0x5d0] ss:$24 sps:$4 sm:$0xff]  }
0x1e8e   : > { %13346 = vmatprep.subr.bf16.mxu1 %v20530_v1  ;;  %13469 = vmatprep.subr.bf16.mxu0 %v20533_v40  ;;  %v20603_v29 = vld [vmem:[%s22145_s17 + $0x5d8] ss:$24 sps:$4 sm:$0xff]   ;;  %v20608_v1 = vld [vmem:[%s22145_s17 + $0x604] ss:$24 sps:$4 sm:$0xff]  }
0x1e8f   : > { %v20611_v40 = vld [vmem:[%s22145_s17 + $0x60c] ss:$24 sps:$4 sm:$0xff]  }
0x1e91   : > { %13347 = vmatpush1.bf16.msra.mxu1 %v20528_v10  ;;  %13470 = vmatpush1.bf16.msra.mxu0 %v20531_v31  ;;  %v20606_v10 = vld [vmem:[%s22145_s17 + $0x600] ss:$24 sps:$4 sm:$0xff]   ;;  %v24146_v31 = vpack.c.bf16 %v24053_v30, %v24053_v30 }
0x1e92   : > { %13348 = vmatprep.subr.bf16.mxu1 %v20536_v22  ;;  %13471 = vmatprep.subr.bf16.mxu0 %v20539_v23  ;;  %v20609_v22 = vld [vmem:[%s22145_s17 + $0x608] ss:$24 sps:$4 sm:$0xff]   ;;  %v24151_v23 = vpack.c.bf16 %v24057_v25, %v24057_v25 }
0x1e95   : > { %13349 = vmatpush1.bf16.msra.mxu1 %v20534_v8  ;;  %13472 = vmatpush1.bf16.msra.mxu0 %v20537_v49  ;;  %v20614_v8 = vld [vmem:[%s22145_s17 + $0x634] ss:$24 sps:$4 sm:$0xff]  }
0x1e96   : > { %13350 = vmatprep.subr.bf16.mxu1 %v20542_v35  ;;  %13473 = vmatprep.subr.bf16.mxu0 %v20545_v44  ;;  %v20617_v49 = vld [vmem:[%s22145_s17 + $0x63c] ss:$24 sps:$4 sm:$0xff]   ;;  %v20612_v35 = vld [vmem:[%s22145_s17 + $0x630] ss:$24 sps:$4 sm:$0xff]  }
0x1e97   : > { %v20615_v44 = vld [vmem:[%s22145_s17 + $0x638] ss:$24 sps:$4 sm:$0xff]  }
0x1e99   : > { %13351 = vmatpush1.bf16.msra.mxu1 %v20540_v3  ;;  %13474 = vmatpush1.bf16.msra.mxu0 %v20543_v46  ;;  %v20620_v3 = vld [vmem:[%s22145_s17 + $0x664] ss:$24 sps:$4 sm:$0xff]  }
0x1e9a   : > { %13352 = vmatprep.subr.bf16.mxu1 %v20548_v33  ;;  %13475 = vmatprep.subr.bf16.mxu0 %v20551_v37  ;;  %v20623_v46 = vld [vmem:[%s22145_s17 + $0x66c] ss:$24 sps:$4 sm:$0xff]   ;;  %v20618_v33 = vld [vmem:[%s22145_s17 + $0x660] ss:$24 sps:$4 sm:$0xff]  }
0x1e9b   : > { %v20621_v37 = vld [vmem:[%s22145_s17 + $0x668] ss:$24 sps:$4 sm:$0xff]  }
0x1e9d   : > { %13353 = vmatpush1.bf16.msra.mxu1 %v20546_v14  ;;  %13476 = vmatpush1.bf16.msra.mxu0 %v20549_v57  ;;  %v20626_v14 = vld [vmem:[%s22145_s17 + $0x694] ss:$24 sps:$4 sm:$0xff]  }
0x1e9e   : > { %13354 = vmatprep.subr.bf16.mxu1 %v20554_v5  ;;  %13477 = vmatprep.subr.bf16.mxu0 %v20557_v59  ;;  %v20629_v57 = vld [vmem:[%s22145_s17 + $0x69c] ss:$24 sps:$4 sm:$0xff]   ;;  %v20624_v5 = vld [vmem:[%s22145_s17 + $0x690] ss:$24 sps:$4 sm:$0xff]  }
0x1e9f   : > { %v20627_v59 = vld [vmem:[%s22145_s17 + $0x698] ss:$24 sps:$4 sm:$0xff]  }
0x1ea1   : > { %13355 = vmatpush1.bf16.msra.mxu1 %v20552_v24  ;;  %13478 = vmatpush1.bf16.msra.mxu0 %v20555_v0  ;;  %v20632_v24 = vld [vmem:[%s22145_s17 + $0x6c4] ss:$24 sps:$4 sm:$0xff]  }
0x1ea2   : > { %13356 = vmatprep.subr.bf16.mxu1 %v20560_v4  ;;  %13479 = vmatprep.subr.bf16.mxu0 %v20563_v12  ;;  %v20635_v0 = vld [vmem:[%s22145_s17 + $0x6cc] ss:$24 sps:$4 sm:$0xff]   ;;  %v20630_v4 = vld [vmem:[%s22145_s17 + $0x6c0] ss:$24 sps:$4 sm:$0xff]  }
0x1ea3   : > { %v20633_v12 = vld [vmem:[%s22145_s17 + $0x6c8] ss:$24 sps:$4 sm:$0xff]  }
0x1ea5   : > { %13357 = vmatpush1.bf16.msra.mxu1 %v20558_v60  ;;  %13480 = vmatpush1.bf16.msra.mxu0 %v20561_v16  ;;  %v20638_v60 = vld [vmem:[%s22145_s17 + $0x6f4] ss:$24 sps:$4 sm:$0xff]  }
0x1ea6   : > { %13358 = vmatprep.subr.bf16.mxu1 %v20566_v11  ;;  %13481 = vmatprep.subr.bf16.mxu0 %v20569_v2  ;;  %v20641_v16 = vld [vmem:[%s22145_s17 + $0x6fc] ss:$24 sps:$4 sm:$0xff]   ;;  %v20636_v11 = vld [vmem:[%s22145_s17 + $0x6f0] ss:$24 sps:$4 sm:$0xff]  }
0x1ea7   : > { %v20639_v2 = vld [vmem:[%s22145_s17 + $0x6f8] ss:$24 sps:$4 sm:$0xff]  }
0x1ea9   : > { %13359 = vmatpush1.bf16.msra.mxu1 %v20564_v18  ;;  %13482 = vmatpush1.bf16.msra.mxu0 %v20567_v34  ;;  %v20644_v18 = vld [vmem:[%s22145_s17 + $0x724] ss:$24 sps:$4 sm:$0xff]  }
0x1eaa   : > { %13360 = vmatprep.subr.bf16.mxu1 %v20572_v45  ;;  %13483 = vmatprep.subr.bf16.mxu0 %v20575_v17  ;;  %v20647_v34 = vld [vmem:[%s22145_s17 + $0x72c] ss:$24 sps:$4 sm:$0xff]   ;;  %v20642_v45 = vld [vmem:[%s22145_s17 + $0x720] ss:$24 sps:$4 sm:$0xff]  }
0x1eab   : > { %v20645_v17 = vld [vmem:[%s22145_s17 + $0x728] ss:$24 sps:$4 sm:$0xff]  }
0x1ead   : > { %13361 = vmatpush1.bf16.msra.mxu1 %v20570_v38  ;;  %13484 = vmatpush1.bf16.msra.mxu0 %v20573_v47  ;;  %v20650_v38 = vld [vmem:[%s22145_s17 + $0x754] ss:$24 sps:$4 sm:$0xff]  }
0x1eae   : > { %13362 = vmatprep.subr.bf16.mxu1 %v20578_v13  ;;  %13485 = vmatprep.subr.bf16.mxu0 %v20581_v20  ;;  %v20653_v47 = vld [vmem:[%s22145_s17 + $0x75c] ss:$24 sps:$4 sm:$0xff]   ;;  %v20648_v13 = vld [vmem:[%s22145_s17 + $0x750] ss:$24 sps:$4 sm:$0xff]  }
0x1eaf   : > { %v20651_v20 = vld [vmem:[%s22145_s17 + $0x758] ss:$24 sps:$4 sm:$0xff]  }
0x1eb1   : > { %13363 = vmatpush1.bf16.msra.mxu1 %v20576_v50  ;;  %13486 = vmatpush1.bf16.msra.mxu0 %v20579_v26  ;;  %v20656_v50 = vld [vmem:[%s22145_s17 + $0x784] ss:$24 sps:$4 sm:$0xff]  }
0x1eb2   : > { %13364 = vmatprep.subr.bf16.mxu1 %v20584_v53  ;;  %13487 = vmatprep.subr.bf16.mxu0 %v20587_v48  ;;  %v20659_v26 = vld [vmem:[%s22145_s17 + $0x78c] ss:$24 sps:$4 sm:$0xff]   ;;  %v20654_v53 = vld [vmem:[%s22145_s17 + $0x780] ss:$24 sps:$4 sm:$0xff]  }
0x1eb3   : > { %v20657_v48 = vld [vmem:[%s22145_s17 + $0x788] ss:$24 sps:$4 sm:$0xff]  }
0x1eb5   : > { %13365 = vmatpush1.bf16.msra.mxu1 %v20582_v63  ;;  %13488 = vmatpush1.bf16.msra.mxu0 %v20585_v52  ;;  %v20662_v63 = vld [vmem:[%s22145_s17 + $0x7b4] ss:$24 sps:$4 sm:$0xff]  }
0x1eb6   : > { %13366 = vmatprep.subr.bf16.mxu1 %v20590_v6  ;;  %13489 = vmatprep.subr.bf16.mxu0 %v20593_v55  ;;  %v20665_v52 = vld [vmem:[%s22145_s17 + $0x7bc] ss:$24 sps:$4 sm:$0xff]   ;;  %v20660_v6 = vld [vmem:[%s22145_s17 + $0x7b0] ss:$24 sps:$4 sm:$0xff]  }
0x1eb7   : > { %v20663_v55 = vld [vmem:[%s22145_s17 + $0x7b8] ss:$24 sps:$4 sm:$0xff]  }
0x1eb9   : > { %13367 = vmatpush1.bf16.msra.mxu1 %v20588_v27  ;;  %13490 = vmatpush1.bf16.msra.mxu0 %v20591_v54  ;;  %v20668_v27 = vld [vmem:[%s22145_s17 + $0x7e4] ss:$24 sps:$4 sm:$0xff]  }
0x1eba   : > { %13368 = vmatprep.subr.bf16.mxu1 %v20596_v62  ;;  %13491 = vmatprep.subr.bf16.mxu0 %v20599_v61  ;;  %v20671_v54 = vld [vmem:[%s22145_s17 + $0x7ec] ss:$24 sps:$4 sm:$0xff]   ;;  %v20666_v62 = vld [vmem:[%s22145_s17 + $0x7e0] ss:$24 sps:$4 sm:$0xff]  }
0x1ebb   : > { %v20669_v61 = vld [vmem:[%s22145_s17 + $0x7e8] ss:$24 sps:$4 sm:$0xff]  }
0x1ebd   : > { %13369 = vmatpush1.bf16.msra.mxu1 %v20594_v28  ;;  %13492 = vmatpush1.bf16.msra.mxu0 %v20597_v43  ;;  %v20674_v28 = vld [vmem:[%s22145_s17 + $0x814] ss:$24 sps:$4 sm:$0xff]  }
0x1ebe   : > { %13370 = vmatprep.subr.bf16.mxu1 %v20602_v42  ;;  %13493 = vmatprep.subr.bf16.mxu0 %v20605_v51  ;;  %v20677_v43 = vld [vmem:[%s22145_s17 + $0x81c] ss:$24 sps:$4 sm:$0xff]   ;;  %v20672_v42 = vld [vmem:[%s22145_s17 + $0x810] ss:$24 sps:$4 sm:$0xff]  }
0x1ebf   : > { %v20675_v51 = vld [vmem:[%s22145_s17 + $0x818] ss:$24 sps:$4 sm:$0xff]  }
0x1ec1   : > { %13371 = vmatpush1.bf16.msra.mxu1 %v20600_v36  ;;  %13494 = vmatpush1.bf16.msra.mxu0 %v20603_v29  ;;  %v20680_v36 = vld [vmem:[%s22145_s17 + $0x844] ss:$24 sps:$4 sm:$0xff]  }
0x1ec2   : > { %13381 = vmatprep.subr.bf16.mxu1 %v20608_v1  ;;  %13504 = vmatprep.subr.bf16.mxu0 %v20611_v40  ;;  %v20683_v29 = vld [vmem:[%s22145_s17 + $0x84c] ss:$24 sps:$4 sm:$0xff]   ;;  %v20678_v1 = vld [vmem:[%s22145_s17 + $0x840] ss:$24 sps:$4 sm:$0xff]  }
0x1ec3   : > { %v20681_v40 = vld [vmem:[%s22145_s17 + $0x848] ss:$24 sps:$4 sm:$0xff]  }
0x1ec4   : > { %13373 = vmatmul.mubr.bf16.vlgmr.msra.gmra.mrb[124].mxu1 %v24146_v31  ;;  %13496 = vmatmul.mubr.bf16.vlgmr.msra.gmra.mrb[112].mxu0 %v24146_v31 }
0x1ec5   : > { %13382 = vmatpush1.bf16.msra.mxu1 %v20606_v10  ;;  %13413 = vmatprep.mubr.bf16.mxu1 %v24151_v23  ;;  %v20686_v10 = vld [vmem:[%s22145_s17 + $0x874] ss:$24 sps:$4 sm:$0xff]  }
0x1ec6   : > { %13505 = vmatpush1.bf16.msra.mxu0 %v20609_v22  ;;  %13536 = vmatprep.mubr.bf16.mxu0 %v24151_v23  ;;  %v20689_v22 = vld [vmem:[%s22145_s17 + $0x87c] ss:$24 sps:$4 sm:$0xff]  }
0x1ec7   : > { %13383 = vmatprep.subr.bf16.mxu1 %v20614_v8  ;;  %13506 = vmatprep.subr.bf16.mxu0 %v20617_v49  ;;  %v20684_v8 = vld [vmem:[%s22145_s17 + $0x870] ss:$24 sps:$4 sm:$0xff]  }
0x1ec8   : > { %v20687_v49 = vld [vmem:[%s22145_s17 + $0x878] ss:$24 sps:$4 sm:$0xff]  }
0x1ec9   : > { %13384 = vmatpush1.bf16.msra.mxu1 %v20612_v35  ;;  %v20692_v35 = vld [vmem:[%s22145_s17 + $0x8a4] ss:$24 sps:$4 sm:$0xff]  }
0x1eca   : > { %13507 = vmatpush1.bf16.msra.mxu0 %v20615_v44  ;;  %13385 = vmatprep.subr.bf16.mxu1 %v20620_v3  ;;  %v20695_v44 = vld [vmem:[%s22145_s17 + $0x8ac] ss:$24 sps:$4 sm:$0xff]   ;;  %v20690_v3 = vld [vmem:[%s22145_s17 + $0x8a0] ss:$24 sps:$4 sm:$0xff]  }
0x1ecb   : > { %13508 = vmatprep.subr.bf16.mxu0 %v20623_v46  ;;  %v20693_v46 = vld [vmem:[%s22145_s17 + $0x8a8] ss:$24 sps:$4 sm:$0xff]  }
0x1ecd   : > { %13386 = vmatpush1.bf16.msra.mxu1 %v20618_v33  ;;  %v20698_v33 = vld [vmem:[%s22145_s17 + $0x8d4] ss:$24 sps:$4 sm:$0xff]  }
0x1ece   : > { %13509 = vmatpush1.bf16.msra.mxu0 %v20621_v37  ;;  %13387 = vmatprep.subr.bf16.mxu1 %v20626_v14  ;;  %v20701_v37 = vld [vmem:[%s22145_s17 + $0x8dc] ss:$24 sps:$4 sm:$0xff]   ;;  %v20696_v14 = vld [vmem:[%s22145_s17 + $0x8d0] ss:$24 sps:$4 sm:$0xff]  }
0x1ecf   : > { %13510 = vmatprep.subr.bf16.mxu0 %v20629_v57  ;;  %v20699_v57 = vld [vmem:[%s22145_s17 + $0x8d8] ss:$24 sps:$4 sm:$0xff]  }
0x1ed1   : > { %13388 = vmatpush1.bf16.msra.mxu1 %v20624_v5  ;;  %v20704_v5 = vld [vmem:[%s22145_s17 + $0x14] ss:$24 sps:$4 sm:$0xff]  }
0x1ed2   : > { %13511 = vmatpush1.bf16.msra.mxu0 %v20627_v59  ;;  %13389 = vmatprep.subr.bf16.mxu1 %v20632_v24  ;;  %v20702_v59 = vld [vmem:[%s22145_s17 + $0x10] ss:$24 sps:$4 sm:$0xff]   ;;  %v24221_v24 = vpack.c.bf16 %v24059_v58, %v24059_v58 }
0x1ed3   : > { %13512 = vmatprep.subr.bf16.mxu0 %v20635_v0  ;;  %v20707_v0 = vld [vmem:[%s22145_s17 + $0x44] ss:$24 sps:$4 sm:$0xff]  }
0x1ed5   : > { %13390 = vmatpush1.bf16.msra.mxu1 %v20630_v4  ;;  %v20705_v4 = vld [vmem:[%s22145_s17 + $0x40] ss:$24 sps:$4 sm:$0xff]  }
0x1ed6   : > { %13513 = vmatpush1.bf16.msra.mxu0 %v20633_v12  ;;  %13391 = vmatprep.subr.bf16.mxu1 %v20638_v60  ;;  %v20710_v12 = vld [vmem:[%s22145_s17 + $0x74] ss:$24 sps:$4 sm:$0xff]   ;;  %v20708_v60 = vld [vmem:[%s22145_s17 + $0x70] ss:$24 sps:$4 sm:$0xff]  }
0x1ed7   : > { %13514 = vmatprep.subr.bf16.mxu0 %v20641_v16  ;;  %v20713_v16 = vld [vmem:[%s22145_s17 + $0xa4] ss:$24 sps:$4 sm:$0xff]  }
0x1ed9   : > { %13392 = vmatpush1.bf16.msra.mxu1 %v20636_v11  ;;  %v20711_v11 = vld [vmem:[%s22145_s17 + $0xa0] ss:$24 sps:$4 sm:$0xff]  }
0x1eda   : > { %13515 = vmatpush1.bf16.msra.mxu0 %v20639_v2  ;;  %13393 = vmatprep.subr.bf16.mxu1 %v20644_v18  ;;  %v20716_v2 = vld [vmem:[%s22145_s17 + $0xd4] ss:$24 sps:$4 sm:$0xff]   ;;  %v20714_v18 = vld [vmem:[%s22145_s17 + $0xd0] ss:$24 sps:$4 sm:$0xff]  }
0x1edb   : > { %13516 = vmatprep.subr.bf16.mxu0 %v20647_v34  ;;  %v20717_v34 = vld [vmem:[%s22145_s17 + $0x100] ss:$24 sps:$4 sm:$0xff]  }
0x1edd   : > { %13394 = vmatpush1.bf16.msra.mxu1 %v20642_v45  ;;  %v20722_v45 = vld [vmem:[%s22145_s17 + $0x134] ss:$24 sps:$4 sm:$0xff]  }
0x1ede   : > { %13517 = vmatpush1.bf16.msra.mxu0 %v20645_v17  ;;  %13395 = vmatprep.subr.bf16.mxu1 %v20650_v38  ;;  %v20720_v17 = vld [vmem:[%s22145_s17 + $0x130] ss:$24 sps:$4 sm:$0xff]   ;;  %v20725_v38 = vld [vmem:[%s22145_s17 + $0x164] ss:$24 sps:$4 sm:$0xff]  }
0x1edf   : > { %13518 = vmatprep.subr.bf16.mxu0 %v20653_v47  ;;  %v20723_v47 = vld [vmem:[%s22145_s17 + $0x160] ss:$24 sps:$4 sm:$0xff]  }
0x1ee1   : > { %13396 = vmatpush1.bf16.msra.mxu1 %v20648_v13  ;;  %v20819_v13 = vld [vmem:[%s22151_s12] ss:$24 sps:$4 sm:$0xff]  }
0x1ee2   : > { %13519 = vmatpush1.bf16.msra.mxu0 %v20651_v20  ;;  %13397 = vmatprep.subr.bf16.mxu1 %v20656_v50  ;;  %v20821_v20 = vld [vmem:[%s22151_s12 + $0x4] ss:$24 sps:$4 sm:$0xff]   ;;  %v20728_v50 = vld [vmem:[%s22145_s17 + $0x194] ss:$24 sps:$4 sm:$0xff]  }
0x1ee3   : > { %13520 = vmatprep.subr.bf16.mxu0 %v20659_v26  ;;  %v20726_v26 = vld [vmem:[%s22145_s17 + $0x190] ss:$24 sps:$4 sm:$0xff]  }
0x1ee5   : > { %13398 = vmatpush1.bf16.msra.mxu1 %v20654_v53  ;;  %v20825_v53 = vld [vmem:[%s22151_s12 + $0x30] ss:$24 sps:$4 sm:$0xff]  }
0x1ee6   : > { %13521 = vmatpush1.bf16.msra.mxu0 %v20657_v48  ;;  %13399 = vmatprep.subr.bf16.mxu1 %v20662_v63  ;;  %v20827_v48 = vld [vmem:[%s22151_s12 + $0x34] ss:$24 sps:$4 sm:$0xff]   ;;  %v20731_v63 = vld [vmem:[%s22145_s17 + $0x1c4] ss:$24 sps:$4 sm:$0xff]  }
0x1ee7   : > { %13522 = vmatprep.subr.bf16.mxu0 %v20665_v52  ;;  %v20729_v52 = vld [vmem:[%s22145_s17 + $0x1c0] ss:$24 sps:$4 sm:$0xff]  }
0x1ee9   : > { %13400 = vmatpush1.bf16.msra.mxu1 %v20660_v6  ;;  %v20831_v6 = vld [vmem:[%s22151_s12 + $0x60] ss:$24 sps:$4 sm:$0xff]  }
0x1eea   : > { %13523 = vmatpush1.bf16.msra.mxu0 %v20663_v55  ;;  %13401 = vmatprep.subr.bf16.mxu1 %v20668_v27  ;;  %v20833_v55 = vld [vmem:[%s22151_s12 + $0x64] ss:$24 sps:$4 sm:$0xff]   ;;  %v20734_v27 = vld [vmem:[%s22145_s17 + $0x1f4] ss:$24 sps:$4 sm:$0xff]  }
0x1eeb   : > { %13524 = vmatprep.subr.bf16.mxu0 %v20671_v54  ;;  %v20732_v54 = vld [vmem:[%s22145_s17 + $0x1f0] ss:$24 sps:$4 sm:$0xff]  }
0x1eed   : > { %13402 = vmatpush1.bf16.msra.mxu1 %v20666_v62  ;;  %v20837_v62 = vld [vmem:[%s22151_s12 + $0x90] ss:$24 sps:$4 sm:$0xff]  }
0x1eee   : > { %13525 = vmatpush1.bf16.msra.mxu0 %v20669_v61  ;;  %13403 = vmatprep.subr.bf16.mxu1 %v20674_v28  ;;  %v20839_v61 = vld [vmem:[%s22151_s12 + $0x94] ss:$24 sps:$4 sm:$0xff]   ;;  %v20737_v28 = vld [vmem:[%s22145_s17 + $0x224] ss:$24 sps:$4 sm:$0xff]  }
0x1eef   : > { %13526 = vmatprep.subr.bf16.mxu0 %v20677_v43  ;;  %v20735_v43 = vld [vmem:[%s22145_s17 + $0x220] ss:$24 sps:$4 sm:$0xff]  }
0x1ef1   : > { %13404 = vmatpush1.bf16.msra.mxu1 %v20672_v42  ;;  %v20843_v42 = vld [vmem:[%s22151_s12 + $0xc0] ss:$24 sps:$4 sm:$0xff]  }
0x1ef2   : > { %13527 = vmatpush1.bf16.msra.mxu0 %v20675_v51  ;;  %13405 = vmatprep.subr.bf16.mxu1 %v20680_v36  ;;  %v20845_v51 = vld [vmem:[%s22151_s12 + $0xc4] ss:$24 sps:$4 sm:$0xff]   ;;  %v20740_v36 = vld [vmem:[%s22145_s17 + $0x254] ss:$24 sps:$4 sm:$0xff]  }
0x1ef3   : > { %13528 = vmatprep.subr.bf16.mxu0 %v20683_v29  ;;  %v20738_v29 = vld [vmem:[%s22145_s17 + $0x250] ss:$24 sps:$4 sm:$0xff]  }
0x1ef5   : > { %13406 = vmatpush1.bf16.msra.mxu1 %v20678_v1  ;;  %v20849_v1 = vld [vmem:[%s22151_s12 + $0xf0] ss:$24 sps:$4 sm:$0xff]  }
0x1ef6   : > { %13529 = vmatpush1.bf16.msra.mxu0 %v20681_v40  ;;  %13407 = vmatprep.subr.bf16.mxu1 %v20686_v10  ;;  %v20851_v40 = vld [vmem:[%s22151_s12 + $0xf4] ss:$24 sps:$4 sm:$0xff]   ;;  %v20743_v10 = vld [vmem:[%s22145_s17 + $0x284] ss:$24 sps:$4 sm:$0xff]  }
0x1ef7   : > { %13530 = vmatprep.subr.bf16.mxu0 %v20689_v22  ;;  %v20741_v22 = vld [vmem:[%s22145_s17 + $0x280] ss:$24 sps:$4 sm:$0xff]  }
0x1ef9   : > { %13408 = vmatpush1.bf16.msra.mxu1 %v20684_v8  ;;  %v20855_v8 = vld [vmem:[%s22151_s12 + $0x120] ss:$24 sps:$4 sm:$0xff]  }
0x1efa   : > { %13531 = vmatpush1.bf16.msra.mxu0 %v20687_v49  ;;  %13409 = vmatprep.subr.bf16.mxu1 %v20692_v35  ;;  %v20857_v49 = vld [vmem:[%s22151_s12 + $0x124] ss:$24 sps:$4 sm:$0xff]   ;;  %v20746_v35 = vld [vmem:[%s22145_s17 + $0x2b4] ss:$24 sps:$4 sm:$0xff]  }
0x1efb   : > { %13532 = vmatprep.subr.bf16.mxu0 %v20695_v44  ;;  %v20744_v44 = vld [vmem:[%s22145_s17 + $0x2b0] ss:$24 sps:$4 sm:$0xff]  }
0x1efd   : > { %13410 = vmatpush1.bf16.msra.mxu1 %v20690_v3  ;;  %v20861_v3 = vld [vmem:[%s22151_s12 + $0x150] ss:$24 sps:$4 sm:$0xff]  }
0x1efe   : > { %13533 = vmatpush1.bf16.msra.mxu0 %v20693_v46  ;;  %13411 = vmatprep.subr.bf16.mxu1 %v20698_v33  ;;  %v20863_v46 = vld [vmem:[%s22151_s12 + $0x154] ss:$24 sps:$4 sm:$0xff]   ;;  %v20749_v33 = vld [vmem:[%s22145_s17 + $0x2e4] ss:$24 sps:$4 sm:$0xff]  }
0x1eff   : > { %13534 = vmatprep.subr.bf16.mxu0 %v20701_v37  ;;  %v20747_v37 = vld [vmem:[%s22145_s17 + $0x2e0] ss:$24 sps:$4 sm:$0xff]  }
0x1f01   : > { %13412 = vmatpush1.bf16.msra.mxu1 %v20696_v14  ;;  %v20867_v14 = vld [vmem:[%s22151_s12 + $0x180] ss:$24 sps:$4 sm:$0xff]  }
0x1f02   : > { %13535 = vmatpush1.bf16.msra.mxu0 %v20699_v57  ;;  %13545 = vmatprep.subr.bf16.mxu1 %v20704_v5  ;;  %v20869_v57 = vld [vmem:[%s22151_s12 + $0x184] ss:$24 sps:$4 sm:$0xff]   ;;  %v20752_v5 = vld [vmem:[%s22145_s17 + $0x314] ss:$24 sps:$4 sm:$0xff]  }
0x1f03   : > { %15432 = vmatprep.subr.bf16.mxu0 %v20821_v20  ;;  %v20899_v20 = vld [vmem:[%s22151_s12 + $0x274] ss:$24 sps:$4 sm:$0xff]  }
0x1f04   : > { %13414 = vmatmul.mubr.bf16.vlgmr.msra.gmra.mrb[124].mxu1 %v24221_v24 }
0x1f05   : > { %13537 = vmatmul.mubr.bf16.vlgmr.msra.gmra.mrb[112].mxu0 %v24221_v24  ;;  %13546 = vmatpush1.bf16.msra.mxu1 %v20702_v59  ;;  %v20750_v59 = vld [vmem:[%s22145_s17 + $0x310] ss:$24 sps:$4 sm:$0xff]  }
0x1f06   : > { %13577 = vmatprep.mubr.bf16.mxu1 %v24063_v21  ;;  %13547 = vmatprep.subr.bf16.mxu1 %v20707_v0  ;;  %v20719_v21 = vld [vmem:[%s22145_s17 + $0x104] ss:$24 sps:$4 sm:$0xff]   ;;  %v20873_v0 = vld [vmem:[%s22151_s12 + $0x1b0] ss:$24 sps:$4 sm:$0xff]  }
0x1f07   : > { %15433 = vmatpush1.bf16.msra.mxu0 %v20819_v13  ;;  %v20897_v13 = vld [vmem:[%s22151_s12 + $0x270] ss:$24 sps:$4 sm:$0xff]  }
0x1f08   : > { %15434 = vmatprep.subr.bf16.mxu0 %v20827_v48  ;;  %v20905_v48 = vld [vmem:[%s22151_s12 + $0x2a4] ss:$24 sps:$4 sm:$0xff]  }
0x1f09   : > { %13548 = vmatpush1.bf16.msra.mxu1 %v20705_v4  ;;  %v20875_v4 = vld [vmem:[%s22151_s12 + $0x1b4] ss:$24 sps:$4 sm:$0xff]  }
0x1f0a   : > { %13549 = vmatprep.subr.bf16.mxu1 %v20710_v12  ;;  %v20755_v12 = vld [vmem:[%s22145_s17 + $0x344] ss:$24 sps:$4 sm:$0xff]  }
0x1f0b   : > { %15435 = vmatpush1.bf16.msra.mxu0 %v20825_v53  ;;  %v20770_v53 = vld [vmem:[%s22145_s17 + $0x434] ss:$24 sps:$4 sm:$0xff]  }
0x1f0c   : > { %15436 = vmatprep.subr.bf16.mxu0 %v20833_v55  ;;  %v20911_v55 = vld [vmem:[%s22151_s12 + $0x2d4] ss:$24 sps:$4 sm:$0xff]  }
0x1f0d   : > { %13550 = vmatpush1.bf16.msra.mxu1 %v20708_v60  ;;  %v20753_v60 = vld [vmem:[%s22145_s17 + $0x340] ss:$24 sps:$4 sm:$0xff]  }
0x1f0e   : > { %13551 = vmatprep.subr.bf16.mxu1 %v20713_v16  ;;  %v20879_v16 = vld [vmem:[%s22151_s12 + $0x1e0] ss:$24 sps:$4 sm:$0xff]  }
0x1f0f   : > { %15437 = vmatpush1.bf16.msra.mxu0 %v20831_v6  ;;  %v20773_v6 = vld [vmem:[%s22145_s17 + $0x464] ss:$24 sps:$4 sm:$0xff]  }
0x1f10   : > { %15438 = vmatprep.subr.bf16.mxu0 %v20839_v61  ;;  %v20917_v61 = vld [vmem:[%s22151_s12 + $0x304] ss:$24 sps:$4 sm:$0xff]  }
0x1f11   : > { %13552 = vmatpush1.bf16.msra.mxu1 %v20711_v11  ;;  %v20881_v11 = vld [vmem:[%s22151_s12 + $0x1e4] ss:$24 sps:$4 sm:$0xff]  }
0x1f12   : > { %13553 = vmatprep.subr.bf16.mxu1 %v20716_v2  ;;  %v20758_v2 = vld [vmem:[%s22145_s17 + $0x374] ss:$24 sps:$4 sm:$0xff]  }
0x1f13   : > { %15439 = vmatpush1.bf16.msra.mxu0 %v20837_v62  ;;  %v20776_v62 = vld [vmem:[%s22145_s17 + $0x494] ss:$24 sps:$4 sm:$0xff]  }
0x1f14   : > { %15440 = vmatprep.subr.bf16.mxu0 %v20845_v51  ;;  %v20782_v51 = vld [vmem:[%s22145_s17 + $0x4f4] ss:$24 sps:$4 sm:$0xff]  }
0x1f15   : > { %13554 = vmatpush1.bf16.msra.mxu1 %v20714_v18  ;;  %v20756_v18 = vld [vmem:[%s22145_s17 + $0x370] ss:$24 sps:$4 sm:$0xff]  }
0x1f16   : > { %13555 = vmatprep.subr.bf16.mxu1 %v20719_v21  ;;  %v20887_v21 = vld [vmem:[%s22151_s12 + $0x214] ss:$24 sps:$4 sm:$0xff]  }
0x1f17   : > { %15441 = vmatpush1.bf16.msra.mxu0 %v20843_v42  ;;  %v20777_v42 = vld [vmem:[%s22145_s17 + $0x4c0] ss:$24 sps:$4 sm:$0xff]  }
0x1f18   : > { %15442 = vmatprep.subr.bf16.mxu0 %v20851_v40  ;;  %v20788_v40 = vld [vmem:[%s22145_s17 + $0x554] ss:$24 sps:$4 sm:$0xff]  }
0x1f19   : > { %13556 = vmatpush1.bf16.msra.mxu1 %v20717_v34  ;;  %v20759_v34 = vld [vmem:[%s22145_s17 + $0x3a0] ss:$24 sps:$4 sm:$0xff]  }
0x1f1a   : > { %13557 = vmatprep.subr.bf16.mxu1 %v20722_v45  ;;  %v20891_v45 = vld [vmem:[%s22151_s12 + $0x240] ss:$24 sps:$4 sm:$0xff]  }
0x1f1b   : > { %15443 = vmatpush1.bf16.msra.mxu0 %v20849_v1  ;;  %v20783_v1 = vld [vmem:[%s22145_s17 + $0x520] ss:$24 sps:$4 sm:$0xff]  }
0x1f1c   : > { %15444 = vmatprep.subr.bf16.mxu0 %v20857_v49  ;;  %v20794_v49 = vld [vmem:[%s22145_s17 + $0x5b4] ss:$24 sps:$4 sm:$0xff]  }
0x1f1d   : > { %13558 = vmatpush1.bf16.msra.mxu1 %v20720_v17  ;;  %v20893_v17 = vld [vmem:[%s22151_s12 + $0x244] ss:$24 sps:$4 sm:$0xff]  }
0x1f1e   : > { %13559 = vmatprep.subr.bf16.mxu1 %v20725_v38  ;;  %v20764_v38 = vld [vmem:[%s22145_s17 + $0x3d4] ss:$24 sps:$4 sm:$0xff]  }
0x1f1f   : > { %15445 = vmatpush1.bf16.msra.mxu0 %v20855_v8  ;;  %v20789_v8 = vld [vmem:[%s22145_s17 + $0x580] ss:$24 sps:$4 sm:$0xff]  }
0x1f20   : > { %15446 = vmatprep.subr.bf16.mxu0 %v20863_v46  ;;  %v20800_v46 = vld [vmem:[%s22145_s17 + $0x614] ss:$24 sps:$4 sm:$0xff]  }
0x1f21   : > { %13560 = vmatpush1.bf16.msra.mxu1 %v20723_v47  ;;  %v20762_v47 = vld [vmem:[%s22145_s17 + $0x3d0] ss:$24 sps:$4 sm:$0xff]  }
0x1f22   : > { %13561 = vmatprep.subr.bf16.mxu1 %v20728_v50  ;;  %v20767_v50 = vld [vmem:[%s22145_s17 + $0x404] ss:$24 sps:$4 sm:$0xff]  }
0x1f23   : > { %15447 = vmatpush1.bf16.msra.mxu0 %v20861_v3  ;;  %v20795_v3 = vld [vmem:[%s22145_s17 + $0x5e0] ss:$24 sps:$4 sm:$0xff]  }
0x1f24   : > { %15448 = vmatprep.subr.bf16.mxu0 %v20869_v57  ;;  %v20806_v57 = vld [vmem:[%s22145_s17 + $0x674] ss:$24 sps:$4 sm:$0xff]  }
0x1f25   : > { %13562 = vmatpush1.bf16.msra.mxu1 %v20726_v26  ;;  %v20765_v26 = vld [vmem:[%s22145_s17 + $0x400] ss:$24 sps:$4 sm:$0xff]  }
0x1f26   : > { %13563 = vmatprep.subr.bf16.mxu1 %v20731_v63  ;;  %v20903_v63 = vld [vmem:[%s22151_s12 + $0x2a0] ss:$24 sps:$4 sm:$0xff]  }
0x1f27   : > { %15449 = vmatpush1.bf16.msra.mxu0 %v20867_v14  ;;  %v20801_v14 = vld [vmem:[%s22145_s17 + $0x640] ss:$24 sps:$4 sm:$0xff]  }
0x1f28   : > { %15450 = vmatprep.subr.bf16.mxu0 %v20875_v4  ;;  %v20810_v4 = vld [vmem:[%s22145_s17 + $0x6d0] ss:$24 sps:$4 sm:$0xff]  }
0x1f29   : > { %13564 = vmatpush1.bf16.msra.mxu1 %v20729_v52  ;;  %v20768_v52 = vld [vmem:[%s22145_s17 + $0x430] ss:$24 sps:$4 sm:$0xff]  }
0x1f2a   : > { %13565 = vmatprep.subr.bf16.mxu1 %v20734_v27  ;;  %v20909_v27 = vld [vmem:[%s22151_s12 + $0x2d0] ss:$24 sps:$4 sm:$0xff]  }
0x1f2b   : > { %15451 = vmatpush1.bf16.msra.mxu0 %v20873_v0  ;;  %v20807_v0 = vld [vmem:[%s22145_s17 + $0x6a0] ss:$24 sps:$4 sm:$0xff]  }
0x1f2c   : > { %15452 = vmatprep.subr.bf16.mxu0 %v20881_v11  ;;  %v20824_v11 = vld [vmem:[%s22145_s17 + $0x764] ss:$24 sps:$4 sm:$0xff]  }
0x1f2d   : > { %13566 = vmatpush1.bf16.msra.mxu1 %v20732_v54  ;;  %v20771_v54 = vld [vmem:[%s22145_s17 + $0x460] ss:$24 sps:$4 sm:$0xff]  }
0x1f2e   : > { %13567 = vmatprep.subr.bf16.mxu1 %v20737_v28  ;;  %v20774_v28 = vld [vmem:[%s22145_s17 + $0x490] ss:$24 sps:$4 sm:$0xff]  }
0x1f2f   : > { %15453 = vmatpush1.bf16.msra.mxu0 %v20879_v16  ;;  %v20816_v16 = vld [vmem:[%s22145_s17 + $0x730] ss:$24 sps:$4 sm:$0xff]  }
0x1f30   : > { %15454 = vmatprep.subr.bf16.mxu0 %v20887_v21  ;;  %v20836_v21 = vld [vmem:[%s22145_s17 + $0x7c4] ss:$24 sps:$4 sm:$0xff]  }
0x1f31   : > { %13568 = vmatpush1.bf16.msra.mxu1 %v20735_v43  ;;  %v20779_v43 = vld [vmem:[%s22145_s17 + $0x4c4] ss:$24 sps:$4 sm:$0xff]  }
0x1f32   : > { %13569 = vmatprep.subr.bf16.mxu1 %v20740_v36  ;;  %v20780_v36 = vld [vmem:[%s22145_s17 + $0x4f0] ss:$24 sps:$4 sm:$0xff]  }
0x1f35   : > { %13570 = vmatpush1.bf16.msra.mxu1 %v20738_v29  ;;  %v20785_v29 = vld [vmem:[%s22145_s17 + $0x524] ss:$24 sps:$4 sm:$0xff]  }
0x1f36   : > { %13571 = vmatprep.subr.bf16.mxu1 %v20743_v10  ;;  %v20786_v10 = vld [vmem:[%s22145_s17 + $0x550] ss:$24 sps:$4 sm:$0xff]  }
0x1f39   : > { %13572 = vmatpush1.bf16.msra.mxu1 %v20741_v22  ;;  %v20791_v22 = vld [vmem:[%s22145_s17 + $0x584] ss:$24 sps:$4 sm:$0xff]  }
0x1f3a   : > { %13573 = vmatprep.subr.bf16.mxu1 %v20746_v35  ;;  %v20792_v35 = vld [vmem:[%s22145_s17 + $0x5b0] ss:$24 sps:$4 sm:$0xff]  }
0x1f3d   : > { %13574 = vmatpush1.bf16.msra.mxu1 %v20744_v44  ;;  %v20797_v44 = vld [vmem:[%s22145_s17 + $0x5e4] ss:$24 sps:$4 sm:$0xff]  }
0x1f3e   : > { %13575 = vmatprep.subr.bf16.mxu1 %v20749_v33  ;;  %v20798_v33 = vld [vmem:[%s22145_s17 + $0x610] ss:$24 sps:$4 sm:$0xff]  }
0x1f41   : > { %13576 = vmatpush1.bf16.msra.mxu1 %v20747_v37  ;;  %v20803_v37 = vld [vmem:[%s22145_s17 + $0x644] ss:$24 sps:$4 sm:$0xff]  }
0x1f42   : > { %13586 = vmatprep.subr.bf16.mxu1 %v20752_v5  ;;  %v20804_v5 = vld [vmem:[%s22145_s17 + $0x670] ss:$24 sps:$4 sm:$0xff]  }
0x1f44   : > { %13578 = vmatmul.mubr.bf16.vlgmr.msra.gmra.mrb[128].mxu1 %v24069_v39  ;;  %v20885_v39 = vld [vmem:[%s22151_s12 + $0x210] ss:$24 sps:$4 sm:$0xff]  }
0x1f45   : > { %13587 = vmatpush1.bf16.msra.mxu1 %v20750_v59  ;;  %13618 = vmatprep.mubr.bf16.mxu1 %v24079_v32  ;;  %v20761_v32 = vld [vmem:[%s22145_s17 + $0x3a4] ss:$24 sps:$4 sm:$0xff]  }
0x1f46   : > { %13588 = vmatprep.subr.bf16.mxu1 %v20755_v12  ;;  %15455 = vmatpush1.bf16.msra.mxu0 %v20885_v39  ;;  %v20809_v59 = vld [vmem:[%s22145_s17 + $0x6a4] ss:$24 sps:$4 sm:$0xff]   ;;  %v20813_v12 = vld [vmem:[%s22145_s17 + $0x700] ss:$24 sps:$4 sm:$0xff]   ;;  %v20828_v39 = vld [vmem:[%s22145_s17 + $0x790] ss:$24 sps:$4 sm:$0xff]  }
0x1f47   : > { %15456 = vmatprep.subr.bf16.mxu0 %v20893_v17  ;;  %v20848_v17 = vld [vmem:[%s22145_s17 + $0x824] ss:$24 sps:$4 sm:$0xff]  }
0x1f49   : > { %13589 = vmatpush1.bf16.msra.mxu1 %v20753_v60  ;;  %v20818_v60 = vld [vmem:[%s22145_s17 + $0x734] ss:$24 sps:$4 sm:$0xff]  }
0x1f4a   : > { %13590 = vmatprep.subr.bf16.mxu1 %v20758_v2  ;;  %15457 = vmatpush1.bf16.msra.mxu0 %v20891_v45  ;;  %v20822_v2 = vld [vmem:[%s22145_s17 + $0x760] ss:$24 sps:$4 sm:$0xff]   ;;  %v20840_v45 = vld [vmem:[%s22145_s17 + $0x7f0] ss:$24 sps:$4 sm:$0xff]  }
0x1f4b   : > { %15458 = vmatprep.subr.bf16.mxu0 %v20899_v20  ;;  %v20860_v20 = vld [vmem:[%s22145_s17 + $0x884] ss:$24 sps:$4 sm:$0xff]  }
0x1f4d   : > { %13591 = vmatpush1.bf16.msra.mxu1 %v20756_v18  ;;  %v20830_v18 = vld [vmem:[%s22145_s17 + $0x794] ss:$24 sps:$4 sm:$0xff]  }
0x1f4e   : > { %13592 = vmatprep.subr.bf16.mxu1 %v20761_v32  ;;  %15459 = vmatpush1.bf16.msra.mxu0 %v20897_v13  ;;  %v20834_v32 = vld [vmem:[%s22145_s17 + $0x7c0] ss:$24 sps:$4 sm:$0xff]   ;;  %v20852_v13 = vld [vmem:[%s22145_s17 + $0x850] ss:$24 sps:$4 sm:$0xff]  }
0x1f4f   : > { %15460 = vmatprep.subr.bf16.mxu0 %v20905_v48  ;;  %v20872_v48 = vld [vmem:[%s22145_s17 + $0x8e4] ss:$24 sps:$4 sm:$0xff]  }
0x1f51   : > { %13593 = vmatpush1.bf16.msra.mxu1 %v20759_v34  ;;  %v20842_v34 = vld [vmem:[%s22145_s17 + $0x7f4] ss:$24 sps:$4 sm:$0xff]  }
0x1f52   : > { %13594 = vmatprep.subr.bf16.mxu1 %v20764_v38  ;;  %15461 = vmatpush1.bf16.msra.mxu0 %v20903_v63  ;;  %v20846_v38 = vld [vmem:[%s22145_s17 + $0x820] ss:$24 sps:$4 sm:$0xff]  }
0x1f53   : > { %15462 = vmatprep.subr.bf16.mxu0 %v20911_v55  ;;  %v20870_v63 = vld [vmem:[%s22145_s17 + $0x8e0] ss:$24 sps:$4 sm:$0xff]   ;;  %v20884_v55 = vld [vmem:[%s22151_s12 + $0x3c] ss:$24 sps:$4 sm:$0xff]  }
0x1f55   : > { %13595 = vmatpush1.bf16.msra.mxu1 %v20762_v47  ;;  %v20854_v47 = vld [vmem:[%s22145_s17 + $0x854] ss:$24 sps:$4 sm:$0xff]  }
0x1f56   : > { %13596 = vmatprep.subr.bf16.mxu1 %v20767_v50  ;;  %15463 = vmatpush1.bf16.msra.mxu0 %v20909_v27  ;;  %v20858_v50 = vld [vmem:[%s22145_s17 + $0x880] ss:$24 sps:$4 sm:$0xff]  }
0x1f57   : > { %15473 = vmatprep.subr.bf16.mxu0 %v20917_v61  ;;  %v20882_v27 = vld [vmem:[%s22151_s12 + $0x38] ss:$24 sps:$4 sm:$0xff]   ;;  %v20896_v61 = vld [vmem:[%s22151_s12 + $0x9c] ss:$24 sps:$4 sm:$0xff]  }
0x1f59   : > { %13597 = vmatpush1.bf16.msra.mxu1 %v20765_v26  ;;  %v20866_v26 = vld [vmem:[%s22145_s17 + $0x8b4] ss:$24 sps:$4 sm:$0xff]  }
0x1f5a   : > { %13598 = vmatprep.subr.bf16.mxu1 %v20770_v53  ;;  %v20864_v53 = vld [vmem:[%s22145_s17 + $0x8b0] ss:$24 sps:$4 sm:$0xff]  }
0x1f5d   : > { %13599 = vmatpush1.bf16.msra.mxu1 %v20768_v52  ;;  %v20878_v52 = vld [vmem:[%s22151_s12 + $0xc] ss:$24 sps:$4 sm:$0xff]  }
0x1f5e   : > { %13600 = vmatprep.subr.bf16.mxu1 %v20773_v6  ;;  %v20876_v6 = vld [vmem:[%s22151_s12 + $0x8] ss:$24 sps:$4 sm:$0xff]  }
0x1f61   : > { %13601 = vmatpush1.bf16.msra.mxu1 %v20771_v54  ;;  %v20890_v54 = vld [vmem:[%s22151_s12 + $0x6c] ss:$24 sps:$4 sm:$0xff]  }
0x1f62   : > { %13602 = vmatprep.subr.bf16.mxu1 %v20776_v62  ;;  %v20888_v62 = vld [vmem:[%s22151_s12 + $0x68] ss:$24 sps:$4 sm:$0xff]  }
0x1f65   : > { %13603 = vmatpush1.bf16.msra.mxu1 %v20774_v28  ;;  %v20894_v28 = vld [vmem:[%s22151_s12 + $0x98] ss:$24 sps:$4 sm:$0xff]  }
0x1f66   : > { %13604 = vmatprep.subr.bf16.mxu1 %v20779_v43  ;;  %v20902_v43 = vld [vmem:[%s22151_s12 + $0xcc] ss:$24 sps:$4 sm:$0xff]  }
0x1f69   : > { %13605 = vmatpush1.bf16.msra.mxu1 %v20777_v42  ;;  %v20900_v42 = vld [vmem:[%s22151_s12 + $0xc8] ss:$24 sps:$4 sm:$0xff]  }
0x1f6a   : > { %13606 = vmatprep.subr.bf16.mxu1 %v20782_v51  ;;  %v20908_v51 = vld [vmem:[%s22151_s12 + $0xfc] ss:$24 sps:$4 sm:$0xff]  }
0x1f6d   : > { %13607 = vmatpush1.bf16.msra.mxu1 %v20780_v36  ;;  %v24373_v36 = vld [vmem:[%s22153_s22] sm:$0xff] }
0x1f6e   : > { %13608 = vmatprep.subr.bf16.mxu1 %v20785_v29 }
0x1f71   : > { %13609 = vmatpush1.bf16.msra.mxu1 %v20783_v1  ;;  %v24378_v1 = vld [vmem:[%s22153_s22 + $0x8] sm:$0xff] }
0x1f72   : > { %13610 = vmatprep.subr.bf16.mxu1 %v20788_v40 }
0x1f75   : > { %13611 = vmatpush1.bf16.msra.mxu1 %v20786_v10  ;;  %v20906_v10 = vld [vmem:[%s22151_s12 + $0xf8] ss:$24 sps:$4 sm:$0xff]  }
0x1f76   : > { %13612 = vmatprep.subr.bf16.mxu1 %v20791_v22  ;;  %v21330_v22 = vld [vmem:[%s22153_s22 + $0x18] sm:$0xff] }
0x1f79   : > { %13613 = vmatpush1.bf16.msra.mxu1 %v20789_v8 }
0x1f7a   : > { %13614 = vmatprep.subr.bf16.mxu1 %v20794_v49  ;;  %v20914_v49 = vld [vmem:[%s22151_s12 + $0x12c] ss:$24 sps:$4 sm:$0xff]  }
0x1f7d   : > { %13615 = vmatpush1.bf16.msra.mxu1 %v20792_v35 }
0x1f7e   : > { %13616 = vmatprep.subr.bf16.mxu1 %v20797_v44 }
0x1f81   : > { %13617 = vmatpush1.bf16.msra.mxu1 %v20795_v3 }
0x1f82   : > { %13627 = vmatprep.subr.bf16.mxu1 %v20800_v46 }
0x1f84   : > { %13619 = vmatmul.mubr.bf16.vlgmr.msra.gmra.mrb[128].mxu1 %v24146_v31  ;;  %v20812_v31 = vld [vmem:[%s22145_s17 + $0x6d4] ss:$24 sps:$4 sm:$0xff]  }
0x1f85   : > { %13628 = vmatpush1.bf16.msra.mxu1 %v20798_v33  ;;  %13659 = vmatprep.mubr.bf16.mxu1 %v24151_v23  ;;  %v20815_v23 = vld [vmem:[%s22145_s17 + $0x704] ss:$24 sps:$4 sm:$0xff]  }
0x1f86   : > { %13629 = vmatprep.subr.bf16.mxu1 %v20803_v37 }
0x1f89   : > { %13630 = vmatpush1.bf16.msra.mxu1 %v20801_v14 }
0x1f8a   : > { %13631 = vmatprep.subr.bf16.mxu1 %v20806_v57  ;;  %v20912_v57 = vld [vmem:[%s22151_s12 + $0x128] ss:$24 sps:$4 sm:$0xff]  }
0x1f8d   : > { %13632 = vmatpush1.bf16.msra.mxu1 %v20804_v5 }
0x1f8e   : > { %13633 = vmatprep.subr.bf16.mxu1 %v20809_v59 }
0x1f91   : > { %13634 = vmatpush1.bf16.msra.mxu1 %v20807_v0 }
0x1f92   : > { %13635 = vmatprep.subr.bf16.mxu1 %v20812_v31 }
0x1f95   : > { %13636 = vmatpush1.bf16.msra.mxu1 %v20810_v4  ;;  %v20920_v4 = vld [vmem:[%s22151_s12 + $0x15c] ss:$24 sps:$4 sm:$0xff]  }
0x1f96   : > { %13637 = vmatprep.subr.bf16.mxu1 %v20815_v23 }
0x1f99   : > { %13638 = vmatpush1.bf16.msra.mxu1 %v20813_v12 }
0x1f9a   : > { %13639 = vmatprep.subr.bf16.mxu1 %v20818_v60 }
0x1f9d   : > { %13640 = vmatpush1.bf16.msra.mxu1 %v20816_v16 }
0x1f9e   : > { %13641 = vmatprep.subr.bf16.mxu1 %v20824_v11  ;;  %v20915_v11 = vld [vmem:[%s22151_s12 + $0x300] ss:$24 sps:$4 sm:$0xff]  }
0x1fa1   : > { %13642 = vmatpush1.bf16.msra.mxu1 %v20822_v2 }
0x1fa2   : > { %13643 = vmatprep.subr.bf16.mxu1 %v20830_v18  ;;  %v20918_v18 = vld [vmem:[%s22151_s12 + $0x158] ss:$24 sps:$4 sm:$0xff]  }
0x1fa5   : > { %13644 = vmatpush1.bf16.msra.mxu1 %v20828_v39  ;;  %v20923_v39 = vld [vmem:[%s22151_s12 + $0x334] ss:$24 sps:$4 sm:$0xff]  }
0x1fa6   : > { %13645 = vmatprep.subr.bf16.mxu1 %v20836_v21 }
0x1fa9   : > { %13646 = vmatpush1.bf16.msra.mxu1 %v20834_v32  ;;  %v20926_v32 = vld [vmem:[%s22151_s12 + $0x18c] ss:$24 sps:$4 sm:$0xff]  }
0x1faa   : > { %13647 = vmatprep.subr.bf16.mxu1 %v20842_v34  ;;  %v20921_v34 = vld [vmem:[%s22151_s12 + $0x330] ss:$24 sps:$4 sm:$0xff]  }
0x1fad   : > { %13648 = vmatpush1.bf16.msra.mxu1 %v20840_v45  ;;  %v20924_v45 = vld [vmem:[%s22151_s12 + $0x188] ss:$24 sps:$4 sm:$0xff]  }
0x1fae   : > { %13649 = vmatprep.subr.bf16.mxu1 %v20848_v17  ;;  %v20929_v17 = vld [vmem:[%s22151_s12 + $0x364] ss:$24 sps:$4 sm:$0xff]  }
0x1fb1   : > { %13650 = vmatpush1.bf16.msra.mxu1 %v20846_v38  ;;  %v20932_v38 = vld [vmem:[%s22151_s12 + $0x1bc] ss:$24 sps:$4 sm:$0xff]  }
0x1fb2   : > { %13651 = vmatprep.subr.bf16.mxu1 %v20854_v47  ;;  %v20927_v47 = vld [vmem:[%s22151_s12 + $0x360] ss:$24 sps:$4 sm:$0xff]  }
0x1fb5   : > { %13652 = vmatpush1.bf16.msra.mxu1 %v20852_v13  ;;  %v20930_v13 = vld [vmem:[%s22151_s12 + $0x1b8] ss:$24 sps:$4 sm:$0xff]  }
0x1fb6   : > { %13653 = vmatprep.subr.bf16.mxu1 %v20860_v20  ;;  %v20935_v20 = vld [vmem:[%s22151_s12 + $0x394] ss:$24 sps:$4 sm:$0xff]  }
0x1fb9   : > { %13654 = vmatpush1.bf16.msra.mxu1 %v20858_v50  ;;  %v20938_v50 = vld [vmem:[%s22151_s12 + $0x1ec] ss:$24 sps:$4 sm:$0xff]  }
0x1fba   : > { %13655 = vmatprep.subr.bf16.mxu1 %v20866_v26  ;;  %v20933_v26 = vld [vmem:[%s22151_s12 + $0x390] ss:$24 sps:$4 sm:$0xff]  }
0x1fbd   : > { %13656 = vmatpush1.bf16.msra.mxu1 %v20864_v53  ;;  %v20936_v53 = vld [vmem:[%s22151_s12 + $0x1e8] ss:$24 sps:$4 sm:$0xff]  }
0x1fbe   : > { %13657 = vmatprep.subr.bf16.mxu1 %v20872_v48  ;;  %v20941_v48 = vld [vmem:[%s22151_s12 + $0x3c4] ss:$24 sps:$4 sm:$0xff]  }
0x1fc1   : > { %13658 = vmatpush1.bf16.msra.mxu1 %v20870_v63  ;;  %v20944_v63 = vld [vmem:[%s22151_s12 + $0x21c] ss:$24 sps:$4 sm:$0xff]  }
0x1fc2   : > { %15555 = vmatprep.subr.bf16.mxu1 %v20878_v52  ;;  %v20939_v52 = vld [vmem:[%s22151_s12 + $0x3c0] ss:$24 sps:$4 sm:$0xff]  }
0x1fc4   : > { %13660 = vmatmul.mubr.bf16.vlgmr.msra.gmra.mrb[128].mxu1 %v24221_v24  ;;  %v24368_v24 = vsub.s32 4, %v22852_v9 }
0x1fc5   : > { %15556 = vmatpush1.bf16.msra.mxu1 %v20876_v6  ;;  %v20942_v6 = vld [vmem:[%s22151_s12 + $0x218] ss:$24 sps:$4 sm:$0xff]  }
0x1fc6   : > { %15557 = vmatprep.subr.bf16.mxu1 %v20884_v55  ;;  %v11838_v29 = vrot.slane %v24373_v36, %v24368_v24  ;;  %v11842_v40 = vrot.slane %v24378_v1, %v24368_v24  ;;  %v11850_v8 = vrot.slane %v21330_v22, %v24368_v24  ;;  %v20947_v55 = vld [vmem:[%s22151_s12 + $0x3f4] ss:$24 sps:$4 sm:$0xff]   ;;  %v20965_v22 = vld [vmem:[%s22151_s12 + $0x484] ss:$24 sps:$4 sm:$0xff]  }
0x1fc9   : > { %15558 = vmatpush1.bf16.msra.mxu1 %v20882_v27  ;;  %v20950_v27 = vld [vmem:[%s22151_s12 + $0x24c] ss:$24 sps:$4 sm:$0xff]  }
0x1fca   : > { %15559 = vmatprep.subr.bf16.mxu1 %v20890_v54  ;;  %v20945_v54 = vld [vmem:[%s22151_s12 + $0x3f0] ss:$24 sps:$4 sm:$0xff]  }
0x1fcd   : > { %15560 = vmatpush1.bf16.msra.mxu1 %v20888_v62  ;;  %v20948_v62 = vld [vmem:[%s22151_s12 + $0x248] ss:$24 sps:$4 sm:$0xff]  }
0x1fce   : > { %15561 = vmatprep.subr.bf16.mxu1 %v20896_v61  ;;  %v20953_v61 = vld [vmem:[%s22151_s12 + $0x424] ss:$24 sps:$4 sm:$0xff]  }
0x1fd1   : > { %15562 = vmatpush1.bf16.msra.mxu1 %v20894_v28  ;;  %v20956_v28 = vld [vmem:[%s22151_s12 + $0x27c] ss:$24 sps:$4 sm:$0xff]  }
0x1fd2   : > { %15563 = vmatprep.subr.bf16.mxu1 %v20902_v43  ;;  %v20951_v43 = vld [vmem:[%s22151_s12 + $0x420] ss:$24 sps:$4 sm:$0xff]  }
0x1fd5   : > { %15564 = vmatpush1.bf16.msra.mxu1 %v20900_v42  ;;  %v20954_v42 = vld [vmem:[%s22151_s12 + $0x278] ss:$24 sps:$4 sm:$0xff]  }
0x1fd6   : > { %15565 = vmatprep.subr.bf16.mxu1 %v20908_v51  ;;  %v20959_v51 = vld [vmem:[%s22151_s12 + $0x454] ss:$24 sps:$4 sm:$0xff]  }
0x1fd7   : > { %v13415_v35 = vpop.f32.mrb[124].mxu1 }
0x1fd8   : > { %v18518_v44 = vadd.f32 %v13415_v35, %v11838_v29  ;;  %v24386_v3 = vpop.f32.mrb[112].mxu0  ;;  %v13417_v46 = vpop.f32.mrb[125].mxu1  ;;  %v20962_v29 = vld [vmem:[%s22151_s12 + $0x2ac] ss:$24 sps:$4 sm:$0xff]   ;;  %v20966_v35 = vld [vmem:[%s22151_s12 + $0x2d8] ss:$24 sps:$4 sm:$0xff]  }
0x1fd9   : > { %v18519_v33 = vadd.f32 %v13417_v46, %v11842_v40  ;;  %v13540_v37 = vpop.f32.mrb[113].mxu0  ;;  %v13419_v14 = vpop.f32.mrb[126].mxu1  ;;  %15566 = vmatpush1.bf16.msra.mxu1 %v20906_v10  ;;  %v20957_v40 = vld [vmem:[%s22151_s12 + $0x450] ss:$24 sps:$4 sm:$0xff]   ;;  %v20995_v46 = vld [vmem:[%s22151_s12 + $0x60c] ss:$24 sps:$4 sm:$0xff]  }
0x1fda   : > { %v13668_v5 = vmax.f32 %v18518_v44, 0.0  ;;  %v18521_v59 = vadd.f32 %v13540_v37, %v11850_v8  ;;  %v13542_v0 = vpop.f32.mrb[114].mxu0  ;;  %v13420_v31 = vpop.f32.mrb[127].mxu1  ;;  %15567 = vmatprep.subr.bf16.mxu1 %v20914_v49  ;;  %v20960_v10 = vld [vmem:[%s22151_s12 + $0x2a8] ss:$24 sps:$4 sm:$0xff]  }
0x1fdb   : > { %v13669_v23 = vmax.f32 %v18519_v33, 0.0  ;;  %v13543_v12 = vpop.f32.mrb[115].mxu0  ;;  %v20968_v8 = vld [vmem:[%s22151_s12 + $0x2dc] ss:$24 sps:$4 sm:$0xff]   ;;  %v20963_v49 = vld [vmem:[%s22151_s12 + $0x480] ss:$24 sps:$4 sm:$0xff]  }
0x1fdc   : > { %v13671_v60 = vmax.f32 %v18521_v59, 0.0  ;;  %v24393_v2 = vpack.c.bf16 %v13668_v5, %v13668_v5  ;;  %v20971_v44 = vld [vmem:[%s22151_s12 + $0x4b4] ss:$24 sps:$4 sm:$0xff]   ;;  %v20969_v33 = vld [vmem:[%s22151_s12 + $0x4b0] ss:$24 sps:$4 sm:$0xff]  }
0x1fdd   : > { %v24390_v16 = vpack.c.bf16 %v13669_v23, %v13669_v23  ;;  %15568 = vmatpush1.bf16.msra.mxu1 %v20912_v57  ;;  %v20974_v37 = vld [vmem:[%s22151_s12 + $0x4e4] ss:$24 sps:$4 sm:$0xff]   ;;  %v20993_v14 = vld [vmem:[%s22151_s12 + $0x608] ss:$24 sps:$4 sm:$0xff]   ;;  %v20977_v59 = vld [vmem:[%s22151_s12 + $0x514] ss:$24 sps:$4 sm:$0xff]  }
0x1fde   : > { %15569 = vmatprep.subr.bf16.mxu1 %v20920_v4  ;;  %v24397_v21 = vpack.c.bf16 %v13671_v60, %v13671_v60  ;;  %v21001_v57 = vld [vmem:[%s22151_s12 + $0x63c] ss:$24 sps:$4 sm:$0xff]   ;;  %v20972_v5 = vld [vmem:[%s22151_s12 + $0x4e0] ss:$24 sps:$4 sm:$0xff]   ;;  %v21007_v31 = vld [vmem:[%s22151_s12 + $0x66c] ss:$24 sps:$4 sm:$0xff]  }
0x1fdf   : > { %15464 = vmatprep.mubr.bf16.mxu0 %v24390_v16  ;;  %15587 = vmatprep.mubr.bf16.mxu1 %v24390_v16  ;;  %v20999_v0 = vld [vmem:[%s22151_s12 + $0x638] ss:$24 sps:$4 sm:$0xff]   ;;  %v20980_v23 = vld [vmem:[%s22151_s12 + $0x544] ss:$24 sps:$4 sm:$0xff]   ;;  %v21005_v12 = vld [vmem:[%s22151_s12 + $0x668] ss:$24 sps:$4 sm:$0xff]  }
0x1fe0   : > { %15465 = vmatmul.mubr.bf16.vlgmr.msra.gmra.mrb[116].mxu0 %v24393_v2  ;;  %v20975_v4 = vld [vmem:[%s22151_s12 + $0x510] ss:$24 sps:$4 sm:$0xff]   ;;  %v21013_v60 = vld [vmem:[%s22151_s12 + $0x69c] ss:$24 sps:$4 sm:$0xff]  }
0x1fe1   : > { %15474 = vmatpush1.bf16.msra.mxu0 %v20915_v11  ;;  %15505 = vmatprep.mubr.bf16.mxu0 %v24397_v21  ;;  %v20978_v11 = vld [vmem:[%s22151_s12 + $0x540] ss:$24 sps:$4 sm:$0xff]  }
0x1fe2   : > { %15570 = vmatpush1.bf16.msra.mxu1 %v20918_v18  ;;  %15475 = vmatprep.subr.bf16.mxu0 %v20923_v39  ;;  %v20983_v18 = vld [vmem:[%s22151_s12 + $0x574] ss:$24 sps:$4 sm:$0xff]   ;;  %v21011_v39 = vld [vmem:[%s22151_s12 + $0x698] ss:$24 sps:$4 sm:$0xff]  }
0x1fe3   : > { %15571 = vmatprep.subr.bf16.mxu1 %v20926_v32  ;;  %v21019_v32 = vld [vmem:[%s22151_s12 + $0x6cc] ss:$24 sps:$4 sm:$0xff]  }
0x1fe5   : > { %15476 = vmatpush1.bf16.msra.mxu0 %v20921_v34  ;;  %v20981_v34 = vld [vmem:[%s22151_s12 + $0x570] ss:$24 sps:$4 sm:$0xff]  }
0x1fe6   : > { %15572 = vmatpush1.bf16.msra.mxu1 %v20924_v45  ;;  %15477 = vmatprep.subr.bf16.mxu0 %v20929_v17  ;;  %v24455_v45 = vld [vmem:[%s22153_s22 + $0x10] sm:$0xff] }
0x1fe7   : > { %15573 = vmatprep.subr.bf16.mxu1 %v20932_v38  ;;  %v11846_v17 = vrot.slane %v24455_v45, %v24368_v24  ;;  %v20986_v38 = vld [vmem:[%s22151_s12 + $0x5a4] ss:$24 sps:$4 sm:$0xff]  }
0x1fe9   : > { %15478 = vmatpush1.bf16.msra.mxu0 %v20927_v47  ;;  %v21017_v47 = vld [vmem:[%s22151_s12 + $0x6c8] ss:$24 sps:$4 sm:$0xff]  }
0x1fea   : > { %15574 = vmatpush1.bf16.msra.mxu1 %v20930_v13  ;;  %15479 = vmatprep.subr.bf16.mxu0 %v20935_v20  ;;  %v21025_v13 = vld [vmem:[%s22151_s12 + $0x6fc] ss:$24 sps:$4 sm:$0xff]   ;;  %v20984_v20 = vld [vmem:[%s22151_s12 + $0x5a0] ss:$24 sps:$4 sm:$0xff]  }
0x1feb   : > { %15575 = vmatprep.subr.bf16.mxu1 %v20938_v50  ;;  %v18520_v50 = vadd.f32 %v24386_v3, %v11846_v17  ;;  %v21037_v3 = vld [vmem:[%s22151_s12 + $0x75c] ss:$24 sps:$4 sm:$0xff]  }
0x1fec   : > { %v21046_v17 = vld [vmem:[%s22151_s12 + $0x7b4] ss:$24 sps:$4 sm:$0xff]  }
0x1fed   : > { %15480 = vmatpush1.bf16.msra.mxu0 %v20933_v26  ;;  %v20989_v26 = vld [vmem:[%s22151_s12 + $0x5d4] ss:$24 sps:$4 sm:$0xff]  }
0x1fee   : > { %15576 = vmatpush1.bf16.msra.mxu1 %v20936_v53  ;;  %15481 = vmatprep.subr.bf16.mxu0 %v20941_v48  ;;  %v21023_v53 = vld [vmem:[%s22151_s12 + $0x6f8] ss:$24 sps:$4 sm:$0xff]   ;;  %v21031_v48 = vld [vmem:[%s22151_s12 + $0x72c] ss:$24 sps:$4 sm:$0xff]  }
0x1fef   : > { %15577 = vmatprep.subr.bf16.mxu1 %v20944_v63  ;;  %v20987_v63 = vld [vmem:[%s22151_s12 + $0x5d0] ss:$24 sps:$4 sm:$0xff]  }
0x1ff1   : > { %15482 = vmatpush1.bf16.msra.mxu0 %v20939_v52  ;;  %v13670_v52 = vmax.f32 %v18520_v50, 0.0  ;;  %v21050_v50 = vld [vmem:[%s22151_s12 + $0x7e0] ss:$24 sps:$4 sm:$0xff]  }
0x1ff2   : > { %15578 = vmatpush1.bf16.msra.mxu1 %v20942_v6  ;;  %15483 = vmatprep.subr.bf16.mxu0 %v20947_v55  ;;  %v20992_v6 = vld [vmem:[%s22151_s12 + $0x604] ss:$24 sps:$4 sm:$0xff]   ;;  %v21029_v55 = vld [vmem:[%s22151_s12 + $0x728] ss:$24 sps:$4 sm:$0xff]  }
0x1ff3   : > { %15579 = vmatprep.subr.bf16.mxu1 %v20950_v27  ;;  %v20990_v27 = vld [vmem:[%s22151_s12 + $0x600] ss:$24 sps:$4 sm:$0xff]  }
0x1ff5   : > { %15484 = vmatpush1.bf16.msra.mxu0 %v20945_v54  ;;  %v24472_v54 = vpack.c.bf16 %v13670_v52, %v13670_v52  ;;  %v21070_v52 = vld [vmem:[%s22151_s12 + $0x874] ss:$24 sps:$4 sm:$0xff]  }
0x1ff6   : > { %15580 = vmatpush1.bf16.msra.mxu1 %v20948_v62  ;;  %15485 = vmatprep.subr.bf16.mxu0 %v20953_v61  ;;  %v20998_v62 = vld [vmem:[%s22151_s12 + $0x634] ss:$24 sps:$4 sm:$0xff]   ;;  %v21035_v61 = vld [vmem:[%s22151_s12 + $0x758] ss:$24 sps:$4 sm:$0xff]  }
0x1ff7   : > { %15581 = vmatprep.subr.bf16.mxu1 %v20956_v28  ;;  %v21043_v28 = vld [vmem:[%s22151_s12 + $0x78c] ss:$24 sps:$4 sm:$0xff]  }
0x1ff9   : > { %15486 = vmatpush1.bf16.msra.mxu0 %v20951_v43  ;;  %v20996_v43 = vld [vmem:[%s22151_s12 + $0x630] ss:$24 sps:$4 sm:$0xff]  }
0x1ffa   : > { %15582 = vmatpush1.bf16.msra.mxu1 %v20954_v42  ;;  %15487 = vmatprep.subr.bf16.mxu0 %v20959_v51  ;;  %v21004_v42 = vld [vmem:[%s22151_s12 + $0x664] ss:$24 sps:$4 sm:$0xff]   ;;  %v21041_v51 = vld [vmem:[%s22151_s12 + $0x788] ss:$24 sps:$4 sm:$0xff]  }
0x1ffb   : > { %15583 = vmatprep.subr.bf16.mxu1 %v20962_v29  ;;  %v21049_v29 = vld [vmem:[%s22151_s12 + $0x7bc] ss:$24 sps:$4 sm:$0xff]  }
0x1ffd   : > { %15488 = vmatpush1.bf16.msra.mxu0 %v20957_v40  ;;  %v21002_v40 = vld [vmem:[%s22151_s12 + $0x660] ss:$24 sps:$4 sm:$0xff]  }
0x1ffe   : > { %15584 = vmatpush1.bf16.msra.mxu1 %v20960_v10  ;;  %15489 = vmatprep.subr.bf16.mxu0 %v20965_v22  ;;  %v21010_v10 = vld [vmem:[%s22151_s12 + $0x694] ss:$24 sps:$4 sm:$0xff]   ;;  %v21047_v22 = vld [vmem:[%s22151_s12 + $0x7b8] ss:$24 sps:$4 sm:$0xff]  }
0x1fff   : > { %15585 = vmatprep.subr.bf16.mxu1 %v20968_v8  ;;  %v21055_v8 = vld [vmem:[%s22151_s12 + $0x7ec] ss:$24 sps:$4 sm:$0xff]  }
0x2001   : > { %15490 = vmatpush1.bf16.msra.mxu0 %v20963_v49  ;;  %v21008_v49 = vld [vmem:[%s22151_s12 + $0x690] ss:$24 sps:$4 sm:$0xff]  }
0x2002   : > { %15586 = vmatpush1.bf16.msra.mxu1 %v20966_v35  ;;  %15491 = vmatprep.subr.bf16.mxu0 %v20971_v44  ;;  %v21016_v35 = vld [vmem:[%s22151_s12 + $0x6c4] ss:$24 sps:$4 sm:$0xff]   ;;  %v21053_v44 = vld [vmem:[%s22151_s12 + $0x7e8] ss:$24 sps:$4 sm:$0xff]  }
0x2003   : > { %15637 = vmatprep.subr.bf16.mxu1 %v20995_v46  ;;  %v21061_v46 = vld [vmem:[%s22151_s12 + $0x81c] ss:$24 sps:$4 sm:$0xff]  }
0x2005   : > { %15492 = vmatpush1.bf16.msra.mxu0 %v20969_v33  ;;  %15588 = vmatmul.mubr.bf16.vlgmr.msra.gmra.mrb[132].mxu1 %v24393_v2  ;;  %v21014_v33 = vld [vmem:[%s22151_s12 + $0x6c0] ss:$24 sps:$4 sm:$0xff]  }
0x2006   : > { %15493 = vmatprep.subr.bf16.mxu0 %v20974_v37  ;;  %15638 = vmatpush1.bf16.msra.mxu1 %v20993_v14  ;;  %v21022_v37 = vld [vmem:[%s22151_s12 + $0x6f4] ss:$24 sps:$4 sm:$0xff]   ;;  %v21059_v14 = vld [vmem:[%s22151_s12 + $0x818] ss:$24 sps:$4 sm:$0xff]  }
0x2007   : > { %15639 = vmatprep.subr.bf16.mxu1 %v21001_v57  ;;  %v21067_v57 = vld [vmem:[%s22151_s12 + $0x84c] ss:$24 sps:$4 sm:$0xff]  }
0x2009   : > { %15494 = vmatpush1.bf16.msra.mxu0 %v20972_v5  ;;  %v21020_v5 = vld [vmem:[%s22151_s12 + $0x6f0] ss:$24 sps:$4 sm:$0xff]  }
0x200a   : > { %15495 = vmatprep.subr.bf16.mxu0 %v20977_v59  ;;  %15640 = vmatpush1.bf16.msra.mxu1 %v20999_v0  ;;  %v21028_v59 = vld [vmem:[%s22151_s12 + $0x724] ss:$24 sps:$4 sm:$0xff]   ;;  %v21065_v0 = vld [vmem:[%s22151_s12 + $0x848] ss:$24 sps:$4 sm:$0xff]  }
0x200b   : > { %15641 = vmatprep.subr.bf16.mxu1 %v21007_v31  ;;  %v21073_v31 = vld [vmem:[%s22151_s12 + $0x87c] ss:$24 sps:$4 sm:$0xff]  }
0x200d   : > { %15496 = vmatpush1.bf16.msra.mxu0 %v20975_v4  ;;  %v21026_v4 = vld [vmem:[%s22151_s12 + $0x720] ss:$24 sps:$4 sm:$0xff]  }
0x200e   : > { %15497 = vmatprep.subr.bf16.mxu0 %v20980_v23  ;;  %15642 = vmatpush1.bf16.msra.mxu1 %v21005_v12  ;;  %v21034_v23 = vld [vmem:[%s22151_s12 + $0x754] ss:$24 sps:$4 sm:$0xff]   ;;  %v21071_v12 = vld [vmem:[%s22151_s12 + $0x878] ss:$24 sps:$4 sm:$0xff]  }
0x200f   : > { %15643 = vmatprep.subr.bf16.mxu1 %v21013_v60  ;;  %v21079_v60 = vld [vmem:[%s22151_s12 + $0x8ac] ss:$24 sps:$4 sm:$0xff]  }
0x2011   : > { %15498 = vmatpush1.bf16.msra.mxu0 %v20978_v11  ;;  %v21032_v11 = vld [vmem:[%s22151_s12 + $0x750] ss:$24 sps:$4 sm:$0xff]  }
0x2012   : > { %15499 = vmatprep.subr.bf16.mxu0 %v20983_v18  ;;  %15644 = vmatpush1.bf16.msra.mxu1 %v21011_v39  ;;  %v21040_v18 = vld [vmem:[%s22151_s12 + $0x784] ss:$24 sps:$4 sm:$0xff]   ;;  %v21077_v39 = vld [vmem:[%s22151_s12 + $0x8a8] ss:$24 sps:$4 sm:$0xff]  }
0x2013   : > { %15645 = vmatprep.subr.bf16.mxu1 %v21019_v32  ;;  %v21085_v32 = vld [vmem:[%s22151_s12 + $0x8dc] ss:$24 sps:$4 sm:$0xff]  }
0x2015   : > { %15500 = vmatpush1.bf16.msra.mxu0 %v20981_v34  ;;  %v21038_v34 = vld [vmem:[%s22151_s12 + $0x780] ss:$24 sps:$4 sm:$0xff]  }
0x2016   : > { %15501 = vmatprep.subr.bf16.mxu0 %v20986_v38  ;;  %15646 = vmatpush1.bf16.msra.mxu1 %v21017_v47  ;;  %v21083_v38 = vld [vmem:[%s22151_s12 + $0x8d8] ss:$24 sps:$4 sm:$0xff]   ;;  %v21091_v47 = vld [vmem:[%s22151_s12 + $0x314] ss:$24 sps:$4 sm:$0xff]  }
0x2017   : > { %15647 = vmatprep.subr.bf16.mxu1 %v21025_v13  ;;  %v21044_v13 = vld [vmem:[%s22151_s12 + $0x7b0] ss:$24 sps:$4 sm:$0xff]  }
0x2019   : > { %15502 = vmatpush1.bf16.msra.mxu0 %v20984_v20  ;;  %v21052_v20 = vld [vmem:[%s22151_s12 + $0x7e4] ss:$24 sps:$4 sm:$0xff]  }
0x201a   : > { %15503 = vmatprep.subr.bf16.mxu0 %v20989_v26  ;;  %15648 = vmatpush1.bf16.msra.mxu1 %v21023_v53  ;;  %v21058_v26 = vld [vmem:[%s22151_s12 + $0x814] ss:$24 sps:$4 sm:$0xff]   ;;  %v21056_v53 = vld [vmem:[%s22151_s12 + $0x810] ss:$24 sps:$4 sm:$0xff]  }
0x201b   : > { %15649 = vmatprep.subr.bf16.mxu1 %v21031_v48  ;;  %v21064_v48 = vld [vmem:[%s22151_s12 + $0x844] ss:$24 sps:$4 sm:$0xff]  }
0x201d   : > { %15504 = vmatpush1.bf16.msra.mxu0 %v20987_v63  ;;  %v21062_v63 = vld [vmem:[%s22151_s12 + $0x840] ss:$24 sps:$4 sm:$0xff]  }
0x201e   : > { %15514 = vmatprep.subr.bf16.mxu0 %v20992_v6  ;;  %15650 = vmatpush1.bf16.msra.mxu1 %v21029_v55  ;;  %v21068_v6 = vld [vmem:[%s22151_s12 + $0x870] ss:$24 sps:$4 sm:$0xff]   ;;  %v21076_v55 = vld [vmem:[%s22151_s12 + $0x8a4] ss:$24 sps:$4 sm:$0xff]  }
0x201f   : > { %15651 = vmatprep.subr.bf16.mxu1 %v21037_v3  ;;  %v21074_v3 = vld [vmem:[%s22151_s12 + $0x8a0] ss:$24 sps:$4 sm:$0xff]  }
0x2020   : > { %15506 = vmatmul.mubr.bf16.vlgmr.msra.gmra.mrb[120].mxu0 %v24472_v54 }
0x2021   : > { %15515 = vmatpush1.bf16.msra.mxu0 %v20990_v27  ;;  %v21082_v27 = vld [vmem:[%s22151_s12 + $0x8d4] ss:$24 sps:$4 sm:$0xff]  }
0x2022   : > { %15516 = vmatprep.subr.bf16.mxu0 %v20998_v62  ;;  %15652 = vmatpush1.bf16.msra.mxu1 %v21035_v61  ;;  %v21080_v62 = vld [vmem:[%s22151_s12 + $0x8d0] ss:$24 sps:$4 sm:$0xff]   ;;  %v21088_v61 = vld [vmem:[%s22151_s12 + $0x30c] ss:$24 sps:$4 sm:$0xff]  }
0x2023   : > { %15653 = vmatprep.subr.bf16.mxu1 %v21043_v28  ;;  %v24525_v28 = vld [vmem:[%s22153_s22 + $0x20] sm:$0xff] }
0x2025   : > { %15517 = vmatpush1.bf16.msra.mxu0 %v20996_v43  ;;  %v11854_v43 = vrot.slane %v24525_v28, %v24368_v24 }
0x2026   : > { %15518 = vmatprep.subr.bf16.mxu0 %v21004_v42  ;;  %15654 = vmatpush1.bf16.msra.mxu1 %v21041_v51  ;;  %v24530_v42 = vld [vmem:[%s22153_s22 + $0x28] sm:$0xff] }
0x2027   : > { %15655 = vmatprep.subr.bf16.mxu1 %v21049_v29  ;;  %v11858_v51 = vrot.slane %v24530_v42, %v24368_v24  ;;  %v21094_v24 = vld [vmem:[%s22151_s12 + $0x33c] ss:$24 sps:$4 sm:$0xff]  }
0x2029   : > { %15519 = vmatpush1.bf16.msra.mxu0 %v21002_v40 }
0x202a   : > { %15520 = vmatprep.subr.bf16.mxu0 %v21010_v10  ;;  %15656 = vmatpush1.bf16.msra.mxu1 %v21047_v22 }
0x202b   : > { %15657 = vmatprep.subr.bf16.mxu1 %v21055_v8 }
0x202d   : > { %15521 = vmatpush1.bf16.msra.mxu0 %v21008_v49 }
0x202e   : > { %15522 = vmatprep.subr.bf16.mxu0 %v21016_v35  ;;  %15658 = vmatpush1.bf16.msra.mxu1 %v21053_v44 }
0x202f   : > { %15659 = vmatprep.subr.bf16.mxu1 %v21061_v46 }
0x2031   : > { %15523 = vmatpush1.bf16.msra.mxu0 %v21014_v33  ;;  %v21086_v33 = vld [vmem:[%s22151_s12 + $0x308] ss:$24 sps:$4 sm:$0xff]  }
0x2032   : > { %15524 = vmatprep.subr.bf16.mxu0 %v21022_v37  ;;  %15660 = vmatpush1.bf16.msra.mxu1 %v21059_v14  ;;  %v21089_v37 = vld [vmem:[%s22151_s12 + $0x310] ss:$24 sps:$4 sm:$0xff]  }
0x2033   : > { %15661 = vmatprep.subr.bf16.mxu1 %v21067_v57  ;;  %v21097_v57 = vld [vmem:[%s22151_s12 + $0x344] ss:$24 sps:$4 sm:$0xff]  }
0x2035   : > { %15525 = vmatpush1.bf16.msra.mxu0 %v21020_v5  ;;  %v21092_v5 = vld [vmem:[%s22151_s12 + $0x338] ss:$24 sps:$4 sm:$0xff]  }
0x2036   : > { %15526 = vmatprep.subr.bf16.mxu0 %v21028_v59  ;;  %15662 = vmatpush1.bf16.msra.mxu1 %v21065_v0  ;;  %v21095_v59 = vld [vmem:[%s22151_s12 + $0x340] ss:$24 sps:$4 sm:$0xff]   ;;  %v21100_v0 = vld [vmem:[%s22151_s12 + $0x36c] ss:$24 sps:$4 sm:$0xff]  }
0x2037   : > { %15663 = vmatprep.subr.bf16.mxu1 %v21073_v31  ;;  %v21103_v31 = vld [vmem:[%s22151_s12 + $0x374] ss:$24 sps:$4 sm:$0xff]  }
0x2039   : > { %15527 = vmatpush1.bf16.msra.mxu0 %v21026_v4  ;;  %v21098_v4 = vld [vmem:[%s22151_s12 + $0x368] ss:$24 sps:$4 sm:$0xff]  }
0x203a   : > { %15528 = vmatprep.subr.bf16.mxu0 %v21034_v23  ;;  %15664 = vmatpush1.bf16.msra.mxu1 %v21071_v12  ;;  %v21101_v23 = vld [vmem:[%s22151_s12 + $0x370] ss:$24 sps:$4 sm:$0xff]   ;;  %v21106_v12 = vld [vmem:[%s22151_s12 + $0x39c] ss:$24 sps:$4 sm:$0xff]  }
0x203b   : > { %15665 = vmatprep.subr.bf16.mxu1 %v21079_v60  ;;  %v21109_v60 = vld [vmem:[%s22151_s12 + $0x3a4] ss:$24 sps:$4 sm:$0xff]  }
0x203d   : > { %15529 = vmatpush1.bf16.msra.mxu0 %v21032_v11  ;;  %v21107_v11 = vld [vmem:[%s22151_s12 + $0x3a0] ss:$24 sps:$4 sm:$0xff]  }
0x203e   : > { %15530 = vmatprep.subr.bf16.mxu0 %v21040_v18  ;;  %15666 = vmatpush1.bf16.msra.mxu1 %v21077_v39  ;;  %v21112_v18 = vld [vmem:[%s22151_s12 + $0x3cc] ss:$24 sps:$4 sm:$0xff]  }
0x203f   : > { %15667 = vmatprep.subr.bf16.mxu1 %v21085_v32  ;;  %v21115_v39 = vld [vmem:[%s22151_s12 + $0x3d4] ss:$24 sps:$4 sm:$0xff]   ;;  %v21110_v32 = vld [vmem:[%s22151_s12 + $0x3c8] ss:$24 sps:$4 sm:$0xff]  }
0x2041   : > { %15531 = vmatpush1.bf16.msra.mxu0 %v21038_v34  ;;  %v21113_v34 = vld [vmem:[%s22151_s12 + $0x3d0] ss:$24 sps:$4 sm:$0xff]  }
0x2042   : > { %15532 = vmatprep.subr.bf16.mxu0 %v21046_v17  ;;  %15668 = vmatpush1.bf16.msra.mxu1 %v21083_v38  ;;  %v21118_v17 = vld [vmem:[%s22151_s12 + $0x3fc] ss:$24 sps:$4 sm:$0xff]  }
0x2043   : > { %15719 = vmatprep.subr.bf16.mxu1 %v21091_v47  ;;  %v21121_v38 = vld [vmem:[%s22151_s12 + $0x404] ss:$24 sps:$4 sm:$0xff]   ;;  %v21116_v47 = vld [vmem:[%s22151_s12 + $0x3f8] ss:$24 sps:$4 sm:$0xff]  }
0x2045   : > { %15533 = vmatpush1.bf16.msra.mxu0 %v21044_v13  ;;  %v21119_v13 = vld [vmem:[%s22151_s12 + $0x400] ss:$24 sps:$4 sm:$0xff]  }
0x2046   : > { %15534 = vmatprep.subr.bf16.mxu0 %v21052_v20  ;;  %v21124_v20 = vld [vmem:[%s22151_s12 + $0x42c] ss:$24 sps:$4 sm:$0xff]  }
0x2049   : > { %15535 = vmatpush1.bf16.msra.mxu0 %v21050_v50  ;;  %v21127_v50 = vld [vmem:[%s22151_s12 + $0x434] ss:$24 sps:$4 sm:$0xff]  }
0x204a   : > { %15536 = vmatprep.subr.bf16.mxu0 %v21058_v26 }
0x204d   : > { %15537 = vmatpush1.bf16.msra.mxu0 %v21056_v53 }
0x204e   : > { %15538 = vmatprep.subr.bf16.mxu0 %v21064_v48 }
0x2051   : > { %15539 = vmatpush1.bf16.msra.mxu0 %v21062_v63  ;;  %v21122_v63 = vld [vmem:[%s22151_s12 + $0x428] ss:$24 sps:$4 sm:$0xff]  }
0x2052   : > { %15540 = vmatprep.subr.bf16.mxu0 %v21070_v52  ;;  %v21125_v52 = vld [vmem:[%s22151_s12 + $0x430] ss:$24 sps:$4 sm:$0xff]  }
0x2055   : > { %15541 = vmatpush1.bf16.msra.mxu0 %v21068_v6 }
0x2056   : > { %15542 = vmatprep.subr.bf16.mxu0 %v21076_v55  ;;  %v21130_v55 = vld [vmem:[%s22151_s12 + $0x45c] ss:$24 sps:$4 sm:$0xff]  }
0x2059   : > { %15543 = vmatpush1.bf16.msra.mxu0 %v21074_v3  ;;  %v21133_v3 = vld [vmem:[%s22151_s12 + $0x464] ss:$24 sps:$4 sm:$0xff]  }
0x205a   : > { %15544 = vmatprep.subr.bf16.mxu0 %v21082_v27  ;;  %v21128_v27 = vld [vmem:[%s22151_s12 + $0x458] ss:$24 sps:$4 sm:$0xff]  }
0x205d   : > { %15545 = vmatpush1.bf16.msra.mxu0 %v21080_v62  ;;  %v21131_v62 = vld [vmem:[%s22151_s12 + $0x460] ss:$24 sps:$4 sm:$0xff]  }
0x205e   : > { %15596 = vmatprep.subr.bf16.mxu0 %v21088_v61  ;;  %v21136_v61 = vld [vmem:[%s22151_s12 + $0x48c] ss:$24 sps:$4 sm:$0xff]  }
0x2097   : > { %v13661_v29 = vpop.f32.mrb[128].mxu1 }
0x2098   : > { %v18522_v40 = vadd.f32 %v13661_v29, %v11854_v43  ;;  %v13663_v10 = vpop.f32.mrb[129].mxu1  ;;  %v21139_v43 = vld [vmem:[%s22151_s12 + $0x494] ss:$24 sps:$4 sm:$0xff]   ;;  %v21137_v29 = vld [vmem:[%s22151_s12 + $0x490] ss:$24 sps:$4 sm:$0xff]  }
0x2099   : > { %v18523_v22 = vadd.f32 %v13663_v10, %v11858_v51  ;;  %v13665_v8 = vpop.f32.mrb[130].mxu1  ;;  %v21134_v51 = vld [vmem:[%s22151_s12 + $0x488] ss:$24 sps:$4 sm:$0xff]   ;;  %v21145_v10 = vld [vmem:[%s22151_s12 + $0x4c4] ss:$24 sps:$4 sm:$0xff]  }
0x209a   : > { %v13672_v49 = vmax.f32 %v18522_v40, 0.0  ;;  %v13666_v35 = vpop.f32.mrb[131].mxu1  ;;  %v21142_v40 = vld [vmem:[%s22151_s12 + $0x4bc] ss:$24 sps:$4 sm:$0xff]   ;;  %v21143_v8 = vld [vmem:[%s22151_s12 + $0x4c0] ss:$24 sps:$4 sm:$0xff]  }
0x209b   : > { %v13673_v44 = vmax.f32 %v18523_v22, 0.0  ;;  %v21140_v22 = vld [vmem:[%s22151_s12 + $0x4b8] ss:$24 sps:$4 sm:$0xff]   ;;  %v21151_v35 = vld [vmem:[%s22151_s12 + $0x4f4] ss:$24 sps:$4 sm:$0xff]  }
0x209c   : > { %v24538_v14 = vpack.c.bf16 %v13672_v49, %v13672_v49  ;;  %v21148_v49 = vld [vmem:[%s22151_s12 + $0x4ec] ss:$24 sps:$4 sm:$0xff]  }
0x209d   : > { %v24534_v46 = vpack.c.bf16 %v13673_v44, %v13673_v44  ;;  %v21146_v44 = vld [vmem:[%s22151_s12 + $0x4e8] ss:$24 sps:$4 sm:$0xff]  }
0x209f   : > { %15546 = vmatprep.mubr.bf16.mxu0 %v24534_v46  ;;  %15669 = vmatprep.mubr.bf16.mxu1 %v24534_v46 }
0x20a0   : > { %15547 = vmatmul.mubr.bf16.vlgmr.msra.gmra.mrb[124].mxu0 %v24538_v14  ;;  %15670 = vmatmul.mubr.bf16.vlgmr.msra.gmra.mrb[136].mxu1 %v24538_v14 }
0x20a1   : > { %15597 = vmatpush1.bf16.msra.mxu0 %v21086_v33  ;;  %15720 = vmatpush1.bf16.msra.mxu1 %v21089_v37  ;;  %v21149_v33 = vld [vmem:[%s22151_s12 + $0x4f0] ss:$24 sps:$4 sm:$0xff]   ;;  %v21154_v37 = vld [vmem:[%s22151_s12 + $0x51c] ss:$24 sps:$4 sm:$0xff]  }
0x20a2   : > { %15628 = vmatprep.mubr.bf16.mxu0 %v24397_v21  ;;  %15751 = vmatprep.mubr.bf16.mxu1 %v24397_v21  ;;  %v21104_v21 = vld [vmem:[%s22151_s12 + $0x398] ss:$24 sps:$4 sm:$0xff]  }
0x20a3   : > { %15598 = vmatprep.subr.bf16.mxu0 %v21094_v24  ;;  %15721 = vmatprep.subr.bf16.mxu1 %v21097_v57  ;;  %v21157_v24 = vld [vmem:[%s22151_s12 + $0x524] ss:$24 sps:$4 sm:$0xff]   ;;  %v21152_v57 = vld [vmem:[%s22151_s12 + $0x518] ss:$24 sps:$4 sm:$0xff]  }
0x20a5   : > { %15599 = vmatpush1.bf16.msra.mxu0 %v21092_v5  ;;  %15722 = vmatpush1.bf16.msra.mxu1 %v21095_v59  ;;  %v21155_v5 = vld [vmem:[%s22151_s12 + $0x520] ss:$24 sps:$4 sm:$0xff]   ;;  %v21160_v59 = vld [vmem:[%s22151_s12 + $0x54c] ss:$24 sps:$4 sm:$0xff]  }
0x20a6   : > { %15600 = vmatprep.subr.bf16.mxu0 %v21100_v0  ;;  %15723 = vmatprep.subr.bf16.mxu1 %v21103_v31  ;;  %v21163_v0 = vld [vmem:[%s22151_s12 + $0x554] ss:$24 sps:$4 sm:$0xff]   ;;  %v21158_v31 = vld [vmem:[%s22151_s12 + $0x548] ss:$24 sps:$4 sm:$0xff]  }
0x20a9   : > { %15601 = vmatpush1.bf16.msra.mxu0 %v21098_v4  ;;  %15724 = vmatpush1.bf16.msra.mxu1 %v21101_v23  ;;  %v21161_v4 = vld [vmem:[%s22151_s12 + $0x550] ss:$24 sps:$4 sm:$0xff]   ;;  %v21166_v23 = vld [vmem:[%s22151_s12 + $0x57c] ss:$24 sps:$4 sm:$0xff]  }
0x20aa   : > { %15602 = vmatprep.subr.bf16.mxu0 %v21106_v12  ;;  %15725 = vmatprep.subr.bf16.mxu1 %v21109_v60  ;;  %v21169_v12 = vld [vmem:[%s22151_s12 + $0x584] ss:$24 sps:$4 sm:$0xff]   ;;  %v21164_v60 = vld [vmem:[%s22151_s12 + $0x578] ss:$24 sps:$4 sm:$0xff]  }
0x20ad   : > { %15603 = vmatpush1.bf16.msra.mxu0 %v21104_v21  ;;  %15726 = vmatpush1.bf16.msra.mxu1 %v21107_v11  ;;  %v21167_v21 = vld [vmem:[%s22151_s12 + $0x580] ss:$24 sps:$4 sm:$0xff]   ;;  %v21172_v11 = vld [vmem:[%s22151_s12 + $0x5ac] ss:$24 sps:$4 sm:$0xff]  }
0x20ae   : > { %15604 = vmatprep.subr.bf16.mxu0 %v21112_v18  ;;  %15727 = vmatprep.subr.bf16.mxu1 %v21115_v39  ;;  %v21175_v18 = vld [vmem:[%s22151_s12 + $0x5b4] ss:$24 sps:$4 sm:$0xff]   ;;  %v21170_v39 = vld [vmem:[%s22151_s12 + $0x5a8] ss:$24 sps:$4 sm:$0xff]  }
0x20b1   : > { %15605 = vmatpush1.bf16.msra.mxu0 %v21110_v32  ;;  %15728 = vmatpush1.bf16.msra.mxu1 %v21113_v34  ;;  %v21173_v32 = vld [vmem:[%s22151_s12 + $0x5b0] ss:$24 sps:$4 sm:$0xff]   ;;  %v21178_v34 = vld [vmem:[%s22151_s12 + $0x5dc] ss:$24 sps:$4 sm:$0xff]  }
0x20b2   : > { %15606 = vmatprep.subr.bf16.mxu0 %v21118_v17  ;;  %15729 = vmatprep.subr.bf16.mxu1 %v21121_v38  ;;  %v21181_v17 = vld [vmem:[%s22151_s12 + $0x5e4] ss:$24 sps:$4 sm:$0xff]  }
0x20b3   : > { %v24568_v26 = vpop.f32.mrb[116].mxu0 }
0x20b4   : > { %v24570_v53 = vpop.f32.mrb[117].mxu0 }
0x20b5   : > { %15607 = vmatpush1.bf16.msra.mxu0 %v21116_v47  ;;  %15730 = vmatpush1.bf16.msra.mxu1 %v21119_v13  ;;  %v15470_v48 = vpop.f32.mrb[118].mxu0  ;;  %v21176_v13 = vld [vmem:[%s22151_s12 + $0x5d8] ss:$24 sps:$4 sm:$0xff]  }
0x20b6   : > { %v15471_v6 = vpop.f32.mrb[119].mxu0  ;;  %15608 = vmatprep.subr.bf16.mxu0 %v21124_v20  ;;  %15731 = vmatprep.subr.bf16.mxu1 %v21127_v50  ;;  %v21179_v20 = vld [vmem:[%s22151_s12 + $0x5e0] ss:$24 sps:$4 sm:$0xff]   ;;  %v21184_v48 = vld [vmem:[%s22151_s12 + $0x14] ss:$24 sps:$4 sm:$0xff]  }
0x20b7   : > { %v21187_v6 = vld [vmem:[%s22151_s12 + $0x44] ss:$24 sps:$4 sm:$0xff]  }
0x20b9   : > { %15609 = vmatpush1.bf16.msra.mxu0 %v21122_v63  ;;  %15732 = vmatpush1.bf16.msra.mxu1 %v21125_v52  ;;  %v21182_v52 = vld [vmem:[%s22151_s12 + $0x10] ss:$24 sps:$4 sm:$0xff]  }
0x20ba   : > { %15610 = vmatprep.subr.bf16.mxu0 %v21130_v55  ;;  %15733 = vmatprep.subr.bf16.mxu1 %v21133_v3  ;;  %v21185_v55 = vld [vmem:[%s22151_s12 + $0x40] ss:$24 sps:$4 sm:$0xff]   ;;  %v21190_v3 = vld [vmem:[%s22151_s12 + $0x74] ss:$24 sps:$4 sm:$0xff]  }
0x20bd   : > { %15611 = vmatpush1.bf16.msra.mxu0 %v21128_v27  ;;  %15734 = vmatpush1.bf16.msra.mxu1 %v21131_v62  ;;  %v21188_v27 = vld [vmem:[%s22151_s12 + $0x70] ss:$24 sps:$4 sm:$0xff]   ;;  %v21193_v62 = vld [vmem:[%s22151_s12 + $0xa4] ss:$24 sps:$4 sm:$0xff]  }
0x20be   : > { %15612 = vmatprep.subr.bf16.mxu0 %v21136_v61  ;;  %15735 = vmatprep.subr.bf16.mxu1 %v21139_v43  ;;  %v21191_v61 = vld [vmem:[%s22151_s12 + $0xa0] ss:$24 sps:$4 sm:$0xff]   ;;  %v24626_v43 = vsub.s32 5, %v22852_v9 }
0x20c1   : > { %15613 = vmatpush1.bf16.msra.mxu0 %v21134_v51  ;;  %15736 = vmatpush1.bf16.msra.mxu1 %v21137_v29  ;;  %v21194_v51 = vld [vmem:[%s22151_s12 + $0xd0] ss:$24 sps:$4 sm:$0xff]   ;;  %v21199_v29 = vld [vmem:[%s22151_s12 + $0x104] ss:$24 sps:$4 sm:$0xff]  }
0x20c2   : > { %15614 = vmatprep.subr.bf16.mxu0 %v21142_v40  ;;  %15737 = vmatprep.subr.bf16.mxu1 %v21145_v10  ;;  %v13975_v40 = vrot.slane %v24378_v1, %v24626_v43  ;;  %v21197_v10 = vld [vmem:[%s22151_s12 + $0x100] ss:$24 sps:$4 sm:$0xff]  }
0x20c5   : > { %15615 = vmatpush1.bf16.msra.mxu0 %v21140_v22  ;;  %15738 = vmatpush1.bf16.msra.mxu1 %v21143_v8  ;;  %v21202_v22 = vld [vmem:[%s22151_s12 + $0x134] ss:$24 sps:$4 sm:$0xff]   ;;  %v15469_v8 = vadd.f32 %v24570_v53, %v13975_v40  ;;  %v21203_v53 = vld [vmem:[%s22151_s12 + $0x160] ss:$24 sps:$4 sm:$0xff]  }
0x20c6   : > { %15616 = vmatprep.subr.bf16.mxu0 %v21148_v49  ;;  %15739 = vmatprep.subr.bf16.mxu1 %v21151_v35  ;;  %v21257_v40 = vld [vmem:[%s22151_s12 + $0x7c0] ss:$24 sps:$4 sm:$0xff]  }
0x20c9   : > { %15617 = vmatpush1.bf16.msra.mxu0 %v21146_v44  ;;  %15740 = vmatpush1.bf16.msra.mxu1 %v21149_v33  ;;  %v21200_v33 = vld [vmem:[%s22151_s12 + $0x130] ss:$24 sps:$4 sm:$0xff]  }
0x20ca   : > { %15618 = vmatprep.subr.bf16.mxu0 %v21154_v37  ;;  %15741 = vmatprep.subr.bf16.mxu1 %v21157_v24  ;;  %v21208_v24 = vld [vmem:[%s22151_s12 + $0x194] ss:$24 sps:$4 sm:$0xff]  }
0x20cd   : > { %15619 = vmatpush1.bf16.msra.mxu0 %v21152_v57  ;;  %15742 = vmatpush1.bf16.msra.mxu1 %v21155_v5  ;;  %v21206_v57 = vld [vmem:[%s22151_s12 + $0x190] ss:$24 sps:$4 sm:$0xff]   ;;  %v21211_v5 = vld [vmem:[%s22151_s12 + $0x1c4] ss:$24 sps:$4 sm:$0xff]  }
0x20ce   : > { %15620 = vmatprep.subr.bf16.mxu0 %v21160_v59  ;;  %15743 = vmatprep.subr.bf16.mxu1 %v21163_v0  ;;  %v21209_v59 = vld [vmem:[%s22151_s12 + $0x1c0] ss:$24 sps:$4 sm:$0xff]   ;;  %v21214_v0 = vld [vmem:[%s22151_s12 + $0x1f4] ss:$24 sps:$4 sm:$0xff]  }
0x20d1   : > { %15621 = vmatpush1.bf16.msra.mxu0 %v21158_v31  ;;  %15744 = vmatpush1.bf16.msra.mxu1 %v21161_v4  ;;  %v21212_v31 = vld [vmem:[%s22151_s12 + $0x1f0] ss:$24 sps:$4 sm:$0xff]   ;;  %v21217_v4 = vld [vmem:[%s22151_s12 + $0x224] ss:$24 sps:$4 sm:$0xff]  }
0x20d2   : > { %15622 = vmatprep.subr.bf16.mxu0 %v21166_v23  ;;  %15745 = vmatprep.subr.bf16.mxu1 %v21169_v12  ;;  %v21215_v23 = vld [vmem:[%s22151_s12 + $0x220] ss:$24 sps:$4 sm:$0xff]   ;;  %v21220_v12 = vld [vmem:[%s22151_s12 + $0x254] ss:$24 sps:$4 sm:$0xff]  }
0x20d5   : > { %15623 = vmatpush1.bf16.msra.mxu0 %v21164_v60  ;;  %15746 = vmatpush1.bf16.msra.mxu1 %v21167_v21  ;;  %v21218_v60 = vld [vmem:[%s22151_s12 + $0x250] ss:$24 sps:$4 sm:$0xff]   ;;  %v21223_v21 = vld [vmem:[%s22151_s12 + $0x284] ss:$24 sps:$4 sm:$0xff]  }
0x20d6   : > { %15624 = vmatprep.subr.bf16.mxu0 %v21172_v11  ;;  %15747 = vmatprep.subr.bf16.mxu1 %v21175_v18  ;;  %v21221_v11 = vld [vmem:[%s22151_s12 + $0x280] ss:$24 sps:$4 sm:$0xff]   ;;  %v21226_v18 = vld [vmem:[%s22151_s12 + $0x2b4] ss:$24 sps:$4 sm:$0xff]  }
0x20d8   : > { %v24608_v38 = vpop.f32.mrb[132].mxu1 }
0x20d9   : > { %v24610_v47 = vpop.f32.mrb[133].mxu1  ;;  %15625 = vmatpush1.bf16.msra.mxu0 %v21170_v39  ;;  %15748 = vmatpush1.bf16.msra.mxu1 %v21173_v32  ;;  %v21224_v39 = vld [vmem:[%s22151_s12 + $0x2b0] ss:$24 sps:$4 sm:$0xff]   ;;  %v21229_v32 = vld [vmem:[%s22151_s12 + $0x2e4] ss:$24 sps:$4 sm:$0xff]  }
0x20da   : > { %v15593_v50 = vpop.f32.mrb[134].mxu1  ;;  %15626 = vmatprep.subr.bf16.mxu0 %v21178_v34  ;;  %15749 = vmatprep.subr.bf16.mxu1 %v21181_v17  ;;  %v21227_v34 = vld [vmem:[%s22151_s12 + $0x2e0] ss:$24 sps:$4 sm:$0xff]   ;;  %v21232_v17 = vld [vmem:[%s22151_s12 + $0x614] ss:$24 sps:$4 sm:$0xff]  }
0x20db   : > { %v15594_v63 = vpop.f32.mrb[135].mxu1  ;;  %v21233_v50 = vld [vmem:[%s22151_s12 + $0x640] ss:$24 sps:$4 sm:$0xff]  }
0x20dc   : > { %v21236_v63 = vld [vmem:[%s22151_s12 + $0x670] ss:$24 sps:$4 sm:$0xff]  }
0x20dd   : > { %15627 = vmatpush1.bf16.msra.mxu0 %v21176_v13  ;;  %15750 = vmatpush1.bf16.msra.mxu1 %v21179_v20  ;;  %v21230_v13 = vld [vmem:[%s22151_s12 + $0x610] ss:$24 sps:$4 sm:$0xff]   ;;  %v21235_v20 = vld [vmem:[%s22151_s12 + $0x644] ss:$24 sps:$4 sm:$0xff]  }
0x20de   : > { %15678 = vmatprep.subr.bf16.mxu0 %v21184_v48  ;;  %v21238_v48 = vld [vmem:[%s22151_s12 + $0x674] ss:$24 sps:$4 sm:$0xff]  }
0x20e0   : > { %15629 = vmatmul.mubr.bf16.vlgmr.msra.gmra.mrb[128].mxu0 %v24472_v54  ;;  %15752 = vmatmul.mubr.bf16.vlgmr.msra.gmra.mrb[140].mxu1 %v24472_v54  ;;  %v21196_v54 = vld [vmem:[%s22151_s12 + $0xd4] ss:$24 sps:$4 sm:$0xff]  }
0x20e1   : > { %15679 = vmatpush1.bf16.msra.mxu0 %v21182_v52  ;;  %15710 = vmatprep.mubr.bf16.mxu0 %v24390_v16  ;;  %v13971_v16 = vrot.slane %v24373_v36, %v24626_v43  ;;  %v21241_v52 = vld [vmem:[%s22151_s12 + $0x6a4] ss:$24 sps:$4 sm:$0xff]  }
0x20e2   : > { %15680 = vmatprep.subr.bf16.mxu0 %v21187_v6  ;;  %v21239_v6 = vld [vmem:[%s22151_s12 + $0x6a0] ss:$24 sps:$4 sm:$0xff]  }
0x20e3   : > { %v15467_v9 = vadd.f32 %v24568_v26, %v13971_v16  ;;  %v21205_v26 = vld [vmem:[%s22151_s12 + $0x164] ss:$24 sps:$4 sm:$0xff]   ;;  %v21254_v16 = vld [vmem:[%s22151_s12 + $0x790] ss:$24 sps:$4 sm:$0xff]  }
0x20e5   : > { %15681 = vmatpush1.bf16.msra.mxu0 %v21185_v55  ;;  %v21242_v55 = vld [vmem:[%s22151_s12 + $0x6d0] ss:$24 sps:$4 sm:$0xff]  }
0x20e6   : > { %15682 = vmatprep.subr.bf16.mxu0 %v21190_v3  ;;  %v21245_v3 = vld [vmem:[%s22151_s12 + $0x700] ss:$24 sps:$4 sm:$0xff]  }
0x20e9   : > { %15683 = vmatpush1.bf16.msra.mxu0 %v21188_v27  ;;  %v21250_v27 = vld [vmem:[%s22151_s12 + $0x734] ss:$24 sps:$4 sm:$0xff]  }
0x20ea   : > { %15684 = vmatprep.subr.bf16.mxu0 %v21193_v62  ;;  %v21248_v62 = vld [vmem:[%s22151_s12 + $0x730] ss:$24 sps:$4 sm:$0xff]  }
0x20ed   : > { %15685 = vmatpush1.bf16.msra.mxu0 %v21191_v61  ;;  %v21253_v61 = vld [vmem:[%s22151_s12 + $0x764] ss:$24 sps:$4 sm:$0xff]  }
0x20ee   : > { %15686 = vmatprep.subr.bf16.mxu0 %v21196_v54  ;;  %v21251_v54 = vld [vmem:[%s22151_s12 + $0x760] ss:$24 sps:$4 sm:$0xff]  }
0x20f1   : > { %15687 = vmatpush1.bf16.msra.mxu0 %v21194_v51  ;;  %v21256_v51 = vld [vmem:[%s22151_s12 + $0x794] ss:$24 sps:$4 sm:$0xff]  }
0x20f2   : > { %15688 = vmatprep.subr.bf16.mxu0 %v21199_v29  ;;  %v21259_v29 = vld [vmem:[%s22151_s12 + $0x7c4] ss:$24 sps:$4 sm:$0xff]  }
0x20f3   : > { %v15507_v49 = vpop.f32.mrb[120].mxu0 }
0x20f4   : > { %v24639_v36 = vadd.f32 %v15507_v49, %v15467_v9  ;;  %v15509_v35 = vpop.f32.mrb[121].mxu0  ;;  %v21260_v9 = vld [vmem:[%s22151_s12 + $0x7f0] ss:$24 sps:$4 sm:$0xff]   ;;  %v21268_v49 = vld [vmem:[%s22151_s12 + $0x854] ss:$24 sps:$4 sm:$0xff]  }
0x20f5   : > { %v24641_v44 = vadd.f32 %v15509_v35, %v15469_v8  ;;  %v15511_v1 = vpop.f32.mrb[122].mxu0  ;;  %15689 = vmatpush1.bf16.msra.mxu0 %v21197_v10  ;;  %v21262_v10 = vld [vmem:[%s22151_s12 + $0x7f4] ss:$24 sps:$4 sm:$0xff]   ;;  %v21263_v8 = vld [vmem:[%s22151_s12 + $0x820] ss:$24 sps:$4 sm:$0xff]  }
0x20f6   : > { %v15512_v37 = vpop.f32.mrb[123].mxu0  ;;  %15690 = vmatprep.subr.bf16.mxu0 %v21202_v22  ;;  %v21265_v22 = vld [vmem:[%s22151_s12 + $0x824] ss:$24 sps:$4 sm:$0xff]   ;;  %v21266_v35 = vld [vmem:[%s22151_s12 + $0x850] ss:$24 sps:$4 sm:$0xff]  }
0x20f7   : > { %v21271_v1 = vld [vmem:[%s22151_s12 + $0x884] ss:$24 sps:$4 sm:$0xff]   ;;  %v21274_v37 = vld [vmem:[%s22151_s12 + $0x8b4] ss:$24 sps:$4 sm:$0xff]  }
0x20f9   : > { %15691 = vmatpush1.bf16.msra.mxu0 %v21200_v33  ;;  %v21269_v33 = vld [vmem:[%s22151_s12 + $0x880] ss:$24 sps:$4 sm:$0xff]  }
0x20fa   : > { %15692 = vmatprep.subr.bf16.mxu0 %v21205_v26  ;;  %v21272_v26 = vld [vmem:[%s22151_s12 + $0x8b0] ss:$24 sps:$4 sm:$0xff]  }
0x20fd   : > { %15693 = vmatpush1.bf16.msra.mxu0 %v21203_v53  ;;  %v21277_v53 = vld [vmem:[%s22151_s12 + $0x8e4] ss:$24 sps:$4 sm:$0xff]  }
0x20fe   : > { %15694 = vmatprep.subr.bf16.mxu0 %v21208_v24  ;;  %v21275_v24 = vld [vmem:[%s22151_s12 + $0x8e0] ss:$24 sps:$4 sm:$0xff]  }
0x2101   : > { %15695 = vmatpush1.bf16.msra.mxu0 %v21206_v57 }
0x2102   : > { %15696 = vmatprep.subr.bf16.mxu0 %v21211_v5 }
0x2105   : > { %15697 = vmatpush1.bf16.msra.mxu0 %v21209_v59 }
0x2106   : > { %15698 = vmatprep.subr.bf16.mxu0 %v21214_v0 }
0x2109   : > { %15699 = vmatpush1.bf16.msra.mxu0 %v21212_v31 }
0x210a   : > { %15700 = vmatprep.subr.bf16.mxu0 %v21217_v4 }
0x210d   : > { %15701 = vmatpush1.bf16.msra.mxu0 %v21215_v23 }
0x210e   : > { %15702 = vmatprep.subr.bf16.mxu0 %v21220_v12 }
0x2111   : > { %15703 = vmatpush1.bf16.msra.mxu0 %v21218_v60 }
0x2112   : > { %15704 = vmatprep.subr.bf16.mxu0 %v21223_v21 }
0x2115   : > { %15705 = vmatpush1.bf16.msra.mxu0 %v21221_v11  ;;  %v13979_v11 = vrot.slane %v24455_v45, %v24626_v43  ;;  %v13987_v45 = vrot.slane %v24525_v28, %v24626_v43 }
0x2116   : > { %15706 = vmatprep.subr.bf16.mxu0 %v21226_v18  ;;  %v21334_v18 = vld [vmem:[%s22153_s22 + $0x18] sm:$0xff] }
0x2119   : > { %15707 = vmatpush1.bf16.msra.mxu0 %v21224_v39  ;;  %v13983_v39 = vrot.slane %v21334_v18, %v24626_v43 }
0x211a   : > { %15708 = vmatprep.subr.bf16.mxu0 %v21229_v32 }
0x211b   : > { %v15592_v32 = vadd.f32 %v24610_v47, %v13983_v39 }
0x211d   : > { %15709 = vmatpush1.bf16.msra.mxu0 %v21227_v34 }
0x211e   : > { %15760 = vmatprep.subr.bf16.mxu0 %v21232_v17 }
0x2120   : > { %15711 = vmatmul.mubr.bf16.vlgmr.msra.gmra.mrb[132].mxu0 %v24393_v2  ;;  %v21244_v2 = vld [vmem:[%s22151_s12 + $0x6d4] ss:$24 sps:$4 sm:$0xff]  }
0x2121   : > { %15761 = vmatpush1.bf16.msra.mxu0 %v21230_v13  ;;  %15792 = vmatprep.mubr.bf16.mxu0 %v24534_v46  ;;  %v21247_v46 = vld [vmem:[%s22151_s12 + $0x704] ss:$24 sps:$4 sm:$0xff]  }
0x2122   : > { %15762 = vmatprep.subr.bf16.mxu0 %v21235_v20 }
0x2125   : > { %15763 = vmatpush1.bf16.msra.mxu0 %v21233_v50 }
0x2126   : > { %15764 = vmatprep.subr.bf16.mxu0 %v21238_v48 }
0x2129   : > { %15765 = vmatpush1.bf16.msra.mxu0 %v21236_v63 }
0x212a   : > { %15766 = vmatprep.subr.bf16.mxu0 %v21241_v52 }
0x212d   : > { %15767 = vmatpush1.bf16.msra.mxu0 %v21239_v6 }
0x212e   : > { %15768 = vmatprep.subr.bf16.mxu0 %v21244_v2 }
0x2131   : > { %15769 = vmatpush1.bf16.msra.mxu0 %v21242_v55 }
0x2132   : > { %15770 = vmatprep.subr.bf16.mxu0 %v21247_v46 }
0x2135   : > { %15771 = vmatpush1.bf16.msra.mxu0 %v21245_v3 }
0x2136   : > { %15772 = vmatprep.subr.bf16.mxu0 %v21250_v27 }
0x2139   : > { %15773 = vmatpush1.bf16.msra.mxu0 %v21248_v62 }
0x213a   : > { %15774 = vmatprep.subr.bf16.mxu0 %v21253_v61 }
0x213d   : > { %15775 = vmatpush1.bf16.msra.mxu0 %v21251_v54 }
0x213e   : > { %15776 = vmatprep.subr.bf16.mxu0 %v21256_v51 }
0x2141   : > { %15777 = vmatpush1.bf16.msra.mxu0 %v21254_v16 }
0x2142   : > { %15778 = vmatprep.subr.bf16.mxu0 %v21259_v29 }
0x2145   : > { %15779 = vmatpush1.bf16.msra.mxu0 %v21257_v40 }
0x2146   : > { %15780 = vmatprep.subr.bf16.mxu0 %v21262_v10 }
0x2149   : > { %15781 = vmatpush1.bf16.msra.mxu0 %v21260_v9 }
0x214a   : > { %15782 = vmatprep.subr.bf16.mxu0 %v21265_v22 }
0x214d   : > { %15783 = vmatpush1.bf16.msra.mxu0 %v21263_v8 }
0x214e   : > { %15784 = vmatprep.subr.bf16.mxu0 %v21268_v49 }
0x2151   : > { %15785 = vmatpush1.bf16.msra.mxu0 %v21266_v35 }
0x2152   : > { %15786 = vmatprep.subr.bf16.mxu0 %v21271_v1 }
0x2155   : > { %15787 = vmatpush1.bf16.msra.mxu0 %v21269_v33 }
0x2156   : > { %15788 = vmatprep.subr.bf16.mxu0 %v21274_v37 }
0x2159   : > { %15789 = vmatpush1.bf16.msra.mxu0 %v21272_v26 }
0x215a   : > { %15790 = vmatprep.subr.bf16.mxu0 %v21277_v53 }
0x215d   : > { %15791 = vmatpush1.bf16.msra.mxu0 %v21275_v24 }
0x2160   : > { %15793 = vmatmul.mubr.bf16.vlgmr.msra.gmra.mrb[136].mxu0 %v24538_v14  ;;  %v15590_v14 = vadd.f32 %v24608_v38, %v13979_v11  ;;  %v13991_v38 = vrot.slane %v24530_v42, %v24626_v43 }
0x2173   : > { %v15548_v57 = vpop.f32.mrb[124].mxu0  ;;  %v15671_v5 = vpop.f32.mrb[136].mxu1 }
0x2174   : > { %v15549_v59 = vadd.f32 %v15548_v57, %v24639_v36  ;;  %v15550_v0 = vpop.f32.mrb[125].mxu0  ;;  %v15673_v31 = vpop.f32.mrb[137].mxu1 }
0x2175   : > { %v15551_v4 = vadd.f32 %v15550_v0, %v24641_v44  ;;  %v15552_v23 = vpop.f32.mrb[126].mxu0  ;;  %v15675_v12 = vpop.f32.mrb[138].mxu1 }
0x2176   : > { %v15553_v60 = vpop.f32.mrb[127].mxu0  ;;  %v15676_v21 = vpop.f32.mrb[139].mxu1  ;;  %v15801_v51 = vadd.f32 %v15549_v59, %v24051_v56 }
0x2177   : > { %v15802_v16 = vadd.f32 %v15551_v4, %v24049_v7 }
0x2179   : > { %v15807_v40 = vadd.f32 %v15802_v16, %v15801_v51 }
0x21b3   : > { %v15630_v34 = vpop.f32.mrb[128].mxu0  ;;  %v15753_v36 = vpop.f32.mrb[140].mxu1 }
0x21b4   : > { %v15631_v17 = vadd.f32 %v15630_v34, %v15590_v14  ;;  %v15632_v13 = vpop.f32.mrb[129].mxu0  ;;  %v15755_v20 = vpop.f32.mrb[141].mxu1  ;;  %v864_v34 = vld [vmem:[%s22153_s22 + $0x38] sm:$0xff] }
0x21b5   : > { %v15633_v44 = vadd.f32 %v15632_v13, %v15592_v32  ;;  %v15634_v50 = vpop.f32.mrb[130].mxu0  ;;  %v15757_v48 = vpop.f32.mrb[142].mxu1  ;;  %v863_v32 = vld [vmem:[%s22153_s22 + $0x30] sm:$0xff] }
0x21b6   : > { %v15672_v63 = vadd.f32 %v15671_v5, %v15631_v17  ;;  %v15635_v52 = vpop.f32.mrb[131].mxu0  ;;  %v15758_v6 = vpop.f32.mrb[143].mxu1  ;;  %v866_v17 = vld [vmem:[%s22153_s22 + $0x48] sm:$0xff]  ;;  %v867_v13 = vld [vmem:[%s22153_s22 + $0x50] sm:$0xff]  ;;  %v15850_v50 = vrot.slane %v864_v34, %v22873_v41 }
0x21b7   : > { %v15674_v2 = vadd.f32 %v15673_v31, %v15633_v44  ;;  %v15846_v44 = vrot.slane %v863_v32, %v22873_v41  ;;  %v15862_v52 = vrot.slane %v867_v13, %v22873_v41  ;;  %v15876_v6 = vrot.slane %v863_v32, %v22859_v15  ;;  %v15917_v32 = vld [vmem:[#allocation16 + $0x20] sm:$0xff] (!%p18201_p6) }
0x21b8   : > { %v15803_v29 = vadd.f32 %v15672_v63, %v24053_v30  ;;  %v15858_v63 = vrot.slane %v866_v17, %v22873_v41 }
0x21b9   : > { %v15804_v28 = vadd.f32 %v15674_v2, %v24055_v19 }
0x21ba   : > { %v15808_v10 = vadd.f32 %v15807_v40, %v15803_v29 }
0x21bc   : > { %v15809_v1 = vadd.f32 %v15808_v10, %v15804_v28 }
0x21f3   : > { %v15712_v55 = vpop.f32.mrb[132].mxu0 }
0x21f4   : > { %v15713_v47 = vadd.f32 %v15712_v55, %v13987_v45  ;;  %v15714_v46 = vpop.f32.mrb[133].mxu0 }
0x21f5   : > { %v15715_v3 = vadd.f32 %v15714_v46, %v13991_v38  ;;  %v15716_v27 = vpop.f32.mrb[134].mxu0  ;;  %v15880_v38 = vrot.slane %v864_v34, %v22859_v15  ;;  %v15918_v34 = vld [vmem:[#allocation16 + $0x28] sm:$0xff] (!%p18201_p6) }
0x21f6   : > { %v15717_v62 = vpop.f32.mrb[135].mxu0  ;;  %v15754_v61 = vadd.f32 %v15753_v36, %v15713_v47  ;;  %v865_v36 = vld [vmem:[%s22153_s22 + $0x40] sm:$0xff]  ;;  %v15888_v47 = vrot.slane %v866_v17, %v22859_v15  ;;  %v15966_v17 = vld [vmem:[#allocation16 + $0x1a8] sm:$0xff] (!%p18201_p6) }
0x21f7   : > { %v15756_v54 = vadd.f32 %v15755_v20, %v15715_v3  ;;  %v868_v20 = vld [vmem:[%s22153_s22 + $0x58] sm:$0xff]  ;;  %v15854_v48 = vrot.slane %v865_v36, %v22873_v41  ;;  %v15884_v55 = vrot.slane %v865_v36, %v22859_v15  ;;  %v15965_v36 = vld [vmem:[#allocation16 + $0x1a0] sm:$0xff] (!%p18201_p6) }
0x21f8   : > { %v15866_v45 = vrot.slane %v868_v20, %v22873_v41 }
0x2233   : > { %v15794_v9 = vpop.f32.mrb[136].mxu0 }
0x2234   : > { %v15795_v42 = vadd.f32 %v15794_v9, %v15754_v61  ;;  %v15796_v43 = vpop.f32.mrb[137].mxu0  ;;  %v15892_v61 = vrot.slane %v867_v13, %v22859_v15  ;;  %v15949_v13 = vld [vmem:[#allocation16 + $0x120] sm:$0xff] (!%p18201_p6) }
0x2235   : > { %v15797_v22 = vadd.f32 %v15796_v43, %v15756_v54  ;;  %v15798_v8 = vpop.f32.mrb[138].mxu0  ;;  %v15896_v54 = vrot.slane %v868_v20, %v22859_v15  ;;  %v15929_v15 = vld [vmem:[#allocation16 + $0x80] sm:$0xff] (!%p18201_p6)  ;;  %v15950_v20 = vld [vmem:[#allocation16 + $0x128] sm:$0xff] (!%p18201_p6) }
0x2236   : > { %v15805_v49 = vadd.f32 %v15795_v42, %v24059_v58  ;;  %v15799_v35 = vpop.f32.mrb[139].mxu0 }
0x2237   : > { %v15806_v33 = vadd.f32 %v15797_v22, %v24057_v25 }
0x2238   : > { %v15810_v56 = vadd.f32 %v15809_v1, %v15805_v49  ;;  %v15930_v1 = vld [vmem:[#allocation16 + $0x88] sm:$0xff] (!%p18201_p6) }
0x223a   : > { %v15811_v37 = vadd.f32 %v15810_v56, %v15806_v33  ;;  %v18422_v56 = vpack.c.bf16 (!%p18201_p6), %v15930_v1, %v15929_v15  ;;  %v15971_v15 = vld [vmem:[#allocation16 + $0x1d0] sm:$0xff] (!%p18201_p6)  ;;  %v15972_v1 = vld [vmem:[#allocation16 + $0x1d8] sm:$0xff] (!%p18201_p6) }
0x223c   : > { %15812 = vadd.xlane.f32.xlu1 %v15811_v37  ;;  %v15914_v37 = vld [vmem:[#allocation16 + $0x8] sm:$0xff] (!%p18201_p6)  ;;  %18423 = vmatprep.subr.bf16.mxu0 (!%p18201_p6), %v18422_v56 }
0x22c9   : > { %v15813_v7 = vpop.xlane.xlu1 %15812 }
0x22ca   : > { %v15814_v30 = vmul.f32 0.0013020834, %v15813_v7  ;;  %v15961_v7 = vld [vmem:[#allocation16 + $0x180] sm:$0xff] (!%p18201_p6) }
0x22cc   : > { %v15815_v26 = vsub.f32 %v15801_v51, %v15814_v30  ;;  %v15816_v53 = vsub.f32 %v15802_v16, %v15814_v30  ;;  %v15817_v24 = vsub.f32 %v15803_v29, %v15814_v30  ;;  %v15818_v19 = vsub.f32 %v15804_v28, %v15814_v30 }
0x22cd   : > { %v15819_v59 = vsub.f32 %v15805_v49, %v15814_v30  ;;  %v15820_v31 = vsub.f32 %v15806_v33, %v15814_v30  ;;  %v15913_v33 = vld [vmem:[#allocation16] sm:$0xff] (!%p18201_p6)  ;;  %v15962_v30 = vld [vmem:[#allocation16 + $0x188] sm:$0xff] (!%p18201_p6) }
0x22ce   : > { %v15821_v57 = vmul.f32 %v15815_v26, %v15815_v26  ;;  %v15822_v5 = vmul.f32 %v15816_v53, %v15816_v53  ;;  %v15823_v0 = vmul.f32 %v15817_v24, %v15817_v24  ;;  %v15824_v25 = vmul.f32 %v15818_v19, %v15818_v19 }
0x22cf   : > { %v15825_v23 = vmul.f32 %v15819_v59, %v15819_v59  ;;  %v15826_v60 = vmul.f32 %v15820_v31, %v15820_v31 }
0x22d0   : > { %v15827_v58 = vadd.f32 %v15822_v5, %v15821_v57  ;;  %v15931_v57 = vld [vmem:[#allocation16 + $0x90] sm:$0xff] (!%p18201_p6) }
0x22d2   : > { %v15828_v4 = vadd.f32 %v15827_v58, %v15823_v0  ;;  %v15915_v0 = vld [vmem:[#allocation16 + $0x10] sm:$0xff] (!%p18201_p6)  ;;  %v15916_v58 = vld [vmem:[#allocation16 + $0x18] sm:$0xff] (!%p18201_p6) }
0x22d4   : > { %v15829_v12 = vadd.f32 %v15828_v4, %v15824_v25  ;;  %v18428_v25 = vpack.c.bf16 (!%p18201_p6), %v15916_v58, %v15915_v0  ;;  %v15963_v4 = vld [vmem:[#allocation16 + $0x190] sm:$0xff] (!%p18201_p6) }
0x22d6   : > { %v15830_v21 = vadd.f32 %v15829_v12, %v15825_v23  ;;  %v15964_v23 = vld [vmem:[#allocation16 + $0x198] sm:$0xff] (!%p18201_p6)  ;;  %v15947_v12 = vld [vmem:[#allocation16 + $0x110] sm:$0xff] (!%p18201_p6) }
0x22d8   : > { %v15831_v11 = vadd.f32 %v15830_v21, %v15826_v60  ;;  %v18458_v60 = vpack.c.bf16 (!%p18201_p6), %v15964_v23, %v15963_v4  ;;  %v15948_v21 = vld [vmem:[#allocation16 + $0x118] sm:$0xff] (!%p18201_p6)  ;;  %v15926_v4 = vld [vmem:[#allocation16 + $0x68] sm:$0xff] (!%p18201_p6)  ;;  %v15957_v23 = vld [vmem:[#allocation16 + $0x160] sm:$0xff] (!%p18201_p6) }
0x22da   : > { %15832 = vadd.xlane.f32.xlu1 %v15831_v11  ;;  %v15933_v11 = vld [vmem:[#allocation16 + $0xa0] sm:$0xff] (!%p18201_p6) }
0x2367   : > { %v15833_v18 = vpop.xlane.xlu1 %15832 }
0x2368   : > { %v15834_v39 = vmul.f32 0.0013020834, %v15833_v18  ;;  %v15934_v18 = vld [vmem:[#allocation16 + $0xa8] sm:$0xff] (!%p18201_p6) }
0x236a   : > { %v15835_v14 = vadd.f32 1e-05, %v15834_v39  ;;  %v18460_v39 = vpack.c.bf16 (!%p18201_p6), %v15948_v21, %v15947_v12  ;;  %v15943_v21 = vld [vmem:[#allocation16 + $0xf0] sm:$0xff] (!%p18201_p6) }
0x236c   : > { %21312 = vrsqrt.f32 %v15835_v14  ;;  %v18430_v14 = vpack.c.bf16 (!%p18201_p6), %v15934_v18, %v15933_v11  ;;  %v15944_v11 = vld [vmem:[#allocation16 + $0xf8] sm:$0xff] (!%p18201_p6)  ;;  %v15975_v18 = vld [vmem:[#allocation16 + $0x1f0] sm:$0xff] (!%p18201_p6) }
0x2376   : > { %v21313_v2 = vpop.eup %21312 }
0x2377   : > { %v15837_v46 = vmul.f32 %v21313_v2, %v15815_v26  ;;  %v15838_v3 = vmul.f32 %v21313_v2, %v15816_v53  ;;  %v15839_v27 = vmul.f32 %v21313_v2, %v15817_v24  ;;  %v15840_v62 = vmul.f32 %v21313_v2, %v15818_v19  ;;  %v15945_v24 = vld [vmem:[#allocation16 + $0x100] sm:$0xff] (!%p18201_p6)  ;;  %v15946_v19 = vld [vmem:[#allocation16 + $0x108] sm:$0xff] (!%p18201_p6) }
0x2378   : > { %v15841_v51 = vmul.f32 %v21313_v2, %v15819_v59  ;;  %v15842_v16 = vmul.f32 %v21313_v2, %v15820_v31  ;;  %v18424_v26 = vpack.c.bf16 (!%p18201_p6), %v15914_v37, %v15913_v33  ;;  %v18454_v53 = vpack.c.bf16 (!%p18201_p6), %v15962_v30, %v15961_v7  ;;  %v15932_v59 = vld [vmem:[#allocation16 + $0x98] sm:$0xff] (!%p18201_p6)  ;;  %v15923_v7 = vld [vmem:[#allocation16 + $0x50] sm:$0xff] (!%p18201_p6) }
0x2379   : > { %v15867_v29 = vmul.f32 %v15846_v44, %v15837_v46  ;;  %v15868_v40 = vmul.f32 %v15850_v50, %v15838_v3  ;;  %v15869_v10 = vmul.f32 %v15854_v48, %v15839_v27  ;;  %v15870_v41 = vmul.f32 %v15858_v63, %v15840_v62  ;;  %15912 = sbr.rel (%p18201_p6) target bundleno = 9364 (0x2494), region = 108  ;;  %v15935_v48 = vld [vmem:[#allocation16 + $0xb0] sm:$0xff] (!%p18201_p6)  ;;  %v15936_v63 = vld [vmem:[#allocation16 + $0xb8] sm:$0xff] (!%p18201_p6)  ;;  %v15937_v27 = vld [vmem:[#allocation16 + $0xc0] sm:$0xff] (!%p18201_p6) }
0x237a   : > { %v15871_v28 = vmul.f32 %v15862_v52, %v15841_v51  ;;  %v15872_v9 = vmul.f32 %v15866_v45, %v15842_v16  ;;  %v18456_v5 = vpack.c.bf16 (!%p18201_p6), %v15946_v19, %v15945_v24  ;;  %18425 = vmatpush3.bf16.msra.mxu0 (!%p18201_p6), %v18424_v26  ;;  %18455 = vmatprep.subr.bf16.mxu1 (!%p18201_p6), %v18454_v53  ;;  %v15919_v52 = vld [vmem:[#allocation16 + $0x30] sm:$0xff] (!%p18201_p6)  ;;  %v15920_v45 = vld [vmem:[#allocation16 + $0x38] sm:$0xff] (!%p18201_p6)  ;;  %v15938_v62 = vld [vmem:[#allocation16 + $0xc8] sm:$0xff] (!%p18201_p6) }
0x237b   : > { %v24733_v42 = vadd.f32 %v15876_v6, %v15867_v29  ;;  %v15898_v43 = vadd.f32 %v15880_v38, %v15868_v40  ;;  %v24735_v22 = vadd.f32 %v15884_v55, %v15869_v10  ;;  %v15900_v8 = vadd.f32 %v15888_v47, %v15870_v41  ;;  %v15967_v38 = vld [vmem:[#allocation16 + $0x1b0] sm:$0xff] (!%p18201_p6)  ;;  %v15968_v55 = vld [vmem:[#allocation16 + $0x1b8] sm:$0xff] (!%p18201_p6)  ;;  %v15970_v51 = vld [vmem:[#allocation16 + $0x1c8] sm:$0xff] (!%p18201_p6) }
0x237c   : > { %v24737_v49 = vadd.f32 %v15892_v61, %v15871_v28  ;;  %v24739_v35 = vadd.f32 %v15896_v54, %v15872_v9  ;;  %v18426_v31 = vpack.c.bf16 (!%p18201_p6), %v15932_v59, %v15931_v57  ;;  %18457 = vmatpush3.bf16.msra.mxu1 (!%p18201_p6), %v18456_v5  ;;  %v18432_v44 = vpack.c.bf16 (!%p18201_p6), %v15918_v34, %v15917_v32  ;;  %v15951_v46 = vld [vmem:[#allocation16 + $0x130] sm:$0xff] (!%p18201_p6)  ;;  %v15952_v3 = vld [vmem:[#allocation16 + $0x138] sm:$0xff] (!%p18201_p6)  ;;  %v15969_v54 = vld [vmem:[#allocation16 + $0x1c0] sm:$0xff] (!%p18201_p6) }
0x237d   : > { %15903 = vst [vmem:[#allocation2] sm:$0xff] %v24733_v42  ;;  %15904 = vst [vmem:[#allocation2 + $0x8] sm:$0xff] %v15898_v43  ;;  %16080 = vmatprep.mubr.f32.mxu0 (!%p18201_p6), %v15898_v43  ;;  %16150 = vmatprep.mubr.f32.mxu1 (!%p18201_p6), %v15900_v8  ;;  %v18462_v50 = vpack.c.bf16 (!%p18201_p6), %v15966_v17, %v15965_v36  ;;  %v18464_v6 = vpack.c.bf16 (!%p18201_p6), %v15950_v20, %v15949_v13  ;;  %v15921_v40 = vld [vmem:[#allocation16 + $0x40] sm:$0xff] (!%p18201_p6)  ;;  %v15922_v10 = vld [vmem:[#allocation16 + $0x48] sm:$0xff] (!%p18201_p6) }
0x237e   : > { %15905 = vst [vmem:[#allocation2 + $0x10] sm:$0xff] %v24735_v22  ;;  %15906 = vst [vmem:[#allocation2 + $0x18] sm:$0xff] %v15900_v8  ;;  %18427 = vmatprep.subr.bf16.mxu0 (!%p18201_p6), %v18426_v31  ;;  %18459 = vmatprep.subr.bf16.mxu1 (!%p18201_p6), %v18458_v60  ;;  %v18434_v2 = vpack.c.bf16 (!%p18201_p6), %v15936_v63, %v15935_v48  ;;  %v18466_v47 = vpack.c.bf16 (!%p18201_p6), %v15968_v55, %v15967_v38  ;;  %v15953_v41 = vld [vmem:[#allocation16 + $0x140] sm:$0xff] (!%p18201_p6)  ;;  %v15954_v9 = vld [vmem:[#allocation16 + $0x148] sm:$0xff] (!%p18201_p6) }
0x237f   : > { %15907 = vst [vmem:[#allocation2 + $0x20] sm:$0xff] %v24737_v49  ;;  %15908 = vst [vmem:[#allocation2 + $0x28] sm:$0xff] %v24739_v35  ;;  %18429 = vmatpush3.bf16.msra.mxu0 (!%p18201_p6), %v18428_v25  ;;  %v18436_v61 = vpack.c.bf16 (!%p18201_p6), %v15920_v45, %v15919_v52  ;;  %v18468_v16 = vpack.c.bf16 (!%p18201_p6), %v15952_v3, %v15951_v46  ;;  %v18438_v29 = vpack.c.bf16 (!%p18201_p6), %v15938_v62, %v15937_v27  ;;  %v15939_v43 = vld [vmem:[#allocation16 + $0xd0] sm:$0xff] (!%p18201_p6)  ;;  %v15940_v8 = vld [vmem:[#allocation16 + $0xd8] sm:$0xff] (!%p18201_p6) }
0x2380   : > { %18461 = vmatpush3.bf16.msra.mxu1 %v18460_v39  ;;  %18431 = vmatprep.subr.bf16.mxu0 %v18430_v14  ;;  %v18470_v28 = vpack.c.bf16 %v15970_v51, %v15969_v54  ;;  %v18440_v33 = vpack.c.bf16 %v15922_v10, %v15921_v40  ;;  %v18472_v56 = vpack.c.bf16 %v15954_v9, %v15953_v41  ;;  %v15924_v30 = vld [vmem:[#allocation16 + $0x58] sm:$0xff]  ;;  %v15955_v26 = vld [vmem:[#allocation16 + $0x150] sm:$0xff]  ;;  %v15941_v19 = vld [vmem:[#allocation16 + $0xe0] sm:$0xff] }
0x2381   : > { %18463 = vmatprep.subr.bf16.mxu1 %v18462_v50  ;;  %v18442_v37 = vpack.c.bf16 %v15940_v8, %v15939_v43  ;;  %v18474_v53 = vpack.c.bf16 %v15972_v1, %v15971_v15  ;;  %v15956_v24 = vld [vmem:[#allocation16 + $0x158] sm:$0xff]  ;;  %v15942_v57 = vld [vmem:[#allocation16 + $0xe8] sm:$0xff]  ;;  %v15973_v5 = vld [vmem:[#allocation16 + $0x1e0] sm:$0xff]  ;;  %v18444_v0 = vpack.c.bf16 %v15924_v30, %v15923_v7  ;;  %v18450_v34 = vpack.c.bf16 %v15944_v11, %v15943_v21 }
0x2382   : > { %v15974_v59 = vld [vmem:[#allocation16 + $0x1e8] sm:$0xff]  ;;  %v18476_v58 = vpack.c.bf16 %v15956_v24, %v15955_v26  ;;  %v18446_v31 = vpack.c.bf16 %v15942_v57, %v15941_v19  ;;  %v15925_v25 = vld [vmem:[#allocation16 + $0x60] sm:$0xff]  ;;  %v15976_v39 = vld [vmem:[#allocation16 + $0x1f8] sm:$0xff] }
0x2383   : > { %18433 = vmatpush3.bf16.msra.mxu0 %v18432_v44  ;;  %v18478_v12 = vpack.c.bf16 %v15974_v59, %v15973_v5  ;;  %v15958_v60 = vld [vmem:[#allocation16 + $0x168] sm:$0xff]  ;;  %v18448_v14 = vpack.c.bf16 %v15926_v4, %v15925_v25  ;;  %v15927_v36 = vld [vmem:[#allocation16 + $0x70] sm:$0xff]  ;;  %v15928_v17 = vld [vmem:[#allocation16 + $0x78] sm:$0xff]  ;;  %v18482_v20 = vpack.c.bf16 %v15976_v39, %v15975_v18 }
0x2384   : > { %18465 = vmatpush3.bf16.msra.mxu1 %v18464_v6  ;;  %18435 = vmatprep.subr.bf16.mxu0 %v18434_v2  ;;  %v18480_v32 = vpack.c.bf16 %v15958_v60, %v15957_v23  ;;  %v15959_v13 = vld [vmem:[#allocation16 + $0x170] sm:$0xff]  ;;  %v15960_v44 = vld [vmem:[#allocation16 + $0x178] sm:$0xff]  ;;  %v15993_v50 = vld [vmem:[#allocation16 + $0x280] sm:$0xff]  ;;  %v18452_v63 = vpack.c.bf16 %v15928_v17, %v15927_v36 }
0x2385   : > { %18467 = vmatprep.subr.bf16.mxu1 %v18466_v47  ;;  %v15994_v48 = vld [vmem:[#allocation16 + $0x288] sm:$0xff]  ;;  %v18484_v52 = vpack.c.bf16 %v15960_v44, %v15959_v13  ;;  %v15977_v2 = vld [vmem:[#allocation16 + $0x200] sm:$0xff]  ;;  %v15995_v38 = vld [vmem:[#allocation16 + $0x290] sm:$0xff] }
0x2386   : > { %v18486_v6 = vpack.c.bf16 %v15994_v48, %v15993_v50  ;;  %v15978_v45 = vld [vmem:[#allocation16 + $0x208] sm:$0xff]  ;;  %v15996_v55 = vld [vmem:[#allocation16 + $0x298] sm:$0xff]  ;;  %v15979_v3 = vld [vmem:[#allocation16 + $0x210] sm:$0xff] }
0x2387   : > { %18437 = vmatpush3.bf16.msra.mxu0 %v18436_v61  ;;  %v18488_v47 = vpack.c.bf16 %v15978_v45, %v15977_v2  ;;  %v18490_v46 = vpack.c.bf16 %v15996_v55, %v15995_v38  ;;  %v15980_v27 = vld [vmem:[#allocation16 + $0x218] sm:$0xff]  ;;  %v15997_v62 = vld [vmem:[#allocation16 + $0x2a0] sm:$0xff]  ;;  %v15998_v61 = vld [vmem:[#allocation16 + $0x2a8] sm:$0xff] }
0x2388   : > { %18469 = vmatpush3.bf16.msra.mxu1 %v18468_v16  ;;  %18439 = vmatprep.subr.bf16.mxu0 %v18438_v29  ;;  %v18492_v54 = vpack.c.bf16 %v15980_v27, %v15979_v3  ;;  %v18494_v51 = vpack.c.bf16 %v15998_v61, %v15997_v62  ;;  %v15981_v16 = vld [vmem:[#allocation16 + $0x220] sm:$0xff]  ;;  %v15982_v29 = vld [vmem:[#allocation16 + $0x228] sm:$0xff]  ;;  %v15999_v40 = vld [vmem:[#allocation16 + $0x2b0] sm:$0xff] }
0x2389   : > { %18471 = vmatprep.subr.bf16.mxu1 %v18470_v28  ;;  %v16000_v10 = vld [vmem:[#allocation16 + $0x2b8] sm:$0xff]  ;;  %v18496_v41 = vpack.c.bf16 %v15982_v29, %v15981_v16  ;;  %v15983_v9 = vld [vmem:[#allocation16 + $0x230] sm:$0xff]  ;;  %v16001_v8 = vld [vmem:[#allocation16 + $0x2c0] sm:$0xff] }
0x238a   : > { %v18498_v28 = vpack.c.bf16 %v16000_v10, %v15999_v40  ;;  %v15984_v43 = vld [vmem:[#allocation16 + $0x238] sm:$0xff]  ;;  %v15985_v1 = vld [vmem:[#allocation16 + $0x240] sm:$0xff]  ;;  %v15987_v30 = vld [vmem:[#allocation16 + $0x250] sm:$0xff] }
0x238b   : > { %18441 = vmatpush3.bf16.msra.mxu0 %v18440_v33  ;;  %v18500_v15 = vpack.c.bf16 %v15984_v43, %v15983_v9  ;;  %v15986_v33 = vld [vmem:[#allocation16 + $0x248] sm:$0xff]  ;;  %v15988_v26 = vld [vmem:[#allocation16 + $0x258] sm:$0xff]  ;;  %v15989_v5 = vld [vmem:[#allocation16 + $0x260] sm:$0xff] }
0x238c   : > { %18473 = vmatpush3.bf16.msra.mxu1 %v18472_v56  ;;  %18443 = vmatprep.subr.bf16.mxu0 %v18442_v37  ;;  %v16003_v56 = vld [vmem:[#allocation16 + $0x2d0] sm:$0xff]  ;;  %v16004_v37 = vld [vmem:[#allocation16 + $0x2d8] sm:$0xff]  ;;  %v16006_v24 = vld [vmem:[#allocation16 + $0x2e8] sm:$0xff]  ;;  %v18508_v19 = vpack.c.bf16 %v15988_v26, %v15987_v30 }
0x238d   : > { %18475 = vmatprep.subr.bf16.mxu1 %v18474_v53  ;;  %v18506_v7 = vpack.c.bf16 %v16004_v37, %v16003_v56  ;;  %v16005_v53 = vld [vmem:[#allocation16 + $0x2e0] sm:$0xff]  ;;  %v15990_v59 = vld [vmem:[#allocation16 + $0x268] sm:$0xff]  ;;  %v15991_v4 = vld [vmem:[#allocation16 + $0x270] sm:$0xff] }
0x238e   : > { %v18510_v57 = vpack.c.bf16 %v16006_v24, %v16005_v53  ;;  %v15992_v23 = vld [vmem:[#allocation16 + $0x278] sm:$0xff]  ;;  %v18202_v21 = vld [vmem:[#allocation17] ss:$0 sm:$0xff] }
0x238f   : > { %18445 = vmatpush3.bf16.msra.mxu0 %v18444_v0  ;;  %v16007_v0 = vld [vmem:[#allocation16 + $0x2f0] sm:$0xff] }
0x2390   : > { %18477 = vmatpush3.bf16.msra.mxu1 %v18476_v58  ;;  %18447 = vmatprep.subr.bf16.mxu0 %v18446_v31  ;;  %v16008_v58 = vld [vmem:[#allocation16 + $0x2f8] sm:$0xff]  ;;  %v18512_v31 = vpack.c.bf16 %v15990_v59, %v15989_v5 }
0x2391   : > { %18479 = vmatprep.subr.bf16.mxu1 %v18478_v12  ;;  %v18514_v25 = vpack.c.bf16 %v16008_v58, %v16007_v0  ;;  %v18516_v12 = vpack.c.bf16 %v15992_v23, %v15991_v4 }
0x2393   : > { %18449 = vmatpush3.bf16.msra.mxu0 %v18448_v14 }
0x2394   : > { %18481 = vmatpush3.bf16.msra.mxu1 %v18480_v32  ;;  %18451 = vmatprep.subr.bf16.mxu0 %v18450_v34 }
0x2395   : > { %18483 = vmatprep.subr.bf16.mxu1 %v18482_v20 }
0x2397   : > { %18453 = vmatpush3.bf16.msra.mxu0 %v18452_v63 }
0x2398   : > { %18485 = vmatpush3.bf16.msra.mxu1 %v18484_v52  ;;  %18487 = vmatprep.subr.bf16.mxu0 %v18486_v6 }
0x239a   : > { %16081 = vmatmul.mubr.f32.vlgmr.msra.gmra.mrb[0].mxu0 %v24733_v42  ;;  %v16002_v42 = vld [vmem:[#allocation16 + $0x2c8] sm:$0xff] }
0x239b   : > { %18489 = vmatpush3.bf16.msra.mxu0 %v18488_v47  ;;  %16151 = vmatmul.mubr.f32.vlgmr.msra.gmra.mrb[0].mxu1 %v24735_v22  ;;  %v18502_v22 = vpack.c.bf16 %v16002_v42, %v16001_v8 }
0x239c   : > { %18491 = vmatprep.subr.bf16.mxu0 %v18490_v46  ;;  %16220 = vmatprep.mubr.f32.mxu0 %v24739_v35  ;;  %v18504_v35 = vpack.c.bf16 %v15986_v33, %v15985_v1 }
0x239f   : > { %18493 = vmatpush3.bf16.msra.mxu0 %v18492_v54 }
0x23a0   : > { %18495 = vmatprep.subr.bf16.mxu0 %v18494_v51 }
0x23a3   : > { %18497 = vmatpush3.bf16.msra.mxu0 %v18496_v41 }
0x23a4   : > { %18499 = vmatprep.subr.bf16.mxu0 %v18498_v28 }
0x23a7   : > { %18501 = vmatpush3.bf16.msra.mxu0 %v18500_v15 }
0x23a8   : > { %18503 = vmatprep.subr.bf16.mxu0 %v18502_v22 }
0x23ab   : > { %18505 = vmatpush3.bf16.msra.mxu0 %v18504_v35 }
0x23ac   : > { %18507 = vmatprep.subr.bf16.mxu0 %v18506_v7 }
0x23af   : > { %18509 = vmatpush3.bf16.msra.mxu0 %v18508_v19 }
0x23b0   : > { %18511 = vmatprep.subr.bf16.mxu0 %v18510_v57 }
0x23b3   : > { %18513 = vmatpush3.bf16.msra.mxu0 %v18512_v31 }
0x23b4   : > { %18515 = vmatprep.subr.bf16.mxu0 %v18514_v25 }
0x23b7   : > { %18517 = vmatpush3.bf16.msra.mxu0 %v18516_v12 }
0x23ba   : > { %16221 = vmatmul.mubr.f32.vlgmr.msra.gmra.mrb[2].mxu0 %v24737_v49 }
0x246d   : > { %v18269_v60 = vpop.f32.mrb[0].mxu0 }
0x246e   : > { %v18270_v11 = vpop.f32.mrb[1].mxu0  ;;  %v18304_v18 = vpop.f32.mrb[0].mxu1 }
0x246f   : > { %v18271_v39 = vadd.f32 %v18270_v11, %v18269_v60  ;;  %v18305_v14 = vpop.f32.mrb[1].mxu1 }
0x2470   : > { %v18306_v32 = vadd.f32 %v18305_v14, %v18304_v18 }
0x2471   : > { %v16083_v34 = vadd.f32 %v18271_v39, %v18202_v21 }
0x2473   : > { %v16153_v36 = vadd.f32 %v18306_v32, %v16083_v34 }
0x248d   : > { %v18339_v17 = vpop.f32.mrb[2].mxu0 }
0x248e   : > { %v18340_v13 = vpop.f32.mrb[3].mxu0 }
0x248f   : > { %v18341_v20 = vadd.f32 %v18340_v13, %v18339_v17 }
0x2491   : > { %v16223_v44 = vadd.f32 %v18341_v20, %v16153_v36 }
0x2493   : > { %16226 = vst [vmem:[%s24839_s1] sm:$0xff] %v16223_v44 }
0x2494 PF: > { %s24840_s16 = sld [smem:[#allocation28_spill]]  ;;  %s24841_s13 = sld [smem:[#allocation26_spill]] }
0x2495   : > { %s24842_s14 = sld [smem:[#allocation27_spill]]  ;;  %s24843_s15 = sld [smem:[#allocation29_spill]] }
0x249a   : > { %p29_p7 = scmp.ge.s32.totalorder %s24840_s16, 8  }
0x249c   :  { %31 = sbr.rel (!%p29_p7) target bundleno = 16 (0x10), region = 173 }
0x24a3   :  { %16238 = vsyncpa [#allocation4], 1 }
0x24a4   :  { %16240 = vsyncpa [#allocation4 + $0x1], 1 }
0x24a5   :  { %16241 = vsyncpa [#allocation6], 1 }
0x24a6   :  { %16242 = vsyncpa [#allocation9], 1 }
0x24a7   :  { %16244 = vsyncpa [#allocation9 + $0x1], 1 }
0x24a8   :  { %16245 = vsyncpa [#allocation12], 1 }
0x24a9   :  { %16247 = vsyncpa [#allocation12 + $0x1], 1 }
0x24aa   :  { %16248 = vsyncpa [#allocation15], 1 }
0x24ab   :  { %16250 = vsyncpa [#allocation15 + $0x1], 1 }
0x24ac   :  { %16251 = vsyncpa [#allocation18], 1 }

</bundles_post_ra>
